<compile_context>
chip_gen: v7x
topology: tpu7x:2x2x1
jax: 0.10.0
libtpu: 0.0.40
codegen_flags: <defaults>
</compile_context>

<pallas_src>
import numpy as np
import jax
import jax.numpy as jnp
from jax.experimental import pallas as pl
from jax.experimental.pallas import tpu as pltpu

# ---- small, self-consistent config (the module's full-size constants are huge) ----
VOCAB_SIZE    = 64
VOCAB_PAD     = ((VOCAB_SIZE + 127) // 128) * 128   # lane-dense logits width (128)
EMBEDDING_DIM = 32     # d_model
HIDDEN_DIM    = 64     # dim_feedforward
NUM_HEADS     = 4      # must divide d_model
NUM_LAYERS    = 2      # encoder layers == decoder layers
MAX_SEQ_LEN   = 64
PAD_IDX       = 0
NEG_INF       = -1e9

# Order of the consolidated weight slabs fed to the fused kernel.
_PARAM_KEYS = ('e_attn_w', 'e_w1', 'e_w2', 'e_vec', 'e_b1',
               'd_attn_w', 'd_w1', 'd_w2', 'd_vec', 'd_b1',
               'fin_vec', 'fc_w', 'fc_b')

# Row indices inside the stacked per-layer vector slabs:
#   encoder e_vec (L, 9, D):  0..3 self q,k,v,o bias | 4,5 ln1 g,b | 6 ffn2 bias | 7,8 ln2 g,b
#   decoder d_vec (L,15, D):  0..3 self q,k,v,o bias | 4,5 ln1 g,b | 6..9 cross q,k,v,o bias
#                             10,11 ln2 g,b | 12 ffn2 bias | 13,14 ln3 g,b
#   fin_vec (4, D): enc_norm g,b, dec_norm g,b


# ----------------------------- fused whole-forward kernel ----------------------------
def _fwd_kernel(src_ref, tgt_ref, sbias_ref, tbias_ref,
                e_aw, e_w1, e_w2, e_vec, e_b1,
                d_aw, d_w1, d_w2, d_vec, d_b1,
                fin_vec, fc_w, fc_b,
                o_ref):
    Bc, S, D = src_ref.shape
    T = tgt_ref.shape[1]
    dh = D // NUM_HEADS
    f32, bf16 = jnp.float32, jnp.bfloat16

    def vec(ref, l, i):                    # (1, D) f32 row of a stacked (L, N, D) slab
        return ref[l, i:i + 1, :]

    def to_bf16(x):
        return x if x.dtype == bf16 else x.astype(bf16)

    def bdot(xb, wm):                      # bf16 MXU inputs, f32 accumulation
        return jnp.dot(xb, wm, preferred_element_type=f32)

    def layer_norm(x, g, b):               # x: (M, D) f32; g, b: (1, D)
        mu = jnp.mean(x, axis=-1, keepdims=True)
        xc = x - mu
        var = jnp.mean(xc * xc, axis=-1, keepdims=True)
        return xc * jax.lax.rsqrt(var + 1e-5) * g + b

    def mha(x_q, x_kv, Sq, Sk, bias_full, wq, bq, wk, bk, wv, bv, wo, bo):
        # x_q: (Bc*Sq, D); x_kv: (Bc*Sk, D) f32 or bf16; bias_full: (Bc, Sq, Sk) additive.
        # 1/sqrt(dh) is pre-folded into wq / bq.
        xqb = to_bf16(x_q)
        xkb = xqb if x_kv is x_q else to_bf16(x_kv)
        q = (bdot(xqb, wq) + bq).reshape(Bc, Sq, D).astype(bf16)
        k = (bdot(xkb, wk) + bk).reshape(Bc, Sk, D).astype(bf16)
        v = (bdot(xkb, wv) + bv).reshape(Bc, Sk, D).astype(bf16)
        heads = []
        # TODO(synk): fold the head loop into one head-batched dot_general once that
        #             lowers cleanly; at dh=8 each score dot underfills the MXU anyway.
        for h in range(NUM_HEADS):
            sl = slice(h * dh, (h + 1) * dh)
            s = jnp.einsum('bqd,bkd->bqk', q[:, :, sl], k[:, :, sl],
                           preferred_element_type=f32) + bias_full
            s = s - jnp.max(s, axis=-1, keepdims=True)
            p = jnp.exp(s)
            p = p * pl.reciprocal(jnp.sum(p, axis=-1, keepdims=True), approx=True)
            heads.append(jnp.einsum('bqk,bkd->bqd', p.astype(bf16), v[:, :, sl],
                                    preferred_element_type=f32))
        # single output-projection dot over all heads (no per-head partial dots)
        ctx = jnp.concatenate(heads, axis=-1).reshape(Bc * Sq, D)
        return bdot(to_bf16(ctx), wo) + bo

    # additive attention biases, built ONCE for the whole batch block
    sbias = sbias_ref[...]                                   # (Bc, 1, S) src key padding
    tbias = tbias_ref[...]                                   # (Bc, 1, T) tgt key padding
    enc_bias = jnp.broadcast_to(sbias, (Bc, S, S))
    crs_bias = jnp.broadcast_to(sbias, (Bc, T, S))
    ri = jax.lax.broadcasted_iota(jnp.int32, (T, T), 0)
    ci = jax.lax.broadcasted_iota(jnp.int32, (T, T), 1)
    causal = jnp.where(ci > ri, jnp.float32(NEG_INF), jnp.float32(0.0))
    dec_bias = tbias + causal[None, :, :]                    # (Bc, T, T)

    # ----------------------------- encoder -----------------------------
    x = src_ref[...].reshape(Bc * S, D)
    for l in range(NUM_LAYERS):
        a = mha(x, x, S, S, enc_bias,
                e_aw[l, 0], vec(e_vec, l, 0), e_aw[l, 1], vec(e_vec, l, 1),
                e_aw[l, 2], vec(e_vec, l, 2), e_aw[l, 3], vec(e_vec, l, 3))
        x = layer_norm(x + a, vec(e_vec, l, 4), vec(e_vec, l, 5))
        ff = jnp.maximum(bdot(to_bf16(x), e_w1[l]) + e_b1[l], 0.0)
        ff = bdot(to_bf16(ff), e_w2[l]) + vec(e_vec, l, 6)
        x = layer_norm(x + ff, vec(e_vec, l, 7), vec(e_vec, l, 8))
    mem = layer_norm(x, fin_vec[0:1, :], fin_vec[1:2, :])    # (Bc*S, D)
    mem_b = mem.astype(bf16)                                 # cast once, reused per layer

    # ----------------------------- decoder -----------------------------
    y = tgt_ref[...].reshape(Bc * T, D)
    for l in range(NUM_LAYERS):
        # masked self-attention
        a = mha(y, y, T, T, dec_bias,
                d_aw[l, 0], vec(d_vec, l, 0), d_aw[l, 1], vec(d_vec, l, 1),
                d_aw[l, 2], vec(d_vec, l, 2), d_aw[l, 3], vec(d_vec, l, 3))
        y = layer_norm(y + a, vec(d_vec, l, 4), vec(d_vec, l, 5))
        # cross-attention over encoder memory
        c = mha(y, mem_b, T, S, crs_bias,
                d_aw[l, 4], vec(d_vec, l, 6), d_aw[l, 5], vec(d_vec, l, 7),
                d_aw[l, 6], vec(d_vec, l, 8), d_aw[l, 7], vec(d_vec, l, 9))
        y = layer_norm(y + c, vec(d_vec, l, 10), vec(d_vec, l, 11))
        # feed-forward
        ff = jnp.maximum(bdot(to_bf16(y), d_w1[l]) + d_b1[l], 0.0)
        ff = bdot(to_bf16(ff), d_w2[l]) + vec(d_vec, l, 12)
        y = layer_norm(y + ff, vec(d_vec, l, 13), vec(d_vec, l, 14))
    y = layer_norm(y, fin_vec[2:3, :], fin_vec[3:4, :])

    # lane-dense (VOCAB_PAD = 128) logits store; the wrapper slices off the padding
    logits = bdot(to_bf16(y), fc_w[...]) + fc_b[...]         # (Bc*T, VOCAB_PAD)
    o_ref[...] = logits.reshape(Bc, T, VOCAB_PAD).astype(o_ref.dtype)


# ----------------------------- cost estimate ------------------------------------------
def _cost_estimate(B, S, T, inputs, out_bytes):
    D, Hd, L, Hh = EMBEDDING_DIM, HIDDEN_DIM, NUM_LAYERS, NUM_HEADS
    mm = lambda m, k, n: 2 * m * k * n
    enc_l = (4 * mm(B * S, D, D) + 2 * mm(B * S, S, D)
             + mm(B * S, D, Hd) + mm(B * S, Hd, D))
    dec_l = (4 * mm(B * T, D, D) + 2 * mm(B * T, T, D)
             + 2 * mm(B * T, D, D) + 2 * mm(B * S, D, D) + 2 * mm(B * T, S, D)
             + mm(B * T, D, Hd) + mm(B * T, Hd, D))
    flops = L * (enc_l + dec_l) + mm(B * T, D, VOCAB_PAD)
    transcendentals = L * Hh * (B * S * S + B * T * T + B * T * S)
    bytes_accessed = sum(int(a.size) * a.dtype.itemsize for a in inputs) + out_bytes
    return pl.CostEstimate(flops=int(flops), transcendentals=int(transcendentals),
                           bytes_accessed=int(bytes_accessed))


# ----------------------------- wrapper ------------------------------------------------
def transformer_forward(packed, src, tgt, *, batch_blocks=1):
    """Full transformer forward in one fused pallas_call.

    batch_blocks=1: whole batch in a single grid step (v5e/v6e, one TensorCore).
    batch_blocks=2: on v7x the "parallel" grid axis gives each TensorCore half
    the batch as one large-M slab.
    """
    B, S = src.shape
    T = tgt.shape[1]
    D = EMBEDDING_DIM
    assert B % batch_blocks == 0
    Bc = B // batch_blocks
    emb_scale = float(np.sqrt(D))
    pe = packed['pe']

    # embedding * sqrt(d_model) + positional encoding (gather in plain JAX);
    # dropout == identity (eval mode)
    src_x = (packed['emb'][src] * emb_scale + pe[:S][None, :, :]).astype(jnp.float32)
    tgt_x = (packed['emb'][tgt] * emb_scale + pe[:T][None, :, :]).astype(jnp.float32)

    # additive key-padding rows; the causal part of the tgt mask is built in-kernel
    src_bias = jnp.where(src == PAD_IDX, NEG_INF, 0.0).astype(jnp.float32)[:, None, :]
    tgt_bias = jnp.where(tgt == PAD_IDX, NEG_INF, 0.0).astype(jnp.float32)[:, None, :]

    acts = [src_x, tgt_x, src_bias, tgt_bias]
    weights = [packed[k] for k in _PARAM_KEYS]

    def act_spec(a):                       # split only the batch dim across the grid
        nd = a.ndim
        return pl.BlockSpec((Bc,) + a.shape[1:],
                            lambda i, nd=nd: (i,) + (0,) * (nd - 1))

    def w_spec(a):                         # whole slab resident, same block every step
        nd = a.ndim
        return pl.BlockSpec(a.shape, lambda i, nd=nd: (0,) * nd)

    out = pl.pallas_call(
        _fwd_kernel,
        grid=(batch_blocks,),
        out_shape=jax.ShapeDtypeStruct((B, T, VOCAB_PAD), jnp.float32),
        in_specs=[act_spec(a) for a in acts] + [w_spec(w) for w in weights],
        out_specs=pl.BlockSpec((Bc, T, VOCAB_PAD), lambda i: (i, 0, 0)),
        compiler_params=pltpu.CompilerParams(
            dimension_semantics=("parallel",),
            vmem_limit_bytes=32 * 1024 * 1024),
        cost_estimate=_cost_estimate(B, S, T, acts + weights, B * T * VOCAB_PAD * 4),
    )(*acts, *weights)
    return out[:, :, :VOCAB_SIZE]


# ----------------------------- parameter packing -------------------------------------
def pack_params(params):
    """Fold 1/sqrt(dh) into Wq/bq, stack per-layer weights into a handful of slabs,
    cast matmul weights to bf16, and pad the fc projection to a lane-dense width."""
    D = EMBEDDING_DIM
    dh = D // NUM_HEADS
    qs = 1.0 / float(np.sqrt(dh))
    bf16 = jnp.bfloat16
    enc, dec = params['enc'], params['dec']

    def attn_w(ap):          # (4, D, D): q*qs, k, v, o
        return jnp.stack([ap['q']['w'] * qs, ap['k']['w'], ap['v']['w'], ap['o']['w']])

    def dec_attn_w(p):       # (8, D, D): self q*qs,k,v,o then cross q*qs,k,v,o
        return jnp.concatenate([attn_w(p['self']), attn_w(p['cross'])], axis=0)

    def attn_b(ap):          # list of 4 (D,) vectors: q*qs, k, v, o
        return [ap['q']['b'] * qs, ap['k']['b'], ap['v']['b'], ap['o']['b']]

    def enc_vec(p):          # (9, D)
        return jnp.stack(attn_b(p['self'])
                         + [p['ln1']['g'], p['ln1']['b'], p['ffn2']['b'],
                            p['ln2']['g'], p['ln2']['b']])

    def dec_vec(p):          # (15, D)
        return jnp.stack(attn_b(p['self'])
                         + [p['ln1']['g'], p['ln1']['b']]
                         + attn_b(p['cross'])
                         + [p['ln2']['g'], p['ln2']['b'], p['ffn2']['b'],
                            p['ln3']['g'], p['ln3']['b']])

    fc_w = jnp.pad(params['fc']['w'], ((0, 0), (0, VOCAB_PAD - VOCAB_SIZE)))
    fc_b = jnp.pad(params['fc']['b'], (0, VOCAB_PAD - VOCAB_SIZE))[None, :]

    return {
        'e_attn_w': jnp.stack([attn_w(p['self']) for p in enc]).astype(bf16),
        'e_w1':     jnp.stack([p['ffn1']['w'] for p in enc]).astype(bf16),
        'e_w2':     jnp.stack([p['ffn2']['w'] for p in enc]).astype(bf16),
        'e_vec':    jnp.stack([enc_vec(p) for p in enc]),
        'e_b1':     jnp.stack([p['ffn1']['b'][None, :] for p in enc]),
        'd_attn_w': jnp.stack([dec_attn_w(p) for p in dec]).astype(bf16),
        'd_w1':     jnp.stack([p['ffn1']['w'] for p in dec]).astype(bf16),
        'd_w2':     jnp.stack([p['ffn2']['w'] for p in dec]).astype(bf16),
        'd_vec':    jnp.stack([dec_vec(p) for p in dec]),
        'd_b1':     jnp.stack([p['ffn1']['b'][None, :] for p in dec]),
        'fin_vec':  jnp.stack([params['enc_norm']['g'], params['enc_norm']['b'],
                               params['dec_norm']['g'], params['dec_norm']['b']]),
        'fc_w':     fc_w.astype(bf16),
        'fc_b':     fc_b.astype(jnp.float32),
        'emb':      params['emb'],
        'pe':       params['pe'],
    }


# ----------------------------- deterministic parameter init --------------------------
def make_pe(max_len, d):
    pos = np.arange(max_len, dtype=np.float32)[:, None]
    div = np.exp(np.arange(0, d, 2, dtype=np.float32) * (-np.log(10000.0) / d))
    pe = np.zeros((max_len, d), np.float32)
    pe[:, 0::2] = np.sin(pos * div)
    pe[:, 1::2] = np.cos(pos * div)
    return jnp.asarray(pe)


def init_params(key):
    it = iter(jax.random.split(key, 256))

    def lin(din, dout):
        return {'w': jax.random.normal(next(it), (din, dout), jnp.float32) * 0.05,
                'b': jnp.zeros((dout,), jnp.float32)}

    def attn():
        D = EMBEDDING_DIM
        return {'q': lin(D, D), 'k': lin(D, D), 'v': lin(D, D), 'o': lin(D, D)}

    def ln():
        return {'g': jnp.ones((EMBEDDING_DIM,), jnp.float32),
                'b': jnp.zeros((EMBEDDING_DIM,), jnp.float32)}

    def enc_layer():
        return {'self': attn(), 'ln1': ln(),
                'ffn1': lin(EMBEDDING_DIM, HIDDEN_DIM),
                'ffn2': lin(HIDDEN_DIM, EMBEDDING_DIM), 'ln2': ln()}

    def dec_layer():
        return {'self': attn(), 'ln1': ln(), 'cross': attn(), 'ln2': ln(),
                'ffn1': lin(EMBEDDING_DIM, HIDDEN_DIM),
                'ffn2': lin(HIDDEN_DIM, EMBEDDING_DIM), 'ln3': ln()}

    return {
        'emb': jax.random.normal(next(it), (VOCAB_SIZE, EMBEDDING_DIM), jnp.float32) * 0.05,
        'pe': make_pe(MAX_SEQ_LEN, EMBEDDING_DIM),
        'enc': [enc_layer() for _ in range(NUM_LAYERS)],
        'dec': [dec_layer() for _ in range(NUM_LAYERS)],
        'enc_norm': ln(),
        'dec_norm': ln(),
        'fc': lin(EMBEDDING_DIM, VOCAB_SIZE),
    }


# ----------------------------- run ---------------------------------------------------
if __name__ == "__main__":
    key = jax.random.PRNGKey(0)
    pkey, skey, tkey = jax.random.split(key, 3)
    params = init_params(pkey)
    packed = pack_params(params)          # fusing / stacking / bf16 cast done once

    B, S, T = 2, 8, 8
    src = jax.random.randint(skey, (B, S), 2, VOCAB_SIZE, dtype=jnp.int32)
    tgt = jax.random.randint(tkey, (B, T), 2, VOCAB_SIZE, dtype=jnp.int32)
    # a bit of trailing padding (never at position 0, so no fully-masked rows)
    src = src.at[:, -2:].set(PAD_IDX)
    tgt = tgt.at[0, -1].set(PAD_IDX)

    logits = jax.jit(transformer_forward)(packed, src, tgt)
    logits = jax.block_until_ready(logits)

    assert logits.shape == (B, T, VOCAB_SIZE), logits.shape
    assert logits.dtype == jnp.float32
    assert bool(jnp.all(jnp.isfinite(logits)))
    print("KERNEL_OK")
</pallas_src>

<mosaic_0001>
module attributes {stable_mosaic.version = 11 : i64} {
  func.func @_fwd_kernel(%arg0: i32, %arg1: memref<2x8x32xf32, #tpu.memory_space<vmem>>, %arg2: memref<2x8x32xf32, #tpu.memory_space<vmem>>, %arg3: memref<2x1x8xf32, #tpu.memory_space<vmem>>, %arg4: memref<2x1x8xf32, #tpu.memory_space<vmem>>, %arg5: memref<2x4x32x32xbf16, #tpu.memory_space<vmem>>, %arg6: memref<2x32x64xbf16, #tpu.memory_space<vmem>>, %arg7: memref<2x64x32xbf16, #tpu.memory_space<vmem>>, %arg8: memref<2x9x32xf32, #tpu.memory_space<vmem>>, %arg9: memref<2x1x64xf32, #tpu.memory_space<vmem>>, %arg10: memref<2x8x32x32xbf16, #tpu.memory_space<vmem>>, %arg11: memref<2x32x64xbf16, #tpu.memory_space<vmem>>, %arg12: memref<2x64x32xbf16, #tpu.memory_space<vmem>>, %arg13: memref<2x15x32xf32, #tpu.memory_space<vmem>>, %arg14: memref<2x1x64xf32, #tpu.memory_space<vmem>>, %arg15: memref<4x32xf32, #tpu.memory_space<vmem>>, %arg16: memref<32x128xbf16, #tpu.memory_space<vmem>>, %arg17: memref<1x128xf32, #tpu.memory_space<vmem>>, %arg18: memref<2x8x128xf32, #tpu.memory_space<vmem>>) attributes {dimension_semantics = [#tpu.dimension_semantics<parallel>], iteration_bounds = array<i64: 1>, scalar_prefetch = 0 : i64, scratch_operands = 0 : i64, tpu.core_type = #tpu.core_type<tc>, window_params = [{transform_indices = @transform_0, window_bounds = array<i64: 2, 8, 32>}, {transform_indices = @transform_1, window_bounds = array<i64: 2, 8, 32>}, {transform_indices = @transform_2, window_bounds = array<i64: 2, 1, 8>}, {transform_indices = @transform_3, window_bounds = array<i64: 2, 1, 8>}, {pipeline_mode = #tpu.pipeline_mode<synchronous>, transform_indices = @transform_4, window_bounds = array<i64: 2, 4, 32, 32>}, {pipeline_mode = #tpu.pipeline_mode<synchronous>, transform_indices = @transform_5, window_bounds = array<i64: 2, 32, 64>}, {pipeline_mode = #tpu.pipeline_mode<synchronous>, transform_indices = @transform_6, window_bounds = array<i64: 2, 64, 32>}, {pipeline_mode = #tpu.pipeline_mode<synchronous>, transform_indices = @transform_7, window_bounds = array<i64: 2, 9, 32>}, {pipeline_mode = #tpu.pipeline_mode<synchronous>, transform_indices = @transform_8, window_bounds = array<i64: 2, 1, 64>}, {pipeline_mode = #tpu.pipeline_mode<synchronous>, transform_indices = @transform_9, window_bounds = array<i64: 2, 8, 32, 32>}, {pipeline_mode = #tpu.pipeline_mode<synchronous>, transform_indices = @transform_10, window_bounds = array<i64: 2, 32, 64>}, {pipeline_mode = #tpu.pipeline_mode<synchronous>, transform_indices = @transform_11, window_bounds = array<i64: 2, 64, 32>}, {pipeline_mode = #tpu.pipeline_mode<synchronous>, transform_indices = @transform_12, window_bounds = array<i64: 2, 15, 32>}, {pipeline_mode = #tpu.pipeline_mode<synchronous>, transform_indices = @transform_13, window_bounds = array<i64: 2, 1, 64>}, {pipeline_mode = #tpu.pipeline_mode<synchronous>, transform_indices = @transform_14, window_bounds = array<i64: 4, 32>}, {pipeline_mode = #tpu.pipeline_mode<synchronous>, transform_indices = @transform_15, window_bounds = array<i64: 32, 128>}, {pipeline_mode = #tpu.pipeline_mode<synchronous>, transform_indices = @transform_16, window_bounds = array<i64: 1, 128>}, {transform_indices = @transform_17, window_bounds = array<i64: 2, 8, 128>}]} {
    %c0 = arith.constant 0 : index
    %c0_0 = arith.constant 0 : index
    %c0_1 = arith.constant 0 : index
    %0 = vector.load %arg3[%c0, %c0_0, %c0_1] : memref<2x1x8xf32, #tpu.memory_space<vmem>>, vector<2x1x8xf32>
    %c0_2 = arith.constant 0 : index
    %c0_3 = arith.constant 0 : index
    %c0_4 = arith.constant 0 : index
    %1 = vector.load %arg4[%c0_2, %c0_3, %c0_4] : memref<2x1x8xf32, #tpu.memory_space<vmem>>, vector<2x1x8xf32>
    %2 = vector.shape_cast %0 : vector<2x1x8xf32> to vector<2x1x8xf32>
    %3 = vector.broadcast %2 : vector<2x1x8xf32> to vector<2x8x8xf32>
    %4 = vector.shape_cast %0 : vector<2x1x8xf32> to vector<2x1x8xf32>
    %5 = vector.broadcast %4 : vector<2x1x8xf32> to vector<2x8x8xf32>
    %6 = tpu.iota {dimensions = array<i32: 0>} : vector<8x8xi32>
    %7 = tpu.iota {dimensions = array<i32: 1>} : vector<8x8xi32>
    %8 = arith.cmpi sgt, %7, %6 : vector<8x8xi32>
    %cst = arith.constant -1.000000e+09 : f32
    %cst_5 = arith.constant 0.000000e+00 : f32
    %9 = vector.broadcast %cst : f32 to vector<8x8xf32>
    %10 = vector.broadcast %cst_5 : f32 to vector<8x8xf32>
    %11 = arith.select %8, %9, %10 : vector<8x8xi1>, vector<8x8xf32>
    %12 = vector.shape_cast %11 : vector<8x8xf32> to vector<1x8x8xf32>
    %13 = vector.broadcast %1 : vector<2x1x8xf32> to vector<2x8x8xf32>
    %14 = vector.broadcast %12 : vector<1x8x8xf32> to vector<2x8x8xf32>
    %15 = arith.addf %13, %14 : vector<2x8x8xf32>
    %c0_6 = arith.constant 0 : index
    %c0_7 = arith.constant 0 : index
    %c0_8 = arith.constant 0 : index
    %16 = vector.load %arg1[%c0_6, %c0_7, %c0_8] : memref<2x8x32xf32, #tpu.memory_space<vmem>>, vector<2x8x32xf32>
    %17 = vector.shape_cast %16 : vector<2x8x32xf32> to vector<16x32xf32>
    %c0_9 = arith.constant 0 : index
    %c0_10 = arith.constant 0 : index
    %c0_11 = arith.constant 0 : index
    %c0_12 = arith.constant 0 : index
    %18 = vector.load %arg5[%c0_9, %c0_10, %c0_11, %c0_12] : memref<2x4x32x32xbf16, #tpu.memory_space<vmem>>, vector<1x1x32x32xbf16>
    %19 = vector.shape_cast %18 : vector<1x1x32x32xbf16> to vector<32x32xbf16>
    %c0_13 = arith.constant 0 : index
    %c0_14 = arith.constant 0 : index
    %c0_15 = arith.constant 0 : index
    %20 = vector.load %arg8[%c0_13, %c0_14, %c0_15] : memref<2x9x32xf32, #tpu.memory_space<vmem>>, vector<1x1x32xf32>
    %21 = vector.shape_cast %20 : vector<1x1x32xf32> to vector<1x32xf32>
    %c0_16 = arith.constant 0 : index
    %c1 = arith.constant 1 : index
    %c0_17 = arith.constant 0 : index
    %c0_18 = arith.constant 0 : index
    %22 = vector.load %arg5[%c0_16, %c1, %c0_17, %c0_18] : memref<2x4x32x32xbf16, #tpu.memory_space<vmem>>, vector<1x1x32x32xbf16>
    %23 = vector.shape_cast %22 : vector<1x1x32x32xbf16> to vector<32x32xbf16>
    %c0_19 = arith.constant 0 : index
    %c1_20 = arith.constant 1 : index
    %c0_21 = arith.constant 0 : index
    %24 = vector.load %arg8[%c0_19, %c1_20, %c0_21] : memref<2x9x32xf32, #tpu.memory_space<vmem>>, vector<1x1x32xf32>
    %25 = vector.shape_cast %24 : vector<1x1x32xf32> to vector<1x32xf32>
    %c0_22 = arith.constant 0 : index
    %c2 = arith.constant 2 : index
    %c0_23 = arith.constant 0 : index
    %c0_24 = arith.constant 0 : index
    %26 = vector.load %arg5[%c0_22, %c2, %c0_23, %c0_24] : memref<2x4x32x32xbf16, #tpu.memory_space<vmem>>, vector<1x1x32x32xbf16>
    %27 = vector.shape_cast %26 : vector<1x1x32x32xbf16> to vector<32x32xbf16>
    %c0_25 = arith.constant 0 : index
    %c2_26 = arith.constant 2 : index
    %c0_27 = arith.constant 0 : index
    %28 = vector.load %arg8[%c0_25, %c2_26, %c0_27] : memref<2x9x32xf32, #tpu.memory_space<vmem>>, vector<1x1x32xf32>
    %29 = vector.shape_cast %28 : vector<1x1x32xf32> to vector<1x32xf32>
    %c0_28 = arith.constant 0 : index
    %c3 = arith.constant 3 : index
    %c0_29 = arith.constant 0 : index
    %c0_30 = arith.constant 0 : index
    %30 = vector.load %arg5[%c0_28, %c3, %c0_29, %c0_30] : memref<2x4x32x32xbf16, #tpu.memory_space<vmem>>, vector<1x1x32x32xbf16>
    %31 = vector.shape_cast %30 : vector<1x1x32x32xbf16> to vector<32x32xbf16>
    %c0_31 = arith.constant 0 : index
    %c3_32 = arith.constant 3 : index
    %c0_33 = arith.constant 0 : index
    %32 = vector.load %arg8[%c0_31, %c3_32, %c0_33] : memref<2x9x32xf32, #tpu.memory_space<vmem>>, vector<1x1x32xf32>
    %33 = vector.shape_cast %32 : vector<1x1x32xf32> to vector<1x32xf32>
    %34 = arith.truncf %17 : vector<16x32xf32> to vector<16x32xbf16>
    %cst_34 = arith.constant dense<0.000000e+00> : vector<16x32xf32>
    %35 = tpu.matmul %34, %19, %cst_34 {dimension_numbers = #tpu.dot_dimension_numbers<[1], [0], [0], [1], [0, 0, 1, 1], [], []>} : vector<16x32xbf16>, vector<32x32xbf16>, vector<16x32xf32> -> vector<16x32xf32>
    %36 = vector.broadcast %21 : vector<1x32xf32> to vector<16x32xf32>
    %37 = arith.addf %35, %36 : vector<16x32xf32>
    %38 = vector.shape_cast %37 : vector<16x32xf32> to vector<2x8x32xf32>
    %39 = arith.truncf %38 : vector<2x8x32xf32> to vector<2x8x32xbf16>
    %cst_35 = arith.constant dense<0.000000e+00> : vector<16x32xf32>
    %40 = tpu.matmul %34, %23, %cst_35 {dimension_numbers = #tpu.dot_dimension_numbers<[1], [0], [0], [1], [0, 0, 1, 1], [], []>} : vector<16x32xbf16>, vector<32x32xbf16>, vector<16x32xf32> -> vector<16x32xf32>
    %41 = vector.broadcast %25 : vector<1x32xf32> to vector<16x32xf32>
    %42 = arith.addf %40, %41 : vector<16x32xf32>
    %43 = vector.shape_cast %42 : vector<16x32xf32> to vector<2x8x32xf32>
    %44 = arith.truncf %43 : vector<2x8x32xf32> to vector<2x8x32xbf16>
    %cst_36 = arith.constant dense<0.000000e+00> : vector<16x32xf32>
    %45 = tpu.matmul %34, %27, %cst_36 {dimension_numbers = #tpu.dot_dimension_numbers<[1], [0], [0], [1], [0, 0, 1, 1], [], []>} : vector<16x32xbf16>, vector<32x32xbf16>, vector<16x32xf32> -> vector<16x32xf32>
    %46 = vector.broadcast %29 : vector<1x32xf32> to vector<16x32xf32>
    %47 = arith.addf %45, %46 : vector<16x32xf32>
    %48 = vector.shape_cast %47 : vector<16x32xf32> to vector<2x8x32xf32>
    %49 = arith.truncf %48 : vector<2x8x32xf32> to vector<2x8x32xbf16>
    %50 = vector.extract_strided_slice %39 {offsets = [0, 0, 0], sizes = [2, 8, 8], strides = [1, 1, 1]} : vector<2x8x32xbf16> to vector<2x8x8xbf16>
    %51 = vector.extract_strided_slice %44 {offsets = [0, 0, 0], sizes = [2, 8, 8], strides = [1, 1, 1]} : vector<2x8x32xbf16> to vector<2x8x8xbf16>
    "tpu.trace_start"() <{level = 10 : i32, message = "bqd,bkd->bqk"}> : () -> ()
    %cst_37 = arith.constant dense<0.000000e+00> : vector<2x8x8xf32>
    %52 = tpu.matmul %50, %51, %cst_37 {dimension_numbers = #tpu.dot_dimension_numbers<[2], [2], [1], [1], [0, 0, 0, 1, 1, 1], [0], [0]>} : vector<2x8x8xbf16>, vector<2x8x8xbf16>, vector<2x8x8xf32> -> vector<2x8x8xf32>
    "tpu.trace_stop"() : () -> ()
    %53 = arith.addf %52, %3 : vector<2x8x8xf32>
    %cst_38 = arith.constant dense<0xFF800000> : vector<2x8xf32>
    %54 = vector.multi_reduction <maximumf>, %53, %cst_38 [2] : vector<2x8x8xf32> to vector<2x8xf32>
    %55 = vector.shape_cast %54 : vector<2x8xf32> to vector<2x8x1xf32>
    %56 = vector.broadcast %55 : vector<2x8x1xf32> to vector<2x8x8xf32>
    %57 = arith.subf %53, %56 : vector<2x8x8xf32>
    %58 = math.exp %57 : vector<2x8x8xf32>
    %cst_39 = arith.constant dense<0.000000e+00> : vector<2x8xf32>
    %59 = vector.multi_reduction <add>, %58, %cst_39 [2] : vector<2x8x8xf32> to vector<2x8xf32>
    %60 = vector.shape_cast %59 : vector<2x8xf32> to vector<2x8x1xf32>
    %61 = tpu.reciprocal %60 {approx = true} : vector<2x8x1xf32> -> vector<2x8x1xf32>
    %62 = vector.broadcast %61 : vector<2x8x1xf32> to vector<2x8x8xf32>
    %63 = arith.mulf %58, %62 : vector<2x8x8xf32>
    %64 = arith.truncf %63 : vector<2x8x8xf32> to vector<2x8x8xbf16>
    %65 = vector.extract_strided_slice %49 {offsets = [0, 0, 0], sizes = [2, 8, 8], strides = [1, 1, 1]} : vector<2x8x32xbf16> to vector<2x8x8xbf16>
    "tpu.trace_start"() <{level = 10 : i32, message = "bqk,bkd->bqd"}> : () -> ()
    %cst_40 = arith.constant dense<0.000000e+00> : vector<2x8x8xf32>
    %66 = tpu.matmul %64, %65, %cst_40 {dimension_numbers = #tpu.dot_dimension_numbers<[2], [1], [1], [2], [0, 0, 0, 1, 1, 2], [0], [0]>} : vector<2x8x8xbf16>, vector<2x8x8xbf16>, vector<2x8x8xf32> -> vector<2x8x8xf32>
    "tpu.trace_stop"() : () -> ()
    %67 = vector.extract_strided_slice %39 {offsets = [0, 0, 8], sizes = [2, 8, 8], strides = [1, 1, 1]} : vector<2x8x32xbf16> to vector<2x8x8xbf16>
    %68 = vector.extract_strided_slice %44 {offsets = [0, 0, 8], sizes = [2, 8, 8], strides = [1, 1, 1]} : vector<2x8x32xbf16> to vector<2x8x8xbf16>
    "tpu.trace_start"() <{level = 10 : i32, message = "bqd,bkd->bqk"}> : () -> ()
    %cst_41 = arith.constant dense<0.000000e+00> : vector<2x8x8xf32>
    %69 = tpu.matmul %67, %68, %cst_41 {dimension_numbers = #tpu.dot_dimension_numbers<[2], [2], [1], [1], [0, 0, 0, 1, 1, 1], [0], [0]>} : vector<2x8x8xbf16>, vector<2x8x8xbf16>, vector<2x8x8xf32> -> vector<2x8x8xf32>
    "tpu.trace_stop"() : () -> ()
    %70 = arith.addf %69, %3 : vector<2x8x8xf32>
    %cst_42 = arith.constant dense<0xFF800000> : vector<2x8xf32>
    %71 = vector.multi_reduction <maximumf>, %70, %cst_42 [2] : vector<2x8x8xf32> to vector<2x8xf32>
    %72 = vector.shape_cast %71 : vector<2x8xf32> to vector<2x8x1xf32>
    %73 = vector.broadcast %72 : vector<2x8x1xf32> to vector<2x8x8xf32>
    %74 = arith.subf %70, %73 : vector<2x8x8xf32>
    %75 = math.exp %74 : vector<2x8x8xf32>
    %cst_43 = arith.constant dense<0.000000e+00> : vector<2x8xf32>
    %76 = vector.multi_reduction <add>, %75, %cst_43 [2] : vector<2x8x8xf32> to vector<2x8xf32>
    %77 = vector.shape_cast %76 : vector<2x8xf32> to vector<2x8x1xf32>
    %78 = tpu.reciprocal %77 {approx = true} : vector<2x8x1xf32> -> vector<2x8x1xf32>
    %79 = vector.broadcast %78 : vector<2x8x1xf32> to vector<2x8x8xf32>
    %80 = arith.mulf %75, %79 : vector<2x8x8xf32>
    %81 = arith.truncf %80 : vector<2x8x8xf32> to vector<2x8x8xbf16>
    %82 = vector.extract_strided_slice %49 {offsets = [0, 0, 8], sizes = [2, 8, 8], strides = [1, 1, 1]} : vector<2x8x32xbf16> to vector<2x8x8xbf16>
    "tpu.trace_start"() <{level = 10 : i32, message = "bqk,bkd->bqd"}> : () -> ()
    %cst_44 = arith.constant dense<0.000000e+00> : vector<2x8x8xf32>
    %83 = tpu.matmul %81, %82, %cst_44 {dimension_numbers = #tpu.dot_dimension_numbers<[2], [1], [1], [2], [0, 0, 0, 1, 1, 2], [0], [0]>} : vector<2x8x8xbf16>, vector<2x8x8xbf16>, vector<2x8x8xf32> -> vector<2x8x8xf32>
    "tpu.trace_stop"() : () -> ()
    %84 = vector.extract_strided_slice %39 {offsets = [0, 0, 16], sizes = [2, 8, 8], strides = [1, 1, 1]} : vector<2x8x32xbf16> to vector<2x8x8xbf16>
    %85 = vector.extract_strided_slice %44 {offsets = [0, 0, 16], sizes = [2, 8, 8], strides = [1, 1, 1]} : vector<2x8x32xbf16> to vector<2x8x8xbf16>
    "tpu.trace_start"() <{level = 10 : i32, message = "bqd,bkd->bqk"}> : () -> ()
    %cst_45 = arith.constant dense<0.000000e+00> : vector<2x8x8xf32>
    %86 = tpu.matmul %84, %85, %cst_45 {dimension_numbers = #tpu.dot_dimension_numbers<[2], [2], [1], [1], [0, 0, 0, 1, 1, 1], [0], [0]>} : vector<2x8x8xbf16>, vector<2x8x8xbf16>, vector<2x8x8xf32> -> vector<2x8x8xf32>
    "tpu.trace_stop"() : () -> ()
    %87 = arith.addf %86, %3 : vector<2x8x8xf32>
    %cst_46 = arith.constant dense<0xFF800000> : vector<2x8xf32>
    %88 = vector.multi_reduction <maximumf>, %87, %cst_46 [2] : vector<2x8x8xf32> to vector<2x8xf32>
    %89 = vector.shape_cast %88 : vector<2x8xf32> to vector<2x8x1xf32>
    %90 = vector.broadcast %89 : vector<2x8x1xf32> to vector<2x8x8xf32>
    %91 = arith.subf %87, %90 : vector<2x8x8xf32>
    %92 = math.exp %91 : vector<2x8x8xf32>
    %cst_47 = arith.constant dense<0.000000e+00> : vector<2x8xf32>
    %93 = vector.multi_reduction <add>, %92, %cst_47 [2] : vector<2x8x8xf32> to vector<2x8xf32>
    %94 = vector.shape_cast %93 : vector<2x8xf32> to vector<2x8x1xf32>
    %95 = tpu.reciprocal %94 {approx = true} : vector<2x8x1xf32> -> vector<2x8x1xf32>
    %96 = vector.broadcast %95 : vector<2x8x1xf32> to vector<2x8x8xf32>
    %97 = arith.mulf %92, %96 : vector<2x8x8xf32>
    %98 = arith.truncf %97 : vector<2x8x8xf32> to vector<2x8x8xbf16>
    %99 = vector.extract_strided_slice %49 {offsets = [0, 0, 16], sizes = [2, 8, 8], strides = [1, 1, 1]} : vector<2x8x32xbf16> to vector<2x8x8xbf16>
    "tpu.trace_start"() <{level = 10 : i32, message = "bqk,bkd->bqd"}> : () -> ()
    %cst_48 = arith.constant dense<0.000000e+00> : vector<2x8x8xf32>
    %100 = tpu.matmul %98, %99, %cst_48 {dimension_numbers = #tpu.dot_dimension_numbers<[2], [1], [1], [2], [0, 0, 0, 1, 1, 2], [0], [0]>} : vector<2x8x8xbf16>, vector<2x8x8xbf16>, vector<2x8x8xf32> -> vector<2x8x8xf32>
    "tpu.trace_stop"() : () -> ()
    %101 = vector.extract_strided_slice %39 {offsets = [0, 0, 24], sizes = [2, 8, 8], strides = [1, 1, 1]} : vector<2x8x32xbf16> to vector<2x8x8xbf16>
    %102 = vector.extract_strided_slice %44 {offsets = [0, 0, 24], sizes = [2, 8, 8], strides = [1, 1, 1]} : vector<2x8x32xbf16> to vector<2x8x8xbf16>
    "tpu.trace_start"() <{level = 10 : i32, message = "bqd,bkd->bqk"}> : () -> ()
    %cst_49 = arith.constant dense<0.000000e+00> : vector<2x8x8xf32>
    %103 = tpu.matmul %101, %102, %cst_49 {dimension_numbers = #tpu.dot_dimension_numbers<[2], [2], [1], [1], [0, 0, 0, 1, 1, 1], [0], [0]>} : vector<2x8x8xbf16>, vector<2x8x8xbf16>, vector<2x8x8xf32> -> vector<2x8x8xf32>
    "tpu.trace_stop"() : () -> ()
    %104 = arith.addf %103, %3 : vector<2x8x8xf32>
    %cst_50 = arith.constant dense<0xFF800000> : vector<2x8xf32>
    %105 = vector.multi_reduction <maximumf>, %104, %cst_50 [2] : vector<2x8x8xf32> to vector<2x8xf32>
    %106 = vector.shape_cast %105 : vector<2x8xf32> to vector<2x8x1xf32>
    %107 = vector.broadcast %106 : vector<2x8x1xf32> to vector<2x8x8xf32>
    %108 = arith.subf %104, %107 : vector<2x8x8xf32>
    %109 = math.exp %108 : vector<2x8x8xf32>
    %cst_51 = arith.constant dense<0.000000e+00> : vector<2x8xf32>
    %110 = vector.multi_reduction <add>, %109, %cst_51 [2] : vector<2x8x8xf32> to vector<2x8xf32>
    %111 = vector.shape_cast %110 : vector<2x8xf32> to vector<2x8x1xf32>
    %112 = tpu.reciprocal %111 {approx = true} : vector<2x8x1xf32> -> vector<2x8x1xf32>
    %113 = vector.broadcast %112 : vector<2x8x1xf32> to vector<2x8x8xf32>
    %114 = arith.mulf %109, %113 : vector<2x8x8xf32>
    %115 = arith.truncf %114 : vector<2x8x8xf32> to vector<2x8x8xbf16>
    %116 = vector.extract_strided_slice %49 {offsets = [0, 0, 24], sizes = [2, 8, 8], strides = [1, 1, 1]} : vector<2x8x32xbf16> to vector<2x8x8xbf16>
    "tpu.trace_start"() <{level = 10 : i32, message = "bqk,bkd->bqd"}> : () -> ()
    %cst_52 = arith.constant dense<0.000000e+00> : vector<2x8x8xf32>
    %117 = tpu.matmul %115, %116, %cst_52 {dimension_numbers = #tpu.dot_dimension_numbers<[2], [1], [1], [2], [0, 0, 0, 1, 1, 2], [0], [0]>} : vector<2x8x8xbf16>, vector<2x8x8xbf16>, vector<2x8x8xf32> -> vector<2x8x8xf32>
    "tpu.trace_stop"() : () -> ()
    %118 = tpu.concatenate %66, %83, %100, %117 in 2 : vector<2x8x8xf32>, vector<2x8x8xf32>, vector<2x8x8xf32>, vector<2x8x8xf32> -> vector<2x8x32xf32>
    %119 = vector.shape_cast %118 : vector<2x8x32xf32> to vector<16x32xf32>
    %120 = arith.truncf %119 : vector<16x32xf32> to vector<16x32xbf16>
    %cst_53 = arith.constant dense<0.000000e+00> : vector<16x32xf32>
    %121 = tpu.matmul %120, %31, %cst_53 {dimension_numbers = #tpu.dot_dimension_numbers<[1], [0], [0], [1], [0, 0, 1, 1], [], []>} : vector<16x32xbf16>, vector<32x32xbf16>, vector<16x32xf32> -> vector<16x32xf32>
    %122 = vector.broadcast %33 : vector<1x32xf32> to vector<16x32xf32>
    %123 = arith.addf %121, %122 : vector<16x32xf32>
    %124 = arith.addf %17, %123 : vector<16x32xf32>
    %c0_54 = arith.constant 0 : index
    %c4 = arith.constant 4 : index
    %c0_55 = arith.constant 0 : index
    %125 = vector.load %arg8[%c0_54, %c4, %c0_55] : memref<2x9x32xf32, #tpu.memory_space<vmem>>, vector<1x1x32xf32>
    %126 = vector.shape_cast %125 : vector<1x1x32xf32> to vector<1x32xf32>
    %c0_56 = arith.constant 0 : index
    %c5 = arith.constant 5 : index
    %c0_57 = arith.constant 0 : index
    %127 = vector.load %arg8[%c0_56, %c5, %c0_57] : memref<2x9x32xf32, #tpu.memory_space<vmem>>, vector<1x1x32xf32>
    %128 = vector.shape_cast %127 : vector<1x1x32xf32> to vector<1x32xf32>
    %cst_58 = arith.constant dense<0.000000e+00> : vector<16xf32>
    %129 = vector.multi_reduction <add>, %124, %cst_58 [1] : vector<16x32xf32> to vector<16xf32>
    %130 = vector.shape_cast %129 : vector<16xf32> to vector<16x1xf32>
    %cst_59 = arith.constant 3.200000e+01 : f32
    %131 = vector.broadcast %cst_59 : f32 to vector<16x1xf32>
    %132 = arith.divf %130, %131 : vector<16x1xf32>
    %133 = vector.broadcast %132 : vector<16x1xf32> to vector<16x32xf32>
    %134 = arith.subf %124, %133 : vector<16x32xf32>
    %135 = arith.mulf %134, %134 : vector<16x32xf32>
    %cst_60 = arith.constant dense<0.000000e+00> : vector<16xf32>
    %136 = vector.multi_reduction <add>, %135, %cst_60 [1] : vector<16x32xf32> to vector<16xf32>
    %137 = vector.shape_cast %136 : vector<16xf32> to vector<16x1xf32>
    %cst_61 = arith.constant 3.200000e+01 : f32
    %138 = vector.broadcast %cst_61 : f32 to vector<16x1xf32>
    %139 = arith.divf %137, %138 : vector<16x1xf32>
    %cst_62 = arith.constant 9.99999974E-6 : f32
    %140 = vector.broadcast %cst_62 : f32 to vector<16x1xf32>
    %141 = arith.addf %139, %140 : vector<16x1xf32>
    %142 = math.rsqrt %141 : vector<16x1xf32>
    %143 = vector.broadcast %142 : vector<16x1xf32> to vector<16x32xf32>
    %144 = arith.mulf %134, %143 : vector<16x32xf32>
    %145 = vector.broadcast %126 : vector<1x32xf32> to vector<16x32xf32>
    %146 = arith.mulf %144, %145 : vector<16x32xf32>
    %147 = vector.broadcast %128 : vector<1x32xf32> to vector<16x32xf32>
    %148 = arith.addf %146, %147 : vector<16x32xf32>
    %149 = arith.truncf %148 : vector<16x32xf32> to vector<16x32xbf16>
    %c0_63 = arith.constant 0 : index
    %c0_64 = arith.constant 0 : index
    %c0_65 = arith.constant 0 : index
    %150 = vector.load %arg6[%c0_63, %c0_64, %c0_65] : memref<2x32x64xbf16, #tpu.memory_space<vmem>>, vector<1x32x64xbf16>
    %151 = vector.shape_cast %150 : vector<1x32x64xbf16> to vector<32x64xbf16>
    %cst_66 = arith.constant dense<0.000000e+00> : vector<16x64xf32>
    %152 = tpu.matmul %149, %151, %cst_66 {dimension_numbers = #tpu.dot_dimension_numbers<[1], [0], [0], [1], [0, 0, 1, 1], [], []>} : vector<16x32xbf16>, vector<32x64xbf16>, vector<16x64xf32> -> vector<16x64xf32>
    %c0_67 = arith.constant 0 : index
    %c0_68 = arith.constant 0 : index
    %c0_69 = arith.constant 0 : index
    %153 = vector.load %arg9[%c0_67, %c0_68, %c0_69] : memref<2x1x64xf32, #tpu.memory_space<vmem>>, vector<1x1x64xf32>
    %154 = vector.shape_cast %153 : vector<1x1x64xf32> to vector<1x64xf32>
    %155 = vector.broadcast %154 : vector<1x64xf32> to vector<16x64xf32>
    %156 = arith.addf %152, %155 : vector<16x64xf32>
    %cst_70 = arith.constant 0.000000e+00 : f32
    %157 = vector.broadcast %cst_70 : f32 to vector<16x64xf32>
    %158 = arith.maximumf %156, %157 : vector<16x64xf32>
    %159 = arith.truncf %158 : vector<16x64xf32> to vector<16x64xbf16>
    %c0_71 = arith.constant 0 : index
    %c0_72 = arith.constant 0 : index
    %c0_73 = arith.constant 0 : index
    %160 = vector.load %arg7[%c0_71, %c0_72, %c0_73] : memref<2x64x32xbf16, #tpu.memory_space<vmem>>, vector<1x64x32xbf16>
    %161 = vector.shape_cast %160 : vector<1x64x32xbf16> to vector<64x32xbf16>
    %cst_74 = arith.constant dense<0.000000e+00> : vector<16x32xf32>
    %162 = tpu.matmul %159, %161, %cst_74 {dimension_numbers = #tpu.dot_dimension_numbers<[1], [0], [0], [1], [0, 0, 1, 1], [], []>} : vector<16x64xbf16>, vector<64x32xbf16>, vector<16x32xf32> -> vector<16x32xf32>
    %c0_75 = arith.constant 0 : index
    %c6 = arith.constant 6 : index
    %c0_76 = arith.constant 0 : index
    %163 = vector.load %arg8[%c0_75, %c6, %c0_76] : memref<2x9x32xf32, #tpu.memory_space<vmem>>, vector<1x1x32xf32>
    %164 = vector.shape_cast %163 : vector<1x1x32xf32> to vector<1x32xf32>
    %165 = vector.broadcast %164 : vector<1x32xf32> to vector<16x32xf32>
    %166 = arith.addf %162, %165 : vector<16x32xf32>
    %167 = arith.addf %148, %166 : vector<16x32xf32>
    %c0_77 = arith.constant 0 : index
    %c7 = arith.constant 7 : index
    %c0_78 = arith.constant 0 : index
    %168 = vector.load %arg8[%c0_77, %c7, %c0_78] : memref<2x9x32xf32, #tpu.memory_space<vmem>>, vector<1x1x32xf32>
    %169 = vector.shape_cast %168 : vector<1x1x32xf32> to vector<1x32xf32>
    %c0_79 = arith.constant 0 : index
    %c8 = arith.constant 8 : index
    %c0_80 = arith.constant 0 : index
    %170 = vector.load %arg8[%c0_79, %c8, %c0_80] : memref<2x9x32xf32, #tpu.memory_space<vmem>>, vector<1x1x32xf32>
    %171 = vector.shape_cast %170 : vector<1x1x32xf32> to vector<1x32xf32>
    %cst_81 = arith.constant dense<0.000000e+00> : vector<16xf32>
    %172 = vector.multi_reduction <add>, %167, %cst_81 [1] : vector<16x32xf32> to vector<16xf32>
    %173 = vector.shape_cast %172 : vector<16xf32> to vector<16x1xf32>
    %cst_82 = arith.constant 3.200000e+01 : f32
    %174 = vector.broadcast %cst_82 : f32 to vector<16x1xf32>
    %175 = arith.divf %173, %174 : vector<16x1xf32>
    %176 = vector.broadcast %175 : vector<16x1xf32> to vector<16x32xf32>
    %177 = arith.subf %167, %176 : vector<16x32xf32>
    %178 = arith.mulf %177, %177 : vector<16x32xf32>
    %cst_83 = arith.constant dense<0.000000e+00> : vector<16xf32>
    %179 = vector.multi_reduction <add>, %178, %cst_83 [1] : vector<16x32xf32> to vector<16xf32>
    %180 = vector.shape_cast %179 : vector<16xf32> to vector<16x1xf32>
    %cst_84 = arith.constant 3.200000e+01 : f32
    %181 = vector.broadcast %cst_84 : f32 to vector<16x1xf32>
    %182 = arith.divf %180, %181 : vector<16x1xf32>
    %cst_85 = arith.constant 9.99999974E-6 : f32
    %183 = vector.broadcast %cst_85 : f32 to vector<16x1xf32>
    %184 = arith.addf %182, %183 : vector<16x1xf32>
    %185 = math.rsqrt %184 : vector<16x1xf32>
    %186 = vector.broadcast %185 : vector<16x1xf32> to vector<16x32xf32>
    %187 = arith.mulf %177, %186 : vector<16x32xf32>
    %188 = vector.broadcast %169 : vector<1x32xf32> to vector<16x32xf32>
    %189 = arith.mulf %187, %188 : vector<16x32xf32>
    %190 = vector.broadcast %171 : vector<1x32xf32> to vector<16x32xf32>
    %191 = arith.addf %189, %190 : vector<16x32xf32>
    %c1_86 = arith.constant 1 : index
    %c0_87 = arith.constant 0 : index
    %c0_88 = arith.constant 0 : index
    %c0_89 = arith.constant 0 : index
    %192 = vector.load %arg5[%c1_86, %c0_87, %c0_88, %c0_89] : memref<2x4x32x32xbf16, #tpu.memory_space<vmem>>, vector<1x1x32x32xbf16>
    %193 = vector.shape_cast %192 : vector<1x1x32x32xbf16> to vector<32x32xbf16>
    %c1_90 = arith.constant 1 : index
    %c0_91 = arith.constant 0 : index
    %c0_92 = arith.constant 0 : index
    %194 = vector.load %arg8[%c1_90, %c0_91, %c0_92] : memref<2x9x32xf32, #tpu.memory_space<vmem>>, vector<1x1x32xf32>
    %195 = vector.shape_cast %194 : vector<1x1x32xf32> to vector<1x32xf32>
    %c1_93 = arith.constant 1 : index
    %c1_94 = arith.constant 1 : index
    %c0_95 = arith.constant 0 : index
    %c0_96 = arith.constant 0 : index
    %196 = vector.load %arg5[%c1_93, %c1_94, %c0_95, %c0_96] : memref<2x4x32x32xbf16, #tpu.memory_space<vmem>>, vector<1x1x32x32xbf16>
    %197 = vector.shape_cast %196 : vector<1x1x32x32xbf16> to vector<32x32xbf16>
    %c1_97 = arith.constant 1 : index
    %c1_98 = arith.constant 1 : index
    %c0_99 = arith.constant 0 : index
    %198 = vector.load %arg8[%c1_97, %c1_98, %c0_99] : memref<2x9x32xf32, #tpu.memory_space<vmem>>, vector<1x1x32xf32>
    %199 = vector.shape_cast %198 : vector<1x1x32xf32> to vector<1x32xf32>
    %c1_100 = arith.constant 1 : index
    %c2_101 = arith.constant 2 : index
    %c0_102 = arith.constant 0 : index
    %c0_103 = arith.constant 0 : index
    %200 = vector.load %arg5[%c1_100, %c2_101, %c0_102, %c0_103] : memref<2x4x32x32xbf16, #tpu.memory_space<vmem>>, vector<1x1x32x32xbf16>
    %201 = vector.shape_cast %200 : vector<1x1x32x32xbf16> to vector<32x32xbf16>
    %c1_104 = arith.constant 1 : index
    %c2_105 = arith.constant 2 : index
    %c0_106 = arith.constant 0 : index
    %202 = vector.load %arg8[%c1_104, %c2_105, %c0_106] : memref<2x9x32xf32, #tpu.memory_space<vmem>>, vector<1x1x32xf32>
    %203 = vector.shape_cast %202 : vector<1x1x32xf32> to vector<1x32xf32>
    %c1_107 = arith.constant 1 : index
    %c3_108 = arith.constant 3 : index
    %c0_109 = arith.constant 0 : index
    %c0_110 = arith.constant 0 : index
    %204 = vector.load %arg5[%c1_107, %c3_108, %c0_109, %c0_110] : memref<2x4x32x32xbf16, #tpu.memory_space<vmem>>, vector<1x1x32x32xbf16>
    %205 = vector.shape_cast %204 : vector<1x1x32x32xbf16> to vector<32x32xbf16>
    %c1_111 = arith.constant 1 : index
    %c3_112 = arith.constant 3 : index
    %c0_113 = arith.constant 0 : index
    %206 = vector.load %arg8[%c1_111, %c3_112, %c0_113] : memref<2x9x32xf32, #tpu.memory_space<vmem>>, vector<1x1x32xf32>
    %207 = vector.shape_cast %206 : vector<1x1x32xf32> to vector<1x32xf32>
    %208 = arith.truncf %191 : vector<16x32xf32> to vector<16x32xbf16>
    %cst_114 = arith.constant dense<0.000000e+00> : vector<16x32xf32>
    %209 = tpu.matmul %208, %193, %cst_114 {dimension_numbers = #tpu.dot_dimension_numbers<[1], [0], [0], [1], [0, 0, 1, 1], [], []>} : vector<16x32xbf16>, vector<32x32xbf16>, vector<16x32xf32> -> vector<16x32xf32>
    %210 = vector.broadcast %195 : vector<1x32xf32> to vector<16x32xf32>
    %211 = arith.addf %209, %210 : vector<16x32xf32>
    %212 = vector.shape_cast %211 : vector<16x32xf32> to vector<2x8x32xf32>
    %213 = arith.truncf %212 : vector<2x8x32xf32> to vector<2x8x32xbf16>
    %cst_115 = arith.constant dense<0.000000e+00> : vector<16x32xf32>
    %214 = tpu.matmul %208, %197, %cst_115 {dimension_numbers = #tpu.dot_dimension_numbers<[1], [0], [0], [1], [0, 0, 1, 1], [], []>} : vector<16x32xbf16>, vector<32x32xbf16>, vector<16x32xf32> -> vector<16x32xf32>
    %215 = vector.broadcast %199 : vector<1x32xf32> to vector<16x32xf32>
    %216 = arith.addf %214, %215 : vector<16x32xf32>
    %217 = vector.shape_cast %216 : vector<16x32xf32> to vector<2x8x32xf32>
    %218 = arith.truncf %217 : vector<2x8x32xf32> to vector<2x8x32xbf16>
    %cst_116 = arith.constant dense<0.000000e+00> : vector<16x32xf32>
    %219 = tpu.matmul %208, %201, %cst_116 {dimension_numbers = #tpu.dot_dimension_numbers<[1], [0], [0], [1], [0, 0, 1, 1], [], []>} : vector<16x32xbf16>, vector<32x32xbf16>, vector<16x32xf32> -> vector<16x32xf32>
    %220 = vector.broadcast %203 : vector<1x32xf32> to vector<16x32xf32>
    %221 = arith.addf %219, %220 : vector<16x32xf32>
    %222 = vector.shape_cast %221 : vector<16x32xf32> to vector<2x8x32xf32>
    %223 = arith.truncf %222 : vector<2x8x32xf32> to vector<2x8x32xbf16>
    %224 = vector.extract_strided_slice %213 {offsets = [0, 0, 0], sizes = [2, 8, 8], strides = [1, 1, 1]} : vector<2x8x32xbf16> to vector<2x8x8xbf16>
    %225 = vector.extract_strided_slice %218 {offsets = [0, 0, 0], sizes = [2, 8, 8], strides = [1, 1, 1]} : vector<2x8x32xbf16> to vector<2x8x8xbf16>
    "tpu.trace_start"() <{level = 10 : i32, message = "bqd,bkd->bqk"}> : () -> ()
    %cst_117 = arith.constant dense<0.000000e+00> : vector<2x8x8xf32>
    %226 = tpu.matmul %224, %225, %cst_117 {dimension_numbers = #tpu.dot_dimension_numbers<[2], [2], [1], [1], [0, 0, 0, 1, 1, 1], [0], [0]>} : vector<2x8x8xbf16>, vector<2x8x8xbf16>, vector<2x8x8xf32> -> vector<2x8x8xf32>
    "tpu.trace_stop"() : () -> ()
    %227 = arith.addf %226, %3 : vector<2x8x8xf32>
    %cst_118 = arith.constant dense<0xFF800000> : vector<2x8xf32>
    %228 = vector.multi_reduction <maximumf>, %227, %cst_118 [2] : vector<2x8x8xf32> to vector<2x8xf32>
    %229 = vector.shape_cast %228 : vector<2x8xf32> to vector<2x8x1xf32>
    %230 = vector.broadcast %229 : vector<2x8x1xf32> to vector<2x8x8xf32>
    %231 = arith.subf %227, %230 : vector<2x8x8xf32>
    %232 = math.exp %231 : vector<2x8x8xf32>
    %cst_119 = arith.constant dense<0.000000e+00> : vector<2x8xf32>
    %233 = vector.multi_reduction <add>, %232, %cst_119 [2] : vector<2x8x8xf32> to vector<2x8xf32>
    %234 = vector.shape_cast %233 : vector<2x8xf32> to vector<2x8x1xf32>
    %235 = tpu.reciprocal %234 {approx = true} : vector<2x8x1xf32> -> vector<2x8x1xf32>
    %236 = vector.broadcast %235 : vector<2x8x1xf32> to vector<2x8x8xf32>
    %237 = arith.mulf %232, %236 : vector<2x8x8xf32>
    %238 = arith.truncf %237 : vector<2x8x8xf32> to vector<2x8x8xbf16>
    %239 = vector.extract_strided_slice %223 {offsets = [0, 0, 0], sizes = [2, 8, 8], strides = [1, 1, 1]} : vector<2x8x32xbf16> to vector<2x8x8xbf16>
    "tpu.trace_start"() <{level = 10 : i32, message = "bqk,bkd->bqd"}> : () -> ()
    %cst_120 = arith.constant dense<0.000000e+00> : vector<2x8x8xf32>
    %240 = tpu.matmul %238, %239, %cst_120 {dimension_numbers = #tpu.dot_dimension_numbers<[2], [1], [1], [2], [0, 0, 0, 1, 1, 2], [0], [0]>} : vector<2x8x8xbf16>, vector<2x8x8xbf16>, vector<2x8x8xf32> -> vector<2x8x8xf32>
    "tpu.trace_stop"() : () -> ()
    %241 = vector.extract_strided_slice %213 {offsets = [0, 0, 8], sizes = [2, 8, 8], strides = [1, 1, 1]} : vector<2x8x32xbf16> to vector<2x8x8xbf16>
    %242 = vector.extract_strided_slice %218 {offsets = [0, 0, 8], sizes = [2, 8, 8], strides = [1, 1, 1]} : vector<2x8x32xbf16> to vector<2x8x8xbf16>
    "tpu.trace_start"() <{level = 10 : i32, message = "bqd,bkd->bqk"}> : () -> ()
    %cst_121 = arith.constant dense<0.000000e+00> : vector<2x8x8xf32>
    %243 = tpu.matmul %241, %242, %cst_121 {dimension_numbers = #tpu.dot_dimension_numbers<[2], [2], [1], [1], [0, 0, 0, 1, 1, 1], [0], [0]>} : vector<2x8x8xbf16>, vector<2x8x8xbf16>, vector<2x8x8xf32> -> vector<2x8x8xf32>
    "tpu.trace_stop"() : () -> ()
    %244 = arith.addf %243, %3 : vector<2x8x8xf32>
    %cst_122 = arith.constant dense<0xFF800000> : vector<2x8xf32>
    %245 = vector.multi_reduction <maximumf>, %244, %cst_122 [2] : vector<2x8x8xf32> to vector<2x8xf32>
    %246 = vector.shape_cast %245 : vector<2x8xf32> to vector<2x8x1xf32>
    %247 = vector.broadcast %246 : vector<2x8x1xf32> to vector<2x8x8xf32>
    %248 = arith.subf %244, %247 : vector<2x8x8xf32>
    %249 = math.exp %248 : vector<2x8x8xf32>
    %cst_123 = arith.constant dense<0.000000e+00> : vector<2x8xf32>
    %250 = vector.multi_reduction <add>, %249, %cst_123 [2] : vector<2x8x8xf32> to vector<2x8xf32>
    %251 = vector.shape_cast %250 : vector<2x8xf32> to vector<2x8x1xf32>
    %252 = tpu.reciprocal %251 {approx = true} : vector<2x8x1xf32> -> vector<2x8x1xf32>
    %253 = vector.broadcast %252 : vector<2x8x1xf32> to vector<2x8x8xf32>
    %254 = arith.mulf %249, %253 : vector<2x8x8xf32>
    %255 = arith.truncf %254 : vector<2x8x8xf32> to vector<2x8x8xbf16>
    %256 = vector.extract_strided_slice %223 {offsets = [0, 0, 8], sizes = [2, 8, 8], strides = [1, 1, 1]} : vector<2x8x32xbf16> to vector<2x8x8xbf16>
    "tpu.trace_start"() <{level = 10 : i32, message = "bqk,bkd->bqd"}> : () -> ()
    %cst_124 = arith.constant dense<0.000000e+00> : vector<2x8x8xf32>
    %257 = tpu.matmul %255, %256, %cst_124 {dimension_numbers = #tpu.dot_dimension_numbers<[2], [1], [1], [2], [0, 0, 0, 1, 1, 2], [0], [0]>} : vector<2x8x8xbf16>, vector<2x8x8xbf16>, vector<2x8x8xf32> -> vector<2x8x8xf32>
    "tpu.trace_stop"() : () -> ()
    %258 = vector.extract_strided_slice %213 {offsets = [0, 0, 16], sizes = [2, 8, 8], strides = [1, 1, 1]} : vector<2x8x32xbf16> to vector<2x8x8xbf16>
    %259 = vector.extract_strided_slice %218 {offsets = [0, 0, 16], sizes = [2, 8, 8], strides = [1, 1, 1]} : vector<2x8x32xbf16> to vector<2x8x8xbf16>
    "tpu.trace_start"() <{level = 10 : i32, message = "bqd,bkd->bqk"}> : () -> ()
    %cst_125 = arith.constant dense<0.000000e+00> : vector<2x8x8xf32>
    %260 = tpu.matmul %258, %259, %cst_125 {dimension_numbers = #tpu.dot_dimension_numbers<[2], [2], [1], [1], [0, 0, 0, 1, 1, 1], [0], [0]>} : vector<2x8x8xbf16>, vector<2x8x8xbf16>, vector<2x8x8xf32> -> vector<2x8x8xf32>
    "tpu.trace_stop"() : () -> ()
    %261 = arith.addf %260, %3 : vector<2x8x8xf32>
    %cst_126 = arith.constant dense<0xFF800000> : vector<2x8xf32>
    %262 = vector.multi_reduction <maximumf>, %261, %cst_126 [2] : vector<2x8x8xf32> to vector<2x8xf32>
    %263 = vector.shape_cast %262 : vector<2x8xf32> to vector<2x8x1xf32>
    %264 = vector.broadcast %263 : vector<2x8x1xf32> to vector<2x8x8xf32>
    %265 = arith.subf %261, %264 : vector<2x8x8xf32>
    %266 = math.exp %265 : vector<2x8x8xf32>
    %cst_127 = arith.constant dense<0.000000e+00> : vector<2x8xf32>
    %267 = vector.multi_reduction <add>, %266, %cst_127 [2] : vector<2x8x8xf32> to vector<2x8xf32>
    %268 = vector.shape_cast %267 : vector<2x8xf32> to vector<2x8x1xf32>
    %269 = tpu.reciprocal %268 {approx = true} : vector<2x8x1xf32> -> vector<2x8x1xf32>
    %270 = vector.broadcast %269 : vector<2x8x1xf32> to vector<2x8x8xf32>
    %271 = arith.mulf %266, %270 : vector<2x8x8xf32>
    %272 = arith.truncf %271 : vector<2x8x8xf32> to vector<2x8x8xbf16>
    %273 = vector.extract_strided_slice %223 {offsets = [0, 0, 16], sizes = [2, 8, 8], strides = [1, 1, 1]} : vector<2x8x32xbf16> to vector<2x8x8xbf16>
    "tpu.trace_start"() <{level = 10 : i32, message = "bqk,bkd->bqd"}> : () -> ()
    %cst_128 = arith.constant dense<0.000000e+00> : vector<2x8x8xf32>
    %274 = tpu.matmul %272, %273, %cst_128 {dimension_numbers = #tpu.dot_dimension_numbers<[2], [1], [1], [2], [0, 0, 0, 1, 1, 2], [0], [0]>} : vector<2x8x8xbf16>, vector<2x8x8xbf16>, vector<2x8x8xf32> -> vector<2x8x8xf32>
    "tpu.trace_stop"() : () -> ()
    %275 = vector.extract_strided_slice %213 {offsets = [0, 0, 24], sizes = [2, 8, 8], strides = [1, 1, 1]} : vector<2x8x32xbf16> to vector<2x8x8xbf16>
    %276 = vector.extract_strided_slice %218 {offsets = [0, 0, 24], sizes = [2, 8, 8], strides = [1, 1, 1]} : vector<2x8x32xbf16> to vector<2x8x8xbf16>
    "tpu.trace_start"() <{level = 10 : i32, message = "bqd,bkd->bqk"}> : () -> ()
    %cst_129 = arith.constant dense<0.000000e+00> : vector<2x8x8xf32>
    %277 = tpu.matmul %275, %276, %cst_129 {dimension_numbers = #tpu.dot_dimension_numbers<[2], [2], [1], [1], [0, 0, 0, 1, 1, 1], [0], [0]>} : vector<2x8x8xbf16>, vector<2x8x8xbf16>, vector<2x8x8xf32> -> vector<2x8x8xf32>
    "tpu.trace_stop"() : () -> ()
    %278 = arith.addf %277, %3 : vector<2x8x8xf32>
    %cst_130 = arith.constant dense<0xFF800000> : vector<2x8xf32>
    %279 = vector.multi_reduction <maximumf>, %278, %cst_130 [2] : vector<2x8x8xf32> to vector<2x8xf32>
    %280 = vector.shape_cast %279 : vector<2x8xf32> to vector<2x8x1xf32>
    %281 = vector.broadcast %280 : vector<2x8x1xf32> to vector<2x8x8xf32>
    %282 = arith.subf %278, %281 : vector<2x8x8xf32>
    %283 = math.exp %282 : vector<2x8x8xf32>
    %cst_131 = arith.constant dense<0.000000e+00> : vector<2x8xf32>
    %284 = vector.multi_reduction <add>, %283, %cst_131 [2] : vector<2x8x8xf32> to vector<2x8xf32>
    %285 = vector.shape_cast %284 : vector<2x8xf32> to vector<2x8x1xf32>
    %286 = tpu.reciprocal %285 {approx = true} : vector<2x8x1xf32> -> vector<2x8x1xf32>
    %287 = vector.broadcast %286 : vector<2x8x1xf32> to vector<2x8x8xf32>
    %288 = arith.mulf %283, %287 : vector<2x8x8xf32>
    %289 = arith.truncf %288 : vector<2x8x8xf32> to vector<2x8x8xbf16>
    %290 = vector.extract_strided_slice %223 {offsets = [0, 0, 24], sizes = [2, 8, 8], strides = [1, 1, 1]} : vector<2x8x32xbf16> to vector<2x8x8xbf16>
    "tpu.trace_start"() <{level = 10 : i32, message = "bqk,bkd->bqd"}> : () -> ()
    %cst_132 = arith.constant dense<0.000000e+00> : vector<2x8x8xf32>
    %291 = tpu.matmul %289, %290, %cst_132 {dimension_numbers = #tpu.dot_dimension_numbers<[2], [1], [1], [2], [0, 0, 0, 1, 1, 2], [0], [0]>} : vector<2x8x8xbf16>, vector<2x8x8xbf16>, vector<2x8x8xf32> -> vector<2x8x8xf32>
    "tpu.trace_stop"() : () -> ()
    %292 = tpu.concatenate %240, %257, %274, %291 in 2 : vector<2x8x8xf32>, vector<2x8x8xf32>, vector<2x8x8xf32>, vector<2x8x8xf32> -> vector<2x8x32xf32>
    %293 = vector.shape_cast %292 : vector<2x8x32xf32> to vector<16x32xf32>
    %294 = arith.truncf %293 : vector<16x32xf32> to vector<16x32xbf16>
    %cst_133 = arith.constant dense<0.000000e+00> : vector<16x32xf32>
    %295 = tpu.matmul %294, %205, %cst_133 {dimension_numbers = #tpu.dot_dimension_numbers<[1], [0], [0], [1], [0, 0, 1, 1], [], []>} : vector<16x32xbf16>, vector<32x32xbf16>, vector<16x32xf32> -> vector<16x32xf32>
    %296 = vector.broadcast %207 : vector<1x32xf32> to vector<16x32xf32>
    %297 = arith.addf %295, %296 : vector<16x32xf32>
    %298 = arith.addf %191, %297 : vector<16x32xf32>
    %c1_134 = arith.constant 1 : index
    %c4_135 = arith.constant 4 : index
    %c0_136 = arith.constant 0 : index
    %299 = vector.load %arg8[%c1_134, %c4_135, %c0_136] : memref<2x9x32xf32, #tpu.memory_space<vmem>>, vector<1x1x32xf32>
    %300 = vector.shape_cast %299 : vector<1x1x32xf32> to vector<1x32xf32>
    %c1_137 = arith.constant 1 : index
    %c5_138 = arith.constant 5 : index
    %c0_139 = arith.constant 0 : index
    %301 = vector.load %arg8[%c1_137, %c5_138, %c0_139] : memref<2x9x32xf32, #tpu.memory_space<vmem>>, vector<1x1x32xf32>
    %302 = vector.shape_cast %301 : vector<1x1x32xf32> to vector<1x32xf32>
    %cst_140 = arith.constant dense<0.000000e+00> : vector<16xf32>
    %303 = vector.multi_reduction <add>, %298, %cst_140 [1] : vector<16x32xf32> to vector<16xf32>
    %304 = vector.shape_cast %303 : vector<16xf32> to vector<16x1xf32>
    %cst_141 = arith.constant 3.200000e+01 : f32
    %305 = vector.broadcast %cst_141 : f32 to vector<16x1xf32>
    %306 = arith.divf %304, %305 : vector<16x1xf32>
    %307 = vector.broadcast %306 : vector<16x1xf32> to vector<16x32xf32>
    %308 = arith.subf %298, %307 : vector<16x32xf32>
    %309 = arith.mulf %308, %308 : vector<16x32xf32>
    %cst_142 = arith.constant dense<0.000000e+00> : vector<16xf32>
    %310 = vector.multi_reduction <add>, %309, %cst_142 [1] : vector<16x32xf32> to vector<16xf32>
    %311 = vector.shape_cast %310 : vector<16xf32> to vector<16x1xf32>
    %cst_143 = arith.constant 3.200000e+01 : f32
    %312 = vector.broadcast %cst_143 : f32 to vector<16x1xf32>
    %313 = arith.divf %311, %312 : vector<16x1xf32>
    %cst_144 = arith.constant 9.99999974E-6 : f32
    %314 = vector.broadcast %cst_144 : f32 to vector<16x1xf32>
    %315 = arith.addf %313, %314 : vector<16x1xf32>
    %316 = math.rsqrt %315 : vector<16x1xf32>
    %317 = vector.broadcast %316 : vector<16x1xf32> to vector<16x32xf32>
    %318 = arith.mulf %308, %317 : vector<16x32xf32>
    %319 = vector.broadcast %300 : vector<1x32xf32> to vector<16x32xf32>
    %320 = arith.mulf %318, %319 : vector<16x32xf32>
    %321 = vector.broadcast %302 : vector<1x32xf32> to vector<16x32xf32>
    %322 = arith.addf %320, %321 : vector<16x32xf32>
    %323 = arith.truncf %322 : vector<16x32xf32> to vector<16x32xbf16>
    %c1_145 = arith.constant 1 : index
    %c0_146 = arith.constant 0 : index
    %c0_147 = arith.constant 0 : index
    %324 = vector.load %arg6[%c1_145, %c0_146, %c0_147] : memref<2x32x64xbf16, #tpu.memory_space<vmem>>, vector<1x32x64xbf16>
    %325 = vector.shape_cast %324 : vector<1x32x64xbf16> to vector<32x64xbf16>
    %cst_148 = arith.constant dense<0.000000e+00> : vector<16x64xf32>
    %326 = tpu.matmul %323, %325, %cst_148 {dimension_numbers = #tpu.dot_dimension_numbers<[1], [0], [0], [1], [0, 0, 1, 1], [], []>} : vector<16x32xbf16>, vector<32x64xbf16>, vector<16x64xf32> -> vector<16x64xf32>
    %c1_149 = arith.constant 1 : index
    %c0_150 = arith.constant 0 : index
    %c0_151 = arith.constant 0 : index
    %327 = vector.load %arg9[%c1_149, %c0_150, %c0_151] : memref<2x1x64xf32, #tpu.memory_space<vmem>>, vector<1x1x64xf32>
    %328 = vector.shape_cast %327 : vector<1x1x64xf32> to vector<1x64xf32>
    %329 = vector.broadcast %328 : vector<1x64xf32> to vector<16x64xf32>
    %330 = arith.addf %326, %329 : vector<16x64xf32>
    %cst_152 = arith.constant 0.000000e+00 : f32
    %331 = vector.broadcast %cst_152 : f32 to vector<16x64xf32>
    %332 = arith.maximumf %330, %331 : vector<16x64xf32>
    %333 = arith.truncf %332 : vector<16x64xf32> to vector<16x64xbf16>
    %c1_153 = arith.constant 1 : index
    %c0_154 = arith.constant 0 : index
    %c0_155 = arith.constant 0 : index
    %334 = vector.load %arg7[%c1_153, %c0_154, %c0_155] : memref<2x64x32xbf16, #tpu.memory_space<vmem>>, vector<1x64x32xbf16>
    %335 = vector.shape_cast %334 : vector<1x64x32xbf16> to vector<64x32xbf16>
    %cst_156 = arith.constant dense<0.000000e+00> : vector<16x32xf32>
    %336 = tpu.matmul %333, %335, %cst_156 {dimension_numbers = #tpu.dot_dimension_numbers<[1], [0], [0], [1], [0, 0, 1, 1], [], []>} : vector<16x64xbf16>, vector<64x32xbf16>, vector<16x32xf32> -> vector<16x32xf32>
    %c1_157 = arith.constant 1 : index
    %c6_158 = arith.constant 6 : index
    %c0_159 = arith.constant 0 : index
    %337 = vector.load %arg8[%c1_157, %c6_158, %c0_159] : memref<2x9x32xf32, #tpu.memory_space<vmem>>, vector<1x1x32xf32>
    %338 = vector.shape_cast %337 : vector<1x1x32xf32> to vector<1x32xf32>
    %339 = vector.broadcast %338 : vector<1x32xf32> to vector<16x32xf32>
    %340 = arith.addf %336, %339 : vector<16x32xf32>
    %341 = arith.addf %322, %340 : vector<16x32xf32>
    %c1_160 = arith.constant 1 : index
    %c7_161 = arith.constant 7 : index
    %c0_162 = arith.constant 0 : index
    %342 = vector.load %arg8[%c1_160, %c7_161, %c0_162] : memref<2x9x32xf32, #tpu.memory_space<vmem>>, vector<1x1x32xf32>
    %343 = vector.shape_cast %342 : vector<1x1x32xf32> to vector<1x32xf32>
    %c1_163 = arith.constant 1 : index
    %c8_164 = arith.constant 8 : index
    %c0_165 = arith.constant 0 : index
    %344 = vector.load %arg8[%c1_163, %c8_164, %c0_165] : memref<2x9x32xf32, #tpu.memory_space<vmem>>, vector<1x1x32xf32>
    %345 = vector.shape_cast %344 : vector<1x1x32xf32> to vector<1x32xf32>
    %cst_166 = arith.constant dense<0.000000e+00> : vector<16xf32>
    %346 = vector.multi_reduction <add>, %341, %cst_166 [1] : vector<16x32xf32> to vector<16xf32>
    %347 = vector.shape_cast %346 : vector<16xf32> to vector<16x1xf32>
    %cst_167 = arith.constant 3.200000e+01 : f32
    %348 = vector.broadcast %cst_167 : f32 to vector<16x1xf32>
    %349 = arith.divf %347, %348 : vector<16x1xf32>
    %350 = vector.broadcast %349 : vector<16x1xf32> to vector<16x32xf32>
    %351 = arith.subf %341, %350 : vector<16x32xf32>
    %352 = arith.mulf %351, %351 : vector<16x32xf32>
    %cst_168 = arith.constant dense<0.000000e+00> : vector<16xf32>
    %353 = vector.multi_reduction <add>, %352, %cst_168 [1] : vector<16x32xf32> to vector<16xf32>
    %354 = vector.shape_cast %353 : vector<16xf32> to vector<16x1xf32>
    %cst_169 = arith.constant 3.200000e+01 : f32
    %355 = vector.broadcast %cst_169 : f32 to vector<16x1xf32>
    %356 = arith.divf %354, %355 : vector<16x1xf32>
    %cst_170 = arith.constant 9.99999974E-6 : f32
    %357 = vector.broadcast %cst_170 : f32 to vector<16x1xf32>
    %358 = arith.addf %356, %357 : vector<16x1xf32>
    %359 = math.rsqrt %358 : vector<16x1xf32>
    %360 = vector.broadcast %359 : vector<16x1xf32> to vector<16x32xf32>
    %361 = arith.mulf %351, %360 : vector<16x32xf32>
    %362 = vector.broadcast %343 : vector<1x32xf32> to vector<16x32xf32>
    %363 = arith.mulf %361, %362 : vector<16x32xf32>
    %364 = vector.broadcast %345 : vector<1x32xf32> to vector<16x32xf32>
    %365 = arith.addf %363, %364 : vector<16x32xf32>
    %c0_171 = arith.constant 0 : index
    %c0_172 = arith.constant 0 : index
    %366 = vector.load %arg15[%c0_171, %c0_172] : memref<4x32xf32, #tpu.memory_space<vmem>>, vector<1x32xf32>
    %c1_173 = arith.constant 1 : index
    %c0_174 = arith.constant 0 : index
    %367 = vector.load %arg15[%c1_173, %c0_174] : memref<4x32xf32, #tpu.memory_space<vmem>>, vector<1x32xf32>
    %cst_175 = arith.constant dense<0.000000e+00> : vector<16xf32>
    %368 = vector.multi_reduction <add>, %365, %cst_175 [1] : vector<16x32xf32> to vector<16xf32>
    %369 = vector.shape_cast %368 : vector<16xf32> to vector<16x1xf32>
    %cst_176 = arith.constant 3.200000e+01 : f32
    %370 = vector.broadcast %cst_176 : f32 to vector<16x1xf32>
    %371 = arith.divf %369, %370 : vector<16x1xf32>
    %372 = vector.broadcast %371 : vector<16x1xf32> to vector<16x32xf32>
    %373 = arith.subf %365, %372 : vector<16x32xf32>
    %374 = arith.mulf %373, %373 : vector<16x32xf32>
    %cst_177 = arith.constant dense<0.000000e+00> : vector<16xf32>
    %375 = vector.multi_reduction <add>, %374, %cst_177 [1] : vector<16x32xf32> to vector<16xf32>
    %376 = vector.shape_cast %375 : vector<16xf32> to vector<16x1xf32>
    %cst_178 = arith.constant 3.200000e+01 : f32
    %377 = vector.broadcast %cst_178 : f32 to vector<16x1xf32>
    %378 = arith.divf %376, %377 : vector<16x1xf32>
    %cst_179 = arith.constant 9.99999974E-6 : f32
    %379 = vector.broadcast %cst_179 : f32 to vector<16x1xf32>
    %380 = arith.addf %378, %379 : vector<16x1xf32>
    %381 = math.rsqrt %380 : vector<16x1xf32>
    %382 = vector.broadcast %381 : vector<16x1xf32> to vector<16x32xf32>
    %383 = arith.mulf %373, %382 : vector<16x32xf32>
    %384 = vector.broadcast %366 : vector<1x32xf32> to vector<16x32xf32>
    %385 = arith.mulf %383, %384 : vector<16x32xf32>
    %386 = vector.broadcast %367 : vector<1x32xf32> to vector<16x32xf32>
    %387 = arith.addf %385, %386 : vector<16x32xf32>
    %388 = arith.truncf %387 : vector<16x32xf32> to vector<16x32xbf16>
    %c0_180 = arith.constant 0 : index
    %c0_181 = arith.constant 0 : index
    %c0_182 = arith.constant 0 : index
    %389 = vector.load %arg2[%c0_180, %c0_181, %c0_182] : memref<2x8x32xf32, #tpu.memory_space<vmem>>, vector<2x8x32xf32>
    %390 = vector.shape_cast %389 : vector<2x8x32xf32> to vector<16x32xf32>
    %c0_183 = arith.constant 0 : index
    %c0_184 = arith.constant 0 : index
    %c0_185 = arith.constant 0 : index
    %c0_186 = arith.constant 0 : index
    %391 = vector.load %arg10[%c0_183, %c0_184, %c0_185, %c0_186] : memref<2x8x32x32xbf16, #tpu.memory_space<vmem>>, vector<1x1x32x32xbf16>
    %392 = vector.shape_cast %391 : vector<1x1x32x32xbf16> to vector<32x32xbf16>
    %c0_187 = arith.constant 0 : index
    %c0_188 = arith.constant 0 : index
    %c0_189 = arith.constant 0 : index
    %393 = vector.load %arg13[%c0_187, %c0_188, %c0_189] : memref<2x15x32xf32, #tpu.memory_space<vmem>>, vector<1x1x32xf32>
    %394 = vector.shape_cast %393 : vector<1x1x32xf32> to vector<1x32xf32>
    %c0_190 = arith.constant 0 : index
    %c1_191 = arith.constant 1 : index
    %c0_192 = arith.constant 0 : index
    %c0_193 = arith.constant 0 : index
    %395 = vector.load %arg10[%c0_190, %c1_191, %c0_192, %c0_193] : memref<2x8x32x32xbf16, #tpu.memory_space<vmem>>, vector<1x1x32x32xbf16>
    %396 = vector.shape_cast %395 : vector<1x1x32x32xbf16> to vector<32x32xbf16>
    %c0_194 = arith.constant 0 : index
    %c1_195 = arith.constant 1 : index
    %c0_196 = arith.constant 0 : index
    %397 = vector.load %arg13[%c0_194, %c1_195, %c0_196] : memref<2x15x32xf32, #tpu.memory_space<vmem>>, vector<1x1x32xf32>
    %398 = vector.shape_cast %397 : vector<1x1x32xf32> to vector<1x32xf32>
    %c0_197 = arith.constant 0 : index
    %c2_198 = arith.constant 2 : index
    %c0_199 = arith.constant 0 : index
    %c0_200 = arith.constant 0 : index
    %399 = vector.load %arg10[%c0_197, %c2_198, %c0_199, %c0_200] : memref<2x8x32x32xbf16, #tpu.memory_space<vmem>>, vector<1x1x32x32xbf16>
    %400 = vector.shape_cast %399 : vector<1x1x32x32xbf16> to vector<32x32xbf16>
    %c0_201 = arith.constant 0 : index
    %c2_202 = arith.constant 2 : index
    %c0_203 = arith.constant 0 : index
    %401 = vector.load %arg13[%c0_201, %c2_202, %c0_203] : memref<2x15x32xf32, #tpu.memory_space<vmem>>, vector<1x1x32xf32>
    %402 = vector.shape_cast %401 : vector<1x1x32xf32> to vector<1x32xf32>
    %c0_204 = arith.constant 0 : index
    %c3_205 = arith.constant 3 : index
    %c0_206 = arith.constant 0 : index
    %c0_207 = arith.constant 0 : index
    %403 = vector.load %arg10[%c0_204, %c3_205, %c0_206, %c0_207] : memref<2x8x32x32xbf16, #tpu.memory_space<vmem>>, vector<1x1x32x32xbf16>
    %404 = vector.shape_cast %403 : vector<1x1x32x32xbf16> to vector<32x32xbf16>
    %c0_208 = arith.constant 0 : index
    %c3_209 = arith.constant 3 : index
    %c0_210 = arith.constant 0 : index
    %405 = vector.load %arg13[%c0_208, %c3_209, %c0_210] : memref<2x15x32xf32, #tpu.memory_space<vmem>>, vector<1x1x32xf32>
    %406 = vector.shape_cast %405 : vector<1x1x32xf32> to vector<1x32xf32>
    %407 = arith.truncf %390 : vector<16x32xf32> to vector<16x32xbf16>
    %cst_211 = arith.constant dense<0.000000e+00> : vector<16x32xf32>
    %408 = tpu.matmul %407, %392, %cst_211 {dimension_numbers = #tpu.dot_dimension_numbers<[1], [0], [0], [1], [0, 0, 1, 1], [], []>} : vector<16x32xbf16>, vector<32x32xbf16>, vector<16x32xf32> -> vector<16x32xf32>
    %409 = vector.broadcast %394 : vector<1x32xf32> to vector<16x32xf32>
    %410 = arith.addf %408, %409 : vector<16x32xf32>
    %411 = vector.shape_cast %410 : vector<16x32xf32> to vector<2x8x32xf32>
    %412 = arith.truncf %411 : vector<2x8x32xf32> to vector<2x8x32xbf16>
    %cst_212 = arith.constant dense<0.000000e+00> : vector<16x32xf32>
    %413 = tpu.matmul %407, %396, %cst_212 {dimension_numbers = #tpu.dot_dimension_numbers<[1], [0], [0], [1], [0, 0, 1, 1], [], []>} : vector<16x32xbf16>, vector<32x32xbf16>, vector<16x32xf32> -> vector<16x32xf32>
    %414 = vector.broadcast %398 : vector<1x32xf32> to vector<16x32xf32>
    %415 = arith.addf %413, %414 : vector<16x32xf32>
    %416 = vector.shape_cast %415 : vector<16x32xf32> to vector<2x8x32xf32>
    %417 = arith.truncf %416 : vector<2x8x32xf32> to vector<2x8x32xbf16>
    %cst_213 = arith.constant dense<0.000000e+00> : vector<16x32xf32>
    %418 = tpu.matmul %407, %400, %cst_213 {dimension_numbers = #tpu.dot_dimension_numbers<[1], [0], [0], [1], [0, 0, 1, 1], [], []>} : vector<16x32xbf16>, vector<32x32xbf16>, vector<16x32xf32> -> vector<16x32xf32>
    %419 = vector.broadcast %402 : vector<1x32xf32> to vector<16x32xf32>
    %420 = arith.addf %418, %419 : vector<16x32xf32>
    %421 = vector.shape_cast %420 : vector<16x32xf32> to vector<2x8x32xf32>
    %422 = arith.truncf %421 : vector<2x8x32xf32> to vector<2x8x32xbf16>
    %423 = vector.extract_strided_slice %412 {offsets = [0, 0, 0], sizes = [2, 8, 8], strides = [1, 1, 1]} : vector<2x8x32xbf16> to vector<2x8x8xbf16>
    %424 = vector.extract_strided_slice %417 {offsets = [0, 0, 0], sizes = [2, 8, 8], strides = [1, 1, 1]} : vector<2x8x32xbf16> to vector<2x8x8xbf16>
    "tpu.trace_start"() <{level = 10 : i32, message = "bqd,bkd->bqk"}> : () -> ()
    %cst_214 = arith.constant dense<0.000000e+00> : vector<2x8x8xf32>
    %425 = tpu.matmul %423, %424, %cst_214 {dimension_numbers = #tpu.dot_dimension_numbers<[2], [2], [1], [1], [0, 0, 0, 1, 1, 1], [0], [0]>} : vector<2x8x8xbf16>, vector<2x8x8xbf16>, vector<2x8x8xf32> -> vector<2x8x8xf32>
    "tpu.trace_stop"() : () -> ()
    %426 = arith.addf %425, %15 : vector<2x8x8xf32>
    %cst_215 = arith.constant dense<0xFF800000> : vector<2x8xf32>
    %427 = vector.multi_reduction <maximumf>, %426, %cst_215 [2] : vector<2x8x8xf32> to vector<2x8xf32>
    %428 = vector.shape_cast %427 : vector<2x8xf32> to vector<2x8x1xf32>
    %429 = vector.broadcast %428 : vector<2x8x1xf32> to vector<2x8x8xf32>
    %430 = arith.subf %426, %429 : vector<2x8x8xf32>
    %431 = math.exp %430 : vector<2x8x8xf32>
    %cst_216 = arith.constant dense<0.000000e+00> : vector<2x8xf32>
    %432 = vector.multi_reduction <add>, %431, %cst_216 [2] : vector<2x8x8xf32> to vector<2x8xf32>
    %433 = vector.shape_cast %432 : vector<2x8xf32> to vector<2x8x1xf32>
    %434 = tpu.reciprocal %433 {approx = true} : vector<2x8x1xf32> -> vector<2x8x1xf32>
    %435 = vector.broadcast %434 : vector<2x8x1xf32> to vector<2x8x8xf32>
    %436 = arith.mulf %431, %435 : vector<2x8x8xf32>
    %437 = arith.truncf %436 : vector<2x8x8xf32> to vector<2x8x8xbf16>
    %438 = vector.extract_strided_slice %422 {offsets = [0, 0, 0], sizes = [2, 8, 8], strides = [1, 1, 1]} : vector<2x8x32xbf16> to vector<2x8x8xbf16>
    "tpu.trace_start"() <{level = 10 : i32, message = "bqk,bkd->bqd"}> : () -> ()
    %cst_217 = arith.constant dense<0.000000e+00> : vector<2x8x8xf32>
    %439 = tpu.matmul %437, %438, %cst_217 {dimension_numbers = #tpu.dot_dimension_numbers<[2], [1], [1], [2], [0, 0, 0, 1, 1, 2], [0], [0]>} : vector<2x8x8xbf16>, vector<2x8x8xbf16>, vector<2x8x8xf32> -> vector<2x8x8xf32>
    "tpu.trace_stop"() : () -> ()
    %440 = vector.extract_strided_slice %412 {offsets = [0, 0, 8], sizes = [2, 8, 8], strides = [1, 1, 1]} : vector<2x8x32xbf16> to vector<2x8x8xbf16>
    %441 = vector.extract_strided_slice %417 {offsets = [0, 0, 8], sizes = [2, 8, 8], strides = [1, 1, 1]} : vector<2x8x32xbf16> to vector<2x8x8xbf16>
    "tpu.trace_start"() <{level = 10 : i32, message = "bqd,bkd->bqk"}> : () -> ()
    %cst_218 = arith.constant dense<0.000000e+00> : vector<2x8x8xf32>
    %442 = tpu.matmul %440, %441, %cst_218 {dimension_numbers = #tpu.dot_dimension_numbers<[2], [2], [1], [1], [0, 0, 0, 1, 1, 1], [0], [0]>} : vector<2x8x8xbf16>, vector<2x8x8xbf16>, vector<2x8x8xf32> -> vector<2x8x8xf32>
    "tpu.trace_stop"() : () -> ()
    %443 = arith.addf %442, %15 : vector<2x8x8xf32>
    %cst_219 = arith.constant dense<0xFF800000> : vector<2x8xf32>
    %444 = vector.multi_reduction <maximumf>, %443, %cst_219 [2] : vector<2x8x8xf32> to vector<2x8xf32>
    %445 = vector.shape_cast %444 : vector<2x8xf32> to vector<2x8x1xf32>
    %446 = vector.broadcast %445 : vector<2x8x1xf32> to vector<2x8x8xf32>
    %447 = arith.subf %443, %446 : vector<2x8x8xf32>
    %448 = math.exp %447 : vector<2x8x8xf32>
    %cst_220 = arith.constant dense<0.000000e+00> : vector<2x8xf32>
    %449 = vector.multi_reduction <add>, %448, %cst_220 [2] : vector<2x8x8xf32> to vector<2x8xf32>
    %450 = vector.shape_cast %449 : vector<2x8xf32> to vector<2x8x1xf32>
    %451 = tpu.reciprocal %450 {approx = true} : vector<2x8x1xf32> -> vector<2x8x1xf32>
    %452 = vector.broadcast %451 : vector<2x8x1xf32> to vector<2x8x8xf32>
    %453 = arith.mulf %448, %452 : vector<2x8x8xf32>
    %454 = arith.truncf %453 : vector<2x8x8xf32> to vector<2x8x8xbf16>
    %455 = vector.extract_strided_slice %422 {offsets = [0, 0, 8], sizes = [2, 8, 8], strides = [1, 1, 1]} : vector<2x8x32xbf16> to vector<2x8x8xbf16>
    "tpu.trace_start"() <{level = 10 : i32, message = "bqk,bkd->bqd"}> : () -> ()
    %cst_221 = arith.constant dense<0.000000e+00> : vector<2x8x8xf32>
    %456 = tpu.matmul %454, %455, %cst_221 {dimension_numbers = #tpu.dot_dimension_numbers<[2], [1], [1], [2], [0, 0, 0, 1, 1, 2], [0], [0]>} : vector<2x8x8xbf16>, vector<2x8x8xbf16>, vector<2x8x8xf32> -> vector<2x8x8xf32>
    "tpu.trace_stop"() : () -> ()
    %457 = vector.extract_strided_slice %412 {offsets = [0, 0, 16], sizes = [2, 8, 8], strides = [1, 1, 1]} : vector<2x8x32xbf16> to vector<2x8x8xbf16>
    %458 = vector.extract_strided_slice %417 {offsets = [0, 0, 16], sizes = [2, 8, 8], strides = [1, 1, 1]} : vector<2x8x32xbf16> to vector<2x8x8xbf16>
    "tpu.trace_start"() <{level = 10 : i32, message = "bqd,bkd->bqk"}> : () -> ()
    %cst_222 = arith.constant dense<0.000000e+00> : vector<2x8x8xf32>
    %459 = tpu.matmul %457, %458, %cst_222 {dimension_numbers = #tpu.dot_dimension_numbers<[2], [2], [1], [1], [0, 0, 0, 1, 1, 1], [0], [0]>} : vector<2x8x8xbf16>, vector<2x8x8xbf16>, vector<2x8x8xf32> -> vector<2x8x8xf32>
    "tpu.trace_stop"() : () -> ()
    %460 = arith.addf %459, %15 : vector<2x8x8xf32>
    %cst_223 = arith.constant dense<0xFF800000> : vector<2x8xf32>
    %461 = vector.multi_reduction <maximumf>, %460, %cst_223 [2] : vector<2x8x8xf32> to vector<2x8xf32>
    %462 = vector.shape_cast %461 : vector<2x8xf32> to vector<2x8x1xf32>
    %463 = vector.broadcast %462 : vector<2x8x1xf32> to vector<2x8x8xf32>
    %464 = arith.subf %460, %463 : vector<2x8x8xf32>
    %465 = math.exp %464 : vector<2x8x8xf32>
    %cst_224 = arith.constant dense<0.000000e+00> : vector<2x8xf32>
    %466 = vector.multi_reduction <add>, %465, %cst_224 [2] : vector<2x8x8xf32> to vector<2x8xf32>
    %467 = vector.shape_cast %466 : vector<2x8xf32> to vector<2x8x1xf32>
    %468 = tpu.reciprocal %467 {approx = true} : vector<2x8x1xf32> -> vector<2x8x1xf32>
    %469 = vector.broadcast %468 : vector<2x8x1xf32> to vector<2x8x8xf32>
    %470 = arith.mulf %465, %469 : vector<2x8x8xf32>
    %471 = arith.truncf %470 : vector<2x8x8xf32> to vector<2x8x8xbf16>
    %472 = vector.extract_strided_slice %422 {offsets = [0, 0, 16], sizes = [2, 8, 8], strides = [1, 1, 1]} : vector<2x8x32xbf16> to vector<2x8x8xbf16>
    "tpu.trace_start"() <{level = 10 : i32, message = "bqk,bkd->bqd"}> : () -> ()
    %cst_225 = arith.constant dense<0.000000e+00> : vector<2x8x8xf32>
    %473 = tpu.matmul %471, %472, %cst_225 {dimension_numbers = #tpu.dot_dimension_numbers<[2], [1], [1], [2], [0, 0, 0, 1, 1, 2], [0], [0]>} : vector<2x8x8xbf16>, vector<2x8x8xbf16>, vector<2x8x8xf32> -> vector<2x8x8xf32>
    "tpu.trace_stop"() : () -> ()
    %474 = vector.extract_strided_slice %412 {offsets = [0, 0, 24], sizes = [2, 8, 8], strides = [1, 1, 1]} : vector<2x8x32xbf16> to vector<2x8x8xbf16>
    %475 = vector.extract_strided_slice %417 {offsets = [0, 0, 24], sizes = [2, 8, 8], strides = [1, 1, 1]} : vector<2x8x32xbf16> to vector<2x8x8xbf16>
    "tpu.trace_start"() <{level = 10 : i32, message = "bqd,bkd->bqk"}> : () -> ()
    %cst_226 = arith.constant dense<0.000000e+00> : vector<2x8x8xf32>
    %476 = tpu.matmul %474, %475, %cst_226 {dimension_numbers = #tpu.dot_dimension_numbers<[2], [2], [1], [1], [0, 0, 0, 1, 1, 1], [0], [0]>} : vector<2x8x8xbf16>, vector<2x8x8xbf16>, vector<2x8x8xf32> -> vector<2x8x8xf32>
    "tpu.trace_stop"() : () -> ()
    %477 = arith.addf %476, %15 : vector<2x8x8xf32>
    %cst_227 = arith.constant dense<0xFF800000> : vector<2x8xf32>
    %478 = vector.multi_reduction <maximumf>, %477, %cst_227 [2] : vector<2x8x8xf32> to vector<2x8xf32>
    %479 = vector.shape_cast %478 : vector<2x8xf32> to vector<2x8x1xf32>
    %480 = vector.broadcast %479 : vector<2x8x1xf32> to vector<2x8x8xf32>
    %481 = arith.subf %477, %480 : vector<2x8x8xf32>
    %482 = math.exp %481 : vector<2x8x8xf32>
    %cst_228 = arith.constant dense<0.000000e+00> : vector<2x8xf32>
    %483 = vector.multi_reduction <add>, %482, %cst_228 [2] : vector<2x8x8xf32> to vector<2x8xf32>
    %484 = vector.shape_cast %483 : vector<2x8xf32> to vector<2x8x1xf32>
    %485 = tpu.reciprocal %484 {approx = true} : vector<2x8x1xf32> -> vector<2x8x1xf32>
    %486 = vector.broadcast %485 : vector<2x8x1xf32> to vector<2x8x8xf32>
    %487 = arith.mulf %482, %486 : vector<2x8x8xf32>
    %488 = arith.truncf %487 : vector<2x8x8xf32> to vector<2x8x8xbf16>
    %489 = vector.extract_strided_slice %422 {offsets = [0, 0, 24], sizes = [2, 8, 8], strides = [1, 1, 1]} : vector<2x8x32xbf16> to vector<2x8x8xbf16>
    "tpu.trace_start"() <{level = 10 : i32, message = "bqk,bkd->bqd"}> : () -> ()
    %cst_229 = arith.constant dense<0.000000e+00> : vector<2x8x8xf32>
    %490 = tpu.matmul %488, %489, %cst_229 {dimension_numbers = #tpu.dot_dimension_numbers<[2], [1], [1], [2], [0, 0, 0, 1, 1, 2], [0], [0]>} : vector<2x8x8xbf16>, vector<2x8x8xbf16>, vector<2x8x8xf32> -> vector<2x8x8xf32>
    "tpu.trace_stop"() : () -> ()
    %491 = tpu.concatenate %439, %456, %473, %490 in 2 : vector<2x8x8xf32>, vector<2x8x8xf32>, vector<2x8x8xf32>, vector<2x8x8xf32> -> vector<2x8x32xf32>
    %492 = vector.shape_cast %491 : vector<2x8x32xf32> to vector<16x32xf32>
    %493 = arith.truncf %492 : vector<16x32xf32> to vector<16x32xbf16>
    %cst_230 = arith.constant dense<0.000000e+00> : vector<16x32xf32>
    %494 = tpu.matmul %493, %404, %cst_230 {dimension_numbers = #tpu.dot_dimension_numbers<[1], [0], [0], [1], [0, 0, 1, 1], [], []>} : vector<16x32xbf16>, vector<32x32xbf16>, vector<16x32xf32> -> vector<16x32xf32>
    %495 = vector.broadcast %406 : vector<1x32xf32> to vector<16x32xf32>
    %496 = arith.addf %494, %495 : vector<16x32xf32>
    %497 = arith.addf %390, %496 : vector<16x32xf32>
    %c0_231 = arith.constant 0 : index
    %c4_232 = arith.constant 4 : index
    %c0_233 = arith.constant 0 : index
    %498 = vector.load %arg13[%c0_231, %c4_232, %c0_233] : memref<2x15x32xf32, #tpu.memory_space<vmem>>, vector<1x1x32xf32>
    %499 = vector.shape_cast %498 : vector<1x1x32xf32> to vector<1x32xf32>
    %c0_234 = arith.constant 0 : index
    %c5_235 = arith.constant 5 : index
    %c0_236 = arith.constant 0 : index
    %500 = vector.load %arg13[%c0_234, %c5_235, %c0_236] : memref<2x15x32xf32, #tpu.memory_space<vmem>>, vector<1x1x32xf32>
    %501 = vector.shape_cast %500 : vector<1x1x32xf32> to vector<1x32xf32>
    %cst_237 = arith.constant dense<0.000000e+00> : vector<16xf32>
    %502 = vector.multi_reduction <add>, %497, %cst_237 [1] : vector<16x32xf32> to vector<16xf32>
    %503 = vector.shape_cast %502 : vector<16xf32> to vector<16x1xf32>
    %cst_238 = arith.constant 3.200000e+01 : f32
    %504 = vector.broadcast %cst_238 : f32 to vector<16x1xf32>
    %505 = arith.divf %503, %504 : vector<16x1xf32>
    %506 = vector.broadcast %505 : vector<16x1xf32> to vector<16x32xf32>
    %507 = arith.subf %497, %506 : vector<16x32xf32>
    %508 = arith.mulf %507, %507 : vector<16x32xf32>
    %cst_239 = arith.constant dense<0.000000e+00> : vector<16xf32>
    %509 = vector.multi_reduction <add>, %508, %cst_239 [1] : vector<16x32xf32> to vector<16xf32>
    %510 = vector.shape_cast %509 : vector<16xf32> to vector<16x1xf32>
    %cst_240 = arith.constant 3.200000e+01 : f32
    %511 = vector.broadcast %cst_240 : f32 to vector<16x1xf32>
    %512 = arith.divf %510, %511 : vector<16x1xf32>
    %cst_241 = arith.constant 9.99999974E-6 : f32
    %513 = vector.broadcast %cst_241 : f32 to vector<16x1xf32>
    %514 = arith.addf %512, %513 : vector<16x1xf32>
    %515 = math.rsqrt %514 : vector<16x1xf32>
    %516 = vector.broadcast %515 : vector<16x1xf32> to vector<16x32xf32>
    %517 = arith.mulf %507, %516 : vector<16x32xf32>
    %518 = vector.broadcast %499 : vector<1x32xf32> to vector<16x32xf32>
    %519 = arith.mulf %517, %518 : vector<16x32xf32>
    %520 = vector.broadcast %501 : vector<1x32xf32> to vector<16x32xf32>
    %521 = arith.addf %519, %520 : vector<16x32xf32>
    %c0_242 = arith.constant 0 : index
    %c4_243 = arith.constant 4 : index
    %c0_244 = arith.constant 0 : index
    %c0_245 = arith.constant 0 : index
    %522 = vector.load %arg10[%c0_242, %c4_243, %c0_244, %c0_245] : memref<2x8x32x32xbf16, #tpu.memory_space<vmem>>, vector<1x1x32x32xbf16>
    %523 = vector.shape_cast %522 : vector<1x1x32x32xbf16> to vector<32x32xbf16>
    %c0_246 = arith.constant 0 : index
    %c6_247 = arith.constant 6 : index
    %c0_248 = arith.constant 0 : index
    %524 = vector.load %arg13[%c0_246, %c6_247, %c0_248] : memref<2x15x32xf32, #tpu.memory_space<vmem>>, vector<1x1x32xf32>
    %525 = vector.shape_cast %524 : vector<1x1x32xf32> to vector<1x32xf32>
    %c0_249 = arith.constant 0 : index
    %c5_250 = arith.constant 5 : index
    %c0_251 = arith.constant 0 : index
    %c0_252 = arith.constant 0 : index
    %526 = vector.load %arg10[%c0_249, %c5_250, %c0_251, %c0_252] : memref<2x8x32x32xbf16, #tpu.memory_space<vmem>>, vector<1x1x32x32xbf16>
    %527 = vector.shape_cast %526 : vector<1x1x32x32xbf16> to vector<32x32xbf16>
    %c0_253 = arith.constant 0 : index
    %c7_254 = arith.constant 7 : index
    %c0_255 = arith.constant 0 : index
    %528 = vector.load %arg13[%c0_253, %c7_254, %c0_255] : memref<2x15x32xf32, #tpu.memory_space<vmem>>, vector<1x1x32xf32>
    %529 = vector.shape_cast %528 : vector<1x1x32xf32> to vector<1x32xf32>
    %c0_256 = arith.constant 0 : index
    %c6_257 = arith.constant 6 : index
    %c0_258 = arith.constant 0 : index
    %c0_259 = arith.constant 0 : index
    %530 = vector.load %arg10[%c0_256, %c6_257, %c0_258, %c0_259] : memref<2x8x32x32xbf16, #tpu.memory_space<vmem>>, vector<1x1x32x32xbf16>
    %531 = vector.shape_cast %530 : vector<1x1x32x32xbf16> to vector<32x32xbf16>
    %c0_260 = arith.constant 0 : index
    %c8_261 = arith.constant 8 : index
    %c0_262 = arith.constant 0 : index
    %532 = vector.load %arg13[%c0_260, %c8_261, %c0_262] : memref<2x15x32xf32, #tpu.memory_space<vmem>>, vector<1x1x32xf32>
    %533 = vector.shape_cast %532 : vector<1x1x32xf32> to vector<1x32xf32>
    %c0_263 = arith.constant 0 : index
    %c7_264 = arith.constant 7 : index
    %c0_265 = arith.constant 0 : index
    %c0_266 = arith.constant 0 : index
    %534 = vector.load %arg10[%c0_263, %c7_264, %c0_265, %c0_266] : memref<2x8x32x32xbf16, #tpu.memory_space<vmem>>, vector<1x1x32x32xbf16>
    %535 = vector.shape_cast %534 : vector<1x1x32x32xbf16> to vector<32x32xbf16>
    %c0_267 = arith.constant 0 : index
    %c9 = arith.constant 9 : index
    %c0_268 = arith.constant 0 : index
    %536 = vector.load %arg13[%c0_267, %c9, %c0_268] : memref<2x15x32xf32, #tpu.memory_space<vmem>>, vector<1x1x32xf32>
    %537 = vector.shape_cast %536 : vector<1x1x32xf32> to vector<1x32xf32>
    %538 = arith.truncf %521 : vector<16x32xf32> to vector<16x32xbf16>
    %cst_269 = arith.constant dense<0.000000e+00> : vector<16x32xf32>
    %539 = tpu.matmul %538, %523, %cst_269 {dimension_numbers = #tpu.dot_dimension_numbers<[1], [0], [0], [1], [0, 0, 1, 1], [], []>} : vector<16x32xbf16>, vector<32x32xbf16>, vector<16x32xf32> -> vector<16x32xf32>
    %540 = vector.broadcast %525 : vector<1x32xf32> to vector<16x32xf32>
    %541 = arith.addf %539, %540 : vector<16x32xf32>
    %542 = vector.shape_cast %541 : vector<16x32xf32> to vector<2x8x32xf32>
    %543 = arith.truncf %542 : vector<2x8x32xf32> to vector<2x8x32xbf16>
    %cst_270 = arith.constant dense<0.000000e+00> : vector<16x32xf32>
    %544 = tpu.matmul %388, %527, %cst_270 {dimension_numbers = #tpu.dot_dimension_numbers<[1], [0], [0], [1], [0, 0, 1, 1], [], []>} : vector<16x32xbf16>, vector<32x32xbf16>, vector<16x32xf32> -> vector<16x32xf32>
    %545 = vector.broadcast %529 : vector<1x32xf32> to vector<16x32xf32>
    %546 = arith.addf %544, %545 : vector<16x32xf32>
    %547 = vector.shape_cast %546 : vector<16x32xf32> to vector<2x8x32xf32>
    %548 = arith.truncf %547 : vector<2x8x32xf32> to vector<2x8x32xbf16>
    %cst_271 = arith.constant dense<0.000000e+00> : vector<16x32xf32>
    %549 = tpu.matmul %388, %531, %cst_271 {dimension_numbers = #tpu.dot_dimension_numbers<[1], [0], [0], [1], [0, 0, 1, 1], [], []>} : vector<16x32xbf16>, vector<32x32xbf16>, vector<16x32xf32> -> vector<16x32xf32>
    %550 = vector.broadcast %533 : vector<1x32xf32> to vector<16x32xf32>
    %551 = arith.addf %549, %550 : vector<16x32xf32>
    %552 = vector.shape_cast %551 : vector<16x32xf32> to vector<2x8x32xf32>
    %553 = arith.truncf %552 : vector<2x8x32xf32> to vector<2x8x32xbf16>
    %554 = vector.extract_strided_slice %543 {offsets = [0, 0, 0], sizes = [2, 8, 8], strides = [1, 1, 1]} : vector<2x8x32xbf16> to vector<2x8x8xbf16>
    %555 = vector.extract_strided_slice %548 {offsets = [0, 0, 0], sizes = [2, 8, 8], strides = [1, 1, 1]} : vector<2x8x32xbf16> to vector<2x8x8xbf16>
    "tpu.trace_start"() <{level = 10 : i32, message = "bqd,bkd->bqk"}> : () -> ()
    %cst_272 = arith.constant dense<0.000000e+00> : vector<2x8x8xf32>
    %556 = tpu.matmul %554, %555, %cst_272 {dimension_numbers = #tpu.dot_dimension_numbers<[2], [2], [1], [1], [0, 0, 0, 1, 1, 1], [0], [0]>} : vector<2x8x8xbf16>, vector<2x8x8xbf16>, vector<2x8x8xf32> -> vector<2x8x8xf32>
    "tpu.trace_stop"() : () -> ()
    %557 = arith.addf %556, %5 : vector<2x8x8xf32>
    %cst_273 = arith.constant dense<0xFF800000> : vector<2x8xf32>
    %558 = vector.multi_reduction <maximumf>, %557, %cst_273 [2] : vector<2x8x8xf32> to vector<2x8xf32>
    %559 = vector.shape_cast %558 : vector<2x8xf32> to vector<2x8x1xf32>
    %560 = vector.broadcast %559 : vector<2x8x1xf32> to vector<2x8x8xf32>
    %561 = arith.subf %557, %560 : vector<2x8x8xf32>
    %562 = math.exp %561 : vector<2x8x8xf32>
    %cst_274 = arith.constant dense<0.000000e+00> : vector<2x8xf32>
    %563 = vector.multi_reduction <add>, %562, %cst_274 [2] : vector<2x8x8xf32> to vector<2x8xf32>
    %564 = vector.shape_cast %563 : vector<2x8xf32> to vector<2x8x1xf32>
    %565 = tpu.reciprocal %564 {approx = true} : vector<2x8x1xf32> -> vector<2x8x1xf32>
    %566 = vector.broadcast %565 : vector<2x8x1xf32> to vector<2x8x8xf32>
    %567 = arith.mulf %562, %566 : vector<2x8x8xf32>
    %568 = arith.truncf %567 : vector<2x8x8xf32> to vector<2x8x8xbf16>
    %569 = vector.extract_strided_slice %553 {offsets = [0, 0, 0], sizes = [2, 8, 8], strides = [1, 1, 1]} : vector<2x8x32xbf16> to vector<2x8x8xbf16>
    "tpu.trace_start"() <{level = 10 : i32, message = "bqk,bkd->bqd"}> : () -> ()
    %cst_275 = arith.constant dense<0.000000e+00> : vector<2x8x8xf32>
    %570 = tpu.matmul %568, %569, %cst_275 {dimension_numbers = #tpu.dot_dimension_numbers<[2], [1], [1], [2], [0, 0, 0, 1, 1, 2], [0], [0]>} : vector<2x8x8xbf16>, vector<2x8x8xbf16>, vector<2x8x8xf32> -> vector<2x8x8xf32>
    "tpu.trace_stop"() : () -> ()
    %571 = vector.extract_strided_slice %543 {offsets = [0, 0, 8], sizes = [2, 8, 8], strides = [1, 1, 1]} : vector<2x8x32xbf16> to vector<2x8x8xbf16>
    %572 = vector.extract_strided_slice %548 {offsets = [0, 0, 8], sizes = [2, 8, 8], strides = [1, 1, 1]} : vector<2x8x32xbf16> to vector<2x8x8xbf16>
    "tpu.trace_start"() <{level = 10 : i32, message = "bqd,bkd->bqk"}> : () -> ()
    %cst_276 = arith.constant dense<0.000000e+00> : vector<2x8x8xf32>
    %573 = tpu.matmul %571, %572, %cst_276 {dimension_numbers = #tpu.dot_dimension_numbers<[2], [2], [1], [1], [0, 0, 0, 1, 1, 1], [0], [0]>} : vector<2x8x8xbf16>, vector<2x8x8xbf16>, vector<2x8x8xf32> -> vector<2x8x8xf32>
    "tpu.trace_stop"() : () -> ()
    %574 = arith.addf %573, %5 : vector<2x8x8xf32>
    %cst_277 = arith.constant dense<0xFF800000> : vector<2x8xf32>
    %575 = vector.multi_reduction <maximumf>, %574, %cst_277 [2] : vector<2x8x8xf32> to vector<2x8xf32>
    %576 = vector.shape_cast %575 : vector<2x8xf32> to vector<2x8x1xf32>
    %577 = vector.broadcast %576 : vector<2x8x1xf32> to vector<2x8x8xf32>
    %578 = arith.subf %574, %577 : vector<2x8x8xf32>
    %579 = math.exp %578 : vector<2x8x8xf32>
    %cst_278 = arith.constant dense<0.000000e+00> : vector<2x8xf32>
    %580 = vector.multi_reduction <add>, %579, %cst_278 [2] : vector<2x8x8xf32> to vector<2x8xf32>
    %581 = vector.shape_cast %580 : vector<2x8xf32> to vector<2x8x1xf32>
    %582 = tpu.reciprocal %581 {approx = true} : vector<2x8x1xf32> -> vector<2x8x1xf32>
    %583 = vector.broadcast %582 : vector<2x8x1xf32> to vector<2x8x8xf32>
    %584 = arith.mulf %579, %583 : vector<2x8x8xf32>
    %585 = arith.truncf %584 : vector<2x8x8xf32> to vector<2x8x8xbf16>
    %586 = vector.extract_strided_slice %553 {offsets = [0, 0, 8], sizes = [2, 8, 8], strides = [1, 1, 1]} : vector<2x8x32xbf16> to vector<2x8x8xbf16>
    "tpu.trace_start"() <{level = 10 : i32, message = "bqk,bkd->bqd"}> : () -> ()
    %cst_279 = arith.constant dense<0.000000e+00> : vector<2x8x8xf32>
    %587 = tpu.matmul %585, %586, %cst_279 {dimension_numbers = #tpu.dot_dimension_numbers<[2], [1], [1], [2], [0, 0, 0, 1, 1, 2], [0], [0]>} : vector<2x8x8xbf16>, vector<2x8x8xbf16>, vector<2x8x8xf32> -> vector<2x8x8xf32>
    "tpu.trace_stop"() : () -> ()
    %588 = vector.extract_strided_slice %543 {offsets = [0, 0, 16], sizes = [2, 8, 8], strides = [1, 1, 1]} : vector<2x8x32xbf16> to vector<2x8x8xbf16>
    %589 = vector.extract_strided_slice %548 {offsets = [0, 0, 16], sizes = [2, 8, 8], strides = [1, 1, 1]} : vector<2x8x32xbf16> to vector<2x8x8xbf16>
    "tpu.trace_start"() <{level = 10 : i32, message = "bqd,bkd->bqk"}> : () -> ()
    %cst_280 = arith.constant dense<0.000000e+00> : vector<2x8x8xf32>
    %590 = tpu.matmul %588, %589, %cst_280 {dimension_numbers = #tpu.dot_dimension_numbers<[2], [2], [1], [1], [0, 0, 0, 1, 1, 1], [0], [0]>} : vector<2x8x8xbf16>, vector<2x8x8xbf16>, vector<2x8x8xf32> -> vector<2x8x8xf32>
    "tpu.trace_stop"() : () -> ()
    %591 = arith.addf %590, %5 : vector<2x8x8xf32>
    %cst_281 = arith.constant dense<0xFF800000> : vector<2x8xf32>
    %592 = vector.multi_reduction <maximumf>, %591, %cst_281 [2] : vector<2x8x8xf32> to vector<2x8xf32>
    %593 = vector.shape_cast %592 : vector<2x8xf32> to vector<2x8x1xf32>
    %594 = vector.broadcast %593 : vector<2x8x1xf32> to vector<2x8x8xf32>
    %595 = arith.subf %591, %594 : vector<2x8x8xf32>
    %596 = math.exp %595 : vector<2x8x8xf32>
    %cst_282 = arith.constant dense<0.000000e+00> : vector<2x8xf32>
    %597 = vector.multi_reduction <add>, %596, %cst_282 [2] : vector<2x8x8xf32> to vector<2x8xf32>
    %598 = vector.shape_cast %597 : vector<2x8xf32> to vector<2x8x1xf32>
    %599 = tpu.reciprocal %598 {approx = true} : vector<2x8x1xf32> -> vector<2x8x1xf32>
    %600 = vector.broadcast %599 : vector<2x8x1xf32> to vector<2x8x8xf32>
    %601 = arith.mulf %596, %600 : vector<2x8x8xf32>
    %602 = arith.truncf %601 : vector<2x8x8xf32> to vector<2x8x8xbf16>
    %603 = vector.extract_strided_slice %553 {offsets = [0, 0, 16], sizes = [2, 8, 8], strides = [1, 1, 1]} : vector<2x8x32xbf16> to vector<2x8x8xbf16>
    "tpu.trace_start"() <{level = 10 : i32, message = "bqk,bkd->bqd"}> : () -> ()
    %cst_283 = arith.constant dense<0.000000e+00> : vector<2x8x8xf32>
    %604 = tpu.matmul %602, %603, %cst_283 {dimension_numbers = #tpu.dot_dimension_numbers<[2], [1], [1], [2], [0, 0, 0, 1, 1, 2], [0], [0]>} : vector<2x8x8xbf16>, vector<2x8x8xbf16>, vector<2x8x8xf32> -> vector<2x8x8xf32>
    "tpu.trace_stop"() : () -> ()
    %605 = vector.extract_strided_slice %543 {offsets = [0, 0, 24], sizes = [2, 8, 8], strides = [1, 1, 1]} : vector<2x8x32xbf16> to vector<2x8x8xbf16>
    %606 = vector.extract_strided_slice %548 {offsets = [0, 0, 24], sizes = [2, 8, 8], strides = [1, 1, 1]} : vector<2x8x32xbf16> to vector<2x8x8xbf16>
    "tpu.trace_start"() <{level = 10 : i32, message = "bqd,bkd->bqk"}> : () -> ()
    %cst_284 = arith.constant dense<0.000000e+00> : vector<2x8x8xf32>
    %607 = tpu.matmul %605, %606, %cst_284 {dimension_numbers = #tpu.dot_dimension_numbers<[2], [2], [1], [1], [0, 0, 0, 1, 1, 1], [0], [0]>} : vector<2x8x8xbf16>, vector<2x8x8xbf16>, vector<2x8x8xf32> -> vector<2x8x8xf32>
    "tpu.trace_stop"() : () -> ()
    %608 = arith.addf %607, %5 : vector<2x8x8xf32>
    %cst_285 = arith.constant dense<0xFF800000> : vector<2x8xf32>
    %609 = vector.multi_reduction <maximumf>, %608, %cst_285 [2] : vector<2x8x8xf32> to vector<2x8xf32>
    %610 = vector.shape_cast %609 : vector<2x8xf32> to vector<2x8x1xf32>
    %611 = vector.broadcast %610 : vector<2x8x1xf32> to vector<2x8x8xf32>
    %612 = arith.subf %608, %611 : vector<2x8x8xf32>
    %613 = math.exp %612 : vector<2x8x8xf32>
    %cst_286 = arith.constant dense<0.000000e+00> : vector<2x8xf32>
    %614 = vector.multi_reduction <add>, %613, %cst_286 [2] : vector<2x8x8xf32> to vector<2x8xf32>
    %615 = vector.shape_cast %614 : vector<2x8xf32> to vector<2x8x1xf32>
    %616 = tpu.reciprocal %615 {approx = true} : vector<2x8x1xf32> -> vector<2x8x1xf32>
    %617 = vector.broadcast %616 : vector<2x8x1xf32> to vector<2x8x8xf32>
    %618 = arith.mulf %613, %617 : vector<2x8x8xf32>
    %619 = arith.truncf %618 : vector<2x8x8xf32> to vector<2x8x8xbf16>
    %620 = vector.extract_strided_slice %553 {offsets = [0, 0, 24], sizes = [2, 8, 8], strides = [1, 1, 1]} : vector<2x8x32xbf16> to vector<2x8x8xbf16>
    "tpu.trace_start"() <{level = 10 : i32, message = "bqk,bkd->bqd"}> : () -> ()
    %cst_287 = arith.constant dense<0.000000e+00> : vector<2x8x8xf32>
    %621 = tpu.matmul %619, %620, %cst_287 {dimension_numbers = #tpu.dot_dimension_numbers<[2], [1], [1], [2], [0, 0, 0, 1, 1, 2], [0], [0]>} : vector<2x8x8xbf16>, vector<2x8x8xbf16>, vector<2x8x8xf32> -> vector<2x8x8xf32>
    "tpu.trace_stop"() : () -> ()
    %622 = tpu.concatenate %570, %587, %604, %621 in 2 : vector<2x8x8xf32>, vector<2x8x8xf32>, vector<2x8x8xf32>, vector<2x8x8xf32> -> vector<2x8x32xf32>
    %623 = vector.shape_cast %622 : vector<2x8x32xf32> to vector<16x32xf32>
    %624 = arith.truncf %623 : vector<16x32xf32> to vector<16x32xbf16>
    %cst_288 = arith.constant dense<0.000000e+00> : vector<16x32xf32>
    %625 = tpu.matmul %624, %535, %cst_288 {dimension_numbers = #tpu.dot_dimension_numbers<[1], [0], [0], [1], [0, 0, 1, 1], [], []>} : vector<16x32xbf16>, vector<32x32xbf16>, vector<16x32xf32> -> vector<16x32xf32>
    %626 = vector.broadcast %537 : vector<1x32xf32> to vector<16x32xf32>
    %627 = arith.addf %625, %626 : vector<16x32xf32>
    %628 = arith.addf %521, %627 : vector<16x32xf32>
    %c0_289 = arith.constant 0 : index
    %c10 = arith.constant 10 : index
    %c0_290 = arith.constant 0 : index
    %629 = vector.load %arg13[%c0_289, %c10, %c0_290] : memref<2x15x32xf32, #tpu.memory_space<vmem>>, vector<1x1x32xf32>
    %630 = vector.shape_cast %629 : vector<1x1x32xf32> to vector<1x32xf32>
    %c0_291 = arith.constant 0 : index
    %c11 = arith.constant 11 : index
    %c0_292 = arith.constant 0 : index
    %631 = vector.load %arg13[%c0_291, %c11, %c0_292] : memref<2x15x32xf32, #tpu.memory_space<vmem>>, vector<1x1x32xf32>
    %632 = vector.shape_cast %631 : vector<1x1x32xf32> to vector<1x32xf32>
    %cst_293 = arith.constant dense<0.000000e+00> : vector<16xf32>
    %633 = vector.multi_reduction <add>, %628, %cst_293 [1] : vector<16x32xf32> to vector<16xf32>
    %634 = vector.shape_cast %633 : vector<16xf32> to vector<16x1xf32>
    %cst_294 = arith.constant 3.200000e+01 : f32
    %635 = vector.broadcast %cst_294 : f32 to vector<16x1xf32>
    %636 = arith.divf %634, %635 : vector<16x1xf32>
    %637 = vector.broadcast %636 : vector<16x1xf32> to vector<16x32xf32>
    %638 = arith.subf %628, %637 : vector<16x32xf32>
    %639 = arith.mulf %638, %638 : vector<16x32xf32>
    %cst_295 = arith.constant dense<0.000000e+00> : vector<16xf32>
    %640 = vector.multi_reduction <add>, %639, %cst_295 [1] : vector<16x32xf32> to vector<16xf32>
    %641 = vector.shape_cast %640 : vector<16xf32> to vector<16x1xf32>
    %cst_296 = arith.constant 3.200000e+01 : f32
    %642 = vector.broadcast %cst_296 : f32 to vector<16x1xf32>
    %643 = arith.divf %641, %642 : vector<16x1xf32>
    %cst_297 = arith.constant 9.99999974E-6 : f32
    %644 = vector.broadcast %cst_297 : f32 to vector<16x1xf32>
    %645 = arith.addf %643, %644 : vector<16x1xf32>
    %646 = math.rsqrt %645 : vector<16x1xf32>
    %647 = vector.broadcast %646 : vector<16x1xf32> to vector<16x32xf32>
    %648 = arith.mulf %638, %647 : vector<16x32xf32>
    %649 = vector.broadcast %630 : vector<1x32xf32> to vector<16x32xf32>
    %650 = arith.mulf %648, %649 : vector<16x32xf32>
    %651 = vector.broadcast %632 : vector<1x32xf32> to vector<16x32xf32>
    %652 = arith.addf %650, %651 : vector<16x32xf32>
    %653 = arith.truncf %652 : vector<16x32xf32> to vector<16x32xbf16>
    %c0_298 = arith.constant 0 : index
    %c0_299 = arith.constant 0 : index
    %c0_300 = arith.constant 0 : index
    %654 = vector.load %arg11[%c0_298, %c0_299, %c0_300] : memref<2x32x64xbf16, #tpu.memory_space<vmem>>, vector<1x32x64xbf16>
    %655 = vector.shape_cast %654 : vector<1x32x64xbf16> to vector<32x64xbf16>
    %cst_301 = arith.constant dense<0.000000e+00> : vector<16x64xf32>
    %656 = tpu.matmul %653, %655, %cst_301 {dimension_numbers = #tpu.dot_dimension_numbers<[1], [0], [0], [1], [0, 0, 1, 1], [], []>} : vector<16x32xbf16>, vector<32x64xbf16>, vector<16x64xf32> -> vector<16x64xf32>
    %c0_302 = arith.constant 0 : index
    %c0_303 = arith.constant 0 : index
    %c0_304 = arith.constant 0 : index
    %657 = vector.load %arg14[%c0_302, %c0_303, %c0_304] : memref<2x1x64xf32, #tpu.memory_space<vmem>>, vector<1x1x64xf32>
    %658 = vector.shape_cast %657 : vector<1x1x64xf32> to vector<1x64xf32>
    %659 = vector.broadcast %658 : vector<1x64xf32> to vector<16x64xf32>
    %660 = arith.addf %656, %659 : vector<16x64xf32>
    %cst_305 = arith.constant 0.000000e+00 : f32
    %661 = vector.broadcast %cst_305 : f32 to vector<16x64xf32>
    %662 = arith.maximumf %660, %661 : vector<16x64xf32>
    %663 = arith.truncf %662 : vector<16x64xf32> to vector<16x64xbf16>
    %c0_306 = arith.constant 0 : index
    %c0_307 = arith.constant 0 : index
    %c0_308 = arith.constant 0 : index
    %664 = vector.load %arg12[%c0_306, %c0_307, %c0_308] : memref<2x64x32xbf16, #tpu.memory_space<vmem>>, vector<1x64x32xbf16>
    %665 = vector.shape_cast %664 : vector<1x64x32xbf16> to vector<64x32xbf16>
    %cst_309 = arith.constant dense<0.000000e+00> : vector<16x32xf32>
    %666 = tpu.matmul %663, %665, %cst_309 {dimension_numbers = #tpu.dot_dimension_numbers<[1], [0], [0], [1], [0, 0, 1, 1], [], []>} : vector<16x64xbf16>, vector<64x32xbf16>, vector<16x32xf32> -> vector<16x32xf32>
    %c0_310 = arith.constant 0 : index
    %c12 = arith.constant 12 : index
    %c0_311 = arith.constant 0 : index
    %667 = vector.load %arg13[%c0_310, %c12, %c0_311] : memref<2x15x32xf32, #tpu.memory_space<vmem>>, vector<1x1x32xf32>
    %668 = vector.shape_cast %667 : vector<1x1x32xf32> to vector<1x32xf32>
    %669 = vector.broadcast %668 : vector<1x32xf32> to vector<16x32xf32>
    %670 = arith.addf %666, %669 : vector<16x32xf32>
    %671 = arith.addf %652, %670 : vector<16x32xf32>
    %c0_312 = arith.constant 0 : index
    %c13 = arith.constant 13 : index
    %c0_313 = arith.constant 0 : index
    %672 = vector.load %arg13[%c0_312, %c13, %c0_313] : memref<2x15x32xf32, #tpu.memory_space<vmem>>, vector<1x1x32xf32>
    %673 = vector.shape_cast %672 : vector<1x1x32xf32> to vector<1x32xf32>
    %c0_314 = arith.constant 0 : index
    %c14 = arith.constant 14 : index
    %c0_315 = arith.constant 0 : index
    %674 = vector.load %arg13[%c0_314, %c14, %c0_315] : memref<2x15x32xf32, #tpu.memory_space<vmem>>, vector<1x1x32xf32>
    %675 = vector.shape_cast %674 : vector<1x1x32xf32> to vector<1x32xf32>
    %cst_316 = arith.constant dense<0.000000e+00> : vector<16xf32>
    %676 = vector.multi_reduction <add>, %671, %cst_316 [1] : vector<16x32xf32> to vector<16xf32>
    %677 = vector.shape_cast %676 : vector<16xf32> to vector<16x1xf32>
    %cst_317 = arith.constant 3.200000e+01 : f32
    %678 = vector.broadcast %cst_317 : f32 to vector<16x1xf32>
    %679 = arith.divf %677, %678 : vector<16x1xf32>
    %680 = vector.broadcast %679 : vector<16x1xf32> to vector<16x32xf32>
    %681 = arith.subf %671, %680 : vector<16x32xf32>
    %682 = arith.mulf %681, %681 : vector<16x32xf32>
    %cst_318 = arith.constant dense<0.000000e+00> : vector<16xf32>
    %683 = vector.multi_reduction <add>, %682, %cst_318 [1] : vector<16x32xf32> to vector<16xf32>
    %684 = vector.shape_cast %683 : vector<16xf32> to vector<16x1xf32>
    %cst_319 = arith.constant 3.200000e+01 : f32
    %685 = vector.broadcast %cst_319 : f32 to vector<16x1xf32>
    %686 = arith.divf %684, %685 : vector<16x1xf32>
    %cst_320 = arith.constant 9.99999974E-6 : f32
    %687 = vector.broadcast %cst_320 : f32 to vector<16x1xf32>
    %688 = arith.addf %686, %687 : vector<16x1xf32>
    %689 = math.rsqrt %688 : vector<16x1xf32>
    %690 = vector.broadcast %689 : vector<16x1xf32> to vector<16x32xf32>
    %691 = arith.mulf %681, %690 : vector<16x32xf32>
    %692 = vector.broadcast %673 : vector<1x32xf32> to vector<16x32xf32>
    %693 = arith.mulf %691, %692 : vector<16x32xf32>
    %694 = vector.broadcast %675 : vector<1x32xf32> to vector<16x32xf32>
    %695 = arith.addf %693, %694 : vector<16x32xf32>
    %c1_321 = arith.constant 1 : index
    %c0_322 = arith.constant 0 : index
    %c0_323 = arith.constant 0 : index
    %c0_324 = arith.constant 0 : index
    %696 = vector.load %arg10[%c1_321, %c0_322, %c0_323, %c0_324] : memref<2x8x32x32xbf16, #tpu.memory_space<vmem>>, vector<1x1x32x32xbf16>
    %697 = vector.shape_cast %696 : vector<1x1x32x32xbf16> to vector<32x32xbf16>
    %c1_325 = arith.constant 1 : index
    %c0_326 = arith.constant 0 : index
    %c0_327 = arith.constant 0 : index
    %698 = vector.load %arg13[%c1_325, %c0_326, %c0_327] : memref<2x15x32xf32, #tpu.memory_space<vmem>>, vector<1x1x32xf32>
    %699 = vector.shape_cast %698 : vector<1x1x32xf32> to vector<1x32xf32>
    %c1_328 = arith.constant 1 : index
    %c1_329 = arith.constant 1 : index
    %c0_330 = arith.constant 0 : index
    %c0_331 = arith.constant 0 : index
    %700 = vector.load %arg10[%c1_328, %c1_329, %c0_330, %c0_331] : memref<2x8x32x32xbf16, #tpu.memory_space<vmem>>, vector<1x1x32x32xbf16>
    %701 = vector.shape_cast %700 : vector<1x1x32x32xbf16> to vector<32x32xbf16>
    %c1_332 = arith.constant 1 : index
    %c1_333 = arith.constant 1 : index
    %c0_334 = arith.constant 0 : index
    %702 = vector.load %arg13[%c1_332, %c1_333, %c0_334] : memref<2x15x32xf32, #tpu.memory_space<vmem>>, vector<1x1x32xf32>
    %703 = vector.shape_cast %702 : vector<1x1x32xf32> to vector<1x32xf32>
    %c1_335 = arith.constant 1 : index
    %c2_336 = arith.constant 2 : index
    %c0_337 = arith.constant 0 : index
    %c0_338 = arith.constant 0 : index
    %704 = vector.load %arg10[%c1_335, %c2_336, %c0_337, %c0_338] : memref<2x8x32x32xbf16, #tpu.memory_space<vmem>>, vector<1x1x32x32xbf16>
    %705 = vector.shape_cast %704 : vector<1x1x32x32xbf16> to vector<32x32xbf16>
    %c1_339 = arith.constant 1 : index
    %c2_340 = arith.constant 2 : index
    %c0_341 = arith.constant 0 : index
    %706 = vector.load %arg13[%c1_339, %c2_340, %c0_341] : memref<2x15x32xf32, #tpu.memory_space<vmem>>, vector<1x1x32xf32>
    %707 = vector.shape_cast %706 : vector<1x1x32xf32> to vector<1x32xf32>
    %c1_342 = arith.constant 1 : index
    %c3_343 = arith.constant 3 : index
    %c0_344 = arith.constant 0 : index
    %c0_345 = arith.constant 0 : index
    %708 = vector.load %arg10[%c1_342, %c3_343, %c0_344, %c0_345] : memref<2x8x32x32xbf16, #tpu.memory_space<vmem>>, vector<1x1x32x32xbf16>
    %709 = vector.shape_cast %708 : vector<1x1x32x32xbf16> to vector<32x32xbf16>
    %c1_346 = arith.constant 1 : index
    %c3_347 = arith.constant 3 : index
    %c0_348 = arith.constant 0 : index
    %710 = vector.load %arg13[%c1_346, %c3_347, %c0_348] : memref<2x15x32xf32, #tpu.memory_space<vmem>>, vector<1x1x32xf32>
    %711 = vector.shape_cast %710 : vector<1x1x32xf32> to vector<1x32xf32>
    %712 = arith.truncf %695 : vector<16x32xf32> to vector<16x32xbf16>
    %cst_349 = arith.constant dense<0.000000e+00> : vector<16x32xf32>
    %713 = tpu.matmul %712, %697, %cst_349 {dimension_numbers = #tpu.dot_dimension_numbers<[1], [0], [0], [1], [0, 0, 1, 1], [], []>} : vector<16x32xbf16>, vector<32x32xbf16>, vector<16x32xf32> -> vector<16x32xf32>
    %714 = vector.broadcast %699 : vector<1x32xf32> to vector<16x32xf32>
    %715 = arith.addf %713, %714 : vector<16x32xf32>
    %716 = vector.shape_cast %715 : vector<16x32xf32> to vector<2x8x32xf32>
    %717 = arith.truncf %716 : vector<2x8x32xf32> to vector<2x8x32xbf16>
    %cst_350 = arith.constant dense<0.000000e+00> : vector<16x32xf32>
    %718 = tpu.matmul %712, %701, %cst_350 {dimension_numbers = #tpu.dot_dimension_numbers<[1], [0], [0], [1], [0, 0, 1, 1], [], []>} : vector<16x32xbf16>, vector<32x32xbf16>, vector<16x32xf32> -> vector<16x32xf32>
    %719 = vector.broadcast %703 : vector<1x32xf32> to vector<16x32xf32>
    %720 = arith.addf %718, %719 : vector<16x32xf32>
    %721 = vector.shape_cast %720 : vector<16x32xf32> to vector<2x8x32xf32>
    %722 = arith.truncf %721 : vector<2x8x32xf32> to vector<2x8x32xbf16>
    %cst_351 = arith.constant dense<0.000000e+00> : vector<16x32xf32>
    %723 = tpu.matmul %712, %705, %cst_351 {dimension_numbers = #tpu.dot_dimension_numbers<[1], [0], [0], [1], [0, 0, 1, 1], [], []>} : vector<16x32xbf16>, vector<32x32xbf16>, vector<16x32xf32> -> vector<16x32xf32>
    %724 = vector.broadcast %707 : vector<1x32xf32> to vector<16x32xf32>
    %725 = arith.addf %723, %724 : vector<16x32xf32>
    %726 = vector.shape_cast %725 : vector<16x32xf32> to vector<2x8x32xf32>
    %727 = arith.truncf %726 : vector<2x8x32xf32> to vector<2x8x32xbf16>
    %728 = vector.extract_strided_slice %717 {offsets = [0, 0, 0], sizes = [2, 8, 8], strides = [1, 1, 1]} : vector<2x8x32xbf16> to vector<2x8x8xbf16>
    %729 = vector.extract_strided_slice %722 {offsets = [0, 0, 0], sizes = [2, 8, 8], strides = [1, 1, 1]} : vector<2x8x32xbf16> to vector<2x8x8xbf16>
    "tpu.trace_start"() <{level = 10 : i32, message = "bqd,bkd->bqk"}> : () -> ()
    %cst_352 = arith.constant dense<0.000000e+00> : vector<2x8x8xf32>
    %730 = tpu.matmul %728, %729, %cst_352 {dimension_numbers = #tpu.dot_dimension_numbers<[2], [2], [1], [1], [0, 0, 0, 1, 1, 1], [0], [0]>} : vector<2x8x8xbf16>, vector<2x8x8xbf16>, vector<2x8x8xf32> -> vector<2x8x8xf32>
    "tpu.trace_stop"() : () -> ()
    %731 = arith.addf %730, %15 : vector<2x8x8xf32>
    %cst_353 = arith.constant dense<0xFF800000> : vector<2x8xf32>
    %732 = vector.multi_reduction <maximumf>, %731, %cst_353 [2] : vector<2x8x8xf32> to vector<2x8xf32>
    %733 = vector.shape_cast %732 : vector<2x8xf32> to vector<2x8x1xf32>
    %734 = vector.broadcast %733 : vector<2x8x1xf32> to vector<2x8x8xf32>
    %735 = arith.subf %731, %734 : vector<2x8x8xf32>
    %736 = math.exp %735 : vector<2x8x8xf32>
    %cst_354 = arith.constant dense<0.000000e+00> : vector<2x8xf32>
    %737 = vector.multi_reduction <add>, %736, %cst_354 [2] : vector<2x8x8xf32> to vector<2x8xf32>
    %738 = vector.shape_cast %737 : vector<2x8xf32> to vector<2x8x1xf32>
    %739 = tpu.reciprocal %738 {approx = true} : vector<2x8x1xf32> -> vector<2x8x1xf32>
    %740 = vector.broadcast %739 : vector<2x8x1xf32> to vector<2x8x8xf32>
    %741 = arith.mulf %736, %740 : vector<2x8x8xf32>
    %742 = arith.truncf %741 : vector<2x8x8xf32> to vector<2x8x8xbf16>
    %743 = vector.extract_strided_slice %727 {offsets = [0, 0, 0], sizes = [2, 8, 8], strides = [1, 1, 1]} : vector<2x8x32xbf16> to vector<2x8x8xbf16>
    "tpu.trace_start"() <{level = 10 : i32, message = "bqk,bkd->bqd"}> : () -> ()
    %cst_355 = arith.constant dense<0.000000e+00> : vector<2x8x8xf32>
    %744 = tpu.matmul %742, %743, %cst_355 {dimension_numbers = #tpu.dot_dimension_numbers<[2], [1], [1], [2], [0, 0, 0, 1, 1, 2], [0], [0]>} : vector<2x8x8xbf16>, vector<2x8x8xbf16>, vector<2x8x8xf32> -> vector<2x8x8xf32>
    "tpu.trace_stop"() : () -> ()
    %745 = vector.extract_strided_slice %717 {offsets = [0, 0, 8], sizes = [2, 8, 8], strides = [1, 1, 1]} : vector<2x8x32xbf16> to vector<2x8x8xbf16>
    %746 = vector.extract_strided_slice %722 {offsets = [0, 0, 8], sizes = [2, 8, 8], strides = [1, 1, 1]} : vector<2x8x32xbf16> to vector<2x8x8xbf16>
    "tpu.trace_start"() <{level = 10 : i32, message = "bqd,bkd->bqk"}> : () -> ()
    %cst_356 = arith.constant dense<0.000000e+00> : vector<2x8x8xf32>
    %747 = tpu.matmul %745, %746, %cst_356 {dimension_numbers = #tpu.dot_dimension_numbers<[2], [2], [1], [1], [0, 0, 0, 1, 1, 1], [0], [0]>} : vector<2x8x8xbf16>, vector<2x8x8xbf16>, vector<2x8x8xf32> -> vector<2x8x8xf32>
    "tpu.trace_stop"() : () -> ()
    %748 = arith.addf %747, %15 : vector<2x8x8xf32>
    %cst_357 = arith.constant dense<0xFF800000> : vector<2x8xf32>
    %749 = vector.multi_reduction <maximumf>, %748, %cst_357 [2] : vector<2x8x8xf32> to vector<2x8xf32>
    %750 = vector.shape_cast %749 : vector<2x8xf32> to vector<2x8x1xf32>
    %751 = vector.broadcast %750 : vector<2x8x1xf32> to vector<2x8x8xf32>
    %752 = arith.subf %748, %751 : vector<2x8x8xf32>
    %753 = math.exp %752 : vector<2x8x8xf32>
    %cst_358 = arith.constant dense<0.000000e+00> : vector<2x8xf32>
    %754 = vector.multi_reduction <add>, %753, %cst_358 [2] : vector<2x8x8xf32> to vector<2x8xf32>
    %755 = vector.shape_cast %754 : vector<2x8xf32> to vector<2x8x1xf32>
    %756 = tpu.reciprocal %755 {approx = true} : vector<2x8x1xf32> -> vector<2x8x1xf32>
    %757 = vector.broadcast %756 : vector<2x8x1xf32> to vector<2x8x8xf32>
    %758 = arith.mulf %753, %757 : vector<2x8x8xf32>
    %759 = arith.truncf %758 : vector<2x8x8xf32> to vector<2x8x8xbf16>
    %760 = vector.extract_strided_slice %727 {offsets = [0, 0, 8], sizes = [2, 8, 8], strides = [1, 1, 1]} : vector<2x8x32xbf16> to vector<2x8x8xbf16>
    "tpu.trace_start"() <{level = 10 : i32, message = "bqk,bkd->bqd"}> : () -> ()
    %cst_359 = arith.constant dense<0.000000e+00> : vector<2x8x8xf32>
    %761 = tpu.matmul %759, %760, %cst_359 {dimension_numbers = #tpu.dot_dimension_numbers<[2], [1], [1], [2], [0, 0, 0, 1, 1, 2], [0], [0]>} : vector<2x8x8xbf16>, vector<2x8x8xbf16>, vector<2x8x8xf32> -> vector<2x8x8xf32>
    "tpu.trace_stop"() : () -> ()
    %762 = vector.extract_strided_slice %717 {offsets = [0, 0, 16], sizes = [2, 8, 8], strides = [1, 1, 1]} : vector<2x8x32xbf16> to vector<2x8x8xbf16>
    %763 = vector.extract_strided_slice %722 {offsets = [0, 0, 16], sizes = [2, 8, 8], strides = [1, 1, 1]} : vector<2x8x32xbf16> to vector<2x8x8xbf16>
    "tpu.trace_start"() <{level = 10 : i32, message = "bqd,bkd->bqk"}> : () -> ()
    %cst_360 = arith.constant dense<0.000000e+00> : vector<2x8x8xf32>
    %764 = tpu.matmul %762, %763, %cst_360 {dimension_numbers = #tpu.dot_dimension_numbers<[2], [2], [1], [1], [0, 0, 0, 1, 1, 1], [0], [0]>} : vector<2x8x8xbf16>, vector<2x8x8xbf16>, vector<2x8x8xf32> -> vector<2x8x8xf32>
    "tpu.trace_stop"() : () -> ()
    %765 = arith.addf %764, %15 : vector<2x8x8xf32>
    %cst_361 = arith.constant dense<0xFF800000> : vector<2x8xf32>
    %766 = vector.multi_reduction <maximumf>, %765, %cst_361 [2] : vector<2x8x8xf32> to vector<2x8xf32>
    %767 = vector.shape_cast %766 : vector<2x8xf32> to vector<2x8x1xf32>
    %768 = vector.broadcast %767 : vector<2x8x1xf32> to vector<2x8x8xf32>
    %769 = arith.subf %765, %768 : vector<2x8x8xf32>
    %770 = math.exp %769 : vector<2x8x8xf32>
    %cst_362 = arith.constant dense<0.000000e+00> : vector<2x8xf32>
    %771 = vector.multi_reduction <add>, %770, %cst_362 [2] : vector<2x8x8xf32> to vector<2x8xf32>
    %772 = vector.shape_cast %771 : vector<2x8xf32> to vector<2x8x1xf32>
    %773 = tpu.reciprocal %772 {approx = true} : vector<2x8x1xf32> -> vector<2x8x1xf32>
    %774 = vector.broadcast %773 : vector<2x8x1xf32> to vector<2x8x8xf32>
    %775 = arith.mulf %770, %774 : vector<2x8x8xf32>
    %776 = arith.truncf %775 : vector<2x8x8xf32> to vector<2x8x8xbf16>
    %777 = vector.extract_strided_slice %727 {offsets = [0, 0, 16], sizes = [2, 8, 8], strides = [1, 1, 1]} : vector<2x8x32xbf16> to vector<2x8x8xbf16>
    "tpu.trace_start"() <{level = 10 : i32, message = "bqk,bkd->bqd"}> : () -> ()
    %cst_363 = arith.constant dense<0.000000e+00> : vector<2x8x8xf32>
    %778 = tpu.matmul %776, %777, %cst_363 {dimension_numbers = #tpu.dot_dimension_numbers<[2], [1], [1], [2], [0, 0, 0, 1, 1, 2], [0], [0]>} : vector<2x8x8xbf16>, vector<2x8x8xbf16>, vector<2x8x8xf32> -> vector<2x8x8xf32>
    "tpu.trace_stop"() : () -> ()
    %779 = vector.extract_strided_slice %717 {offsets = [0, 0, 24], sizes = [2, 8, 8], strides = [1, 1, 1]} : vector<2x8x32xbf16> to vector<2x8x8xbf16>
    %780 = vector.extract_strided_slice %722 {offsets = [0, 0, 24], sizes = [2, 8, 8], strides = [1, 1, 1]} : vector<2x8x32xbf16> to vector<2x8x8xbf16>
    "tpu.trace_start"() <{level = 10 : i32, message = "bqd,bkd->bqk"}> : () -> ()
    %cst_364 = arith.constant dense<0.000000e+00> : vector<2x8x8xf32>
    %781 = tpu.matmul %779, %780, %cst_364 {dimension_numbers = #tpu.dot_dimension_numbers<[2], [2], [1], [1], [0, 0, 0, 1, 1, 1], [0], [0]>} : vector<2x8x8xbf16>, vector<2x8x8xbf16>, vector<2x8x8xf32> -> vector<2x8x8xf32>
    "tpu.trace_stop"() : () -> ()
    %782 = arith.addf %781, %15 : vector<2x8x8xf32>
    %cst_365 = arith.constant dense<0xFF800000> : vector<2x8xf32>
    %783 = vector.multi_reduction <maximumf>, %782, %cst_365 [2] : vector<2x8x8xf32> to vector<2x8xf32>
    %784 = vector.shape_cast %783 : vector<2x8xf32> to vector<2x8x1xf32>
    %785 = vector.broadcast %784 : vector<2x8x1xf32> to vector<2x8x8xf32>
    %786 = arith.subf %782, %785 : vector<2x8x8xf32>
    %787 = math.exp %786 : vector<2x8x8xf32>
    %cst_366 = arith.constant dense<0.000000e+00> : vector<2x8xf32>
    %788 = vector.multi_reduction <add>, %787, %cst_366 [2] : vector<2x8x8xf32> to vector<2x8xf32>
    %789 = vector.shape_cast %788 : vector<2x8xf32> to vector<2x8x1xf32>
    %790 = tpu.reciprocal %789 {approx = true} : vector<2x8x1xf32> -> vector<2x8x1xf32>
    %791 = vector.broadcast %790 : vector<2x8x1xf32> to vector<2x8x8xf32>
    %792 = arith.mulf %787, %791 : vector<2x8x8xf32>
    %793 = arith.truncf %792 : vector<2x8x8xf32> to vector<2x8x8xbf16>
    %794 = vector.extract_strided_slice %727 {offsets = [0, 0, 24], sizes = [2, 8, 8], strides = [1, 1, 1]} : vector<2x8x32xbf16> to vector<2x8x8xbf16>
    "tpu.trace_start"() <{level = 10 : i32, message = "bqk,bkd->bqd"}> : () -> ()
    %cst_367 = arith.constant dense<0.000000e+00> : vector<2x8x8xf32>
    %795 = tpu.matmul %793, %794, %cst_367 {dimension_numbers = #tpu.dot_dimension_numbers<[2], [1], [1], [2], [0, 0, 0, 1, 1, 2], [0], [0]>} : vector<2x8x8xbf16>, vector<2x8x8xbf16>, vector<2x8x8xf32> -> vector<2x8x8xf32>
    "tpu.trace_stop"() : () -> ()
    %796 = tpu.concatenate %744, %761, %778, %795 in 2 : vector<2x8x8xf32>, vector<2x8x8xf32>, vector<2x8x8xf32>, vector<2x8x8xf32> -> vector<2x8x32xf32>
    %797 = vector.shape_cast %796 : vector<2x8x32xf32> to vector<16x32xf32>
    %798 = arith.truncf %797 : vector<16x32xf32> to vector<16x32xbf16>
    %cst_368 = arith.constant dense<0.000000e+00> : vector<16x32xf32>
    %799 = tpu.matmul %798, %709, %cst_368 {dimension_numbers = #tpu.dot_dimension_numbers<[1], [0], [0], [1], [0, 0, 1, 1], [], []>} : vector<16x32xbf16>, vector<32x32xbf16>, vector<16x32xf32> -> vector<16x32xf32>
    %800 = vector.broadcast %711 : vector<1x32xf32> to vector<16x32xf32>
    %801 = arith.addf %799, %800 : vector<16x32xf32>
    %802 = arith.addf %695, %801 : vector<16x32xf32>
    %c1_369 = arith.constant 1 : index
    %c4_370 = arith.constant 4 : index
    %c0_371 = arith.constant 0 : index
    %803 = vector.load %arg13[%c1_369, %c4_370, %c0_371] : memref<2x15x32xf32, #tpu.memory_space<vmem>>, vector<1x1x32xf32>
    %804 = vector.shape_cast %803 : vector<1x1x32xf32> to vector<1x32xf32>
    %c1_372 = arith.constant 1 : index
    %c5_373 = arith.constant 5 : index
    %c0_374 = arith.constant 0 : index
    %805 = vector.load %arg13[%c1_372, %c5_373, %c0_374] : memref<2x15x32xf32, #tpu.memory_space<vmem>>, vector<1x1x32xf32>
    %806 = vector.shape_cast %805 : vector<1x1x32xf32> to vector<1x32xf32>
    %cst_375 = arith.constant dense<0.000000e+00> : vector<16xf32>
    %807 = vector.multi_reduction <add>, %802, %cst_375 [1] : vector<16x32xf32> to vector<16xf32>
    %808 = vector.shape_cast %807 : vector<16xf32> to vector<16x1xf32>
    %cst_376 = arith.constant 3.200000e+01 : f32
    %809 = vector.broadcast %cst_376 : f32 to vector<16x1xf32>
    %810 = arith.divf %808, %809 : vector<16x1xf32>
    %811 = vector.broadcast %810 : vector<16x1xf32> to vector<16x32xf32>
    %812 = arith.subf %802, %811 : vector<16x32xf32>
    %813 = arith.mulf %812, %812 : vector<16x32xf32>
    %cst_377 = arith.constant dense<0.000000e+00> : vector<16xf32>
    %814 = vector.multi_reduction <add>, %813, %cst_377 [1] : vector<16x32xf32> to vector<16xf32>
    %815 = vector.shape_cast %814 : vector<16xf32> to vector<16x1xf32>
    %cst_378 = arith.constant 3.200000e+01 : f32
    %816 = vector.broadcast %cst_378 : f32 to vector<16x1xf32>
    %817 = arith.divf %815, %816 : vector<16x1xf32>
    %cst_379 = arith.constant 9.99999974E-6 : f32
    %818 = vector.broadcast %cst_379 : f32 to vector<16x1xf32>
    %819 = arith.addf %817, %818 : vector<16x1xf32>
    %820 = math.rsqrt %819 : vector<16x1xf32>
    %821 = vector.broadcast %820 : vector<16x1xf32> to vector<16x32xf32>
    %822 = arith.mulf %812, %821 : vector<16x32xf32>
    %823 = vector.broadcast %804 : vector<1x32xf32> to vector<16x32xf32>
    %824 = arith.mulf %822, %823 : vector<16x32xf32>
    %825 = vector.broadcast %806 : vector<1x32xf32> to vector<16x32xf32>
    %826 = arith.addf %824, %825 : vector<16x32xf32>
    %c1_380 = arith.constant 1 : index
    %c4_381 = arith.constant 4 : index
    %c0_382 = arith.constant 0 : index
    %c0_383 = arith.constant 0 : index
    %827 = vector.load %arg10[%c1_380, %c4_381, %c0_382, %c0_383] : memref<2x8x32x32xbf16, #tpu.memory_space<vmem>>, vector<1x1x32x32xbf16>
    %828 = vector.shape_cast %827 : vector<1x1x32x32xbf16> to vector<32x32xbf16>
    %c1_384 = arith.constant 1 : index
    %c6_385 = arith.constant 6 : index
    %c0_386 = arith.constant 0 : index
    %829 = vector.load %arg13[%c1_384, %c6_385, %c0_386] : memref<2x15x32xf32, #tpu.memory_space<vmem>>, vector<1x1x32xf32>
    %830 = vector.shape_cast %829 : vector<1x1x32xf32> to vector<1x32xf32>
    %c1_387 = arith.constant 1 : index
    %c5_388 = arith.constant 5 : index
    %c0_389 = arith.constant 0 : index
    %c0_390 = arith.constant 0 : index
    %831 = vector.load %arg10[%c1_387, %c5_388, %c0_389, %c0_390] : memref<2x8x32x32xbf16, #tpu.memory_space<vmem>>, vector<1x1x32x32xbf16>
    %832 = vector.shape_cast %831 : vector<1x1x32x32xbf16> to vector<32x32xbf16>
    %c1_391 = arith.constant 1 : index
    %c7_392 = arith.constant 7 : index
    %c0_393 = arith.constant 0 : index
    %833 = vector.load %arg13[%c1_391, %c7_392, %c0_393] : memref<2x15x32xf32, #tpu.memory_space<vmem>>, vector<1x1x32xf32>
    %834 = vector.shape_cast %833 : vector<1x1x32xf32> to vector<1x32xf32>
    %c1_394 = arith.constant 1 : index
    %c6_395 = arith.constant 6 : index
    %c0_396 = arith.constant 0 : index
    %c0_397 = arith.constant 0 : index
    %835 = vector.load %arg10[%c1_394, %c6_395, %c0_396, %c0_397] : memref<2x8x32x32xbf16, #tpu.memory_space<vmem>>, vector<1x1x32x32xbf16>
    %836 = vector.shape_cast %835 : vector<1x1x32x32xbf16> to vector<32x32xbf16>
    %c1_398 = arith.constant 1 : index
    %c8_399 = arith.constant 8 : index
    %c0_400 = arith.constant 0 : index
    %837 = vector.load %arg13[%c1_398, %c8_399, %c0_400] : memref<2x15x32xf32, #tpu.memory_space<vmem>>, vector<1x1x32xf32>
    %838 = vector.shape_cast %837 : vector<1x1x32xf32> to vector<1x32xf32>
    %c1_401 = arith.constant 1 : index
    %c7_402 = arith.constant 7 : index
    %c0_403 = arith.constant 0 : index
    %c0_404 = arith.constant 0 : index
    %839 = vector.load %arg10[%c1_401, %c7_402, %c0_403, %c0_404] : memref<2x8x32x32xbf16, #tpu.memory_space<vmem>>, vector<1x1x32x32xbf16>
    %840 = vector.shape_cast %839 : vector<1x1x32x32xbf16> to vector<32x32xbf16>
    %c1_405 = arith.constant 1 : index
    %c9_406 = arith.constant 9 : index
    %c0_407 = arith.constant 0 : index
    %841 = vector.load %arg13[%c1_405, %c9_406, %c0_407] : memref<2x15x32xf32, #tpu.memory_space<vmem>>, vector<1x1x32xf32>
    %842 = vector.shape_cast %841 : vector<1x1x32xf32> to vector<1x32xf32>
    %843 = arith.truncf %826 : vector<16x32xf32> to vector<16x32xbf16>
    %cst_408 = arith.constant dense<0.000000e+00> : vector<16x32xf32>
    %844 = tpu.matmul %843, %828, %cst_408 {dimension_numbers = #tpu.dot_dimension_numbers<[1], [0], [0], [1], [0, 0, 1, 1], [], []>} : vector<16x32xbf16>, vector<32x32xbf16>, vector<16x32xf32> -> vector<16x32xf32>
    %845 = vector.broadcast %830 : vector<1x32xf32> to vector<16x32xf32>
    %846 = arith.addf %844, %845 : vector<16x32xf32>
    %847 = vector.shape_cast %846 : vector<16x32xf32> to vector<2x8x32xf32>
    %848 = arith.truncf %847 : vector<2x8x32xf32> to vector<2x8x32xbf16>
    %cst_409 = arith.constant dense<0.000000e+00> : vector<16x32xf32>
    %849 = tpu.matmul %388, %832, %cst_409 {dimension_numbers = #tpu.dot_dimension_numbers<[1], [0], [0], [1], [0, 0, 1, 1], [], []>} : vector<16x32xbf16>, vector<32x32xbf16>, vector<16x32xf32> -> vector<16x32xf32>
    %850 = vector.broadcast %834 : vector<1x32xf32> to vector<16x32xf32>
    %851 = arith.addf %849, %850 : vector<16x32xf32>
    %852 = vector.shape_cast %851 : vector<16x32xf32> to vector<2x8x32xf32>
    %853 = arith.truncf %852 : vector<2x8x32xf32> to vector<2x8x32xbf16>
    %cst_410 = arith.constant dense<0.000000e+00> : vector<16x32xf32>
    %854 = tpu.matmul %388, %836, %cst_410 {dimension_numbers = #tpu.dot_dimension_numbers<[1], [0], [0], [1], [0, 0, 1, 1], [], []>} : vector<16x32xbf16>, vector<32x32xbf16>, vector<16x32xf32> -> vector<16x32xf32>
    %855 = vector.broadcast %838 : vector<1x32xf32> to vector<16x32xf32>
    %856 = arith.addf %854, %855 : vector<16x32xf32>
    %857 = vector.shape_cast %856 : vector<16x32xf32> to vector<2x8x32xf32>
    %858 = arith.truncf %857 : vector<2x8x32xf32> to vector<2x8x32xbf16>
    %859 = vector.extract_strided_slice %848 {offsets = [0, 0, 0], sizes = [2, 8, 8], strides = [1, 1, 1]} : vector<2x8x32xbf16> to vector<2x8x8xbf16>
    %860 = vector.extract_strided_slice %853 {offsets = [0, 0, 0], sizes = [2, 8, 8], strides = [1, 1, 1]} : vector<2x8x32xbf16> to vector<2x8x8xbf16>
    "tpu.trace_start"() <{level = 10 : i32, message = "bqd,bkd->bqk"}> : () -> ()
    %cst_411 = arith.constant dense<0.000000e+00> : vector<2x8x8xf32>
    %861 = tpu.matmul %859, %860, %cst_411 {dimension_numbers = #tpu.dot_dimension_numbers<[2], [2], [1], [1], [0, 0, 0, 1, 1, 1], [0], [0]>} : vector<2x8x8xbf16>, vector<2x8x8xbf16>, vector<2x8x8xf32> -> vector<2x8x8xf32>
    "tpu.trace_stop"() : () -> ()
    %862 = arith.addf %861, %5 : vector<2x8x8xf32>
    %cst_412 = arith.constant dense<0xFF800000> : vector<2x8xf32>
    %863 = vector.multi_reduction <maximumf>, %862, %cst_412 [2] : vector<2x8x8xf32> to vector<2x8xf32>
    %864 = vector.shape_cast %863 : vector<2x8xf32> to vector<2x8x1xf32>
    %865 = vector.broadcast %864 : vector<2x8x1xf32> to vector<2x8x8xf32>
    %866 = arith.subf %862, %865 : vector<2x8x8xf32>
    %867 = math.exp %866 : vector<2x8x8xf32>
    %cst_413 = arith.constant dense<0.000000e+00> : vector<2x8xf32>
    %868 = vector.multi_reduction <add>, %867, %cst_413 [2] : vector<2x8x8xf32> to vector<2x8xf32>
    %869 = vector.shape_cast %868 : vector<2x8xf32> to vector<2x8x1xf32>
    %870 = tpu.reciprocal %869 {approx = true} : vector<2x8x1xf32> -> vector<2x8x1xf32>
    %871 = vector.broadcast %870 : vector<2x8x1xf32> to vector<2x8x8xf32>
    %872 = arith.mulf %867, %871 : vector<2x8x8xf32>
    %873 = arith.truncf %872 : vector<2x8x8xf32> to vector<2x8x8xbf16>
    %874 = vector.extract_strided_slice %858 {offsets = [0, 0, 0], sizes = [2, 8, 8], strides = [1, 1, 1]} : vector<2x8x32xbf16> to vector<2x8x8xbf16>
    "tpu.trace_start"() <{level = 10 : i32, message = "bqk,bkd->bqd"}> : () -> ()
    %cst_414 = arith.constant dense<0.000000e+00> : vector<2x8x8xf32>
    %875 = tpu.matmul %873, %874, %cst_414 {dimension_numbers = #tpu.dot_dimension_numbers<[2], [1], [1], [2], [0, 0, 0, 1, 1, 2], [0], [0]>} : vector<2x8x8xbf16>, vector<2x8x8xbf16>, vector<2x8x8xf32> -> vector<2x8x8xf32>
    "tpu.trace_stop"() : () -> ()
    %876 = vector.extract_strided_slice %848 {offsets = [0, 0, 8], sizes = [2, 8, 8], strides = [1, 1, 1]} : vector<2x8x32xbf16> to vector<2x8x8xbf16>
    %877 = vector.extract_strided_slice %853 {offsets = [0, 0, 8], sizes = [2, 8, 8], strides = [1, 1, 1]} : vector<2x8x32xbf16> to vector<2x8x8xbf16>
    "tpu.trace_start"() <{level = 10 : i32, message = "bqd,bkd->bqk"}> : () -> ()
    %cst_415 = arith.constant dense<0.000000e+00> : vector<2x8x8xf32>
    %878 = tpu.matmul %876, %877, %cst_415 {dimension_numbers = #tpu.dot_dimension_numbers<[2], [2], [1], [1], [0, 0, 0, 1, 1, 1], [0], [0]>} : vector<2x8x8xbf16>, vector<2x8x8xbf16>, vector<2x8x8xf32> -> vector<2x8x8xf32>
    "tpu.trace_stop"() : () -> ()
    %879 = arith.addf %878, %5 : vector<2x8x8xf32>
    %cst_416 = arith.constant dense<0xFF800000> : vector<2x8xf32>
    %880 = vector.multi_reduction <maximumf>, %879, %cst_416 [2] : vector<2x8x8xf32> to vector<2x8xf32>
    %881 = vector.shape_cast %880 : vector<2x8xf32> to vector<2x8x1xf32>
    %882 = vector.broadcast %881 : vector<2x8x1xf32> to vector<2x8x8xf32>
    %883 = arith.subf %879, %882 : vector<2x8x8xf32>
    %884 = math.exp %883 : vector<2x8x8xf32>
    %cst_417 = arith.constant dense<0.000000e+00> : vector<2x8xf32>
    %885 = vector.multi_reduction <add>, %884, %cst_417 [2] : vector<2x8x8xf32> to vector<2x8xf32>
    %886 = vector.shape_cast %885 : vector<2x8xf32> to vector<2x8x1xf32>
    %887 = tpu.reciprocal %886 {approx = true} : vector<2x8x1xf32> -> vector<2x8x1xf32>
    %888 = vector.broadcast %887 : vector<2x8x1xf32> to vector<2x8x8xf32>
    %889 = arith.mulf %884, %888 : vector<2x8x8xf32>
    %890 = arith.truncf %889 : vector<2x8x8xf32> to vector<2x8x8xbf16>
    %891 = vector.extract_strided_slice %858 {offsets = [0, 0, 8], sizes = [2, 8, 8], strides = [1, 1, 1]} : vector<2x8x32xbf16> to vector<2x8x8xbf16>
    "tpu.trace_start"() <{level = 10 : i32, message = "bqk,bkd->bqd"}> : () -> ()
    %cst_418 = arith.constant dense<0.000000e+00> : vector<2x8x8xf32>
    %892 = tpu.matmul %890, %891, %cst_418 {dimension_numbers = #tpu.dot_dimension_numbers<[2], [1], [1], [2], [0, 0, 0, 1, 1, 2], [0], [0]>} : vector<2x8x8xbf16>, vector<2x8x8xbf16>, vector<2x8x8xf32> -> vector<2x8x8xf32>
    "tpu.trace_stop"() : () -> ()
    %893 = vector.extract_strided_slice %848 {offsets = [0, 0, 16], sizes = [2, 8, 8], strides = [1, 1, 1]} : vector<2x8x32xbf16> to vector<2x8x8xbf16>
    %894 = vector.extract_strided_slice %853 {offsets = [0, 0, 16], sizes = [2, 8, 8], strides = [1, 1, 1]} : vector<2x8x32xbf16> to vector<2x8x8xbf16>
    "tpu.trace_start"() <{level = 10 : i32, message = "bqd,bkd->bqk"}> : () -> ()
    %cst_419 = arith.constant dense<0.000000e+00> : vector<2x8x8xf32>
    %895 = tpu.matmul %893, %894, %cst_419 {dimension_numbers = #tpu.dot_dimension_numbers<[2], [2], [1], [1], [0, 0, 0, 1, 1, 1], [0], [0]>} : vector<2x8x8xbf16>, vector<2x8x8xbf16>, vector<2x8x8xf32> -> vector<2x8x8xf32>
    "tpu.trace_stop"() : () -> ()
    %896 = arith.addf %895, %5 : vector<2x8x8xf32>
    %cst_420 = arith.constant dense<0xFF800000> : vector<2x8xf32>
    %897 = vector.multi_reduction <maximumf>, %896, %cst_420 [2] : vector<2x8x8xf32> to vector<2x8xf32>
    %898 = vector.shape_cast %897 : vector<2x8xf32> to vector<2x8x1xf32>
    %899 = vector.broadcast %898 : vector<2x8x1xf32> to vector<2x8x8xf32>
    %900 = arith.subf %896, %899 : vector<2x8x8xf32>
    %901 = math.exp %900 : vector<2x8x8xf32>
    %cst_421 = arith.constant dense<0.000000e+00> : vector<2x8xf32>
    %902 = vector.multi_reduction <add>, %901, %cst_421 [2] : vector<2x8x8xf32> to vector<2x8xf32>
    %903 = vector.shape_cast %902 : vector<2x8xf32> to vector<2x8x1xf32>
    %904 = tpu.reciprocal %903 {approx = true} : vector<2x8x1xf32> -> vector<2x8x1xf32>
    %905 = vector.broadcast %904 : vector<2x8x1xf32> to vector<2x8x8xf32>
    %906 = arith.mulf %901, %905 : vector<2x8x8xf32>
    %907 = arith.truncf %906 : vector<2x8x8xf32> to vector<2x8x8xbf16>
    %908 = vector.extract_strided_slice %858 {offsets = [0, 0, 16], sizes = [2, 8, 8], strides = [1, 1, 1]} : vector<2x8x32xbf16> to vector<2x8x8xbf16>
    "tpu.trace_start"() <{level = 10 : i32, message = "bqk,bkd->bqd"}> : () -> ()
    %cst_422 = arith.constant dense<0.000000e+00> : vector<2x8x8xf32>
    %909 = tpu.matmul %907, %908, %cst_422 {dimension_numbers = #tpu.dot_dimension_numbers<[2], [1], [1], [2], [0, 0, 0, 1, 1, 2], [0], [0]>} : vector<2x8x8xbf16>, vector<2x8x8xbf16>, vector<2x8x8xf32> -> vector<2x8x8xf32>
    "tpu.trace_stop"() : () -> ()
    %910 = vector.extract_strided_slice %848 {offsets = [0, 0, 24], sizes = [2, 8, 8], strides = [1, 1, 1]} : vector<2x8x32xbf16> to vector<2x8x8xbf16>
    %911 = vector.extract_strided_slice %853 {offsets = [0, 0, 24], sizes = [2, 8, 8], strides = [1, 1, 1]} : vector<2x8x32xbf16> to vector<2x8x8xbf16>
    "tpu.trace_start"() <{level = 10 : i32, message = "bqd,bkd->bqk"}> : () -> ()
    %cst_423 = arith.constant dense<0.000000e+00> : vector<2x8x8xf32>
    %912 = tpu.matmul %910, %911, %cst_423 {dimension_numbers = #tpu.dot_dimension_numbers<[2], [2], [1], [1], [0, 0, 0, 1, 1, 1], [0], [0]>} : vector<2x8x8xbf16>, vector<2x8x8xbf16>, vector<2x8x8xf32> -> vector<2x8x8xf32>
    "tpu.trace_stop"() : () -> ()
    %913 = arith.addf %912, %5 : vector<2x8x8xf32>
    %cst_424 = arith.constant dense<0xFF800000> : vector<2x8xf32>
    %914 = vector.multi_reduction <maximumf>, %913, %cst_424 [2] : vector<2x8x8xf32> to vector<2x8xf32>
    %915 = vector.shape_cast %914 : vector<2x8xf32> to vector<2x8x1xf32>
    %916 = vector.broadcast %915 : vector<2x8x1xf32> to vector<2x8x8xf32>
    %917 = arith.subf %913, %916 : vector<2x8x8xf32>
    %918 = math.exp %917 : vector<2x8x8xf32>
    %cst_425 = arith.constant dense<0.000000e+00> : vector<2x8xf32>
    %919 = vector.multi_reduction <add>, %918, %cst_425 [2] : vector<2x8x8xf32> to vector<2x8xf32>
    %920 = vector.shape_cast %919 : vector<2x8xf32> to vector<2x8x1xf32>
    %921 = tpu.reciprocal %920 {approx = true} : vector<2x8x1xf32> -> vector<2x8x1xf32>
    %922 = vector.broadcast %921 : vector<2x8x1xf32> to vector<2x8x8xf32>
    %923 = arith.mulf %918, %922 : vector<2x8x8xf32>
    %924 = arith.truncf %923 : vector<2x8x8xf32> to vector<2x8x8xbf16>
    %925 = vector.extract_strided_slice %858 {offsets = [0, 0, 24], sizes = [2, 8, 8], strides = [1, 1, 1]} : vector<2x8x32xbf16> to vector<2x8x8xbf16>
    "tpu.trace_start"() <{level = 10 : i32, message = "bqk,bkd->bqd"}> : () -> ()
    %cst_426 = arith.constant dense<0.000000e+00> : vector<2x8x8xf32>
    %926 = tpu.matmul %924, %925, %cst_426 {dimension_numbers = #tpu.dot_dimension_numbers<[2], [1], [1], [2], [0, 0, 0, 1, 1, 2], [0], [0]>} : vector<2x8x8xbf16>, vector<2x8x8xbf16>, vector<2x8x8xf32> -> vector<2x8x8xf32>
    "tpu.trace_stop"() : () -> ()
    %927 = tpu.concatenate %875, %892, %909, %926 in 2 : vector<2x8x8xf32>, vector<2x8x8xf32>, vector<2x8x8xf32>, vector<2x8x8xf32> -> vector<2x8x32xf32>
    %928 = vector.shape_cast %927 : vector<2x8x32xf32> to vector<16x32xf32>
    %929 = arith.truncf %928 : vector<16x32xf32> to vector<16x32xbf16>
    %cst_427 = arith.constant dense<0.000000e+00> : vector<16x32xf32>
    %930 = tpu.matmul %929, %840, %cst_427 {dimension_numbers = #tpu.dot_dimension_numbers<[1], [0], [0], [1], [0, 0, 1, 1], [], []>} : vector<16x32xbf16>, vector<32x32xbf16>, vector<16x32xf32> -> vector<16x32xf32>
    %931 = vector.broadcast %842 : vector<1x32xf32> to vector<16x32xf32>
    %932 = arith.addf %930, %931 : vector<16x32xf32>
    %933 = arith.addf %826, %932 : vector<16x32xf32>
    %c1_428 = arith.constant 1 : index
    %c10_429 = arith.constant 10 : index
    %c0_430 = arith.constant 0 : index
    %934 = vector.load %arg13[%c1_428, %c10_429, %c0_430] : memref<2x15x32xf32, #tpu.memory_space<vmem>>, vector<1x1x32xf32>
    %935 = vector.shape_cast %934 : vector<1x1x32xf32> to vector<1x32xf32>
    %c1_431 = arith.constant 1 : index
    %c11_432 = arith.constant 11 : index
    %c0_433 = arith.constant 0 : index
    %936 = vector.load %arg13[%c1_431, %c11_432, %c0_433] : memref<2x15x32xf32, #tpu.memory_space<vmem>>, vector<1x1x32xf32>
    %937 = vector.shape_cast %936 : vector<1x1x32xf32> to vector<1x32xf32>
    %cst_434 = arith.constant dense<0.000000e+00> : vector<16xf32>
    %938 = vector.multi_reduction <add>, %933, %cst_434 [1] : vector<16x32xf32> to vector<16xf32>
    %939 = vector.shape_cast %938 : vector<16xf32> to vector<16x1xf32>
    %cst_435 = arith.constant 3.200000e+01 : f32
    %940 = vector.broadcast %cst_435 : f32 to vector<16x1xf32>
    %941 = arith.divf %939, %940 : vector<16x1xf32>
    %942 = vector.broadcast %941 : vector<16x1xf32> to vector<16x32xf32>
    %943 = arith.subf %933, %942 : vector<16x32xf32>
    %944 = arith.mulf %943, %943 : vector<16x32xf32>
    %cst_436 = arith.constant dense<0.000000e+00> : vector<16xf32>
    %945 = vector.multi_reduction <add>, %944, %cst_436 [1] : vector<16x32xf32> to vector<16xf32>
    %946 = vector.shape_cast %945 : vector<16xf32> to vector<16x1xf32>
    %cst_437 = arith.constant 3.200000e+01 : f32
    %947 = vector.broadcast %cst_437 : f32 to vector<16x1xf32>
    %948 = arith.divf %946, %947 : vector<16x1xf32>
    %cst_438 = arith.constant 9.99999974E-6 : f32
    %949 = vector.broadcast %cst_438 : f32 to vector<16x1xf32>
    %950 = arith.addf %948, %949 : vector<16x1xf32>
    %951 = math.rsqrt %950 : vector<16x1xf32>
    %952 = vector.broadcast %951 : vector<16x1xf32> to vector<16x32xf32>
    %953 = arith.mulf %943, %952 : vector<16x32xf32>
    %954 = vector.broadcast %935 : vector<1x32xf32> to vector<16x32xf32>
    %955 = arith.mulf %953, %954 : vector<16x32xf32>
    %956 = vector.broadcast %937 : vector<1x32xf32> to vector<16x32xf32>
    %957 = arith.addf %955, %956 : vector<16x32xf32>
    %958 = arith.truncf %957 : vector<16x32xf32> to vector<16x32xbf16>
    %c1_439 = arith.constant 1 : index
    %c0_440 = arith.constant 0 : index
    %c0_441 = arith.constant 0 : index
    %959 = vector.load %arg11[%c1_439, %c0_440, %c0_441] : memref<2x32x64xbf16, #tpu.memory_space<vmem>>, vector<1x32x64xbf16>
    %960 = vector.shape_cast %959 : vector<1x32x64xbf16> to vector<32x64xbf16>
    %cst_442 = arith.constant dense<0.000000e+00> : vector<16x64xf32>
    %961 = tpu.matmul %958, %960, %cst_442 {dimension_numbers = #tpu.dot_dimension_numbers<[1], [0], [0], [1], [0, 0, 1, 1], [], []>} : vector<16x32xbf16>, vector<32x64xbf16>, vector<16x64xf32> -> vector<16x64xf32>
    %c1_443 = arith.constant 1 : index
    %c0_444 = arith.constant 0 : index
    %c0_445 = arith.constant 0 : index
    %962 = vector.load %arg14[%c1_443, %c0_444, %c0_445] : memref<2x1x64xf32, #tpu.memory_space<vmem>>, vector<1x1x64xf32>
    %963 = vector.shape_cast %962 : vector<1x1x64xf32> to vector<1x64xf32>
    %964 = vector.broadcast %963 : vector<1x64xf32> to vector<16x64xf32>
    %965 = arith.addf %961, %964 : vector<16x64xf32>
    %cst_446 = arith.constant 0.000000e+00 : f32
    %966 = vector.broadcast %cst_446 : f32 to vector<16x64xf32>
    %967 = arith.maximumf %965, %966 : vector<16x64xf32>
    %968 = arith.truncf %967 : vector<16x64xf32> to vector<16x64xbf16>
    %c1_447 = arith.constant 1 : index
    %c0_448 = arith.constant 0 : index
    %c0_449 = arith.constant 0 : index
    %969 = vector.load %arg12[%c1_447, %c0_448, %c0_449] : memref<2x64x32xbf16, #tpu.memory_space<vmem>>, vector<1x64x32xbf16>
    %970 = vector.shape_cast %969 : vector<1x64x32xbf16> to vector<64x32xbf16>
    %cst_450 = arith.constant dense<0.000000e+00> : vector<16x32xf32>
    %971 = tpu.matmul %968, %970, %cst_450 {dimension_numbers = #tpu.dot_dimension_numbers<[1], [0], [0], [1], [0, 0, 1, 1], [], []>} : vector<16x64xbf16>, vector<64x32xbf16>, vector<16x32xf32> -> vector<16x32xf32>
    %c1_451 = arith.constant 1 : index
    %c12_452 = arith.constant 12 : index
    %c0_453 = arith.constant 0 : index
    %972 = vector.load %arg13[%c1_451, %c12_452, %c0_453] : memref<2x15x32xf32, #tpu.memory_space<vmem>>, vector<1x1x32xf32>
    %973 = vector.shape_cast %972 : vector<1x1x32xf32> to vector<1x32xf32>
    %974 = vector.broadcast %973 : vector<1x32xf32> to vector<16x32xf32>
    %975 = arith.addf %971, %974 : vector<16x32xf32>
    %976 = arith.addf %957, %975 : vector<16x32xf32>
    %c1_454 = arith.constant 1 : index
    %c13_455 = arith.constant 13 : index
    %c0_456 = arith.constant 0 : index
    %977 = vector.load %arg13[%c1_454, %c13_455, %c0_456] : memref<2x15x32xf32, #tpu.memory_space<vmem>>, vector<1x1x32xf32>
    %978 = vector.shape_cast %977 : vector<1x1x32xf32> to vector<1x32xf32>
    %c1_457 = arith.constant 1 : index
    %c14_458 = arith.constant 14 : index
    %c0_459 = arith.constant 0 : index
    %979 = vector.load %arg13[%c1_457, %c14_458, %c0_459] : memref<2x15x32xf32, #tpu.memory_space<vmem>>, vector<1x1x32xf32>
    %980 = vector.shape_cast %979 : vector<1x1x32xf32> to vector<1x32xf32>
    %cst_460 = arith.constant dense<0.000000e+00> : vector<16xf32>
    %981 = vector.multi_reduction <add>, %976, %cst_460 [1] : vector<16x32xf32> to vector<16xf32>
    %982 = vector.shape_cast %981 : vector<16xf32> to vector<16x1xf32>
    %cst_461 = arith.constant 3.200000e+01 : f32
    %983 = vector.broadcast %cst_461 : f32 to vector<16x1xf32>
    %984 = arith.divf %982, %983 : vector<16x1xf32>
    %985 = vector.broadcast %984 : vector<16x1xf32> to vector<16x32xf32>
    %986 = arith.subf %976, %985 : vector<16x32xf32>
    %987 = arith.mulf %986, %986 : vector<16x32xf32>
    %cst_462 = arith.constant dense<0.000000e+00> : vector<16xf32>
    %988 = vector.multi_reduction <add>, %987, %cst_462 [1] : vector<16x32xf32> to vector<16xf32>
    %989 = vector.shape_cast %988 : vector<16xf32> to vector<16x1xf32>
    %cst_463 = arith.constant 3.200000e+01 : f32
    %990 = vector.broadcast %cst_463 : f32 to vector<16x1xf32>
    %991 = arith.divf %989, %990 : vector<16x1xf32>
    %cst_464 = arith.constant 9.99999974E-6 : f32
    %992 = vector.broadcast %cst_464 : f32 to vector<16x1xf32>
    %993 = arith.addf %991, %992 : vector<16x1xf32>
    %994 = math.rsqrt %993 : vector<16x1xf32>
    %995 = vector.broadcast %994 : vector<16x1xf32> to vector<16x32xf32>
    %996 = arith.mulf %986, %995 : vector<16x32xf32>
    %997 = vector.broadcast %978 : vector<1x32xf32> to vector<16x32xf32>
    %998 = arith.mulf %996, %997 : vector<16x32xf32>
    %999 = vector.broadcast %980 : vector<1x32xf32> to vector<16x32xf32>
    %1000 = arith.addf %998, %999 : vector<16x32xf32>
    %c2_465 = arith.constant 2 : index
    %c0_466 = arith.constant 0 : index
    %1001 = vector.load %arg15[%c2_465, %c0_466] : memref<4x32xf32, #tpu.memory_space<vmem>>, vector<1x32xf32>
    %c3_467 = arith.constant 3 : index
    %c0_468 = arith.constant 0 : index
    %1002 = vector.load %arg15[%c3_467, %c0_468] : memref<4x32xf32, #tpu.memory_space<vmem>>, vector<1x32xf32>
    %cst_469 = arith.constant dense<0.000000e+00> : vector<16xf32>
    %1003 = vector.multi_reduction <add>, %1000, %cst_469 [1] : vector<16x32xf32> to vector<16xf32>
    %1004 = vector.shape_cast %1003 : vector<16xf32> to vector<16x1xf32>
    %cst_470 = arith.constant 3.200000e+01 : f32
    %1005 = vector.broadcast %cst_470 : f32 to vector<16x1xf32>
    %1006 = arith.divf %1004, %1005 : vector<16x1xf32>
    %1007 = vector.broadcast %1006 : vector<16x1xf32> to vector<16x32xf32>
    %1008 = arith.subf %1000, %1007 : vector<16x32xf32>
    %1009 = arith.mulf %1008, %1008 : vector<16x32xf32>
    %cst_471 = arith.constant dense<0.000000e+00> : vector<16xf32>
    %1010 = vector.multi_reduction <add>, %1009, %cst_471 [1] : vector<16x32xf32> to vector<16xf32>
    %1011 = vector.shape_cast %1010 : vector<16xf32> to vector<16x1xf32>
    %cst_472 = arith.constant 3.200000e+01 : f32
    %1012 = vector.broadcast %cst_472 : f32 to vector<16x1xf32>
    %1013 = arith.divf %1011, %1012 : vector<16x1xf32>
    %cst_473 = arith.constant 9.99999974E-6 : f32
    %1014 = vector.broadcast %cst_473 : f32 to vector<16x1xf32>
    %1015 = arith.addf %1013, %1014 : vector<16x1xf32>
    %1016 = math.rsqrt %1015 : vector<16x1xf32>
    %1017 = vector.broadcast %1016 : vector<16x1xf32> to vector<16x32xf32>
    %1018 = arith.mulf %1008, %1017 : vector<16x32xf32>
    %1019 = vector.broadcast %1001 : vector<1x32xf32> to vector<16x32xf32>
    %1020 = arith.mulf %1018, %1019 : vector<16x32xf32>
    %1021 = vector.broadcast %1002 : vector<1x32xf32> to vector<16x32xf32>
    %1022 = arith.addf %1020, %1021 : vector<16x32xf32>
    %1023 = arith.truncf %1022 : vector<16x32xf32> to vector<16x32xbf16>
    %c0_474 = arith.constant 0 : index
    %c0_475 = arith.constant 0 : index
    %1024 = vector.load %arg16[%c0_474, %c0_475] : memref<32x128xbf16, #tpu.memory_space<vmem>>, vector<32x128xbf16>
    %cst_476 = arith.constant dense<0.000000e+00> : vector<16x128xf32>
    %1025 = tpu.matmul %1023, %1024, %cst_476 {dimension_numbers = #tpu.dot_dimension_numbers<[1], [0], [0], [1], [0, 0, 1, 1], [], []>} : vector<16x32xbf16>, vector<32x128xbf16>, vector<16x128xf32> -> vector<16x128xf32>
    %c0_477 = arith.constant 0 : index
    %c0_478 = arith.constant 0 : index
    %1026 = vector.load %arg17[%c0_477, %c0_478] : memref<1x128xf32, #tpu.memory_space<vmem>>, vector<1x128xf32>
    %1027 = vector.broadcast %1026 : vector<1x128xf32> to vector<16x128xf32>
    %1028 = arith.addf %1025, %1027 : vector<16x128xf32>
    %1029 = vector.shape_cast %1028 : vector<16x128xf32> to vector<2x8x128xf32>
    %c0_479 = arith.constant 0 : index
    %c0_480 = arith.constant 0 : index
    %c0_481 = arith.constant 0 : index
    %1030 = vector.load %arg18[%c0_479, %c0_480, %c0_481] : memref<2x8x128xf32, #tpu.memory_space<vmem>>, vector<2x8x128xf32>
    tpu.vector_store %arg18[%c0_479, %c0_480, %c0_481], %1029 {strides = array<i32>} : memref<2x8x128xf32, #tpu.memory_space<vmem>>, vector<2x8x128xf32>,
    return
  }
  func.func @transform_0(%arg0: i32) -> (i32, i32, i32) {
    %c0_i32 = arith.constant 0 : i32
    %c0_i32_0 = arith.constant 0 : i32
    %c0_i32_1 = arith.constant 0 : i32
    return %arg0, %c0_i32, %c0_i32_0 : i32, i32, i32
  }
  func.func @transform_1(%arg0: i32) -> (i32, i32, i32) {
    %c0_i32 = arith.constant 0 : i32
    %c0_i32_0 = arith.constant 0 : i32
    %c0_i32_1 = arith.constant 0 : i32
    return %arg0, %c0_i32, %c0_i32_0 : i32, i32, i32
  }
  func.func @transform_2(%arg0: i32) -> (i32, i32, i32) {
    %c0_i32 = arith.constant 0 : i32
    %c0_i32_0 = arith.constant 0 : i32
    %c0_i32_1 = arith.constant 0 : i32
    return %arg0, %c0_i32, %c0_i32_0 : i32, i32, i32
  }
  func.func @transform_3(%arg0: i32) -> (i32, i32, i32) {
    %c0_i32 = arith.constant 0 : i32
    %c0_i32_0 = arith.constant 0 : i32
    %c0_i32_1 = arith.constant 0 : i32
    return %arg0, %c0_i32, %c0_i32_0 : i32, i32, i32
  }
  func.func @transform_4(%arg0: i32) -> (i32, i32, i32, i32) {
    %c0_i32 = arith.constant 0 : i32
    %c0_i32_0 = arith.constant 0 : i32
    %c0_i32_1 = arith.constant 0 : i32
    %c0_i32_2 = arith.constant 0 : i32
    %c0_i32_3 = arith.constant 0 : i32
    return %c0_i32, %c0_i32_0, %c0_i32_1, %c0_i32_2 : i32, i32, i32, i32
  }
  func.func @transform_5(%arg0: i32) -> (i32, i32, i32) {
    %c0_i32 = arith.constant 0 : i32
    %c0_i32_0 = arith.constant 0 : i32
    %c0_i32_1 = arith.constant 0 : i32
    %c0_i32_2 = arith.constant 0 : i32
    return %c0_i32, %c0_i32_0, %c0_i32_1 : i32, i32, i32
  }
  func.func @transform_6(%arg0: i32) -> (i32, i32, i32) {
    %c0_i32 = arith.constant 0 : i32
    %c0_i32_0 = arith.constant 0 : i32
    %c0_i32_1 = arith.constant 0 : i32
    %c0_i32_2 = arith.constant 0 : i32
    return %c0_i32, %c0_i32_0, %c0_i32_1 : i32, i32, i32
  }
  func.func @transform_7(%arg0: i32) -> (i32, i32, i32) {
    %c0_i32 = arith.constant 0 : i32
    %c0_i32_0 = arith.constant 0 : i32
    %c0_i32_1 = arith.constant 0 : i32
    %c0_i32_2 = arith.constant 0 : i32
    return %c0_i32, %c0_i32_0, %c0_i32_1 : i32, i32, i32
  }
  func.func @transform_8(%arg0: i32) -> (i32, i32, i32) {
    %c0_i32 = arith.constant 0 : i32
    %c0_i32_0 = arith.constant 0 : i32
    %c0_i32_1 = arith.constant 0 : i32
    %c0_i32_2 = arith.constant 0 : i32
    return %c0_i32, %c0_i32_0, %c0_i32_1 : i32, i32, i32
  }
  func.func @transform_9(%arg0: i32) -> (i32, i32, i32, i32) {
    %c0_i32 = arith.constant 0 : i32
    %c0_i32_0 = arith.constant 0 : i32
    %c0_i32_1 = arith.constant 0 : i32
    %c0_i32_2 = arith.constant 0 : i32
    %c0_i32_3 = arith.constant 0 : i32
    return %c0_i32, %c0_i32_0, %c0_i32_1, %c0_i32_2 : i32, i32, i32, i32
  }
  func.func @transform_10(%arg0: i32) -> (i32, i32, i32) {
    %c0_i32 = arith.constant 0 : i32
    %c0_i32_0 = arith.constant 0 : i32
    %c0_i32_1 = arith.constant 0 : i32
    %c0_i32_2 = arith.constant 0 : i32
    return %c0_i32, %c0_i32_0, %c0_i32_1 : i32, i32, i32
  }
  func.func @transform_11(%arg0: i32) -> (i32, i32, i32) {
    %c0_i32 = arith.constant 0 : i32
    %c0_i32_0 = arith.constant 0 : i32
    %c0_i32_1 = arith.constant 0 : i32
    %c0_i32_2 = arith.constant 0 : i32
    return %c0_i32, %c0_i32_0, %c0_i32_1 : i32, i32, i32
  }
  func.func @transform_12(%arg0: i32) -> (i32, i32, i32) {
    %c0_i32 = arith.constant 0 : i32
    %c0_i32_0 = arith.constant 0 : i32
    %c0_i32_1 = arith.constant 0 : i32
    %c0_i32_2 = arith.constant 0 : i32
    return %c0_i32, %c0_i32_0, %c0_i32_1 : i32, i32, i32
  }
  func.func @transform_13(%arg0: i32) -> (i32, i32, i32) {
    %c0_i32 = arith.constant 0 : i32
    %c0_i32_0 = arith.constant 0 : i32
    %c0_i32_1 = arith.constant 0 : i32
    %c0_i32_2 = arith.constant 0 : i32
    return %c0_i32, %c0_i32_0, %c0_i32_1 : i32, i32, i32
  }
  func.func @transform_14(%arg0: i32) -> (i32, i32) {
    %c0_i32 = arith.constant 0 : i32
    %c0_i32_0 = arith.constant 0 : i32
    %c0_i32_1 = arith.constant 0 : i32
    return %c0_i32, %c0_i32_0 : i32, i32
  }
  func.func @transform_15(%arg0: i32) -> (i32, i32) {
    %c0_i32 = arith.constant 0 : i32
    %c0_i32_0 = arith.constant 0 : i32
    %c0_i32_1 = arith.constant 0 : i32
    return %c0_i32, %c0_i32_0 : i32, i32
  }
  func.func @transform_16(%arg0: i32) -> (i32, i32) {
    %c0_i32 = arith.constant 0 : i32
    %c0_i32_0 = arith.constant 0 : i32
    %c0_i32_1 = arith.constant 0 : i32
    return %c0_i32, %c0_i32_0 : i32, i32
  }
  func.func @transform_17(%arg0: i32) -> (i32, i32, i32) {
    %c0_i32 = arith.constant 0 : i32
    %c0_i32_0 = arith.constant 0 : i32
    %c0_i32_1 = arith.constant 0 : i32
    return %arg0, %c0_i32, %c0_i32_0 : i32, i32, i32
  }
}

</mosaic_0001>

<bundles_post_ra>
// kernel: transformer_forward.1
= control target key start
LH: loop header
LB: loop body
LE: loop exit
PB: predicated region body
PF: predicated region fallthrough
CT: control target
= control target key end

     0   :  { %s12284_s0 = inlined_call_operand.vmem [shape: f32[2,8,32], index: 0, kind: input, shape index: {}]   ;;  %s12285_s1 = inlined_call_operand.vmem [shape: f32[2,8,32], index: 1, kind: input, shape index: {}]   ;;  %s12286_s2 = inlined_call_operand.vmem [shape: f32[2,1,8], index: 2, kind: input, shape index: {}]   ;;  %s12287_s3 = inlined_call_operand.vmem [shape: f32[2,1,8], index: 3, kind: input, shape index: {}]   ;;  %s12288_s4 = inlined_call_operand.vmem [shape: bf16[2,4,32,32], index: 4, kind: input, shape index: {}]   ;;  %s12289_s5 = inlined_call_operand.vmem [shape: bf16[2,32,64], index: 5, kind: input, shape index: {}]   ;;  %s12290_s6 = inlined_call_operand.vmem [shape: bf16[2,64,32], index: 6, kind: input, shape index: {}]   ;;  %s12291_s7 = inlined_call_operand.vmem [shape: f32[2,9,32], index: 7, kind: input, shape index: {}]   ;;  %s12292_s8 = inlined_call_operand.vmem [shape: f32[2,1,64], index: 8, kind: input, shape index: {}]   ;;  %s12293_s9 = inlined_call_operand.vmem [shape: bf16[2,8,32,32], index: 9, kind: input, shape index: {}]   ;;  %s12294_s10 = inlined_call_operand.vmem [shape: bf16[2,32,64], index: 10, kind: input, shape index: {}]   ;;  %s12295_s11 = inlined_call_operand.vmem [shape: bf16[2,64,32], index: 11, kind: input, shape index: {}]   ;;  %s12296_s12 = inlined_call_operand.vmem [shape: f32[2,15,32], index: 12, kind: input, shape index: {}]   ;;  %s12297_s13 = inlined_call_operand.vmem [shape: f32[2,1,64], index: 13, kind: input, shape index: {}]   ;;  %s12298_s14 = inlined_call_operand.vmem [shape: f32[4,32], index: 14, kind: input, shape index: {}]   ;;  %s12299_s15 = inlined_call_operand.vmem [shape: bf16[32,128], index: 15, kind: input, shape index: {}]   ;;  %s12300_s16 = inlined_call_operand.vmem [shape: f32[1,128], index: 16, kind: input, shape index: {}]   ;;  %s12301_s17 = inlined_call_operand.hbm [shape: f32[2,8,128], index: 17, kind: output, shape index: {}]  }
   0x1   :  { %12304 = sst [smem:[#allocation5_spill]] %s12284_s0 }
   0x2   :  { %12305 = sst [smem:[#allocation6_spill]] %s12285_s1 }
   0x3   :  { %v9986_v0 = vld [vmem:[%s12288_s4 + $0x10] sm:$0xff]   ;;  %v10332_v1 = vmov 0.0   ;;  %v9987_v2 = vld [vmem:[%s12288_s4 + $0x18] sm:$0xff]   ;;  %v9988_v3 = vld [vmem:[%s12288_s4] sm:$0xff]   ;;  %vm10333_vm0 = vmmov 0   ;;  %s12306_s18 = sld [smem:[#allocation5_spill]] }
   0x4   :  { %9038 = vmatprep.subr.bf16.mxu1 %v10332_v1  ;;  %9030 = vmatprep.subr.bf16.mxu0 %v10332_v1  ;;  %v9989_v6 = vld [vmem:[%s12288_s4 + $0x8] sm:$0xff]   ;;  %vm136_vm1 = vcmask 261120   ;;  %v9990_v8 = vld [vmem:[%s12288_s4 + $0x20] sm:$0xff]  }
   0x5   :  { %9039 = vmatpush3.bf16.msra.mxu1 %v9986_v0  ;;  %9042 = vmatprep.mubr.msk.bf16.mxu1 %vm10333_vm0, %v10332_v1  ;;  %v9991_v9 = vld [vmem:[%s12288_s4 + $0x28] sm:$0xff]  }
   0x6   :  { %9040 = vmatprep.subr.bf16.mxu1 %v10332_v1  ;;  %9034 = vmatprep.mubr.msk.bf16.mxu0 %vm10333_vm0, %v10332_v1 }
   0x7   :  { %9031 = vmatpush3.bf16.msra.mxu0 %v9988_v3 }
   0x8   :  { %9032 = vmatprep.subr.bf16.mxu0 %v10332_v1 }
   0x9   :  { %v94_v4 = vld [vmem:[%s12306_s18] sm:$0xff]  ;;  %v95_v5 = vld [vmem:[%s12306_s18 + $0x8] sm:$0xff]  ;;  %9041 = vmatpush3.bf16.msra.mxu1 %v9987_v2 }
   0xa   :  { %v119_v7 = vpack.c.bf16 %v95_v5, %v94_v4  ;;  %9054 = vmatprep.subr.bf16.mxu1 %v10332_v1 }
   0xb   :  { %9033 = vmatpush3.bf16.msra.mxu0 %v9989_v6 }
   0xc   :  { %9043 = vmatmul.mubr.msk.bf16.vlgmr.msra.gmra.mrb[0].mxu1 %vm136_vm1, %v119_v7  ;;  %9046 = vmatprep.subr.bf16.mxu0 %v10332_v1 }
   0xd   :  { %9056 = vmatprep.mubr.msk.bf16.mxu1 %vm10333_vm0, %v10332_v1 }
   0xe   :  { %9035 = vmatmul.mubr.msk.bf16.vlgmr.msra.gmra.mrb[0].mxu0 %vm136_vm1, %v119_v7 }
   0xf   :  { %9047 = vmatpush3.bf16.msra.mxu0 %v9990_v8  ;;  %9050 = vmatprep.mubr.msk.bf16.mxu0 %vm10333_vm0, %v10332_v1 }
  0x10   :  { %9048 = vmatprep.subr.bf16.mxu0 %v10332_v1 }
  0x13   :  { %9049 = vmatpush3.bf16.msra.mxu0 %v9991_v9 }
  0x14   :  { %9060 = vmatprep.subr.bf16.mxu0 %v10332_v1 }
  0x16   :  { %9051 = vmatmul.mubr.msk.bf16.vlgmr.msra.gmra.mrb[4].mxu0 %vm136_vm1, %v119_v7 }
  0x17   :  { %9062 = vmatprep.mubr.msk.bf16.mxu0 %vm10333_vm0, %v10332_v1 }
  0x18   :  { %22 = vsyncpa [#allocation3], 0  ;;  %v8349_v10 = vld [vmem:[%s12291_s7 + $0x1] ss:$0 sm:$0xff]  ;;  %v8345_v15 = vld [vmem:[%s12291_s7] ss:$0 sm:$0xff] }
  0x19   :  { %vm301_vm2 = vcmask 64512   ;;  %s10334_s0 = smov 120   ;;  %v8353_v34 = vld [vmem:[%s12291_s7 + $0x2] ss:$0 sm:$0xff]  ;;  %vm421_vm3 = vcmask 1043456   ;;  %s10335_s23 = smov 112  }
  0x1a   :  { %v10523_v41 = vld [vmem:[%s12286_s2] ss:$0 sm:$0xff]  ;;  %v10528_v43 = vld [vmem:[%s12286_s2 + $0x1] ss:$0 sm:$0xff]  ;;  %s10336_s24 = smov 104   ;;  %s10337_s25 = smov 8  }
  0x1b   :  { %s10338_s26 = smov 16   ;;  %s10339_s19 = smov 24   ;;  %vm1203_vm4 = vcmask 130048   ;;  %vm1206_vm5 = vcmask 195584   ;;  %vm1421_vm6 = vcmask 523264  }
  0x1c   :  { %s12307_s20 = sld [smem:[#allocation6_spill]]  ;;  %s10340_s29 = smov [#allocation2]  }
  0xdf   :  { %v233_v11 = vpop.f32.mrb[0].mxu1 }
  0xe0   :  { %v234_v12 = vadd.f32 %v8349_v10, %v233_v11  ;;  %v9044_v13 = vpop.f32.mrb[1].mxu1 }
  0xe1   :  { %v236_v14 = vpop.f32.mrb[2].mxu1  ;;  %v174_v16 = vpop.f32.mrb[0].mxu0 }
  0xe2   :  { %v10483_v17 = vpack.c.bf16 %v234_v12, %v234_v12  ;;  %v237_v18 = vadd.f32 %v8349_v10, %v236_v14  ;;  %v9045_v19 = vpop.f32.mrb[3].mxu1  ;;  %v9036_v20 = vpop.f32.mrb[1].mxu0  ;;  %v175_v23 = vadd.f32 %v8345_v15, %v174_v16 }
  0xe3   :  { %v177_v21 = vpop.f32.mrb[2].mxu0 }
  0xe4   :  { %v10485_v22 = vpack.c.bf16 %v237_v18, %v237_v18  ;;  %v306_v24 = vsel %vm301_vm2, %v10483_v17, 0  ;;  %v9037_v25 = vpop.f32.mrb[3].mxu0  ;;  %v10494_v27 = vpack.c.bf16 %v175_v23, %v175_v23  ;;  %v178_v28 = vadd.f32 %v8345_v15, %v177_v21 }
  0xe5   :  { %9055 = vmatpush3.bf16.xpose.msra.mxu1 %v306_v24 }
  0xe6   :  { %567 = vrot.lane.b32.xlu1 %v10485_v22, %s10334_s0  ;;  %v352_v26 = vsel %vm301_vm2, %v10485_v22, 0  ;;  %9066 = vmatprep.subr.bf16.mxu1 %v10332_v1  ;;  %v10497_v32 = vpack.c.bf16 %v178_v28, %v178_v28 }
  0xe7   :  { %9061 = vmatpush3.bf16.xpose.msra.mxu0 %v352_v26 }
  0xe8   :  { %9072 = vmatprep.subr.bf16.mxu0 %v10332_v1 }
  0xe9   :  { %v292_v29 = vpop.f32.mrb[4].mxu0 }
  0xea   :  { %v9052_v30 = vpop.f32.mrb[5].mxu0  ;;  %v293_v35 = vadd.f32 %v8353_v34, %v292_v29 }
  0xeb   :  { %v295_v31 = vpop.f32.mrb[6].mxu0 }
  0xec   :  { %9057 = vmatmul.mubr.msk.bf16.vlgmr.msra.gmra.mrb[4].mxu1 %vm301_vm2, %v10494_v27  ;;  %v9053_v33 = vpop.f32.mrb[7].mxu0  ;;  %v296_v36 = vadd.f32 %v8353_v34, %v295_v31  ;;  %v10510_v37 = vpack.c.bf16 %v293_v35, %v293_v35 }
  0xed   :  { %9068 = vmatprep.mubr.msk.bf16.mxu1 %vm10333_vm0, %v10332_v1 }
  0xee   :  { %9063 = vmatmul.mubr.msk.bf16.vlgmr.msra.gmra.mrb[8].mxu0 %vm301_vm2, %v10497_v32  ;;  %v10512_v38 = vpack.c.bf16 %v296_v36, %v296_v36  ;;  %v423_v39 = vsel %vm421_vm3, %v10510_v37, 0 }
  0xef   :  { %9074 = vmatprep.mubr.msk.bf16.mxu0 %vm10333_vm0, %v10332_v1  ;;  %9067 = vmatpush3.bf16.msra.mxu1 %v423_v39 }
  0xf0   :  { %v469_v40 = vsel %vm421_vm3, %v10512_v38, 0  ;;  %9078 = vmatprep.subr.bf16.mxu1 %v10332_v1 }
  0xf1   :  { %9073 = vmatpush3.bf16.msra.mxu0 %v469_v40 }
  0xf2   :  { %9084 = vmatprep.subr.bf16.mxu0 %v10332_v1 }
 0x158   :  { %v568_v2 = vpop.permute.xlu1 %567 }
 0x159   :  { %v573_v13 = vsel %vm301_vm2, %v568_v2, 0 }
 0x1bf   :  { %v342_v42 = vpop.f32.mrb[4].mxu1 }
 0x1c0   :  { %v343_v44 = vadd.f32 %v10523_v41, %v342_v42  ;;  %v9058_v45 = vpop.f32.mrb[5].mxu1 }
 0x1c1   :  { %v345_v46 = vpop.f32.mrb[6].mxu1  ;;  %v388_v47 = vpop.f32.mrb[8].mxu0 }
 0x1c2   :  { %v389_v48 = vadd.f32 %v10528_v43, %v388_v47  ;;  %v9059_v49 = vpop.f32.mrb[7].mxu1  ;;  %v9064_v50 = vpop.f32.mrb[9].mxu0  ;;  %v394_v51 = vsel %vm301_vm2, %v343_v44, -inf }
 0x1c3   :  { %v391_v52 = vpop.f32.mrb[10].mxu0  ;;  %395 = vmax.xlane.f32.xlu0 %v394_v51 }
 0x1c4   :  { %v9065_v53 = vpop.f32.mrb[11].mxu0  ;;  %v397_v54 = vsel %vm301_vm2, %v389_v48, -inf }
 0x1c7   :  { %398 = vmax.xlane.f32.xlu0 %v397_v54 }
 0x1dd   :  { %515 = vrot.lane.b32.xlu0 %v10483_v17, %s10334_s0 }
 0x250   :  { %v396_v55 = vpop.xlane.xlu0 %395 }
 0x251   :  { %v400_v56 = vsub.f32 %v343_v44, %v396_v55 }
 0x253   :  { %v402_v57 = vmul.f32 1.442695, %v400_v56 }
 0x254   :  { %v399_v58 = vpop.xlane.xlu0 %398 }
 0x255   :  { %10060 = vpow2.f32 %v402_v57  ;;  %v401_v59 = vsub.f32 %v389_v48, %v399_v58 }
 0x257   :  { %v404_v60 = vmul.f32 1.442695, %v401_v59 }
 0x258   :  { %v516_v7 = vpop.permute.xlu0 %515 }
 0x259   :  { %10062 = vpow2.f32 %v404_v60  ;;  %v521_v10 = vsel %vm301_vm2, %v516_v7, 0 }
 0x25f   :  { %v10061_v61 = vpop.eup %10060 }
 0x260   :  { %v406_v62 = vsel %vm301_vm2, %v10061_v61, 0.0 }
 0x261   :  { %407 = vadd.xlane.f32.xlu1 %v406_v62 }
 0x263   :  { %v10063_v63 = vpop.eup %10062 }
 0x264   :  { %v409_v0 = vsel %vm301_vm2, %v10063_v63, 0.0 }
 0x265   :  { %410 = vadd.xlane.f32.xlu1 %v409_v0 }
 0x276   :  { %512 = vrot.lane.b32.xlu1 %v10494_v27, %s10334_s0 }
 0x27a   :  { %564 = vrot.lane.b32.xlu1 %v10497_v32, %s10334_s0 }
 0x2ee   :  { %v408_v3 = vpop.xlane.xlu1 %407 }
 0x2ef   :  { %10064 = vrcp.f32 %v408_v3 }
 0x2f2   :  { %v411_v4 = vpop.xlane.xlu1 %410 }
 0x2f3   :  { %10066 = vrcp.f32 %v411_v4 }
 0x2f6   :  { %v513_v14 = vpop.permute.xlu1 %512 }
 0x2f9   :  { %v10065_v5 = vpop.eup %10064 }
 0x2fa   :  { %v414_v6 = vmul.f32 %v10065_v5, %v10061_v61  ;;  %v565_v15 = vpop.permute.xlu1 %564 }
 0x2fc   :  { %v416_v8 = vpack.c.bf16 %v414_v6, %v414_v6 }
 0x2fd   :  { %v10067_v9 = vpop.eup %10066 }
 0x2fe   :  { %9069 = vmatmul.mubr.msk.bf16.vlgmr.msra.gmra.mrb[8].mxu1 %vm301_vm2, %v416_v8  ;;  %v415_v11 = vmul.f32 %v10067_v9, %v10063_v63 }
 0x2ff   :  { %9079 = vmatpush3.bf16.xpose.msra.mxu1 %v521_v10  ;;  %9080 = vmatprep.mubr.msk.bf16.mxu1 %vm10333_vm0, %v10332_v1 }
 0x300   :  { %v417_v12 = vpack.c.bf16 %v415_v11, %v415_v11  ;;  %9090 = vmatprep.subr.bf16.mxu1 %v10332_v1 }
 0x302   :  { %9075 = vmatmul.mubr.msk.bf16.vlgmr.msra.gmra.mrb[12].mxu0 %vm301_vm2, %v417_v12 }
 0x303   :  { %9085 = vmatpush3.bf16.xpose.msra.mxu0 %v573_v13  ;;  %9086 = vmatprep.mubr.msk.bf16.mxu0 %vm10333_vm0, %v10332_v1 }
 0x304   :  { %9096 = vmatprep.subr.bf16.mxu0 %v10332_v1 }
 0x306   :  { %9081 = vmatmul.mubr.msk.bf16.vlgmr.msra.gmra.mrb[12].mxu1 %vm301_vm2, %v513_v14 }
 0x307   :  { %9092 = vmatprep.mubr.msk.bf16.mxu1 %vm10333_vm0, %v10332_v1 }
 0x30a   :  { %9087 = vmatmul.mubr.msk.bf16.vlgmr.msra.gmra.mrb[16].mxu0 %vm301_vm2, %v565_v15 }
 0x30b   :  { %9098 = vmatprep.mubr.msk.bf16.mxu0 %vm10333_vm0, %v10332_v1 }
 0x3d1   :  { %v10558_v16 = vpop.f32.mrb[8].mxu1 }
 0x3d2   :  { %v9070_v18 = vpop.f32.mrb[9].mxu1 }
 0x3d3   :  { %v462_v19 = vpop.f32.mrb[10].mxu1 }
 0x3d4   :  { %v9071_v20 = vpop.f32.mrb[11].mxu1 }
 0x3d5   :  { %v10560_v21 = vpop.f32.mrb[12].mxu0 }
 0x3d6   :  { %v9076_v23 = vpop.f32.mrb[13].mxu0 }
 0x3d7   :  { %v508_v24 = vpop.f32.mrb[14].mxu0 }
 0x3d8   :  { %v9077_v25 = vpop.f32.mrb[15].mxu0 }
 0x3d9   :  { %v557_v26 = vpop.f32.mrb[12].mxu1 }
 0x3da   :  { %v558_v28 = vadd.f32 %v10523_v41, %v557_v26  ;;  %v9082_v29 = vpop.f32.mrb[13].mxu1 }
 0x3db   :  { %v560_v30 = vpop.f32.mrb[14].mxu1 }
 0x3dc   :  { %v9083_v31 = vpop.f32.mrb[15].mxu1  ;;  %v615_v33 = vsel %vm301_vm2, %v558_v28, -inf }
 0x3dd   :  { %v609_v34 = vpop.f32.mrb[16].mxu0  ;;  %616 = vmax.xlane.f32.xlu0 %v615_v33 }
 0x3de   :  { %v610_v35 = vadd.f32 %v10528_v43, %v609_v34  ;;  %v9088_v36 = vpop.f32.mrb[17].mxu0 }
 0x3df   :  { %v612_v39 = vpop.f32.mrb[18].mxu0 }
 0x3e0   :  { %v9089_v40 = vpop.f32.mrb[19].mxu0  ;;  %v618_v42 = vsel %vm301_vm2, %v610_v35, -inf }
 0x3e1   :  { %619 = vmax.xlane.f32.xlu1 %v618_v42 }
 0x3f2   :  { %689 = vrot.lane.b32.xlu1 %v10512_v38, %s10334_s0 }
 0x3f6   :  { %739 = vrot.lane.b32.xlu1 %v10483_v17, %s10335_s23 }
 0x3fa   :  { %789 = vrot.lane.b32.xlu1 %v10485_v22, %s10335_s23 }
 0x3fe   :  { %787 = vrot.lane.b32.xlu1 %v10497_v32, %s10335_s23 }
 0x46a   :  { %v617_v44 = vpop.xlane.xlu0 %616 }
 0x46b   :  { %v621_v45 = vsub.f32 %v558_v28, %v617_v44 }
 0x46d   :  { %v623_v46 = vmul.f32 1.442695, %v621_v45 }
 0x46e   :  { %v620_v47 = vpop.xlane.xlu1 %619 }
 0x46f   :  { %10068 = vpow2.f32 %v623_v46  ;;  %v622_v48 = vsub.f32 %v610_v35, %v620_v47 }
 0x471   :  { %v625_v49 = vmul.f32 1.442695, %v622_v48 }
 0x472   :  { %v690_v50 = vpop.permute.xlu1 %689 }
 0x473   :  { %10070 = vpow2.f32 %v625_v49  ;;  %v695_v51 = vsel %vm421_vm3, %v690_v50, 0 }
 0x474   :  { %9097 = vmatpush3.bf16.msra.mxu0 %v695_v51 }
 0x475   :  { %9108 = vmatprep.subr.bf16.mxu0 %v10332_v1 }
 0x476   :  { %v740_v61 = vpop.permute.xlu1 %739 }
 0x477   :  { %v745_v4 = vsel %vm301_vm2, %v740_v61, 0 }
 0x479   :  { %v10069_v52 = vpop.eup %10068 }
 0x47a   :  { %v627_v53 = vsel %vm301_vm2, %v10069_v52, 0.0  ;;  %v790_v3 = vpop.permute.xlu1 %789 }
 0x47b   :  { %628 = vadd.xlane.f32.xlu0 %v627_v53  ;;  %v795_v6 = vsel %vm301_vm2, %v790_v3, 0 }
 0x47d   :  { %v10071_v54 = vpop.eup %10070 }
 0x47e   :  { %v630_v55 = vsel %vm301_vm2, %v10071_v54, 0.0  ;;  %v788_v8 = vpop.permute.xlu1 %787 }
 0x47f   :  { %631 = vadd.xlane.f32.xlu0 %v630_v55 }
 0x495   :  { %640 = vrot.lane.b32.xlu0 %v10510_v37, %s10334_s0 }
 0x499   :  { %737 = vrot.lane.b32.xlu0 %v10494_v27, %s10335_s23 }
 0x508   :  { %v629_v56 = vpop.xlane.xlu0 %628 }
 0x509   :  { %10072 = vrcp.f32 %v629_v56 }
 0x50c   :  { %v632_v57 = vpop.xlane.xlu0 %631 }
 0x50d   :  { %10074 = vrcp.f32 %v632_v57 }
 0x510   :  { %v641_v58 = vpop.permute.xlu0 %640 }
 0x511   :  { %v646_v59 = vsel %vm421_vm3, %v641_v58, 0 }
 0x512   :  { %9091 = vmatpush3.bf16.msra.mxu1 %v646_v59 }
 0x513   :  { %v10073_v60 = vpop.eup %10072  ;;  %9102 = vmatprep.subr.bf16.mxu1 %v10332_v1 }
 0x514   :  { %v635_v62 = vmul.f32 %v10073_v60, %v10069_v52  ;;  %v738_v7 = vpop.permute.xlu0 %737 }
 0x516   :  { %v637_v63 = vpack.c.bf16 %v635_v62, %v635_v62 }
 0x517   :  { %v10075_v0 = vpop.eup %10074 }
 0x518   :  { %9093 = vmatmul.mubr.msk.bf16.vlgmr.msra.gmra.mrb[16].mxu1 %vm301_vm2, %v637_v63  ;;  %v636_v2 = vmul.f32 %v10075_v0, %v10071_v54 }
 0x519   :  { %9104 = vmatprep.mubr.msk.bf16.mxu1 %vm10333_vm0, %v10332_v1 }
 0x51a   :  { %v638_v5 = vpack.c.bf16 %v636_v2, %v636_v2 }
 0x51b   :  { %9103 = vmatpush3.bf16.xpose.msra.mxu1 %v745_v4 }
 0x51c   :  { %9099 = vmatmul.mubr.msk.bf16.vlgmr.msra.gmra.mrb[20].mxu0 %vm301_vm2, %v638_v5  ;;  %9114 = vmatprep.subr.bf16.mxu1 %v10332_v1 }
 0x51d   :  { %9109 = vmatpush3.bf16.xpose.msra.mxu0 %v795_v6  ;;  %9110 = vmatprep.mubr.msk.bf16.mxu0 %vm10333_vm0, %v10332_v1 }
 0x51e   :  { %9120 = vmatprep.subr.bf16.mxu0 %v10332_v1 }
 0x522   :  { %9105 = vmatmul.mubr.msk.bf16.vlgmr.msra.gmra.mrb[20].mxu1 %vm301_vm2, %v738_v7 }
 0x523   :  { %9116 = vmatprep.mubr.msk.bf16.mxu1 %vm10333_vm0, %v10332_v1 }
 0x524   :  { %9111 = vmatmul.mubr.msk.bf16.vlgmr.msra.gmra.mrb[24].mxu0 %vm301_vm2, %v788_v8 }
 0x525   :  { %9122 = vmatprep.mubr.msk.bf16.mxu0 %vm10333_vm0, %v10332_v1 }
 0x5eb   :  { %v10600_v9 = vpop.f32.mrb[16].mxu1 }
 0x5ec   :  { %v9094_v10 = vpop.f32.mrb[17].mxu1 }
 0x5ed   :  { %v685_v11 = vpop.f32.mrb[18].mxu1 }
 0x5ee   :  { %v9095_v12 = vpop.f32.mrb[19].mxu1 }
 0x5ef   :  { %v10602_v13 = vpop.f32.mrb[20].mxu0 }
 0x5f0   :  { %v9896_v14 = vpack.i.bf16 %v10602_v13, %v10600_v9  ;;  %v9100_v15 = vpop.f32.mrb[21].mxu0 }
 0x5f1   :  { %v734_v18 = vpop.f32.mrb[22].mxu0 }
 0x5f2   :  { %v9101_v19 = vpop.f32.mrb[23].mxu0 }
 0x5f5   :  { %v781_v20 = vpop.f32.mrb[20].mxu1 }
 0x5f6   :  { %v782_v23 = vadd.f32 %v10523_v41, %v781_v20  ;;  %v9106_v24 = vpop.f32.mrb[21].mxu1 }
 0x5f7   :  { %v784_v25 = vpop.f32.mrb[22].mxu1  ;;  %v831_v26 = vpop.f32.mrb[24].mxu0 }
 0x5f8   :  { %v832_v28 = vadd.f32 %v10528_v43, %v831_v26  ;;  %v9107_v29 = vpop.f32.mrb[23].mxu1  ;;  %v9112_v30 = vpop.f32.mrb[25].mxu0  ;;  %v837_v31 = vsel %vm301_vm2, %v782_v23, -inf }
 0x5f9   :  { %v834_v33 = vpop.f32.mrb[26].mxu0  ;;  %838 = vmax.xlane.f32.xlu0 %v837_v31 }
 0x5fa   :  { %v9113_v34 = vpop.f32.mrb[27].mxu0  ;;  %v840_v35 = vsel %vm301_vm2, %v832_v28, -inf }
 0x5fb   :  { %841 = vmax.xlane.f32.xlu1 %v840_v35 }
 0x60c   :  { %909 = vrot.lane.b32.xlu1 %v10512_v38, %s10335_s23 }
 0x610   :  { %959 = vrot.lane.b32.xlu1 %v10483_v17, %s10336_s24 }
 0x614   :  { %1009 = vrot.lane.b32.xlu1 %v10485_v22, %s10336_s24 }
 0x618   :  { %1007 = vrot.lane.b32.xlu1 %v10497_v32, %s10336_s24 }
 0x686   :  { %v839_v36 = vpop.xlane.xlu0 %838 }
 0x687   :  { %v843_v39 = vsub.f32 %v782_v23, %v839_v36 }
 0x688   :  { %v842_v40 = vpop.xlane.xlu1 %841 }
 0x689   :  { %v845_v42 = vmul.f32 1.442695, %v843_v39  ;;  %v844_v44 = vsub.f32 %v832_v28, %v842_v40 }
 0x68b   :  { %10076 = vpow2.f32 %v845_v42  ;;  %v847_v45 = vmul.f32 1.442695, %v844_v44 }
 0x68c   :  { %v910_v46 = vpop.permute.xlu1 %909 }
 0x68d   :  { %10078 = vpow2.f32 %v847_v45  ;;  %v915_v47 = vsel %vm421_vm3, %v910_v46, 0 }
 0x68e   :  { %9121 = vmatpush3.bf16.msra.mxu0 %v915_v47 }
 0x68f   :  { %9132 = vmatprep.subr.bf16.mxu0 %v10332_v1 }
 0x690   :  { %v960_v54 = vpop.permute.xlu1 %959 }
 0x694   :  { %v1010_v59 = vpop.permute.xlu1 %1009 }
 0x695   :  { %v10077_v17 = vpop.eup %10076  ;;  %v1015_v61 = vsel %vm301_vm2, %v1010_v59, 0 }
 0x696   :  { %v849_v22 = vsel %vm301_vm2, %v10077_v17, 0.0 }
 0x697   :  { %v10079_v48 = vpop.eup %10078  ;;  %850 = vadd.xlane.f32.xlu0 %v849_v22 }
 0x698   :  { %v852_v32 = vsel %vm301_vm2, %v10079_v48, 0.0  ;;  %v1008_v63 = vpop.permute.xlu1 %1007 }
 0x69b   :  { %853 = vadd.xlane.f32.xlu0 %v852_v32  ;;  %v9992_v32 = vld [vmem:[%s12288_s4 + $0x30] sm:$0xff]  }
 0x6b1   :  { %861 = vrot.lane.b32.xlu0 %v10510_v37, %s10335_s23 }
 0x6b5   :  { %957 = vrot.lane.b32.xlu0 %v10494_v27, %s10336_s24  ;;  %v965_v27 = vsel %vm301_vm2, %v960_v54, 0 }
 0x724   :  { %v851_v49 = vpop.xlane.xlu0 %850 }
 0x725   :  { %10080 = vrcp.f32 %v851_v49  ;;  %v9993_v49 = vld [vmem:[%s12288_s4 + $0x38] sm:$0xff]  }
 0x728   :  { %v854_v50 = vpop.xlane.xlu0 %853 }
 0x729   :  { %10082 = vrcp.f32 %v854_v50 }
 0x72c   :  { %v862_v51 = vpop.permute.xlu0 %861 }
 0x72d   :  { %v867_v52 = vsel %vm421_vm3, %v862_v51, 0 }
 0x72e   :  { %9115 = vmatpush3.bf16.msra.mxu1 %v867_v52 }
 0x72f   :  { %v10081_v53 = vpop.eup %10080  ;;  %9126 = vmatprep.subr.bf16.mxu1 %v10332_v1 }
 0x730   :  { %v857_v55 = vmul.f32 %v10081_v53, %v10077_v17  ;;  %v958_v62 = vpop.permute.xlu0 %957 }
 0x732   :  { %v859_v56 = vpack.c.bf16 %v857_v55, %v857_v55 }
 0x733   :  { %v10083_v57 = vpop.eup %10082 }
 0x734   :  { %9117 = vmatmul.mubr.msk.bf16.vlgmr.msra.gmra.mrb[24].mxu1 %vm301_vm2, %v859_v56  ;;  %v858_v58 = vmul.f32 %v10083_v57, %v10079_v48 }
 0x735   :  { %9128 = vmatprep.mubr.msk.bf16.mxu1 %vm10333_vm0, %v10332_v1 }
 0x736   :  { %v860_v60 = vpack.c.bf16 %v858_v58, %v858_v58 }
 0x737   :  { %9127 = vmatpush3.bf16.xpose.msra.mxu1 %v965_v27 }
 0x738   :  { %9123 = vmatmul.mubr.msk.bf16.vlgmr.msra.gmra.mrb[28].mxu0 %vm301_vm2, %v860_v60  ;;  %9138 = vmatprep.subr.bf16.mxu1 %v10332_v1 }
 0x739   :  { %9133 = vmatpush3.bf16.xpose.msra.mxu0 %v1015_v61  ;;  %9134 = vmatprep.mubr.msk.bf16.mxu0 %vm10333_vm0, %v10332_v1 }
 0x73a   :  { %9144 = vmatprep.subr.bf16.mxu0 %v10332_v1 }
 0x73e   :  { %9129 = vmatmul.mubr.msk.bf16.vlgmr.msra.gmra.mrb[28].mxu1 %vm301_vm2, %v958_v62 }
 0x73f   :  { %9140 = vmatprep.mubr.msk.bf16.mxu1 %vm10333_vm0, %v10332_v1 }
 0x740   :  { %9135 = vmatmul.mubr.msk.bf16.vlgmr.msra.gmra.mrb[32].mxu0 %vm301_vm2, %v1008_v63 }
 0x741   :  { %9146 = vmatprep.mubr.msk.bf16.mxu0 %vm10333_vm0, %v10332_v1 }
 0x807   :  { %v903_v0 = vpop.f32.mrb[24].mxu1 }
 0x808   :  { %v9118_v2 = vpop.f32.mrb[25].mxu1 }
 0x809   :  { %v906_v3 = vpop.f32.mrb[26].mxu1 }
 0x80a   :  { %v9119_v4 = vpop.f32.mrb[27].mxu1 }
 0x80b   :  { %v951_v5 = vpop.f32.mrb[28].mxu0 }
 0x80c   :  { %v9901_v6 = vpack.i.bf16 %v951_v5, %v903_v0  ;;  %v9124_v7 = vpop.f32.mrb[29].mxu0 }
 0x80d   :  { %v954_v8 = vpop.f32.mrb[30].mxu0 }
 0x80e   :  { %v9125_v10 = vpop.f32.mrb[31].mxu0 }
 0x811   :  { %v1001_v11 = vpop.f32.mrb[28].mxu1 }
 0x812   :  { %v1002_v12 = vadd.f32 %v10523_v41, %v1001_v11  ;;  %v9130_v15 = vpop.f32.mrb[29].mxu1 }
 0x813   :  { %v1004_v18 = vpop.f32.mrb[30].mxu1  ;;  %v1051_v19 = vpop.f32.mrb[32].mxu0 }
 0x814   :  { %v1052_v20 = vadd.f32 %v10528_v43, %v1051_v19  ;;  %v9131_v23 = vpop.f32.mrb[31].mxu1  ;;  %v9136_v24 = vpop.f32.mrb[33].mxu0  ;;  %v1057_v25 = vsel %vm301_vm2, %v1002_v12, -inf }
 0x815   :  { %v1054_v26 = vpop.f32.mrb[34].mxu0  ;;  %1058 = vmax.xlane.f32.xlu0 %v1057_v25  ;;  %v10300_v23 = vld [vmem:[%s12306_s18] sm:$0xff] }
 0x816   :  { %v9137_v28 = vpop.f32.mrb[35].mxu0  ;;  %v1060_v29 = vsel %vm301_vm2, %v1052_v20, -inf  ;;  %v10301_v26 = vld [vmem:[%s12306_s18 + $0x8] sm:$0xff] }
 0x817   :  { %1061 = vmax.xlane.f32.xlu1 %v1060_v29 }
 0x828   :  { %1129 = vrot.lane.b32.xlu1 %v10512_v38, %s10336_s24 }
 0x82c   :  { %9897 = vrot.lane.b32.xlu1 %v9896_v14, %s10337_s25 }
 0x830   :  { %9902 = vrot.lane.b32.xlu1 %v9901_v6, %s10338_s26 }
 0x8a2   :  { %v1059_v43 = vpop.xlane.xlu0 %1058 }
 0x8a3   :  { %v1063_v30 = vsub.f32 %v1002_v12, %v1059_v43 }
 0x8a4   :  { %v1062_v31 = vpop.xlane.xlu1 %1061 }
 0x8a5   :  { %v1065_v33 = vmul.f32 1.442695, %v1063_v30  ;;  %v1064_v34 = vsub.f32 %v1052_v20, %v1062_v31 }
 0x8a7   :  { %10084 = vpow2.f32 %v1065_v33  ;;  %v1067_v35 = vmul.f32 1.442695, %v1064_v34 }
 0x8a8   :  { %v1130_v36 = vpop.permute.xlu1 %1129 }
 0x8a9   :  { %10086 = vpow2.f32 %v1067_v35  ;;  %v1135_v38 = vsel %vm421_vm3, %v1130_v36, 0 }
 0x8aa   :  { %9145 = vmatpush3.bf16.msra.mxu0 %v1135_v38 }
 0x8ab   :  { %9158 = vmatprep.subr.bf16.mxu0 %v10332_v1 }
 0x8ac   :  { %v9898_v59 = vpop.permute.xlu1 %9897 }
 0x8ad   :  { %v9900_v60 = vunpack.i.h.bf16 %v9898_v59  ;;  %v9899_v61 = vunpack.i.l.bf16 %v9898_v59  ;;  %v8379_v59 = vld [vmem:[%s12292_s8] ss:$0 sm:$0xff] }
 0x8af   :  { %v1202_v2 = vsel %vm301_vm2, %v10560_v21, %v9900_v60  ;;  %v1201_v3 = vsel %vm301_vm2, %v10558_v16, %v9899_v61  ;;  %v8373_v16 = vld [vmem:[%s12291_s7 + $0x3] ss:$0 sm:$0xff] }
 0x8b0   :  { %v9903_v27 = vpop.permute.xlu1 %9902 }
 0x8b1   :  { %v10085_v39 = vpop.eup %10084  ;;  %v9905_v62 = vunpack.i.h.bf16 %v9903_v27  ;;  %v9904_v63 = vunpack.i.l.bf16 %v9903_v27 }
 0x8b2   :  { %v1069_v9 = vsel %vm301_vm2, %v10085_v39, 0.0 }
 0x8b3   :  { %v10087_v13 = vpop.eup %10086  ;;  %1070 = vadd.xlane.f32.xlu0 %v1069_v9  ;;  %v1205_v6 = vsel %vm1203_vm4, %v1202_v2, %v9905_v62  ;;  %v1204_v7 = vsel %vm1203_vm4, %v1201_v3, %v9904_v63 }
 0x8b4   :  { %v1072_v14 = vsel %vm301_vm2, %v10087_v13, 0.0 }
 0x8b7   :  { %1073 = vadd.xlane.f32.xlu0 %v1072_v14  ;;  %v9995_v14 = vld [vmem:[%s12289_s5 + $0x8] sm:$0xff]  }
 0x8cd   :  { %1081 = vrot.lane.b32.xlu0 %v10510_v37, %s10336_s24 }
 0x940   :  { %v1071_v40 = vpop.xlane.xlu0 %1070 }
 0x941   :  { %10088 = vrcp.f32 %v1071_v40  ;;  %v9996_v40 = vld [vmem:[%s12290_s6] sm:$0xff]  }
 0x944   :  { %v1074_v42 = vpop.xlane.xlu0 %1073 }
 0x945   :  { %10090 = vrcp.f32 %v1074_v42  ;;  %v9997_v42 = vld [vmem:[%s12290_s6 + $0x8] sm:$0xff]  }
 0x948   :  { %v1082_v44 = vpop.permute.xlu0 %1081 }
 0x949   :  { %v1087_v45 = vsel %vm421_vm3, %v1082_v44, 0 }
 0x94a   :  { %9139 = vmatpush3.bf16.msra.mxu1 %v1087_v45 }
 0x94b   :  { %v10089_v46 = vpop.eup %10088  ;;  %9150 = vmatprep.subr.bf16.mxu1 %v10332_v1 }
 0x94c   :  { %v1077_v47 = vmul.f32 %v10089_v46, %v10085_v39 }
 0x94e   :  { %v1079_v17 = vpack.c.bf16 %v1077_v47, %v1077_v47 }
 0x94f   :  { %v10091_v22 = vpop.eup %10090 }
 0x950   :  { %9141 = vmatmul.mubr.msk.bf16.vlgmr.msra.gmra.mrb[32].mxu1 %vm301_vm2, %v1079_v17  ;;  %v1078_v48 = vmul.f32 %v10091_v22, %v10087_v13  ;;  %v9994_v13 = vld [vmem:[%s12289_s5] sm:$0xff]  }
 0x951   :  { %9154 = vmatprep.mubr.msk.bf16.mxu1 %vm10333_vm0, %v10332_v1  ;;  %9151 = vmatpush3.bf16.msra.mxu1 %v9992_v32  ;;  %v8377_v32 = vld [vmem:[%s12291_s7 + $0x4] ss:$0 sm:$0xff] }
 0x952   :  { %v1080_v37 = vpack.c.bf16 %v1078_v48, %v1078_v48  ;;  %9152 = vmatprep.subr.bf16.mxu1 %v10332_v1 }
 0x954   :  { %9147 = vmatmul.mubr.msk.bf16.vlgmr.msra.gmra.mrb[36].mxu0 %vm301_vm2, %v1080_v37 }
 0x955   :  { %9162 = vmatprep.mubr.msk.bf16.mxu0 %vm10333_vm0, %v10332_v1  ;;  %9153 = vmatpush3.bf16.msra.mxu1 %v9993_v49 }
 0x956   :  { %9166 = vmatprep.subr.bf16.mxu1 %v10332_v1  ;;  %9159 = vmatpush3.bf16.msra.mxu0 %v9994_v13 }
 0x957   :  { %9160 = vmatprep.subr.bf16.mxu0 %v10332_v1 }
 0x95a   :  { %9161 = vmatpush3.bf16.msra.mxu0 %v9995_v14 }
 0x95b   :  { %9178 = vmatprep.subr.bf16.mxu0 %v10332_v1 }
 0xa23   :  { %v1123_v50 = vpop.f32.mrb[32].mxu1 }
 0xa24   :  { %v9142_v51 = vpop.f32.mrb[33].mxu1 }
 0xa25   :  { %v1126_v52 = vpop.f32.mrb[34].mxu1 }
 0xa26   :  { %v9143_v53 = vpop.f32.mrb[35].mxu1  ;;  %v8378_v52 = vld [vmem:[%s12291_s7 + $0x5] ss:$0 sm:$0xff] }
 0xa27   :  { %v1171_v54 = vpop.f32.mrb[36].mxu0 }
 0xa28   :  { %v9906_v55 = vpack.i.bf16 %v1171_v54, %v1123_v50  ;;  %v9148_v56 = vpop.f32.mrb[37].mxu0 }
 0xa29   :  { %v1174_v57 = vpop.f32.mrb[38].mxu0 }
 0xa2a   :  { %v9149_v58 = vpop.f32.mrb[39].mxu0  ;;  %9907 = vrot.lane.b32.xlu0 %v9906_v55, %s10339_s19  ;;  %v9998_v57 = vld [vmem:[%s12290_s6 + $0x10] sm:$0xff]  }
 0xa2b   :  { %v9999_v58 = vld [vmem:[%s12290_s6 + $0x18] sm:$0xff]  }
 0xa9c   :  { %v9908_v0 = vpop.permute.xlu0 %9907 }
 0xa9d   :  { %v9910_v4 = vunpack.i.h.bf16 %v9908_v0  ;;  %v9909_v5 = vunpack.i.l.bf16 %v9908_v0 }
 0xa9f   :  { %v1208_v8 = vsel %vm1206_vm5, %v1205_v6, %v9910_v4  ;;  %v1207_v10 = vsel %vm1206_vm5, %v1204_v7, %v9909_v5  ;;  %v8383_v5 = vld [vmem:[%s12291_s7 + $0x6] ss:$0 sm:$0xff] }
 0xaa0   :  { %v1209_v11 = vpack.c.bf16 %v1208_v8, %v1207_v10 }
 0xaa2   :  { %9155 = vmatmul.mubr.msk.bf16.vlgmr.msra.gmra.mrb[36].mxu1 %vm136_vm1, %v1209_v11 }
 0xaa3   :  { %9174 = vmatprep.mubr.msk.bf16.mxu1 %vm10333_vm0, %v10332_v1  ;;  %9167 = vmatpush3.bf16.msra.mxu1 %v9996_v40 }
 0xaa4   :  { %9168 = vmatprep.subr.bf16.mxu1 %v10332_v1 }
 0xaa7   :  { %9169 = vmatpush3.bf16.msra.mxu1 %v9997_v42  ;;  %v8389_v42 = vld [vmem:[%s12291_s7 + $0x7] ss:$0 sm:$0xff] }
 0xaa8   :  { %9170 = vmatprep.subr.bf16.mxu1 %v10332_v1 }
 0xaab   :  { %9171 = vmatpush3.bf16.msra.mxu1 %v9998_v57 }
 0xaac   :  { %9172 = vmatprep.subr.bf16.mxu1 %v10332_v1 }
 0xaaf   :  { %9173 = vmatpush3.bf16.msra.mxu1 %v9999_v58 }
 0xab0   :  { %9194 = vmatprep.subr.bf16.mxu1 %v10332_v1 }
 0xb75   :  { %v1263_v21 = vpop.f32.mrb[36].mxu1 }
 0xb76   :  { %v1264_v12 = vadd.f32 %v8373_v16, %v1263_v21  ;;  %v9156_v15 = vpop.f32.mrb[37].mxu1 }
 0xb77   :  { %v1266_v18 = vpop.f32.mrb[38].mxu1 }
 0xb78   :  { %v1267_v19 = vadd.f32 %v8373_v16, %v1266_v18  ;;  %v9157_v20 = vpop.f32.mrb[39].mxu1  ;;  %v1270_v24 = vadd.f32 %v10300_v23, %v1264_v12 }
 0xb7a   :  { %v1274_v25 = vsel %vm136_vm1, %v1270_v24, 0.0  ;;  %v1271_v28 = vadd.f32 %v10301_v26, %v1267_v19 }
 0xb7b   :  { %1275 = vadd.xlane.f32.xlu1 %v1274_v25 }
 0xb7c   :  { %v1277_v29 = vsel %vm136_vm1, %v1271_v28, 0.0 }
 0xb7d   :  { %1278 = vadd.xlane.f32.xlu0 %v1277_v29 }
 0xc08   :  { %v1276_v43 = vpop.xlane.xlu1 %1275 }
 0xc09   :  { %v1281_v30 = vmul.f32 0.03125, %v1276_v43 }
 0xc0a   :  { %v1279_v31 = vpop.xlane.xlu0 %1278 }
 0xc0b   :  { %v1283_v33 = vsub.f32 %v1270_v24, %v1281_v30  ;;  %v1282_v34 = vmul.f32 0.03125, %v1279_v31  ;;  %v10000_v31 = vld [vmem:[%s12288_s4 + $0x40] sm:$0xff]  }
 0xc0d   :  { %v1284_v35 = vsub.f32 %v1271_v28, %v1282_v34  ;;  %v1285_v36 = vmul.f32 %v1283_v33, %v1283_v33  ;;  %v10002_v34 = vld [vmem:[%s12288_s4 + $0x48] sm:$0xff]  }
 0xc0f   :  { %v1287_v38 = vsel %vm136_vm1, %v1285_v36, 0.0  ;;  %v1286_v39 = vmul.f32 %v1284_v35, %v1284_v35 }
 0xc10   :  { %1288 = vadd.xlane.f32.xlu0 %v1287_v38 }
 0xc11   :  { %v1290_v9 = vsel %vm136_vm1, %v1286_v39, 0.0 }
 0xc14   :  { %1291 = vadd.xlane.f32.xlu0 %v1290_v9 }
 0xc9d   :  { %v1289_v44 = vpop.xlane.xlu0 %1288 }
 0xc9e   :  { %v1293_v45 = vmul.f32 0.03125, %v1289_v44 }
 0xca0   :  { %v1295_v46 = vadd.f32 1e-05, %v1293_v45 }
 0xca1   :  { %v1292_v47 = vpop.xlane.xlu0 %1291 }
 0xca2   :  { %10092 = vrsqrt.f32 %v1295_v46  ;;  %v1294_v17 = vmul.f32 0.03125, %v1292_v47 }
 0xca4   :  { %v1296_v22 = vadd.f32 1e-05, %v1294_v17  ;;  %v8390_v17 = vld [vmem:[%s12291_s7 + $0x8] ss:$0 sm:$0xff] }
 0xca6   :  { %10094 = vrsqrt.f32 %v1296_v22 }
 0xcac   :  { %v10093_v48 = vpop.eup %10092 }
 0xcad   :  { %v1299_v37 = vmul.f32 %v10093_v48, %v1283_v33  ;;  %v10001_v33 = vld [vmem:[%s12288_s4 + $0x60] sm:$0xff]  }
 0xcaf   :  { %v1305_v50 = vmul.f32 %v8377_v32, %v1299_v37 }
 0xcb0   :  { %v10095_v49 = vpop.eup %10094 }
 0xcb1   :  { %v1300_v51 = vmul.f32 %v10095_v49, %v1284_v35  ;;  %v1311_v54 = vadd.f32 %v8378_v52, %v1305_v50  ;;  %v10003_v35 = vld [vmem:[%s12288_s4 + $0x68] sm:$0xff]   ;;  %v10005_v50 = vld [vmem:[%s12288_s4 + $0x58] sm:$0xff]  }
 0xcb3   :  { %v1306_v53 = vmul.f32 %v8377_v32, %v1300_v51  ;;  %v10004_v32 = vld [vmem:[%s12288_s4 + $0x50] sm:$0xff]  }
 0xcb5   :  { %v1312_v55 = vadd.f32 %v8378_v52, %v1306_v53 }
 0xcb7   :  { %v1313_v56 = vpack.c.bf16 %v1312_v55, %v1311_v54 }
 0xcb9   :  { %9163 = vmatmul.mubr.msk.bf16.vlgmr.msra.gmra.mrb[40].mxu0 %vm136_vm1, %v1313_v56 }
 0xcba   :  { %9182 = vmatprep.mubr.msk.bf16.mxu0 %vm10333_vm0, %v10332_v1  ;;  %9179 = vmatpush3.bf16.msra.mxu0 %v10000_v31 }
 0xcbb   :  { %9180 = vmatprep.subr.bf16.mxu0 %v10332_v1 }
 0xcbe   :  { %9181 = vmatpush3.bf16.msra.mxu0 %v10002_v34 }
 0xcbf   :  { %9186 = vmatprep.subr.bf16.mxu0 %v10332_v1 }
 0xd8c   :  { %v1374_v27 = vpop.f32.mrb[40].mxu0 }
 0xd8d   :  { %v1375_v60 = vadd.f32 %v8379_v59, %v1374_v27  ;;  %v9164_v61 = vpop.f32.mrb[41].mxu0 }
 0xd8e   :  { %v1377_v62 = vpop.f32.mrb[42].mxu0 }
 0xd8f   :  { %v1378_v63 = vadd.f32 %v8379_v59, %v1377_v62  ;;  %v9165_v0 = vpop.f32.mrb[43].mxu0  ;;  %v1381_v2 = vmax.f32 %v1375_v60, 0.0  ;;  %v8415_v59 = vld [vmem:[%s12291_s7 + $0x11] ss:$0 sm:$0xff]  ;;  %v8419_v62 = vld [vmem:[%s12291_s7 + $0x12] ss:$0 sm:$0xff] }
 0xd91   :  { %v1382_v3 = vmax.f32 %v1378_v63, 0.0 }
 0xd93   :  { %v1383_v4 = vpack.c.bf16 %v1382_v3, %v1381_v2 }
 0xd95   :  { %9175 = vmatmul.mubr.msk.bf16.vlgmr.msra.gmra.mrb[40].mxu1 %vm1421_vm6, %v1383_v4  ;;  %v8411_v4 = vld [vmem:[%s12291_s7 + $0x10] ss:$0 sm:$0xff] }
 0xd96   :  { %9198 = vmatprep.mubr.msk.bf16.mxu1 %vm10333_vm0, %v10332_v1  ;;  %9195 = vmatpush3.bf16.msra.mxu1 %v10001_v33 }
 0xd97   :  { %9196 = vmatprep.subr.bf16.mxu1 %v10332_v1 }
 0xd9a   :  { %9197 = vmatpush3.bf16.msra.mxu1 %v10003_v35 }
 0xd9b   :  { %9208 = vmatprep.subr.bf16.mxu1 %v10332_v1 }
 0xe68   :  { %v1459_v6 = vpop.f32.mrb[40].mxu1 }
 0xe69   :  { %v1460_v7 = vadd.f32 %v8383_v5, %v1459_v6  ;;  %v9176_v8 = vpop.f32.mrb[41].mxu1 }
 0xe6a   :  { %v1462_v10 = vpop.f32.mrb[42].mxu1 }
 0xe6b   :  { %v1463_v11 = vadd.f32 %v8383_v5, %v1462_v10  ;;  %v9177_v16 = vpop.f32.mrb[43].mxu1  ;;  %v1466_v21 = vadd.f32 %v1460_v7, %v1311_v54 }
 0xe6d   :  { %v1470_v12 = vsel %vm136_vm1, %v1466_v21, 0.0  ;;  %v1467_v15 = vadd.f32 %v1463_v11, %v1312_v55 }
 0xe6e   :  { %1471 = vadd.xlane.f32.xlu1 %v1470_v12 }
 0xe6f   :  { %v1473_v18 = vsel %vm136_vm1, %v1467_v15, 0.0 }
 0xe70   :  { %1474 = vadd.xlane.f32.xlu0 %v1473_v18 }
 0xefb   :  { %v1472_v19 = vpop.xlane.xlu1 %1471 }
 0xefc   :  { %v1476_v20 = vmul.f32 0.03125, %v1472_v19 }
 0xefd   :  { %v1475_v23 = vpop.xlane.xlu0 %1474 }
 0xefe   :  { %v1478_v24 = vsub.f32 %v1466_v21, %v1476_v20  ;;  %v1477_v25 = vmul.f32 0.03125, %v1475_v23 }
 0xf00   :  { %v1479_v26 = vsub.f32 %v1467_v15, %v1477_v25  ;;  %v1480_v28 = vmul.f32 %v1478_v24, %v1478_v24 }
 0xf02   :  { %v1482_v29 = vsel %vm136_vm1, %v1480_v28, 0.0  ;;  %v1481_v43 = vmul.f32 %v1479_v26, %v1479_v26 }
 0xf03   :  { %1483 = vadd.xlane.f32.xlu1 %v1482_v29  ;;  %v10838_v29 = vld [vmem:[%s12286_s2 + $0x1] ss:$0 sm:$0xff] }
 0xf04   :  { %v1485_v30 = vsel %vm136_vm1, %v1481_v43, 0.0 }
 0xf05   :  { %1486 = vadd.xlane.f32.xlu0 %v1485_v30 }
 0xf90   :  { %v1484_v36 = vpop.xlane.xlu1 %1483 }
 0xf91   :  { %v1488_v38 = vmul.f32 0.03125, %v1484_v36 }
 0xf92   :  { %v1487_v39 = vpop.xlane.xlu0 %1486 }
 0xf93   :  { %v1490_v9 = vadd.f32 1e-05, %v1488_v38  ;;  %v1489_v13 = vmul.f32 0.03125, %v1487_v39 }
 0xf95   :  { %10096 = vrsqrt.f32 %v1490_v9  ;;  %v1491_v14 = vadd.f32 1e-05, %v1489_v13 }
 0xf97   :  { %10098 = vrsqrt.f32 %v1491_v14 }
 0xf9f   :  { %v10097_v40 = vpop.eup %10096 }
 0xfa0   :  { %v1494_v44 = vmul.f32 %v10097_v40, %v1478_v24 }
 0xfa1   :  { %v10099_v45 = vpop.eup %10098 }
 0xfa2   :  { %v1500_v46 = vmul.f32 %v8389_v42, %v1494_v44  ;;  %v1495_v47 = vmul.f32 %v10099_v45, %v1479_v26 }
 0xfa4   :  { %v1501_v22 = vmul.f32 %v8389_v42, %v1495_v47  ;;  %v10770_v48 = vadd.f32 %v8390_v17, %v1500_v46 }
 0xfa6   :  { %v10772_v37 = vadd.f32 %v8390_v17, %v1501_v22 }
 0xfa8   :  { %v1533_v49 = vpack.c.bf16 %v10772_v37, %v10770_v48 }
 0xfaa   :  { %9183 = vmatmul.mubr.msk.bf16.vlgmr.msra.gmra.mrb[44].mxu0 %vm136_vm1, %v1533_v49  ;;  %9199 = vmatmul.mubr.msk.bf16.vlgmr.msra.gmra.mrb[44].mxu1 %vm136_vm1, %v1533_v49 }
 0xfab   :  { %9187 = vmatpush3.bf16.msra.mxu0 %v10004_v32  ;;  %9190 = vmatprep.mubr.msk.bf16.mxu0 %vm10333_vm0, %v10332_v1 }
 0xfac   :  { %9188 = vmatprep.subr.bf16.mxu0 %v10332_v1  ;;  %9210 = vmatprep.mubr.msk.bf16.mxu1 %vm10333_vm0, %v10332_v1 }
 0xfaf   :  { %9189 = vmatpush3.bf16.msra.mxu0 %v10005_v50 }
 0xfb0   :  { %9202 = vmatprep.subr.bf16.mxu0 %v10332_v1 }
 0xfb2   :  { %9191 = vmatmul.mubr.msk.bf16.vlgmr.msra.gmra.mrb[48].mxu0 %vm136_vm1, %v1533_v49 }
 0xfb3   :  { %9204 = vmatprep.mubr.msk.bf16.mxu0 %vm10333_vm0, %v10332_v1 }
0x107d   :  { %v1587_v51 = vpop.f32.mrb[44].mxu0  ;;  %v1705_v52 = vpop.f32.mrb[44].mxu1 }
0x107e   :  { %v9184_v53 = vpop.f32.mrb[45].mxu0  ;;  %v9200_v54 = vpop.f32.mrb[45].mxu1  ;;  %v1706_v5 = vadd.f32 %v8419_v62, %v1705_v52  ;;  %v1588_v8 = vadd.f32 %v8411_v4, %v1587_v51 }
0x107f   :  { %v1590_v55 = vpop.f32.mrb[46].mxu0  ;;  %v1708_v56 = vpop.f32.mrb[46].mxu1 }
0x1080   :  { %v9185_v57 = vpop.f32.mrb[47].mxu0  ;;  %v9201_v58 = vpop.f32.mrb[47].mxu1  ;;  %v1709_v10 = vadd.f32 %v8419_v62, %v1708_v56  ;;  %v10811_v16 = vpack.c.bf16 %v1706_v5, %v1706_v5  ;;  %v1591_v21 = vadd.f32 %v8411_v4, %v1590_v55  ;;  %v10814_v12 = vpack.c.bf16 %v1588_v8, %v1588_v8  ;;  %v10876_v4 = vld [vmem:[%s12286_s2] ss:$0 sm:$0xff] }
0x1082   :  { %v10816_v15 = vpack.c.bf16 %v1709_v10, %v1709_v10  ;;  %v10818_v18 = vpack.c.bf16 %v1591_v21, %v1591_v21  ;;  %v1834_v19 = vsel %vm421_vm3, %v10811_v16, 0 }
0x1084   :  { %v1880_v20 = vsel %vm421_vm3, %v10816_v15, 0 }
0x1085   :  { %v1646_v27 = vpop.f32.mrb[48].mxu0 }
0x1086   :  { %v1647_v60 = vadd.f32 %v8415_v59, %v1646_v27  ;;  %v9192_v61 = vpop.f32.mrb[49].mxu0 }
0x1087   :  { %v1649_v63 = vpop.f32.mrb[50].mxu0 }
0x1088   :  { %v10799_v0 = vpack.c.bf16 %v1647_v60, %v1647_v60  ;;  %v1650_v2 = vadd.f32 %v8415_v59, %v1649_v63  ;;  %v9193_v3 = vpop.f32.mrb[51].mxu0 }
0x108a   :  { %v10804_v6 = vpack.c.bf16 %v1650_v2, %v1650_v2  ;;  %v1718_v7 = vsel %vm301_vm2, %v10799_v0, 0 }
0x108b   :  { %9203 = vmatpush3.bf16.xpose.msra.mxu0 %v1718_v7 }
0x108c   :  { %v1764_v11 = vsel %vm301_vm2, %v10804_v6, 0  ;;  %9214 = vmatprep.subr.bf16.mxu0 %v10332_v1 }
0x108d   :  { %9209 = vmatpush3.bf16.xpose.msra.mxu1 %v1764_v11 }
0x108e   :  { %9220 = vmatprep.subr.bf16.mxu1 %v10332_v1 }
0x1092   :  { %9205 = vmatmul.mubr.msk.bf16.vlgmr.msra.gmra.mrb[52].mxu0 %vm301_vm2, %v10814_v12 }
0x1093   :  { %9215 = vmatpush3.bf16.msra.mxu0 %v1834_v19  ;;  %9216 = vmatprep.mubr.msk.bf16.mxu0 %vm10333_vm0, %v10332_v1 }
0x1094   :  { %9211 = vmatmul.mubr.msk.bf16.vlgmr.msra.gmra.mrb[48].mxu1 %vm301_vm2, %v10818_v18  ;;  %9226 = vmatprep.subr.bf16.mxu0 %v10332_v1 }
0x1095   :  { %9221 = vmatpush3.bf16.msra.mxu1 %v1880_v20  ;;  %9222 = vmatprep.mubr.msk.bf16.mxu1 %vm10333_vm0, %v10332_v1 }
0x1096   :  { %9232 = vmatprep.subr.bf16.mxu1 %v10332_v1 }
0x1165   :  { %v1754_v23 = vpop.f32.mrb[52].mxu0 }
0x1166   :  { %v1755_v24 = vadd.f32 %v10523_v41, %v1754_v23  ;;  %v9206_v25 = vpop.f32.mrb[53].mxu0 }
0x1167   :  { %v1757_v26 = vpop.f32.mrb[54].mxu0  ;;  %v1800_v28 = vpop.f32.mrb[48].mxu1 }
0x1168   :  { %v1801_v43 = vadd.f32 %v10838_v29, %v1800_v28  ;;  %v9207_v30 = vpop.f32.mrb[55].mxu0  ;;  %v9212_v31 = vpop.f32.mrb[49].mxu1  ;;  %v1806_v33 = vsel %vm301_vm2, %v1755_v24, -inf }
0x1169   :  { %1807 = vmax.xlane.f32.xlu1 %v1806_v33  ;;  %v1803_v34 = vpop.f32.mrb[50].mxu1 }
0x116a   :  { %v9213_v35 = vpop.f32.mrb[51].mxu1  ;;  %v1809_v36 = vsel %vm301_vm2, %v1801_v43, -inf }
0x116b   :  { %1810 = vmax.xlane.f32.xlu0 %v1809_v36 }
0x117a   :  { %1926 = vrot.lane.b32.xlu1 %v10799_v0, %s10334_s0 }
0x11f6   :  { %v1808_v41 = vpop.xlane.xlu1 %1807 }
0x11f7   :  { %v1812_v38 = vsub.f32 %v1755_v24, %v1808_v41 }
0x11f8   :  { %v1811_v39 = vpop.xlane.xlu0 %1810 }
0x11f9   :  { %v1814_v9 = vmul.f32 1.442695, %v1812_v38  ;;  %v1813_v13 = vsub.f32 %v1801_v43, %v1811_v39 }
0x11fa   :  { %v1927_v46 = vpop.permute.xlu1 %1926 }
0x11fb   :  { %10100 = vpow2.f32 %v1814_v9  ;;  %v1816_v14 = vmul.f32 1.442695, %v1813_v13  ;;  %v1932_v53 = vsel %vm301_vm2, %v1927_v46, 0 }
0x11fd   :  { %10102 = vpow2.f32 %v1816_v14 }
0x1205   :  { %v10101_v40 = vpop.eup %10100 }
0x1206   :  { %v1818_v42 = vsel %vm301_vm2, %v10101_v40, 0.0 }
0x1207   :  { %v10103_v44 = vpop.eup %10102  ;;  %1819 = vadd.xlane.f32.xlu1 %v1818_v42 }
0x1208   :  { %v1821_v45 = vsel %vm301_vm2, %v10103_v44, 0.0 }
0x1209   :  { %1822 = vadd.xlane.f32.xlu0 %v1821_v45 }
0x1218   :  { %1923 = vrot.lane.b32.xlu1 %v10814_v12, %s10334_s0 }
0x121c   :  { %1975 = vrot.lane.b32.xlu1 %v10818_v18, %s10334_s0 }
0x121f   :  { %1978 = vrot.lane.b32.xlu0 %v10804_v6, %s10334_s0 }
0x1294   :  { %v1820_v47 = vpop.xlane.xlu1 %1819 }
0x1295   :  { %10104 = vrcp.f32 %v1820_v47 }
0x1296   :  { %v1823_v17 = vpop.xlane.xlu0 %1822 }
0x1297   :  { %10106 = vrcp.f32 %v1823_v17 }
0x1298   :  { %v1924_v56 = vpop.permute.xlu1 %1923 }
0x129a   :  { %v1979_v52 = vpop.permute.xlu0 %1978 }
0x129b   :  { %v1984_v55 = vsel %vm301_vm2, %v1979_v52, 0 }
0x129c   :  { %v1976_v57 = vpop.permute.xlu1 %1975 }
0x129f   :  { %v10105_v22 = vpop.eup %10104 }
0x12a0   :  { %v1826_v32 = vmul.f32 %v10105_v22, %v10101_v40 }
0x12a1   :  { %v10107_v49 = vpop.eup %10106 }
0x12a2   :  { %v1828_v50 = vpack.c.bf16 %v1826_v32, %v1826_v32  ;;  %v1827_v51 = vmul.f32 %v10107_v49, %v10103_v44 }
0x12a4   :  { %9217 = vmatmul.mubr.msk.bf16.vlgmr.msra.gmra.mrb[56].mxu0 %vm301_vm2, %v1828_v50  ;;  %v1829_v54 = vpack.c.bf16 %v1827_v51, %v1827_v51 }
0x12a5   :  { %9227 = vmatpush3.bf16.xpose.msra.mxu0 %v1932_v53  ;;  %9228 = vmatprep.mubr.msk.bf16.mxu0 %vm10333_vm0, %v10332_v1 }
0x12a6   :  { %9223 = vmatmul.mubr.msk.bf16.vlgmr.msra.gmra.mrb[52].mxu1 %vm301_vm2, %v1829_v54  ;;  %9238 = vmatprep.subr.bf16.mxu0 %v10332_v1 }
0x12a7   :  { %9233 = vmatpush3.bf16.xpose.msra.mxu1 %v1984_v55  ;;  %9234 = vmatprep.mubr.msk.bf16.mxu1 %vm10333_vm0, %v10332_v1 }
0x12a8   :  { %9244 = vmatprep.subr.bf16.mxu1 %v10332_v1 }
0x12ac   :  { %9229 = vmatmul.mubr.msk.bf16.vlgmr.msra.gmra.mrb[60].mxu0 %vm301_vm2, %v1924_v56 }
0x12ad   :  { %9240 = vmatprep.mubr.msk.bf16.mxu0 %vm10333_vm0, %v10332_v1 }
0x12ae   :  { %9235 = vmatmul.mubr.msk.bf16.vlgmr.msra.gmra.mrb[56].mxu1 %vm301_vm2, %v1976_v57 }
0x12af   :  { %9246 = vmatprep.mubr.msk.bf16.mxu1 %vm10333_vm0, %v10332_v1 }
0x1377   :  { %v10869_v58 = vpop.f32.mrb[56].mxu0 }
0x1378   :  { %v9218_v59 = vpop.f32.mrb[57].mxu0 }
0x1379   :  { %v1873_v27 = vpop.f32.mrb[58].mxu0  ;;  %v10871_v60 = vpop.f32.mrb[52].mxu1 }
0x137a   :  { %v9219_v61 = vpop.f32.mrb[59].mxu0  ;;  %v9224_v62 = vpop.f32.mrb[53].mxu1 }
0x137b   :  { %v1919_v63 = vpop.f32.mrb[54].mxu1 }
0x137c   :  { %v9225_v2 = vpop.f32.mrb[55].mxu1 }
0x137f   :  { %v1968_v3 = vpop.f32.mrb[60].mxu0 }
0x1380   :  { %v1969_v5 = vadd.f32 %v10876_v4, %v1968_v3  ;;  %v9230_v7 = vpop.f32.mrb[61].mxu0 }
0x1381   :  { %v1971_v8 = vpop.f32.mrb[62].mxu0  ;;  %v2020_v10 = vpop.f32.mrb[56].mxu1 }
0x1382   :  { %v2021_v11 = vadd.f32 %v10838_v29, %v2020_v10  ;;  %v9231_v21 = vpop.f32.mrb[63].mxu0  ;;  %v9236_v19 = vpop.f32.mrb[57].mxu1  ;;  %v2026_v20 = vsel %vm301_vm2, %v1969_v5, -inf }
0x1383   :  { %2027 = vmax.xlane.f32.xlu1 %v2026_v20  ;;  %v2023_v23 = vpop.f32.mrb[58].mxu1 }
0x1384   :  { %v9237_v24 = vpop.f32.mrb[59].mxu1  ;;  %v2029_v25 = vsel %vm301_vm2, %v2021_v11, -inf }
0x1385   :  { %2030 = vmax.xlane.f32.xlu0 %v2029_v25 }
0x1394   :  { %2051 = vrot.lane.b32.xlu1 %v10811_v16, %s10334_s0 }
0x1398   :  { %2150 = vrot.lane.b32.xlu1 %v10799_v0, %s10335_s23 }
0x139c   :  { %2200 = vrot.lane.b32.xlu1 %v10804_v6, %s10335_s23 }
0x13a0   :  { %2148 = vrot.lane.b32.xlu1 %v10814_v12, %s10335_s23 }
0x1410   :  { %v2028_v26 = vpop.xlane.xlu1 %2027 }
0x1411   :  { %v2032_v28 = vsub.f32 %v1969_v5, %v2028_v26 }
0x1412   :  { %v2031_v43 = vpop.xlane.xlu0 %2030 }
0x1413   :  { %v2034_v30 = vmul.f32 1.442695, %v2032_v28  ;;  %v2033_v31 = vsub.f32 %v2021_v11, %v2031_v43 }
0x1414   :  { %v2052_v33 = vpop.permute.xlu1 %2051 }
0x1415   :  { %10108 = vpow2.f32 %v2034_v30  ;;  %v2036_v34 = vmul.f32 1.442695, %v2033_v31  ;;  %v2057_v35 = vsel %vm421_vm3, %v2052_v33, 0 }
0x1416   :  { %9239 = vmatpush3.bf16.msra.mxu0 %v2057_v35 }
0x1417   :  { %10110 = vpow2.f32 %v2036_v34  ;;  %9250 = vmatprep.subr.bf16.mxu0 %v10332_v1 }
0x1418   :  { %v2151_v44 = vpop.permute.xlu1 %2150 }
0x1419   :  { %v2156_v17 = vsel %vm301_vm2, %v2151_v44, 0 }
0x141c   :  { %v2201_v32 = vpop.permute.xlu1 %2200 }
0x141d   :  { %v2206_v50 = vsel %vm301_vm2, %v2201_v32, 0 }
0x141f   :  { %v10109_v36 = vpop.eup %10108 }
0x1420   :  { %v2038_v41 = vsel %vm301_vm2, %v10109_v36, 0.0  ;;  %v2149_v51 = vpop.permute.xlu1 %2148 }
0x1421   :  { %v10111_v38 = vpop.eup %10110  ;;  %2039 = vadd.xlane.f32.xlu0 %v2038_v41 }
0x1422   :  { %v2041_v39 = vsel %vm301_vm2, %v10111_v38, 0.0 }
0x1425   :  { %2042 = vadd.xlane.f32.xlu0 %v2041_v39 }
0x143b   :  { %2100 = vrot.lane.b32.xlu0 %v10816_v15, %s10334_s0 }
0x143f   :  { %2198 = vrot.lane.b32.xlu0 %v10818_v18, %s10335_s23 }
0x14ae   :  { %v2040_v9 = vpop.xlane.xlu0 %2039 }
0x14af   :  { %10112 = vrcp.f32 %v2040_v9 }
0x14b2   :  { %v2043_v13 = vpop.xlane.xlu0 %2042 }
0x14b3   :  { %10114 = vrcp.f32 %v2043_v13 }
0x14b6   :  { %v2101_v14 = vpop.permute.xlu0 %2100 }
0x14b7   :  { %v2106_v40 = vsel %vm421_vm3, %v2101_v14, 0 }
0x14b8   :  { %9245 = vmatpush3.bf16.msra.mxu1 %v2106_v40 }
0x14b9   :  { %v10113_v42 = vpop.eup %10112  ;;  %9256 = vmatprep.subr.bf16.mxu1 %v10332_v1 }
0x14ba   :  { %v2046_v45 = vmul.f32 %v10113_v42, %v10109_v36  ;;  %v2199_v52 = vpop.permute.xlu0 %2198 }
0x14bc   :  { %v2048_v46 = vpack.c.bf16 %v2046_v45, %v2046_v45 }
0x14bd   :  { %v10115_v47 = vpop.eup %10114 }
0x14be   :  { %9241 = vmatmul.mubr.msk.bf16.vlgmr.msra.gmra.mrb[64].mxu0 %vm301_vm2, %v2048_v46  ;;  %v2047_v22 = vmul.f32 %v10115_v47, %v10111_v38 }
0x14bf   :  { %9251 = vmatpush3.bf16.xpose.msra.mxu0 %v2156_v17  ;;  %9252 = vmatprep.mubr.msk.bf16.mxu0 %vm10333_vm0, %v10332_v1 }
0x14c0   :  { %v2049_v49 = vpack.c.bf16 %v2047_v22, %v2047_v22  ;;  %9262 = vmatprep.subr.bf16.mxu0 %v10332_v1 }
0x14c2   :  { %9247 = vmatmul.mubr.msk.bf16.vlgmr.msra.gmra.mrb[60].mxu1 %vm301_vm2, %v2049_v49 }
0x14c3   :  { %9257 = vmatpush3.bf16.xpose.msra.mxu1 %v2206_v50  ;;  %9258 = vmatprep.mubr.msk.bf16.mxu1 %vm10333_vm0, %v10332_v1 }
0x14c4   :  { %9268 = vmatprep.subr.bf16.mxu1 %v10332_v1 }
0x14c6   :  { %9253 = vmatmul.mubr.msk.bf16.vlgmr.msra.gmra.mrb[68].mxu0 %vm301_vm2, %v2149_v51 }
0x14c7   :  { %9264 = vmatprep.mubr.msk.bf16.mxu0 %vm10333_vm0, %v10332_v1 }
0x14ca   :  { %9259 = vmatmul.mubr.msk.bf16.vlgmr.msra.gmra.mrb[64].mxu1 %vm301_vm2, %v2199_v52 }
0x14cb   :  { %9270 = vmatprep.mubr.msk.bf16.mxu1 %vm10333_vm0, %v10332_v1 }
0x1591   :  { %v10916_v53 = vpop.f32.mrb[64].mxu0 }
0x1592   :  { %v9242_v54 = vpop.f32.mrb[65].mxu0 }
0x1593   :  { %v2096_v55 = vpop.f32.mrb[66].mxu0 }
0x1594   :  { %v9243_v56 = vpop.f32.mrb[67].mxu0 }
0x1595   :  { %v10918_v57 = vpop.f32.mrb[60].mxu1 }
0x1596   :  { %v9911_v59 = vpack.i.bf16 %v10918_v57, %v10916_v53  ;;  %v9248_v27 = vpop.f32.mrb[61].mxu1 }
0x1597   :  { %v2145_v61 = vpop.f32.mrb[62].mxu1 }
0x1598   :  { %v9249_v62 = vpop.f32.mrb[63].mxu1 }
0x1599   :  { %v2192_v63 = vpop.f32.mrb[68].mxu0 }
0x159a   :  { %v2193_v2 = vadd.f32 %v10876_v4, %v2192_v63  ;;  %v9254_v3 = vpop.f32.mrb[69].mxu0 }
0x159b   :  { %v2195_v5 = vpop.f32.mrb[70].mxu0 }
0x159c   :  { %v9255_v7 = vpop.f32.mrb[71].mxu0  ;;  %v2248_v8 = vsel %vm301_vm2, %v2193_v2, -inf }
0x159d   :  { %2249 = vmax.xlane.f32.xlu1 %v2248_v8  ;;  %v2242_v10 = vpop.f32.mrb[64].mxu1 }
0x159e   :  { %v2243_v11 = vadd.f32 %v10838_v29, %v2242_v10  ;;  %v9260_v21 = vpop.f32.mrb[65].mxu1 }
0x159f   :  { %v2245_v19 = vpop.f32.mrb[66].mxu1 }
0x15a0   :  { %v9261_v20 = vpop.f32.mrb[67].mxu1  ;;  %v2251_v23 = vsel %vm301_vm2, %v2243_v11, -inf }
0x15a1   :  { %2252 = vmax.xlane.f32.xlu0 %v2251_v23 }
0x15ae   :  { %2272 = vrot.lane.b32.xlu1 %v10811_v16, %s10335_s23 }
0x15b2   :  { %2370 = vrot.lane.b32.xlu1 %v10799_v0, %s10336_s24 }
0x15b6   :  { %2420 = vrot.lane.b32.xlu1 %v10804_v6, %s10336_s24 }
0x15ba   :  { %2368 = vrot.lane.b32.xlu1 %v10814_v12, %s10336_s24 }
0x162a   :  { %v2250_v24 = vpop.xlane.xlu1 %2249 }
0x162b   :  { %v2254_v25 = vsub.f32 %v2193_v2, %v2250_v24 }
0x162d   :  { %v2256_v26 = vmul.f32 1.442695, %v2254_v25 }
0x162e   :  { %v2273_v28 = vpop.permute.xlu1 %2272  ;;  %v2253_v43 = vpop.xlane.xlu0 %2252 }
0x162f   :  { %10116 = vpow2.f32 %v2256_v26  ;;  %v2278_v30 = vsel %vm421_vm3, %v2273_v28, 0  ;;  %v2255_v31 = vsub.f32 %v2243_v11, %v2253_v43 }
0x1630   :  { %9263 = vmatpush3.bf16.msra.mxu0 %v2278_v30 }
0x1631   :  { %v2258_v33 = vmul.f32 1.442695, %v2255_v31  ;;  %9274 = vmatprep.subr.bf16.mxu0 %v10332_v1 }
0x1632   :  { %v2371_v9 = vpop.permute.xlu1 %2370 }
0x1633   :  { %10118 = vpow2.f32 %v2258_v33  ;;  %v2376_v42 = vsel %vm301_vm2, %v2371_v9, 0 }
0x1636   :  { %v2421_v44 = vpop.permute.xlu1 %2420 }
0x1637   :  { %v2426_v46 = vsel %vm301_vm2, %v2421_v44, 0 }
0x1639   :  { %v10117_v0 = vpop.eup %10116 }
0x163a   :  { %v2260_v6 = vsel %vm301_vm2, %v10117_v0, 0.0  ;;  %v2369_v47 = vpop.permute.xlu1 %2368 }
0x163b   :  { %2261 = vadd.xlane.f32.xlu0 %v2260_v6 }
0x163d   :  { %v10119_v34 = vpop.eup %10118 }
0x163e   :  { %v2263_v12 = vsel %vm301_vm2, %v10119_v34, 0.0 }
0x163f   :  { %2264 = vadd.xlane.f32.xlu0 %v2263_v12 }
0x1655   :  { %2320 = vrot.lane.b32.xlu0 %v10816_v15, %s10335_s23 }
0x1659   :  { %2418 = vrot.lane.b32.xlu0 %v10818_v18, %s10336_s24 }
0x16c8   :  { %v2262_v35 = vpop.xlane.xlu0 %2261 }
0x16c9   :  { %10120 = vrcp.f32 %v2262_v35  ;;  %v10006_v35 = vld [vmem:[%s12288_s4 + $0x70] sm:$0xff]  }
0x16cc   :  { %v2265_v36 = vpop.xlane.xlu0 %2264 }
0x16cd   :  { %10122 = vrcp.f32 %v2265_v36  ;;  %v10007_v36 = vld [vmem:[%s12288_s4 + $0x78] sm:$0xff]  }
0x16d0   :  { %v2321_v41 = vpop.permute.xlu0 %2320 }
0x16d1   :  { %v2326_v38 = vsel %vm421_vm3, %v2321_v41, 0 }
0x16d2   :  { %9269 = vmatpush3.bf16.msra.mxu1 %v2326_v38 }
0x16d3   :  { %v10121_v39 = vpop.eup %10120  ;;  %9280 = vmatprep.subr.bf16.mxu1 %v10332_v1 }
0x16d4   :  { %v2268_v13 = vmul.f32 %v10121_v39, %v10117_v0  ;;  %v2419_v17 = vpop.permute.xlu0 %2418 }
0x16d6   :  { %v2270_v14 = vpack.c.bf16 %v2268_v13, %v2268_v13 }
0x16d7   :  { %v10123_v40 = vpop.eup %10122 }
0x16d8   :  { %9265 = vmatmul.mubr.msk.bf16.vlgmr.msra.gmra.mrb[72].mxu0 %vm301_vm2, %v2270_v14  ;;  %v2269_v18 = vmul.f32 %v10123_v40, %v10119_v34 }
0x16d9   :  { %9275 = vmatpush3.bf16.xpose.msra.mxu0 %v2376_v42  ;;  %9276 = vmatprep.mubr.msk.bf16.mxu0 %vm10333_vm0, %v10332_v1 }
0x16da   :  { %v2271_v45 = vpack.c.bf16 %v2269_v18, %v2269_v18  ;;  %9286 = vmatprep.subr.bf16.mxu0 %v10332_v1 }
0x16dc   :  { %9271 = vmatmul.mubr.msk.bf16.vlgmr.msra.gmra.mrb[68].mxu1 %vm301_vm2, %v2271_v45 }
0x16dd   :  { %9281 = vmatpush3.bf16.xpose.msra.mxu1 %v2426_v46  ;;  %9282 = vmatprep.mubr.msk.bf16.mxu1 %vm10333_vm0, %v10332_v1 }
0x16de   :  { %9292 = vmatprep.subr.bf16.mxu1 %v10332_v1 }
0x16e0   :  { %9277 = vmatmul.mubr.msk.bf16.vlgmr.msra.gmra.mrb[76].mxu0 %vm301_vm2, %v2369_v47 }
0x16e1   :  { %9288 = vmatprep.mubr.msk.bf16.mxu0 %vm10333_vm0, %v10332_v1 }
0x16e4   :  { %9283 = vmatmul.mubr.msk.bf16.vlgmr.msra.gmra.mrb[72].mxu1 %vm301_vm2, %v2419_v17 }
0x16e5   :  { %9294 = vmatprep.mubr.msk.bf16.mxu1 %vm10333_vm0, %v10332_v1 }
0x17ab   :  { %v2314_v22 = vpop.f32.mrb[72].mxu0 }
0x17ac   :  { %v9266_v32 = vpop.f32.mrb[73].mxu0 }
0x17ad   :  { %v2317_v49 = vpop.f32.mrb[74].mxu0 }
0x17ae   :  { %v9267_v50 = vpop.f32.mrb[75].mxu0 }
0x17af   :  { %v2362_v51 = vpop.f32.mrb[68].mxu1 }
0x17b0   :  { %v9916_v52 = vpack.i.bf16 %v2362_v51, %v2314_v22  ;;  %v9272_v54 = vpop.f32.mrb[69].mxu1 }
0x17b1   :  { %v2365_v55 = vpop.f32.mrb[70].mxu1 }
0x17b2   :  { %v9273_v56 = vpop.f32.mrb[71].mxu1 }
0x17b3   :  { %v2412_v27 = vpop.f32.mrb[76].mxu0 }
0x17b4   :  { %v2413_v61 = vadd.f32 %v10876_v4, %v2412_v27  ;;  %v9278_v62 = vpop.f32.mrb[77].mxu0 }
0x17b5   :  { %v2415_v63 = vpop.f32.mrb[78].mxu0 }
0x17b6   :  { %v9279_v2 = vpop.f32.mrb[79].mxu0  ;;  %v2468_v3 = vsel %vm301_vm2, %v2413_v61, -inf }
0x17b7   :  { %2469 = vmax.xlane.f32.xlu1 %v2468_v3  ;;  %v2462_v5 = vpop.f32.mrb[72].mxu1 }
0x17b8   :  { %v2463_v7 = vadd.f32 %v10838_v29, %v2462_v5  ;;  %v9284_v8 = vpop.f32.mrb[73].mxu1 }
0x17b9   :  { %v2465_v10 = vpop.f32.mrb[74].mxu1 }
0x17ba   :  { %v9285_v11 = vpop.f32.mrb[75].mxu1  ;;  %v2471_v21 = vsel %vm301_vm2, %v2463_v7, -inf }
0x17bb   :  { %2472 = vmax.xlane.f32.xlu0 %v2471_v21 }
0x17c8   :  { %2492 = vrot.lane.b32.xlu1 %v10811_v16, %s10336_s24 }
0x17cc   :  { %9912 = vrot.lane.b32.xlu1 %v9911_v59, %s10337_s25 }
0x17d0   :  { %9917 = vrot.lane.b32.xlu1 %v9916_v52, %s10338_s26 }
0x1844   :  { %v2470_v4 = vpop.xlane.xlu1 %2469 }
0x1845   :  { %v2474_v19 = vsub.f32 %v2413_v61, %v2470_v4 }
0x1847   :  { %v2476_v20 = vmul.f32 1.442695, %v2474_v19 }
0x1848   :  { %v2493_v29 = vpop.permute.xlu1 %2492  ;;  %v2473_v23 = vpop.xlane.xlu0 %2472 }
0x1849   :  { %10124 = vpow2.f32 %v2476_v20  ;;  %v2498_v24 = vsel %vm421_vm3, %v2493_v29, 0  ;;  %v2475_v25 = vsub.f32 %v2463_v7, %v2473_v23 }
0x184a   :  { %9287 = vmatpush3.bf16.msra.mxu0 %v2498_v24 }
0x184b   :  { %v2478_v26 = vmul.f32 1.442695, %v2475_v25  ;;  %9298 = vmatprep.subr.bf16.mxu0 %v10332_v1 }
0x184c   :  { %v9913_v44 = vpop.permute.xlu1 %9912 }
0x184d   :  { %10126 = vpow2.f32 %v2478_v26  ;;  %v9915_v46 = vunpack.i.h.bf16 %v9913_v44  ;;  %v9914_v47 = vunpack.i.l.bf16 %v9913_v44  ;;  %v10012_v44 = vld [vmem:[%s12293_s9 + $0x10] sm:$0xff]  }
0x184f   :  { %v2613_v49 = vsel %vm301_vm2, %v10871_v60, %v9915_v46  ;;  %v2612_v50 = vsel %vm301_vm2, %v10869_v58, %v9914_v47  ;;  %v8439_v58 = vld [vmem:[%s12291_s7 + $0x13] ss:$0 sm:$0xff]  ;;  %v10017_v47 = vld [vmem:[%s12290_s6 + $0x38] sm:$0xff]  }
0x1850   :  { %v9918_v45 = vpop.permute.xlu1 %9917  ;;  %v10016_v46 = vld [vmem:[%s12290_s6 + $0x30] sm:$0xff]  }
0x1851   :  { %v9920_v17 = vunpack.i.h.bf16 %v9918_v45  ;;  %v9919_v22 = vunpack.i.l.bf16 %v9918_v45  ;;  %v10013_v45 = vld [vmem:[%s12293_s9 + $0x18] sm:$0xff]  }
0x1853   :  { %v10125_v16 = vpop.eup %10124  ;;  %v2615_v54 = vsel %vm1203_vm4, %v2613_v49, %v9920_v17  ;;  %v2614_v55 = vsel %vm1203_vm4, %v2612_v50, %v9919_v22  ;;  %v8452_v17 = vld [vmem:[%s12292_s8 + $0x1] ss:$0 sm:$0xff] }
0x1854   :  { %v2480_v53 = vsel %vm301_vm2, %v10125_v16, 0.0 }
0x1855   :  { %2481 = vadd.xlane.f32.xlu0 %v2480_v53  ;;  %v10014_v53 = vld [vmem:[%s12290_s6 + $0x20] sm:$0xff]  }
0x1857   :  { %v10127_v57 = vpop.eup %10126 }
0x1858   :  { %v2483_v59 = vsel %vm301_vm2, %v10127_v57, 0.0 }
0x1859   :  { %2484 = vadd.xlane.f32.xlu0 %v2483_v59 }
0x186f   :  { %2540 = vrot.lane.b32.xlu0 %v10816_v15, %s10336_s24 }
0x18e2   :  { %v2482_v28 = vpop.xlane.xlu0 %2481 }
0x18e3   :  { %10128 = vrcp.f32 %v2482_v28 }
0x18e6   :  { %v2485_v43 = vpop.xlane.xlu0 %2484 }
0x18e7   :  { %10130 = vrcp.f32 %v2485_v43 }
0x18ea   :  { %v2541_v30 = vpop.permute.xlu0 %2540 }
0x18eb   :  { %v2546_v31 = vsel %vm421_vm3, %v2541_v30, 0 }
0x18ec   :  { %9293 = vmatpush3.bf16.msra.mxu1 %v2546_v31 }
0x18ed   :  { %v10129_v33 = vpop.eup %10128  ;;  %9306 = vmatprep.subr.bf16.mxu1 %v10332_v1 }
0x18ee   :  { %v2488_v0 = vmul.f32 %v10129_v33, %v10125_v16  ;;  %v10009_v16 = vld [vmem:[%s12289_s5 + $0x18] sm:$0xff]  }
0x18f0   :  { %v2490_v6 = vpack.c.bf16 %v2488_v0, %v2488_v0 }
0x18f1   :  { %v10131_v34 = vpop.eup %10130 }
0x18f2   :  { %9289 = vmatmul.mubr.msk.bf16.vlgmr.msra.gmra.mrb[80].mxu0 %vm301_vm2, %v2490_v6  ;;  %v2489_v12 = vmul.f32 %v10131_v34, %v10127_v57  ;;  %v10015_v57 = vld [vmem:[%s12290_s6 + $0x28] sm:$0xff]   ;;  %v8445_v34 = vld [vmem:[%s12291_s7 + $0x14] ss:$0 sm:$0xff] }
0x18f3   :  { %9302 = vmatprep.mubr.msk.bf16.mxu0 %vm10333_vm0, %v10332_v1  ;;  %9299 = vmatpush3.bf16.msra.mxu0 %v10006_v35 }
0x18f4   :  { %v2491_v15 = vpack.c.bf16 %v2489_v12, %v2489_v12  ;;  %9300 = vmatprep.subr.bf16.mxu0 %v10332_v1 }
0x18f6   :  { %9295 = vmatmul.mubr.msk.bf16.vlgmr.msra.gmra.mrb[76].mxu1 %vm301_vm2, %v2491_v15 }
0x18f7   :  { %9310 = vmatprep.mubr.msk.bf16.mxu1 %vm10333_vm0, %v10332_v1  ;;  %9301 = vmatpush3.bf16.msra.mxu0 %v10007_v36  ;;  %v8446_v36 = vld [vmem:[%s12291_s7 + $0x15] ss:$0 sm:$0xff] }
0x18f8   :  { %9314 = vmatprep.subr.bf16.mxu0 %v10332_v1 }
0x19c5   :  { %v2534_v41 = vpop.f32.mrb[80].mxu0 }
0x19c6   :  { %v9290_v38 = vpop.f32.mrb[81].mxu0 }
0x19c7   :  { %v2537_v39 = vpop.f32.mrb[82].mxu0 }
0x19c8   :  { %v9291_v9 = vpop.f32.mrb[83].mxu0 }
0x19c9   :  { %v2582_v13 = vpop.f32.mrb[76].mxu1  ;;  %v10010_v9 = vld [vmem:[%s12293_s9] sm:$0xff]  }
0x19ca   :  { %v9921_v14 = vpack.i.bf16 %v2582_v13, %v2534_v41  ;;  %v9296_v40 = vpop.f32.mrb[77].mxu1 }
0x19cb   :  { %v2585_v42 = vpop.f32.mrb[78].mxu1  ;;  %v11054_v40 = vld [vmem:[%s12307_s20] sm:$0xff] }
0x19cc   :  { %9922 = vrot.lane.b32.xlu1 %v9921_v14, %s10339_s19  ;;  %v9297_v18 = vpop.f32.mrb[79].mxu1  ;;  %v10011_v14 = vld [vmem:[%s12293_s9 + $0x8] sm:$0xff]  }
0x19cd   :  { %v11059_v42 = vld [vmem:[%s12307_s20 + $0x8] sm:$0xff] }
0x19ce   :  { %v2984_v18 = vpack.c.bf16 %v11059_v42, %v11054_v40 }
0x1a3e   :  { %v9923_v32 = vpop.permute.xlu1 %9922 }
0x1a3f   :  { %v9925_v51 = vunpack.i.h.bf16 %v9923_v32  ;;  %v9924_v52 = vunpack.i.l.bf16 %v9923_v32 }
0x1a41   :  { %v2617_v56 = vsel %vm1206_vm5, %v2615_v54, %v9925_v51  ;;  %v2616_v27 = vsel %vm1206_vm5, %v2614_v55, %v9924_v52 }
0x1a42   :  { %v2618_v61 = vpack.c.bf16 %v2617_v56, %v2616_v27  ;;  %v10018_v56 = vld [vmem:[%s12293_s9 + $0x20] sm:$0xff]  }
0x1a44   :  { %9303 = vmatmul.mubr.msk.bf16.vlgmr.msra.gmra.mrb[84].mxu0 %vm136_vm1, %v2618_v61 }
0x1a45   :  { %9322 = vmatprep.mubr.msk.bf16.mxu0 %vm10333_vm0, %v10332_v1  ;;  %9315 = vmatpush3.bf16.msra.mxu0 %v10014_v53 }
0x1a46   :  { %9316 = vmatprep.subr.bf16.mxu0 %v10332_v1 }
0x1a49   :  { %9317 = vmatpush3.bf16.msra.mxu0 %v10015_v57 }
0x1a4a   :  { %9318 = vmatprep.subr.bf16.mxu0 %v10332_v1 }
0x1a4d   :  { %9319 = vmatpush3.bf16.msra.mxu0 %v10016_v46 }
0x1a4e   :  { %9320 = vmatprep.subr.bf16.mxu0 %v10332_v1 }
0x1a51   :  { %9321 = vmatpush3.bf16.msra.mxu0 %v10017_v47 }
0x1a52   :  { %9342 = vmatprep.subr.bf16.mxu0 %v10332_v1 }
0x1b17   :  { %v2672_v60 = vpop.f32.mrb[84].mxu0 }
0x1b18   :  { %v2673_v62 = vadd.f32 %v8439_v58, %v2672_v60  ;;  %v9304_v63 = vpop.f32.mrb[85].mxu0 }
0x1b19   :  { %v2675_v2 = vpop.f32.mrb[86].mxu0 }
0x1b1a   :  { %v2676_v3 = vadd.f32 %v8439_v58, %v2675_v2  ;;  %v9305_v5 = vpop.f32.mrb[87].mxu0  ;;  %v2679_v7 = vadd.f32 %v2673_v62, %v10770_v48  ;;  %v10019_v62 = vld [vmem:[%s12293_s9 + $0x28] sm:$0xff]   ;;  %v8493_v2 = vld [vmem:[%s12296_s12 + $0x1] ss:$0 sm:$0xff] }
0x1b1c   :  { %v2683_v8 = vsel %vm136_vm1, %v2679_v7, 0.0  ;;  %v2680_v10 = vadd.f32 %v2676_v3, %v10772_v37  ;;  %v10008_v37 = vld [vmem:[%s12289_s5 + $0x10] sm:$0xff]  }
0x1b1d   :  { %2684 = vadd.xlane.f32.xlu0 %v2683_v8  ;;  %9307 = vmatpush3.bf16.msra.mxu1 %v10008_v37 }
0x1b1e   :  { %v2686_v11 = vsel %vm136_vm1, %v2680_v10, 0.0  ;;  %9308 = vmatprep.subr.bf16.mxu1 %v10332_v1 }
0x1b1f   :  { %2687 = vadd.xlane.f32.xlu1 %v2686_v11 }
0x1b21   :  { %9309 = vmatpush3.bf16.msra.mxu1 %v10009_v16  ;;  %v11137_v16 = vld [vmem:[%s12291_s7 + $0x16] ss:$0 sm:$0xff] }
0x1b22   :  { %9326 = vmatprep.subr.bf16.mxu1 %v10332_v1 }
0x1baa   :  { %v2685_v21 = vpop.xlane.xlu0 %2684 }
0x1bab   :  { %v2689_v4 = vmul.f32 0.03125, %v2685_v21 }
0x1bac   :  { %v2688_v19 = vpop.xlane.xlu1 %2687 }
0x1bad   :  { %v2691_v20 = vsub.f32 %v2679_v7, %v2689_v4  ;;  %v2690_v29 = vmul.f32 0.03125, %v2688_v19  ;;  %v8489_v4 = vld [vmem:[%s12296_s12] ss:$0 sm:$0xff] }
0x1baf   :  { %v2692_v23 = vsub.f32 %v2680_v10, %v2690_v29  ;;  %v2693_v24 = vmul.f32 %v2691_v20, %v2691_v20 }
0x1bb1   :  { %v2695_v25 = vsel %vm136_vm1, %v2693_v24, 0.0  ;;  %v2694_v26 = vmul.f32 %v2692_v23, %v2692_v23 }
0x1bb2   :  { %2696 = vadd.xlane.f32.xlu0 %v2695_v25 }
0x1bb3   :  { %v2698_v48 = vsel %vm136_vm1, %v2694_v26, 0.0 }
0x1bb6   :  { %2699 = vadd.xlane.f32.xlu0 %v2698_v48 }
0x1c3f   :  { %v2697_v59 = vpop.xlane.xlu0 %2696 }
0x1c40   :  { %v2701_v28 = vmul.f32 0.03125, %v2697_v59 }
0x1c42   :  { %v2703_v43 = vadd.f32 1e-05, %v2701_v28  ;;  %v74_v28 = vlaneseq }
0x1c43   :  { %v2700_v30 = vpop.xlane.xlu0 %2699 }
0x1c44   :  { %10132 = vrsqrt.f32 %v2703_v43  ;;  %v2702_v31 = vmul.f32 0.03125, %v2700_v30  ;;  %v8497_v43 = vld [vmem:[%s12296_s12 + $0x2] ss:$0 sm:$0xff]  ;;  %v75_v30 = vshrl.u32 %v74_v28, 7 }
0x1c46   :  { %v2704_v33 = vadd.f32 1e-05, %v2702_v31  ;;  %v77_v31 = vand.u32 127, %v74_v28 }
0x1c48   :  { %10134 = vrsqrt.f32 %v2704_v33  ;;  %vm78_vm7 = vcmp.gt.s32.totalorder %v77_v31, %v75_v30 }
0x1c4e   :  { %v10133_v0 = vpop.eup %10132 }
0x1c4f   :  { %v2707_v6 = vmul.f32 %v10133_v0, %v2691_v20 }
0x1c51   :  { %v2713_v15 = vmul.f32 %v8445_v34, %v2707_v6 }
0x1c52   :  { %v10135_v12 = vpop.eup %10134 }
0x1c53   :  { %v2708_v35 = vmul.f32 %v10135_v12, %v2692_v23  ;;  %v11036_v38 = vadd.f32 %v8446_v36, %v2713_v15 }
0x1c55   :  { %v2714_v41 = vmul.f32 %v8445_v34, %v2708_v35 }
0x1c57   :  { %v11038_v39 = vadd.f32 %v8446_v36, %v2714_v41 }
0x1c59   :  { %v2721_v13 = vpack.c.bf16 %v11038_v39, %v11036_v38 }
0x1c5b   :  { %9311 = vmatmul.mubr.msk.bf16.vlgmr.msra.gmra.mrb[80].mxu1 %vm136_vm1, %v2721_v13  ;;  %v79_v13 = vsel %vm78_vm7, -1e+09, %v10332_v1 }
0x1c5c   :  { %9327 = vmatpush3.bf16.msra.mxu1 %v10010_v9  ;;  %9330 = vmatprep.mubr.msk.bf16.mxu1 %vm10333_vm0, %v10332_v1  ;;  %v8331_v9 = vld [vmem:[%s12287_s3] ss:$0 sm:$0xff] }
0x1c5d   :  { %9328 = vmatprep.subr.bf16.mxu1 %v10332_v1 }
0x1c60   :  { %9329 = vmatpush3.bf16.msra.mxu1 %v10011_v14 }
0x1c61   :  { %9334 = vmatprep.subr.bf16.mxu1 %v10332_v1 }
0x1c63   :  { %9331 = vmatmul.mubr.msk.bf16.vlgmr.msra.gmra.mrb[84].mxu1 %vm136_vm1, %v2984_v18 }
0x1c64   :  { %9335 = vmatpush3.bf16.msra.mxu1 %v10012_v44  ;;  %9338 = vmatprep.mubr.msk.bf16.mxu1 %vm10333_vm0, %v10332_v1  ;;  %v11161_v44 = vadd.f32 %v8331_v9, %v79_v13 }
0x1c65   :  { %9336 = vmatprep.subr.bf16.mxu1 %v10332_v1 }
0x1c68   :  { %9337 = vmatpush3.bf16.msra.mxu1 %v10013_v45 }
0x1c69   :  { %9350 = vmatprep.subr.bf16.mxu1 %v10332_v1 }
0x1c6b   :  { %9339 = vmatmul.mubr.msk.bf16.vlgmr.msra.gmra.mrb[88].mxu1 %vm136_vm1, %v2984_v18 }
0x1c6c   :  { %9352 = vmatprep.mubr.msk.bf16.mxu1 %vm10333_vm0, %v10332_v1 }
0x1d2e   :  { %v2784_v22 = vpop.f32.mrb[80].mxu1 }
0x1d2f   :  { %v2785_v32 = vadd.f32 %v8452_v17, %v2784_v22  ;;  %v9312_v49 = vpop.f32.mrb[81].mxu1 }
0x1d30   :  { %v2787_v50 = vpop.f32.mrb[82].mxu1 }
0x1d31   :  { %v2788_v51 = vadd.f32 %v8452_v17, %v2787_v50  ;;  %v9313_v52 = vpop.f32.mrb[83].mxu1  ;;  %v2791_v54 = vmax.f32 %v2785_v32, 0.0 }
0x1d33   :  { %v2792_v55 = vmax.f32 %v2788_v51, 0.0 }
0x1d35   :  { %v2793_v27 = vpack.c.bf16 %v2792_v55, %v2791_v54 }
0x1d36   :  { %v3038_v61 = vpop.f32.mrb[84].mxu1 }
0x1d37   :  { %9323 = vmatmul.mubr.msk.bf16.vlgmr.msra.gmra.mrb[88].mxu0 %vm1421_vm6, %v2793_v27  ;;  %v9332_v58 = vpop.f32.mrb[85].mxu1  ;;  %v3039_v29 = vadd.f32 %v8489_v4, %v3038_v61 }
0x1d38   :  { %v3041_v60 = vpop.f32.mrb[86].mxu1  ;;  %9343 = vmatpush3.bf16.msra.mxu0 %v10018_v56  ;;  %9346 = vmatprep.mubr.msk.bf16.mxu0 %vm10333_vm0, %v10332_v1 }
0x1d39   :  { %v9333_v63 = vpop.f32.mrb[87].mxu1  ;;  %9344 = vmatprep.subr.bf16.mxu0 %v10332_v1  ;;  %v3042_v24 = vadd.f32 %v8489_v4, %v3041_v60  ;;  %v11120_v25 = vpack.c.bf16 %v3039_v29, %v3039_v29 }
0x1d3b   :  { %v11122_v26 = vpack.c.bf16 %v3042_v24, %v3042_v24 }
0x1d3c   :  { %9345 = vmatpush3.bf16.msra.mxu0 %v10019_v62 }
0x1d3d   :  { %9356 = vmatprep.subr.bf16.mxu0 %v10332_v1 }
0x1d3e   :  { %v3097_v3 = vpop.f32.mrb[88].mxu1 }
0x1d3f   :  { %v3098_v5 = vadd.f32 %v8493_v2, %v3097_v3  ;;  %v9340_v7 = vpop.f32.mrb[89].mxu1  ;;  %9347 = vmatmul.mubr.msk.bf16.vlgmr.msra.gmra.mrb[92].mxu0 %vm136_vm1, %v2984_v18  ;;  %v8332_v18 = vld [vmem:[%s12287_s3 + $0x1] ss:$0 sm:$0xff] }
0x1d40   :  { %v3100_v8 = vpop.f32.mrb[90].mxu1  ;;  %9358 = vmatprep.mubr.msk.bf16.mxu0 %vm10333_vm0, %v10332_v1  ;;  %v11164_v45 = vadd.f32 %v8332_v18, %v79_v13 }
0x1d41   :  { %v11107_v10 = vpack.c.bf16 %v3098_v5, %v3098_v5  ;;  %v3101_v11 = vadd.f32 %v8493_v2, %v3100_v8  ;;  %v9341_v21 = vpop.f32.mrb[91].mxu1 }
0x1d43   :  { %v11112_v19 = vpack.c.bf16 %v3101_v11, %v3101_v11  ;;  %v3169_v20 = vsel %vm301_vm2, %v11107_v10, 0 }
0x1d44   :  { %9351 = vmatpush3.bf16.xpose.msra.mxu1 %v3169_v20 }
0x1d45   :  { %v3215_v23 = vsel %vm301_vm2, %v11112_v19, 0  ;;  %9362 = vmatprep.subr.bf16.mxu1 %v10332_v1 }
0x1d46   :  { %9357 = vmatpush3.bf16.xpose.msra.mxu0 %v3215_v23 }
0x1d47   :  { %9368 = vmatprep.subr.bf16.mxu0 %v10332_v1 }
0x1d4b   :  { %9353 = vmatmul.mubr.msk.bf16.vlgmr.msra.gmra.mrb[92].mxu1 %vm301_vm2, %v11120_v25 }
0x1d4c   :  { %9364 = vmatprep.mubr.msk.bf16.mxu1 %vm10333_vm0, %v10332_v1 }
0x1d4d   :  { %9359 = vmatmul.mubr.msk.bf16.vlgmr.msra.gmra.mrb[96].mxu0 %vm301_vm2, %v11122_v26 }
0x1d4e   :  { %9370 = vmatprep.mubr.msk.bf16.mxu0 %vm10333_vm0, %v10332_v1 }
0x1e0a   :  { %v11132_v48 = vpop.f32.mrb[88].mxu0 }
0x1e0b   :  { %v9324_v37 = vpop.f32.mrb[89].mxu0 }
0x1e0c   :  { %v2872_v53 = vpop.f32.mrb[90].mxu0 }
0x1e0d   :  { %v11140_v57 = vadd.f32 %v11137_v16, %v2872_v53  ;;  %v9325_v59 = vpop.f32.mrb[91].mxu0 }
0x1e12   :  { %v3156_v33 = vpop.f32.mrb[92].mxu0 }
0x1e13   :  { %v3157_v0 = vadd.f32 %v8497_v43, %v3156_v33  ;;  %v9348_v6 = vpop.f32.mrb[93].mxu0 }
0x1e14   :  { %v3159_v34 = vpop.f32.mrb[94].mxu0 }
0x1e15   :  { %v11145_v12 = vpack.c.bf16 %v3157_v0, %v3157_v0  ;;  %v3160_v15 = vadd.f32 %v8497_v43, %v3159_v34  ;;  %v9349_v35 = vpop.f32.mrb[95].mxu0 }
0x1e17   :  { %v11147_v36 = vpack.c.bf16 %v3160_v15, %v3160_v15  ;;  %v3285_v41 = vsel %vm421_vm3, %v11145_v12, 0 }
0x1e18   :  { %9363 = vmatpush3.bf16.msra.mxu1 %v3285_v41 }
0x1e19   :  { %v3331_v14 = vsel %vm421_vm3, %v11147_v36, 0  ;;  %9374 = vmatprep.subr.bf16.mxu1 %v10332_v1 }
0x1e1a   :  { %9369 = vmatpush3.bf16.msra.mxu0 %v3331_v14 }
0x1e1b   :  { %9380 = vmatprep.subr.bf16.mxu0 %v10332_v1 }
0x1e1e   :  { %v3205_v46 = vpop.f32.mrb[92].mxu1 }
0x1e1f   :  { %v3206_v47 = vadd.f32 %v3205_v46, %v11161_v44  ;;  %v9354_v17 = vpop.f32.mrb[93].mxu1 }
0x1e20   :  { %v3208_v22 = vpop.f32.mrb[94].mxu1  ;;  %v3251_v32 = vpop.f32.mrb[96].mxu0 }
0x1e21   :  { %v3252_v49 = vadd.f32 %v3251_v32, %v11164_v45  ;;  %v9355_v50 = vpop.f32.mrb[95].mxu1  ;;  %v9360_v51 = vpop.f32.mrb[97].mxu0  ;;  %v3257_v52 = vsel %vm301_vm2, %v3206_v47, -inf }
0x1e22   :  { %v3254_v54 = vpop.f32.mrb[98].mxu0  ;;  %3258 = vmax.xlane.f32.xlu0 %v3257_v52 }
0x1e23   :  { %v9361_v55 = vpop.f32.mrb[99].mxu0  ;;  %v3260_v56 = vsel %vm301_vm2, %v3252_v49, -inf }
0x1e24   :  { %3261 = vmax.xlane.f32.xlu1 %v3260_v56 }
0x1e35   :  { %3429 = vrot.lane.b32.xlu1 %v11112_v19, %s10334_s0 }
0x1eaf   :  { %v3259_v27 = vpop.xlane.xlu0 %3258 }
0x1eb0   :  { %v3263_v61 = vsub.f32 %v3206_v47, %v3259_v27 }
0x1eb1   :  { %v3262_v58 = vpop.xlane.xlu1 %3261 }
0x1eb2   :  { %v3265_v60 = vmul.f32 1.442695, %v3263_v61  ;;  %v3264_v62 = vsub.f32 %v3252_v49, %v3262_v58 }
0x1eb4   :  { %10136 = vpow2.f32 %v3265_v60  ;;  %v3267_v63 = vmul.f32 1.442695, %v3264_v62 }
0x1eb5   :  { %v3430_v8 = vpop.permute.xlu1 %3429 }
0x1eb6   :  { %10138 = vpow2.f32 %v3267_v63  ;;  %v3435_v28 = vsel %vm301_vm2, %v3430_v8, 0 }
0x1ebe   :  { %v10137_v2 = vpop.eup %10136 }
0x1ebf   :  { %v3269_v3 = vsel %vm301_vm2, %v10137_v2, 0.0 }
0x1ec0   :  { %v10139_v5 = vpop.eup %10138  ;;  %3270 = vadd.xlane.f32.xlu0 %v3269_v3 }
0x1ec1   :  { %v3272_v7 = vsel %vm301_vm2, %v10139_v5, 0.0 }
0x1ec2   :  { %3273 = vadd.xlane.f32.xlu1 %v3272_v7 }
0x1ed3   :  { %3374 = vrot.lane.b32.xlu1 %v11120_v25, %s10334_s0 }
0x1ed6   :  { %3377 = vrot.lane.b32.xlu0 %v11107_v10, %s10334_s0 }
0x1ed7   :  { %3426 = vrot.lane.b32.xlu1 %v11122_v26, %s10334_s0 }
0x1f4d   :  { %v3271_v11 = vpop.xlane.xlu0 %3270 }
0x1f4e   :  { %10140 = vrcp.f32 %v3271_v11 }
0x1f4f   :  { %v3274_v21 = vpop.xlane.xlu1 %3273 }
0x1f50   :  { %10142 = vrcp.f32 %v3274_v21 }
0x1f51   :  { %v3378_v23 = vpop.permute.xlu0 %3377 }
0x1f52   :  { %v3383_v53 = vsel %vm301_vm2, %v3378_v23, 0 }
0x1f53   :  { %v3375_v43 = vpop.permute.xlu1 %3374 }
0x1f57   :  { %v3427_v30 = vpop.permute.xlu1 %3426 }
0x1f58   :  { %v10141_v4 = vpop.eup %10140 }
0x1f59   :  { %v3277_v20 = vmul.f32 %v10141_v4, %v10137_v2 }
0x1f5a   :  { %v10143_v29 = vpop.eup %10142 }
0x1f5b   :  { %v3279_v24 = vpack.c.bf16 %v3277_v20, %v3277_v20  ;;  %v3278_v37 = vmul.f32 %v10143_v29, %v10139_v5 }
0x1f5d   :  { %9365 = vmatmul.mubr.msk.bf16.vlgmr.msra.gmra.mrb[96].mxu1 %vm301_vm2, %v3279_v24  ;;  %v3280_v59 = vpack.c.bf16 %v3278_v37, %v3278_v37 }
0x1f5e   :  { %9375 = vmatpush3.bf16.xpose.msra.mxu1 %v3383_v53  ;;  %9376 = vmatprep.mubr.msk.bf16.mxu1 %vm10333_vm0, %v10332_v1 }
0x1f5f   :  { %9371 = vmatmul.mubr.msk.bf16.vlgmr.msra.gmra.mrb[100].mxu0 %vm301_vm2, %v3280_v59  ;;  %9386 = vmatprep.subr.bf16.mxu1 %v10332_v1 }
0x1f60   :  { %9381 = vmatpush3.bf16.xpose.msra.mxu0 %v3435_v28  ;;  %9382 = vmatprep.mubr.msk.bf16.mxu0 %vm10333_vm0, %v10332_v1 }
0x1f61   :  { %9392 = vmatprep.subr.bf16.mxu0 %v10332_v1 }
0x1f65   :  { %9377 = vmatmul.mubr.msk.bf16.vlgmr.msra.gmra.mrb[100].mxu1 %vm301_vm2, %v3375_v43 }
0x1f66   :  { %9388 = vmatprep.mubr.msk.bf16.mxu1 %vm10333_vm0, %v10332_v1 }
0x1f67   :  { %9383 = vmatmul.mubr.msk.bf16.vlgmr.msra.gmra.mrb[104].mxu0 %vm301_vm2, %v3427_v30 }
0x1f68   :  { %9394 = vmatprep.mubr.msk.bf16.mxu0 %vm10333_vm0, %v10332_v1 }
0x2030   :  { %v11196_v31 = vpop.f32.mrb[96].mxu1 }
0x2031   :  { %v9366_v33 = vpop.f32.mrb[97].mxu1 }
0x2032   :  { %v3324_v0 = vpop.f32.mrb[98].mxu1  ;;  %v11198_v6 = vpop.f32.mrb[100].mxu0 }
0x2033   :  { %v9367_v34 = vpop.f32.mrb[99].mxu1  ;;  %v9372_v15 = vpop.f32.mrb[101].mxu0 }
0x2034   :  { %v3370_v35 = vpop.f32.mrb[102].mxu0 }
0x2035   :  { %v9373_v41 = vpop.f32.mrb[103].mxu0 }
0x2038   :  { %v3419_v9 = vpop.f32.mrb[100].mxu1 }
0x2039   :  { %v3420_v13 = vadd.f32 %v3419_v9, %v11161_v44  ;;  %v9378_v14 = vpop.f32.mrb[101].mxu1 }
0x203a   :  { %v3422_v18 = vpop.f32.mrb[102].mxu1  ;;  %v3471_v46 = vpop.f32.mrb[104].mxu0 }
0x203b   :  { %v3472_v47 = vadd.f32 %v3471_v46, %v11164_v45  ;;  %v9379_v17 = vpop.f32.mrb[103].mxu1  ;;  %v9384_v22 = vpop.f32.mrb[105].mxu0  ;;  %v3477_v32 = vsel %vm301_vm2, %v3420_v13, -inf }
0x203c   :  { %v3474_v49 = vpop.f32.mrb[106].mxu0  ;;  %3478 = vmax.xlane.f32.xlu0 %v3477_v32 }
0x203d   :  { %v9385_v50 = vpop.f32.mrb[107].mxu0  ;;  %v3480_v51 = vsel %vm301_vm2, %v3472_v47, -inf }
0x203e   :  { %3481 = vmax.xlane.f32.xlu1 %v3480_v51 }
0x204f   :  { %3551 = vrot.lane.b32.xlu1 %v11147_v36, %s10334_s0 }
0x2053   :  { %3601 = vrot.lane.b32.xlu1 %v11107_v10, %s10335_s23 }
0x2057   :  { %3651 = vrot.lane.b32.xlu1 %v11112_v19, %s10335_s23 }
0x205b   :  { %3649 = vrot.lane.b32.xlu1 %v11122_v26, %s10335_s23 }
0x20c9   :  { %v3479_v52 = vpop.xlane.xlu0 %3478 }
0x20ca   :  { %v3483_v54 = vsub.f32 %v3420_v13, %v3479_v52 }
0x20cb   :  { %v3482_v55 = vpop.xlane.xlu1 %3481 }
0x20cc   :  { %v3485_v56 = vmul.f32 1.442695, %v3483_v54  ;;  %v3484_v27 = vsub.f32 %v3472_v47, %v3482_v55 }
0x20ce   :  { %10144 = vpow2.f32 %v3485_v56  ;;  %v3487_v61 = vmul.f32 1.442695, %v3484_v27 }
0x20cf   :  { %v3552_v58 = vpop.permute.xlu1 %3551 }
0x20d0   :  { %10146 = vpow2.f32 %v3487_v61  ;;  %v3557_v60 = vsel %vm421_vm3, %v3552_v58, 0 }
0x20d1   :  { %9393 = vmatpush3.bf16.msra.mxu0 %v3557_v60 }
0x20d2   :  { %9404 = vmatprep.subr.bf16.mxu0 %v10332_v1 }
0x20d3   :  { %v3602_v4 = vpop.permute.xlu1 %3601 }
0x20d4   :  { %v3607_v53 = vsel %vm301_vm2, %v3602_v4, 0 }
0x20d7   :  { %v3652_v37 = vpop.permute.xlu1 %3651 }
0x20d8   :  { %v10145_v62 = vpop.eup %10144  ;;  %v3657_v28 = vsel %vm301_vm2, %v3652_v37, 0 }
0x20d9   :  { %v3489_v63 = vsel %vm301_vm2, %v10145_v62, 0.0 }
0x20da   :  { %v10147_v2 = vpop.eup %10146  ;;  %3490 = vadd.xlane.f32.xlu0 %v3489_v63 }
0x20db   :  { %v3492_v3 = vsel %vm301_vm2, %v10147_v2, 0.0  ;;  %v3650_v30 = vpop.permute.xlu1 %3649 }
0x20de   :  { %3493 = vadd.xlane.f32.xlu0 %v3492_v3 }
0x20f4   :  { %3502 = vrot.lane.b32.xlu0 %v11145_v12, %s10334_s0 }
0x20f8   :  { %3599 = vrot.lane.b32.xlu0 %v11120_v25, %s10335_s23 }
0x2167   :  { %v3491_v5 = vpop.xlane.xlu0 %3490 }
0x2168   :  { %10148 = vrcp.f32 %v3491_v5 }
0x216b   :  { %v3494_v7 = vpop.xlane.xlu0 %3493 }
0x216c   :  { %10150 = vrcp.f32 %v3494_v7 }
0x216f   :  { %v3503_v8 = vpop.permute.xlu0 %3502 }
0x2170   :  { %v3508_v11 = vsel %vm421_vm3, %v3503_v8, 0 }
0x2171   :  { %9387 = vmatpush3.bf16.msra.mxu1 %v3508_v11 }
0x2172   :  { %v10149_v21 = vpop.eup %10148  ;;  %9398 = vmatprep.subr.bf16.mxu1 %v10332_v1 }
0x2173   :  { %v3497_v20 = vmul.f32 %v10149_v21, %v10145_v62  ;;  %v3600_v43 = vpop.permute.xlu0 %3599 }
0x2175   :  { %v3499_v29 = vpack.c.bf16 %v3497_v20, %v3497_v20 }
0x2176   :  { %v10151_v23 = vpop.eup %10150 }
0x2177   :  { %9389 = vmatmul.mubr.msk.bf16.vlgmr.msra.gmra.mrb[104].mxu1 %vm301_vm2, %v3499_v29  ;;  %v3498_v24 = vmul.f32 %v10151_v23, %v10147_v2 }
0x2178   :  { %9400 = vmatprep.mubr.msk.bf16.mxu1 %vm10333_vm0, %v10332_v1 }
0x2179   :  { %v3500_v59 = vpack.c.bf16 %v3498_v24, %v3498_v24 }
0x217a   :  { %9399 = vmatpush3.bf16.xpose.msra.mxu1 %v3607_v53 }
0x217b   :  { %9395 = vmatmul.mubr.msk.bf16.vlgmr.msra.gmra.mrb[108].mxu0 %vm301_vm2, %v3500_v59  ;;  %9410 = vmatprep.subr.bf16.mxu1 %v10332_v1 }
0x217c   :  { %9405 = vmatpush3.bf16.xpose.msra.mxu0 %v3657_v28  ;;  %9406 = vmatprep.mubr.msk.bf16.mxu0 %vm10333_vm0, %v10332_v1 }
0x217d   :  { %9416 = vmatprep.subr.bf16.mxu0 %v10332_v1 }
0x2181   :  { %9401 = vmatmul.mubr.msk.bf16.vlgmr.msra.gmra.mrb[108].mxu1 %vm301_vm2, %v3600_v43 }
0x2182   :  { %9412 = vmatprep.mubr.msk.bf16.mxu1 %vm10333_vm0, %v10332_v1 }
0x2183   :  { %9407 = vmatmul.mubr.msk.bf16.vlgmr.msra.gmra.mrb[112].mxu0 %vm301_vm2, %v3650_v30 }
0x2184   :  { %9418 = vmatprep.mubr.msk.bf16.mxu0 %vm10333_vm0, %v10332_v1 }
0x224a   :  { %v11238_v33 = vpop.f32.mrb[104].mxu1 }
0x224b   :  { %v9390_v0 = vpop.f32.mrb[105].mxu1 }
0x224c   :  { %v3547_v34 = vpop.f32.mrb[106].mxu1 }
0x224d   :  { %v9391_v15 = vpop.f32.mrb[107].mxu1 }
0x224e   :  { %v11240_v35 = vpop.f32.mrb[108].mxu0 }
0x224f   :  { %v9926_v41 = vpack.i.bf16 %v11240_v35, %v11238_v33  ;;  %v9396_v9 = vpop.f32.mrb[109].mxu0 }
0x2250   :  { %v3596_v13 = vpop.f32.mrb[110].mxu0 }
0x2251   :  { %v9397_v14 = vpop.f32.mrb[111].mxu0 }
0x2254   :  { %v3643_v18 = vpop.f32.mrb[108].mxu1 }
0x2255   :  { %v3644_v46 = vadd.f32 %v3643_v18, %v11161_v44  ;;  %v9402_v47 = vpop.f32.mrb[109].mxu1 }
0x2256   :  { %v3646_v17 = vpop.f32.mrb[110].mxu1  ;;  %v3693_v22 = vpop.f32.mrb[112].mxu0 }
0x2257   :  { %v3694_v32 = vadd.f32 %v3693_v22, %v11164_v45  ;;  %v9403_v49 = vpop.f32.mrb[111].mxu1  ;;  %v9408_v50 = vpop.f32.mrb[113].mxu0  ;;  %v3699_v51 = vsel %vm301_vm2, %v3644_v46, -inf }
0x2258   :  { %v3696_v52 = vpop.f32.mrb[114].mxu0  ;;  %3700 = vmax.xlane.f32.xlu0 %v3699_v51 }
0x2259   :  { %v9409_v54 = vpop.f32.mrb[115].mxu0  ;;  %v3702_v55 = vsel %vm301_vm2, %v3694_v32, -inf }
0x225a   :  { %3703 = vmax.xlane.f32.xlu1 %v3702_v55 }
0x226b   :  { %3771 = vrot.lane.b32.xlu1 %v11147_v36, %s10335_s23 }
0x226f   :  { %3821 = vrot.lane.b32.xlu1 %v11107_v10, %s10336_s24 }
0x2273   :  { %3871 = vrot.lane.b32.xlu1 %v11112_v19, %s10336_s24 }
0x2277   :  { %3869 = vrot.lane.b32.xlu1 %v11122_v26, %s10336_s24 }
0x22e5   :  { %v3701_v56 = vpop.xlane.xlu0 %3700 }
0x22e6   :  { %v3705_v27 = vsub.f32 %v3644_v46, %v3701_v56 }
0x22e7   :  { %v3704_v61 = vpop.xlane.xlu1 %3703 }
0x22e8   :  { %v3707_v58 = vmul.f32 1.442695, %v3705_v27  ;;  %v3706_v60 = vsub.f32 %v3694_v32, %v3704_v61  ;;  %v2870_v61 = vadd.f32 %v11137_v16, %v11132_v48 }
0x22ea   :  { %10152 = vpow2.f32 %v3707_v58  ;;  %v3709_v62 = vmul.f32 1.442695, %v3706_v60  ;;  %v2876_v58 = vadd.f32 %v2870_v61, %v11036_v38 }
0x22eb   :  { %v3772_v63 = vpop.permute.xlu1 %3771 }
0x22ec   :  { %10154 = vpow2.f32 %v3709_v62  ;;  %v3777_v2 = vsel %vm421_vm3, %v3772_v63, 0  ;;  %v2880_v60 = vsel %vm136_vm1, %v2876_v58, 0.0 }
0x22ed   :  { %9417 = vmatpush3.bf16.msra.mxu0 %v3777_v2 }
0x22ee   :  { %9428 = vmatprep.subr.bf16.mxu0 %v10332_v1 }
0x22ef   :  { %v3822_v4 = vpop.permute.xlu1 %3821 }
0x22f3   :  { %v3872_v37 = vpop.permute.xlu1 %3871 }
0x22f4   :  { %v10153_v10 = vpop.eup %10152  ;;  %v3877_v59 = vsel %vm301_vm2, %v3872_v37, 0 }
0x22f5   :  { %v3711_v19 = vsel %vm301_vm2, %v10153_v10, 0.0 }
0x22f6   :  { %v10155_v3 = vpop.eup %10154  ;;  %3712 = vadd.xlane.f32.xlu0 %v3711_v19 }
0x22f7   :  { %v3714_v26 = vsel %vm301_vm2, %v10155_v3, 0.0  ;;  %v3870_v43 = vpop.permute.xlu1 %3869 }
0x22fa   :  { %3715 = vadd.xlane.f32.xlu0 %v3714_v26 }
0x2310   :  { %3723 = vrot.lane.b32.xlu0 %v11145_v12, %s10335_s23 }
0x2314   :  { %3819 = vrot.lane.b32.xlu0 %v11120_v25, %s10336_s24  ;;  %v3827_v25 = vsel %vm301_vm2, %v3822_v4, 0 }
0x2383   :  { %v3713_v5 = vpop.xlane.xlu0 %3712 }
0x2384   :  { %10156 = vrcp.f32 %v3713_v5 }
0x2387   :  { %v3716_v7 = vpop.xlane.xlu0 %3715 }
0x2388   :  { %10158 = vrcp.f32 %v3716_v7 }
0x238b   :  { %v3724_v8 = vpop.permute.xlu0 %3723 }
0x238c   :  { %v3729_v11 = vsel %vm421_vm3, %v3724_v8, 0 }
0x238d   :  { %9411 = vmatpush3.bf16.msra.mxu1 %v3729_v11 }
0x238e   :  { %v10157_v21 = vpop.eup %10156  ;;  %9422 = vmatprep.subr.bf16.mxu1 %v10332_v1 }
0x238f   :  { %v3719_v20 = vmul.f32 %v10157_v21, %v10153_v10  ;;  %v3820_v28 = vpop.permute.xlu0 %3819 }
0x2391   :  { %v3721_v29 = vpack.c.bf16 %v3719_v20, %v3719_v20 }
0x2392   :  { %v10159_v23 = vpop.eup %10158 }
0x2393   :  { %9413 = vmatmul.mubr.msk.bf16.vlgmr.msra.gmra.mrb[112].mxu1 %vm301_vm2, %v3721_v29  ;;  %v3720_v24 = vmul.f32 %v10159_v23, %v10155_v3  ;;  %v10020_v29 = vld [vmem:[%s12293_s9 + $0x30] sm:$0xff]   ;;  %v10021_v23 = vld [vmem:[%s12293_s9 + $0x38] sm:$0xff]  }
0x2394   :  { %9424 = vmatprep.mubr.msk.bf16.mxu1 %vm10333_vm0, %v10332_v1 }
0x2395   :  { %v3722_v53 = vpack.c.bf16 %v3720_v24, %v3720_v24 }
0x2396   :  { %9423 = vmatpush3.bf16.xpose.msra.mxu1 %v3827_v25 }
0x2397   :  { %9419 = vmatmul.mubr.msk.bf16.vlgmr.msra.gmra.mrb[116].mxu0 %vm301_vm2, %v3722_v53  ;;  %9434 = vmatprep.subr.bf16.mxu1 %v10332_v1 }
0x2398   :  { %9429 = vmatpush3.bf16.xpose.msra.mxu0 %v3877_v59  ;;  %9430 = vmatprep.mubr.msk.bf16.mxu0 %vm10333_vm0, %v10332_v1 }
0x2399   :  { %9440 = vmatprep.subr.bf16.mxu0 %v10332_v1 }
0x239d   :  { %9425 = vmatmul.mubr.msk.bf16.vlgmr.msra.gmra.mrb[116].mxu1 %vm301_vm2, %v3820_v28 }
0x239e   :  { %9436 = vmatprep.mubr.msk.bf16.mxu1 %vm10333_vm0, %v10332_v1 }
0x239f   :  { %9431 = vmatmul.mubr.msk.bf16.vlgmr.msra.gmra.mrb[120].mxu0 %vm301_vm2, %v3870_v43 }
0x23a0   :  { %9442 = vmatprep.mubr.msk.bf16.mxu0 %vm10333_vm0, %v10332_v1 }
0x2466   :  { %v3765_v30 = vpop.f32.mrb[112].mxu1 }
0x2467   :  { %v9414_v0 = vpop.f32.mrb[113].mxu1 }
0x2468   :  { %v3768_v34 = vpop.f32.mrb[114].mxu1 }
0x2469   :  { %v9415_v15 = vpop.f32.mrb[115].mxu1 }
0x246a   :  { %v3813_v9 = vpop.f32.mrb[116].mxu0 }
0x246b   :  { %v9931_v13 = vpack.i.bf16 %v3813_v9, %v3765_v30  ;;  %v9420_v14 = vpop.f32.mrb[117].mxu0 }
0x246c   :  { %v3816_v18 = vpop.f32.mrb[118].mxu0  ;;  %v2877_v14 = vadd.f32 %v11140_v57, %v11038_v39 }
0x246d   :  { %v9421_v46 = vpop.f32.mrb[119].mxu0 }
0x246e   :  { %v2883_v46 = vsel %vm136_vm1, %v2877_v14, 0.0 }
0x2470   :  { %v3863_v47 = vpop.f32.mrb[116].mxu1 }
0x2471   :  { %v3864_v17 = vadd.f32 %v3863_v47, %v11161_v44  ;;  %v9426_v22 = vpop.f32.mrb[117].mxu1 }
0x2472   :  { %v3866_v32 = vpop.f32.mrb[118].mxu1  ;;  %v3913_v49 = vpop.f32.mrb[120].mxu0 }
0x2473   :  { %v3914_v50 = vadd.f32 %v3913_v49, %v11164_v45  ;;  %v9427_v51 = vpop.f32.mrb[119].mxu1  ;;  %v9432_v52 = vpop.f32.mrb[121].mxu0  ;;  %v3919_v54 = vsel %vm301_vm2, %v3864_v17, -inf }
0x2474   :  { %v3916_v55 = vpop.f32.mrb[122].mxu0  ;;  %3920 = vmax.xlane.f32.xlu0 %v3919_v54 }
0x2475   :  { %v9433_v56 = vpop.f32.mrb[123].mxu0  ;;  %v3922_v27 = vsel %vm301_vm2, %v3914_v50, -inf }
0x2476   :  { %3923 = vmax.xlane.f32.xlu1 %v3922_v27 }
0x2487   :  { %3991 = vrot.lane.b32.xlu1 %v11147_v36, %s10336_s24 }
0x248b   :  { %9927 = vrot.lane.b32.xlu1 %v9926_v41, %s10337_s25 }
0x248f   :  { %9932 = vrot.lane.b32.xlu1 %v9931_v13, %s10338_s26 }
0x24b3   :  { %2881 = vadd.xlane.f32.xlu1 %v2880_v60 }
0x2501   :  { %v3921_v62 = vpop.xlane.xlu0 %3920 }
0x2502   :  { %v3925_v63 = vsub.f32 %v3864_v17, %v3921_v62 }
0x2503   :  { %v3924_v2 = vpop.xlane.xlu1 %3923 }
0x2504   :  { %v3927_v10 = vmul.f32 1.442695, %v3925_v63  ;;  %v3926_v36 = vsub.f32 %v3914_v50, %v3924_v2 }
0x2506   :  { %10160 = vpow2.f32 %v3927_v10  ;;  %v3929_v19 = vmul.f32 1.442695, %v3926_v36 }
0x2507   :  { %v3992_v3 = vpop.permute.xlu1 %3991 }
0x2508   :  { %10162 = vpow2.f32 %v3929_v19  ;;  %v3997_v33 = vsel %vm421_vm3, %v3992_v3, 0  ;;  %v8473_v3 = vld [vmem:[%s12291_s7 + $0x17] ss:$0 sm:$0xff] }
0x2509   :  { %9441 = vmatpush3.bf16.msra.mxu0 %v3997_v33 }
0x250a   :  { %9454 = vmatprep.subr.bf16.mxu0 %v10332_v1 }
0x250b   :  { %v9928_v34 = vpop.permute.xlu1 %9927 }
0x250c   :  { %v9930_v22 = vunpack.i.h.bf16 %v9928_v34  ;;  %v9929_v32 = vunpack.i.l.bf16 %v9928_v34 }
0x250e   :  { %v4064_v52 = vsel %vm301_vm2, %v11198_v6, %v9930_v22  ;;  %v4063_v54 = vsel %vm301_vm2, %v11196_v31, %v9929_v32 }
0x250f   :  { %v9933_v15 = vpop.permute.xlu1 %9932 }
0x2510   :  { %v10161_v48 = vpop.eup %10160  ;;  %v9935_v49 = vunpack.i.h.bf16 %v9933_v15  ;;  %v9934_v50 = vunpack.i.l.bf16 %v9933_v15 }
0x2511   :  { %v3931_v38 = vsel %vm301_vm2, %v10161_v48, 0.0 }
0x2512   :  { %v10163_v16 = vpop.eup %10162  ;;  %3932 = vadd.xlane.f32.xlu0 %v3931_v38  ;;  %v4066_v55 = vsel %vm1203_vm4, %v4064_v52, %v9935_v49  ;;  %v4065_v56 = vsel %vm1203_vm4, %v4063_v54, %v9934_v50 }
0x2513   :  { %v3934_v35 = vsel %vm301_vm2, %v10163_v16, 0.0 }
0x2516   :  { %3935 = vadd.xlane.f32.xlu0 %v3934_v35 }
0x252c   :  { %3943 = vrot.lane.b32.xlu0 %v11145_v12, %s10336_s24 }
0x2540   :  { %v2882_v9 = vpop.xlane.xlu1 %2881 }
0x2541   :  { %v2886_v13 = vmul.f32 0.03125, %v2882_v9 }
0x2543   :  { %v2888_v18 = vsub.f32 %v2876_v58, %v2886_v13 }
0x2545   :  { %v2890_v47 = vmul.f32 %v2888_v18, %v2888_v18 }
0x2547   :  { %v2892_v17 = vsel %vm136_vm1, %v2890_v47, 0.0 }
0x259f   :  { %v3933_v41 = vpop.xlane.xlu0 %3932 }
0x25a0   :  { %10164 = vrcp.f32 %v3933_v41 }
0x25a3   :  { %v3936_v26 = vpop.xlane.xlu0 %3935 }
0x25a4   :  { %10166 = vrcp.f32 %v3936_v26 }
0x25a7   :  { %v3944_v5 = vpop.permute.xlu0 %3943 }
0x25a8   :  { %v3949_v7 = vsel %vm421_vm3, %v3944_v5, 0 }
0x25a9   :  { %9435 = vmatpush3.bf16.msra.mxu1 %v3949_v7  ;;  %v8517_v7 = vld [vmem:[%s12296_s12 + $0x3] ss:$0 sm:$0xff] }
0x25aa   :  { %v10165_v8 = vpop.eup %10164  ;;  %9446 = vmatprep.subr.bf16.mxu1 %v10332_v1 }
0x25ab   :  { %v3939_v11 = vmul.f32 %v10165_v8, %v10161_v48  ;;  %v8474_v48 = vld [vmem:[%s12291_s7 + $0x18] ss:$0 sm:$0xff] }
0x25ad   :  { %v3941_v21 = vpack.c.bf16 %v3939_v11, %v3939_v11 }
0x25ae   :  { %v10167_v4 = vpop.eup %10166 }
0x25af   :  { %9437 = vmatmul.mubr.msk.bf16.vlgmr.msra.gmra.mrb[120].mxu1 %vm301_vm2, %v3941_v21  ;;  %v3940_v20 = vmul.f32 %v10167_v4, %v10163_v16 }
0x25b0   :  { %9450 = vmatprep.mubr.msk.bf16.mxu1 %vm10333_vm0, %v10332_v1  ;;  %9447 = vmatpush3.bf16.msra.mxu1 %v10020_v29 }
0x25b1   :  { %v3942_v12 = vpack.c.bf16 %v3940_v20, %v3940_v20  ;;  %9448 = vmatprep.subr.bf16.mxu1 %v10332_v1 }
0x25b3   :  { %9443 = vmatmul.mubr.msk.bf16.vlgmr.msra.gmra.mrb[124].mxu0 %vm301_vm2, %v3942_v12 }
0x25b4   :  { %9458 = vmatprep.mubr.msk.bf16.mxu0 %vm10333_vm0, %v10332_v1  ;;  %9449 = vmatpush3.bf16.msra.mxu1 %v10021_v23 }
0x25b5   :  { %9462 = vmatprep.subr.bf16.mxu1 %v10332_v1 }
0x2682   :  { %v3985_v24 = vpop.f32.mrb[120].mxu1 }
0x2683   :  { %v9438_v37 = vpop.f32.mrb[121].mxu1 }
0x2684   :  { %v3988_v25 = vpop.f32.mrb[122].mxu1 }
0x2685   :  { %v9439_v53 = vpop.f32.mrb[123].mxu1 }
0x2686   :  { %v4033_v59 = vpop.f32.mrb[124].mxu0 }
0x2687   :  { %v9936_v28 = vpack.i.bf16 %v4033_v59, %v3985_v24  ;;  %v9444_v43 = vpop.f32.mrb[125].mxu0 }
0x2688   :  { %v4036_v30 = vpop.f32.mrb[126].mxu0 }
0x2689   :  { %v9445_v0 = vpop.f32.mrb[127].mxu0  ;;  %9937 = vrot.lane.b32.xlu0 %v9936_v28, %s10339_s19 }
0x26a8   :  { %2884 = vadd.xlane.f32.xlu0 %v2883_v46 }
0x26ac   :  { %2893 = vadd.xlane.f32.xlu0 %v2892_v17 }
0x26fb   :  { %v9938_v51 = vpop.permute.xlu0 %9937 }
0x26fc   :  { %v9940_v39 = vunpack.i.h.bf16 %v9938_v51  ;;  %v9939_v57 = vunpack.i.l.bf16 %v9938_v51 }
0x26fe   :  { %v4068_v27 = vsel %vm1206_vm5, %v4066_v55, %v9940_v39  ;;  %v4067_v61 = vsel %vm1206_vm5, %v4065_v56, %v9939_v57  ;;  %v10022_v39 = vld [vmem:[%s12293_s9 + $0x50] sm:$0xff]   ;;  %v10023_v57 = vld [vmem:[%s12293_s9 + $0x40] sm:$0xff]   ;;  %v10024_v55 = vld [vmem:[%s12293_s9 + $0x58] sm:$0xff]  }
0x26ff   :  { %v4069_v58 = vpack.c.bf16 %v4068_v27, %v4067_v61  ;;  %9455 = vmatpush3.bf16.msra.mxu0 %v10023_v57  ;;  %v10025_v56 = vld [vmem:[%s12293_s9 + $0x48] sm:$0xff]  }
0x2700   :  { %9456 = vmatprep.subr.bf16.mxu0 %v10332_v1 }
0x2701   :  { %9451 = vmatmul.mubr.msk.bf16.vlgmr.msra.gmra.mrb[124].mxu1 %vm136_vm1, %v4069_v58 }
0x2702   :  { %9466 = vmatprep.mubr.msk.bf16.mxu1 %vm10333_vm0, %v10332_v1  ;;  %9463 = vmatpush3.bf16.msra.mxu1 %v10022_v39 }
0x2703   :  { %9464 = vmatprep.subr.bf16.mxu1 %v10332_v1  ;;  %9457 = vmatpush3.bf16.msra.mxu0 %v10025_v56 }
0x2704   :  { %9470 = vmatprep.subr.bf16.mxu0 %v10332_v1 }
0x2706   :  { %9465 = vmatpush3.bf16.msra.mxu1 %v10024_v55 }
0x2707   :  { %9478 = vmatprep.subr.bf16.mxu1 %v10332_v1 }
0x2735   :  { %v2885_v6 = vpop.xlane.xlu0 %2884 }
0x2736   :  { %v2887_v60 = vmul.f32 0.03125, %v2885_v6 }
0x2738   :  { %v2889_v62 = vsub.f32 %v2877_v14, %v2887_v60 }
0x2739   :  { %v2894_v31 = vpop.xlane.xlu0 %2893 }
0x273a   :  { %v2898_v63 = vmul.f32 0.03125, %v2894_v31  ;;  %v2891_v2 = vmul.f32 %v2889_v62, %v2889_v62 }
0x273c   :  { %v2900_v10 = vadd.f32 1e-05, %v2898_v63  ;;  %v2895_v36 = vsel %vm136_vm1, %v2891_v2, 0.0 }
0x273d   :  { %2896 = vadd.xlane.f32.xlu0 %v2895_v36 }
0x273e   :  { %10168 = vrsqrt.f32 %v2900_v10 }
0x2748   :  { %v10169_v19 = vpop.eup %10168 }
0x2749   :  { %v2904_v33 = vmul.f32 %v10169_v19, %v2888_v18 }
0x274b   :  { %v2910_v38 = vmul.f32 %v8473_v3, %v2904_v33 }
0x274d   :  { %v2916_v16 = vadd.f32 %v8474_v48, %v2910_v38  ;;  %v8475_v38 = vld [vmem:[%s12298_s14] ss:$0 sm:$0xff] }
0x274f   :  { %v2920_v35 = vsel %vm136_vm1, %v2916_v16, 0.0 }
0x2750   :  { %2921 = vadd.xlane.f32.xlu1 %v2920_v35 }
0x27ca   :  { %v2897_v41 = vpop.xlane.xlu0 %2896 }
0x27cb   :  { %v2899_v26 = vmul.f32 0.03125, %v2897_v41 }
0x27cd   :  { %v2901_v5 = vadd.f32 1e-05, %v2899_v26 }
0x27cf   :  { %10170 = vrsqrt.f32 %v2901_v5  ;;  %v8521_v5 = vld [vmem:[%s12296_s12 + $0x4] ss:$0 sm:$0xff] }
0x27d4   :  { %v4123_v8 = vpop.f32.mrb[124].mxu1 }
0x27d5   :  { %v4124_v11 = vadd.f32 %v8517_v7, %v4123_v8  ;;  %v9452_v21 = vpop.f32.mrb[125].mxu1 }
0x27d6   :  { %v4126_v4 = vpop.f32.mrb[126].mxu1 }
0x27d7   :  { %v4130_v20 = vadd.f32 %v4124_v11, %v11054_v40  ;;  %v9453_v12 = vpop.f32.mrb[127].mxu1  ;;  %v4127_v37 = vadd.f32 %v8517_v7, %v4126_v4  ;;  %v8476_v7 = vld [vmem:[%s12298_s14 + $0x1] ss:$0 sm:$0xff] }
0x27d9   :  { %v10171_v29 = vpop.eup %10170  ;;  %v4134_v23 = vsel %vm136_vm1, %v4130_v20, 0.0  ;;  %v4131_v43 = vadd.f32 %v4127_v37, %v11059_v42 }
0x27da   :  { %4135 = vadd.xlane.f32.xlu1 %v4134_v23  ;;  %v2905_v24 = vmul.f32 %v10171_v29, %v2889_v62  ;;  %v8522_v29 = vld [vmem:[%s12296_s12 + $0x5] ss:$0 sm:$0xff] }
0x27db   :  { %v4137_v15 = vsel %vm136_vm1, %v4131_v43, 0.0 }
0x27dc   :  { %v2911_v25 = vmul.f32 %v8473_v3, %v2905_v24 }
0x27dd   :  { %v2922_v53 = vpop.xlane.xlu1 %2921 }
0x27de   :  { %v2926_v59 = vmul.f32 0.03125, %v2922_v53  ;;  %v2917_v28 = vadd.f32 %v8474_v48, %v2911_v25  ;;  %v10026_v53 = vld [vmem:[%s12293_s9 + $0x60] sm:$0xff]  }
0x27e0   :  { %v2928_v30 = vsub.f32 %v2916_v16, %v2926_v59  ;;  %v2923_v0 = vsel %vm136_vm1, %v2917_v28, 0.0 }
0x27e1   :  { %2924 = vadd.xlane.f32.xlu0 %v2923_v0 }
0x27e2   :  { %v2930_v34 = vmul.f32 %v2928_v30, %v2928_v30 }
0x27e4   :  { %v2932_v40 = vsel %vm136_vm1, %v2930_v34, 0.0 }
0x27e5   :  { %2933 = vadd.xlane.f32.xlu1 %v2932_v40  ;;  %4138 = vadd.xlane.f32.xlu0 %v4137_v15 }
0x2867   :  { %v4136_v9 = vpop.xlane.xlu1 %4135 }
0x2868   :  { %v4140_v13 = vmul.f32 0.03125, %v4136_v9 }
0x286a   :  { %v4142_v14 = vsub.f32 %v4130_v20, %v4140_v13 }
0x286c   :  { %v4144_v18 = vmul.f32 %v4142_v14, %v4142_v14 }
0x286e   :  { %v2925_v46 = vpop.xlane.xlu0 %2924  ;;  %v4146_v47 = vsel %vm136_vm1, %v4144_v18, 0.0 }
0x286f   :  { %v2927_v17 = vmul.f32 0.03125, %v2925_v46  ;;  %4147 = vadd.xlane.f32.xlu1 %v4146_v47 }
0x2871   :  { %v2929_v42 = vsub.f32 %v2917_v28, %v2927_v17  ;;  %v10027_v28 = vld [vmem:[%s12293_s9 + $0x68] sm:$0xff]  }
0x2872   :  { %v4139_v22 = vpop.xlane.xlu0 %4138  ;;  %v2934_v27 = vpop.xlane.xlu1 %2933 }
0x2873   :  { %v4141_v32 = vmul.f32 0.03125, %v4139_v22  ;;  %v2931_v49 = vmul.f32 %v2929_v42, %v2929_v42  ;;  %v2938_v61 = vmul.f32 0.03125, %v2934_v27 }
0x2875   :  { %v4143_v50 = vsub.f32 %v4131_v43, %v4141_v32  ;;  %v2935_v51 = vsel %vm136_vm1, %v2931_v49, 0.0  ;;  %v2940_v6 = vadd.f32 1e-05, %v2938_v61  ;;  %v8543_v43 = vld [vmem:[%s12296_s12 + $0x7] ss:$0 sm:$0xff] }
0x2876   :  { %2936 = vadd.xlane.f32.xlu0 %v2935_v51  ;;  %v8547_v51 = vld [vmem:[%s12296_s12 + $0x8] ss:$0 sm:$0xff] }
0x2877   :  { %v4145_v52 = vmul.f32 %v4143_v50, %v4143_v50  ;;  %10172 = vrsqrt.f32 %v2940_v6 }
0x2879   :  { %v4149_v54 = vsel %vm136_vm1, %v4145_v52, 0.0 }
0x287a   :  { %4150 = vadd.xlane.f32.xlu0 %v4149_v54 }
0x2881   :  { %v10173_v3 = vpop.eup %10172 }
0x2882   :  { %v2944_v33 = vmul.f32 %v10173_v3, %v2928_v30  ;;  %v11460_v3 = vld [vmem:[%s12286_s2 + $0x1] ss:$0 sm:$0xff] }
0x2884   :  { %v2950_v35 = vmul.f32 %v8475_v38, %v2944_v33 }
0x2886   :  { %v2956_v20 = vadd.f32 %v8476_v7, %v2950_v35 }
0x28fc   :  { %v4148_v58 = vpop.xlane.xlu1 %4147 }
0x28fd   :  { %v4152_v60 = vmul.f32 0.03125, %v4148_v58 }
0x28ff   :  { %v4154_v62 = vadd.f32 1e-05, %v4152_v60 }
0x2901   :  { %10174 = vrsqrt.f32 %v4154_v62 }
0x2903   :  { %v2937_v31 = vpop.xlane.xlu0 %2936 }
0x2904   :  { %v2939_v63 = vmul.f32 0.03125, %v2937_v31 }
0x2906   :  { %v2941_v2 = vadd.f32 1e-05, %v2939_v63  ;;  %v11454_v63 = vld [vmem:[%s12286_s2] ss:$0 sm:$0xff] }
0x2907   :  { %v4151_v10 = vpop.xlane.xlu0 %4150 }
0x2908   :  { %10176 = vrsqrt.f32 %v2941_v2  ;;  %v4153_v36 = vmul.f32 0.03125, %v4151_v10 }
0x290a   :  { %v4155_v19 = vadd.f32 1e-05, %v4153_v36 }
0x290b   :  { %v10175_v48 = vpop.eup %10174 }
0x290c   :  { %10178 = vrsqrt.f32 %v4155_v19  ;;  %v4158_v41 = vmul.f32 %v10175_v48, %v4142_v14  ;;  %v8539_v14 = vld [vmem:[%s12296_s12 + $0x6] ss:$0 sm:$0xff] }
0x290e   :  { %v4164_v21 = vmul.f32 %v8521_v5, %v4158_v41 }
0x2910   :  { %v11387_v37 = vadd.f32 %v8522_v29, %v4164_v21 }
0x2912   :  { %v10177_v16 = vpop.eup %10176 }
0x2913   :  { %v2945_v26 = vmul.f32 %v10177_v16, %v2929_v42 }
0x2915   :  { %v2951_v8 = vmul.f32 %v8475_v38, %v2945_v26 }
0x2916   :  { %v10179_v11 = vpop.eup %10178 }
0x2917   :  { %v4159_v4 = vmul.f32 %v10179_v11, %v4143_v50  ;;  %v2957_v12 = vadd.f32 %v8476_v7, %v2951_v8 }
0x2919   :  { %v4165_v23 = vmul.f32 %v8521_v5, %v4159_v4  ;;  %v11383_v24 = vpack.c.bf16 %v2957_v12, %v2956_v20 }
0x291b   :  { %9467 = vmatmul.mubr.msk.bf16.vlgmr.msra.gmra.mrb[128].mxu1 %vm136_vm1, %v11383_v24  ;;  %v11389_v25 = vadd.f32 %v8522_v29, %v4165_v23 }
0x291c   :  { %9480 = vmatprep.mubr.msk.bf16.mxu1 %vm10333_vm0, %v10332_v1 }
0x291d   :  { %v4196_v59 = vpack.c.bf16 %v11389_v25, %v11387_v37 }
0x291f   :  { %9459 = vmatmul.mubr.msk.bf16.vlgmr.msra.gmra.mrb[128].mxu0 %vm136_vm1, %v4196_v59 }
0x2920   :  { %9471 = vmatpush3.bf16.msra.mxu0 %v10026_v53  ;;  %9474 = vmatprep.mubr.msk.bf16.mxu0 %vm10333_vm0, %v10332_v1 }
0x2921   :  { %9472 = vmatprep.subr.bf16.mxu0 %v10332_v1 }
0x2924   :  { %9473 = vmatpush3.bf16.msra.mxu0 %v10027_v28 }
0x2925   :  { %9484 = vmatprep.subr.bf16.mxu0 %v10332_v1 }
0x2927   :  { %9475 = vmatmul.mubr.msk.bf16.vlgmr.msra.gmra.mrb[132].mxu0 %vm136_vm1, %v11383_v24 }
0x2928   :  { %9486 = vmatprep.mubr.msk.bf16.mxu0 %vm10333_vm0, %v10332_v1 }
0x29ee   :  { %v4312_v30 = vpop.f32.mrb[128].mxu1 }
0x29ef   :  { %v4313_v0 = vadd.f32 %v8543_v43, %v4312_v30  ;;  %v9468_v34 = vpop.f32.mrb[129].mxu1 }
0x29f0   :  { %v4315_v40 = vpop.f32.mrb[130].mxu1 }
0x29f1   :  { %v11413_v15 = vpack.c.bf16 %v4313_v0, %v4313_v0  ;;  %v4316_v9 = vadd.f32 %v8543_v43, %v4315_v40  ;;  %v9469_v13 = vpop.f32.mrb[131].mxu1 }
0x29f2   :  { %v4250_v18 = vpop.f32.mrb[128].mxu0 }
0x29f3   :  { %v11418_v46 = vpack.c.bf16 %v4316_v9, %v4316_v9  ;;  %v9460_v47 = vpop.f32.mrb[129].mxu0  ;;  %v4384_v17 = vsel %vm301_vm2, %v11413_v15, 0  ;;  %v4251_v22 = vadd.f32 %v8539_v14, %v4250_v18 }
0x29f4   :  { %v4253_v42 = vpop.f32.mrb[130].mxu0  ;;  %9479 = vmatpush3.bf16.xpose.msra.mxu1 %v4384_v17 }
0x29f5   :  { %v9461_v32 = vpop.f32.mrb[131].mxu0  ;;  %v4430_v49 = vsel %vm301_vm2, %v11418_v46, 0  ;;  %9490 = vmatprep.subr.bf16.mxu1 %v10332_v1  ;;  %v4254_v50 = vadd.f32 %v8539_v14, %v4253_v42  ;;  %v11429_v52 = vpack.c.bf16 %v4251_v22, %v4251_v22 }
0x29f6   :  { %9485 = vmatpush3.bf16.xpose.msra.mxu0 %v4430_v49 }
0x29f7   :  { %9496 = vmatprep.subr.bf16.mxu0 %v10332_v1  ;;  %v11431_v39 = vpack.c.bf16 %v4254_v50, %v4254_v50 }
0x29fa   :  { %v4371_v54 = vpop.f32.mrb[132].mxu0 }
0x29fb   :  { %v4372_v57 = vadd.f32 %v8547_v51, %v4371_v54  ;;  %v9476_v55 = vpop.f32.mrb[133].mxu0  ;;  %9481 = vmatmul.mubr.msk.bf16.vlgmr.msra.gmra.mrb[132].mxu1 %vm301_vm2, %v11429_v52 }
0x29fc   :  { %v4374_v56 = vpop.f32.mrb[134].mxu0  ;;  %9492 = vmatprep.mubr.msk.bf16.mxu1 %vm10333_vm0, %v10332_v1 }
0x29fd   :  { %v11437_v27 = vpack.c.bf16 %v4372_v57, %v4372_v57  ;;  %v4375_v61 = vadd.f32 %v8547_v51, %v4374_v56  ;;  %v9477_v58 = vpop.f32.mrb[135].mxu0  ;;  %9487 = vmatmul.mubr.msk.bf16.vlgmr.msra.gmra.mrb[136].mxu0 %vm301_vm2, %v11431_v39 }
0x29fe   :  { %9498 = vmatprep.mubr.msk.bf16.mxu0 %vm10333_vm0, %v10332_v1 }
0x29ff   :  { %v11443_v6 = vpack.c.bf16 %v4375_v61, %v4375_v61  ;;  %v4500_v60 = vsel %vm421_vm3, %v11437_v27, 0 }
0x2a00   :  { %9491 = vmatpush3.bf16.msra.mxu1 %v4500_v60 }
0x2a01   :  { %v4546_v62 = vsel %vm421_vm3, %v11443_v6, 0  ;;  %9502 = vmatprep.subr.bf16.mxu1 %v10332_v1 }
0x2a02   :  { %9497 = vmatpush3.bf16.msra.mxu0 %v4546_v62 }
0x2a03   :  { %9508 = vmatprep.subr.bf16.mxu0 %v10332_v1 }
0x2ace   :  { %v4420_v31 = vpop.f32.mrb[132].mxu1 }
0x2acf   :  { %v4421_v2 = vadd.f32 %v11454_v63, %v4420_v31  ;;  %v9482_v10 = vpop.f32.mrb[133].mxu1 }
0x2ad0   :  { %v4423_v36 = vpop.f32.mrb[134].mxu1  ;;  %v4466_v19 = vpop.f32.mrb[136].mxu0 }
0x2ad1   :  { %v4467_v33 = vadd.f32 %v11460_v3, %v4466_v19  ;;  %v9483_v48 = vpop.f32.mrb[135].mxu1  ;;  %v9488_v38 = vpop.f32.mrb[137].mxu0  ;;  %v4472_v16 = vsel %vm301_vm2, %v4421_v2, -inf }
0x2ad2   :  { %v4469_v35 = vpop.f32.mrb[138].mxu0  ;;  %4473 = vmax.xlane.f32.xlu1 %v4472_v16 }
0x2ad3   :  { %v9489_v41 = vpop.f32.mrb[139].mxu0  ;;  %v4475_v26 = vsel %vm301_vm2, %v4467_v33, -inf }
0x2ad4   :  { %4476 = vmax.xlane.f32.xlu0 %v4475_v26 }
0x2ae3   :  { %4592 = vrot.lane.b32.xlu1 %v11413_v15, %s10334_s0 }
0x2b5f   :  { %v4474_v5 = vpop.xlane.xlu1 %4473 }
0x2b60   :  { %v4478_v7 = vsub.f32 %v4421_v2, %v4474_v5 }
0x2b61   :  { %v4477_v8 = vpop.xlane.xlu0 %4476 }
0x2b62   :  { %v4480_v11 = vmul.f32 1.442695, %v4478_v7  ;;  %v4479_v21 = vsub.f32 %v4467_v33, %v4477_v8 }
0x2b63   :  { %v4593_v53 = vpop.permute.xlu1 %4592 }
0x2b64   :  { %10180 = vpow2.f32 %v4480_v11  ;;  %v4482_v4 = vmul.f32 1.442695, %v4479_v21  ;;  %v4598_v13 = vsel %vm301_vm2, %v4593_v53, 0 }
0x2b66   :  { %10182 = vpow2.f32 %v4482_v4 }
0x2b6e   :  { %v10181_v20 = vpop.eup %10180 }
0x2b6f   :  { %v4484_v12 = vsel %vm301_vm2, %v10181_v20, 0.0 }
0x2b70   :  { %v10183_v29 = vpop.eup %10182  ;;  %4485 = vadd.xlane.f32.xlu1 %v4484_v12 }
0x2b71   :  { %v4487_v23 = vsel %vm301_vm2, %v10183_v29, 0.0 }
0x2b72   :  { %4488 = vadd.xlane.f32.xlu0 %v4487_v23 }
0x2b81   :  { %4589 = vrot.lane.b32.xlu1 %v11429_v52, %s10334_s0 }
0x2b85   :  { %4641 = vrot.lane.b32.xlu1 %v11431_v39, %s10334_s0 }
0x2b88   :  { %4644 = vrot.lane.b32.xlu0 %v11418_v46, %s10334_s0 }
0x2bfd   :  { %v4486_v59 = vpop.xlane.xlu1 %4485 }
0x2bfe   :  { %10184 = vrcp.f32 %v4486_v59 }
0x2bff   :  { %v4489_v28 = vpop.xlane.xlu0 %4488 }
0x2c00   :  { %10186 = vrcp.f32 %v4489_v28 }
0x2c01   :  { %v4590_v47 = vpop.permute.xlu1 %4589 }
0x2c03   :  { %v4645_v9 = vpop.permute.xlu0 %4644 }
0x2c04   :  { %v4650_v18 = vsel %vm301_vm2, %v4645_v9, 0 }
0x2c05   :  { %v4642_v17 = vpop.permute.xlu1 %4641 }
0x2c08   :  { %v10185_v43 = vpop.eup %10184 }
0x2c09   :  { %v4492_v30 = vmul.f32 %v10185_v43, %v10181_v20 }
0x2c0a   :  { %v10187_v0 = vpop.eup %10186 }
0x2c0b   :  { %v4494_v34 = vpack.c.bf16 %v4492_v30, %v4492_v30  ;;  %v4493_v40 = vmul.f32 %v10187_v0, %v10183_v29 }
0x2c0d   :  { %9493 = vmatmul.mubr.msk.bf16.vlgmr.msra.gmra.mrb[136].mxu1 %vm301_vm2, %v4494_v34  ;;  %v4495_v14 = vpack.c.bf16 %v4493_v40, %v4493_v40 }
0x2c0e   :  { %9503 = vmatpush3.bf16.xpose.msra.mxu1 %v4598_v13  ;;  %9504 = vmatprep.mubr.msk.bf16.mxu1 %vm10333_vm0, %v10332_v1 }
0x2c0f   :  { %9499 = vmatmul.mubr.msk.bf16.vlgmr.msra.gmra.mrb[140].mxu0 %vm301_vm2, %v4495_v14  ;;  %9514 = vmatprep.subr.bf16.mxu1 %v10332_v1 }
0x2c10   :  { %9509 = vmatpush3.bf16.xpose.msra.mxu0 %v4650_v18  ;;  %9510 = vmatprep.mubr.msk.bf16.mxu0 %vm10333_vm0, %v10332_v1 }
0x2c11   :  { %9520 = vmatprep.subr.bf16.mxu0 %v10332_v1 }
0x2c15   :  { %9505 = vmatmul.mubr.msk.bf16.vlgmr.msra.gmra.mrb[140].mxu1 %vm301_vm2, %v4590_v47 }
0x2c16   :  { %9516 = vmatprep.mubr.msk.bf16.mxu1 %vm10333_vm0, %v10332_v1 }
0x2c17   :  { %9511 = vmatmul.mubr.msk.bf16.vlgmr.msra.gmra.mrb[144].mxu0 %vm301_vm2, %v4642_v17 }
0x2c18   :  { %9522 = vmatprep.mubr.msk.bf16.mxu0 %vm10333_vm0, %v10332_v1 }
0x2ce0   :  { %v11491_v42 = vpop.f32.mrb[136].mxu1 }
0x2ce1   :  { %v9494_v22 = vpop.f32.mrb[137].mxu1 }
0x2ce2   :  { %v4539_v32 = vpop.f32.mrb[138].mxu1  ;;  %v11493_v49 = vpop.f32.mrb[140].mxu0 }
0x2ce3   :  { %v9495_v50 = vpop.f32.mrb[139].mxu1  ;;  %v9500_v51 = vpop.f32.mrb[141].mxu0 }
0x2ce4   :  { %v4585_v54 = vpop.f32.mrb[142].mxu0 }
0x2ce5   :  { %v9501_v57 = vpop.f32.mrb[143].mxu0 }
0x2ce8   :  { %v4634_v55 = vpop.f32.mrb[140].mxu1 }
0x2ce9   :  { %v4635_v56 = vadd.f32 %v11454_v63, %v4634_v55  ;;  %v9506_v61 = vpop.f32.mrb[141].mxu1 }
0x2cea   :  { %v4637_v58 = vpop.f32.mrb[142].mxu1  ;;  %v4686_v60 = vpop.f32.mrb[144].mxu0 }
0x2ceb   :  { %v4687_v62 = vadd.f32 %v11460_v3, %v4686_v60  ;;  %v9507_v31 = vpop.f32.mrb[143].mxu1  ;;  %v9512_v2 = vpop.f32.mrb[145].mxu0  ;;  %v4692_v10 = vsel %vm301_vm2, %v4635_v56, -inf }
0x2cec   :  { %v4689_v36 = vpop.f32.mrb[146].mxu0  ;;  %4693 = vmax.xlane.f32.xlu1 %v4692_v10 }
0x2ced   :  { %v9513_v19 = vpop.f32.mrb[147].mxu0  ;;  %v4695_v33 = vsel %vm301_vm2, %v4687_v62, -inf }
0x2cee   :  { %4696 = vmax.xlane.f32.xlu0 %v4695_v33 }
0x2cfd   :  { %4717 = vrot.lane.b32.xlu1 %v11437_v27, %s10334_s0 }
0x2d01   :  { %4816 = vrot.lane.b32.xlu1 %v11413_v15, %s10335_s23 }
0x2d05   :  { %4866 = vrot.lane.b32.xlu1 %v11418_v46, %s10335_s23 }
0x2d09   :  { %4814 = vrot.lane.b32.xlu1 %v11429_v52, %s10335_s23 }
0x2d79   :  { %v4694_v48 = vpop.xlane.xlu1 %4693 }
0x2d7a   :  { %v4698_v38 = vsub.f32 %v4635_v56, %v4694_v48 }
0x2d7b   :  { %v4697_v16 = vpop.xlane.xlu0 %4696 }
0x2d7c   :  { %v4700_v35 = vmul.f32 1.442695, %v4698_v38  ;;  %v4699_v41 = vsub.f32 %v4687_v62, %v4697_v16 }
0x2d7d   :  { %v4718_v26 = vpop.permute.xlu1 %4717 }
0x2d7e   :  { %10188 = vpow2.f32 %v4700_v35  ;;  %v4702_v5 = vmul.f32 1.442695, %v4699_v41  ;;  %v4723_v7 = vsel %vm421_vm3, %v4718_v26, 0 }
0x2d7f   :  { %9515 = vmatpush3.bf16.msra.mxu1 %v4723_v7 }
0x2d80   :  { %10190 = vpow2.f32 %v4702_v5  ;;  %9526 = vmatprep.subr.bf16.mxu1 %v10332_v1 }
0x2d81   :  { %v4817_v59 = vpop.permute.xlu1 %4816 }
0x2d82   :  { %v4822_v0 = vsel %vm301_vm2, %v4817_v59, 0 }
0x2d85   :  { %v4867_v40 = vpop.permute.xlu1 %4866 }
0x2d86   :  { %v4872_v13 = vsel %vm301_vm2, %v4867_v40, 0 }
0x2d88   :  { %v10189_v8 = vpop.eup %10188 }
0x2d89   :  { %v4704_v11 = vsel %vm301_vm2, %v10189_v8, 0.0  ;;  %v4815_v14 = vpop.permute.xlu1 %4814 }
0x2d8a   :  { %v10191_v21 = vpop.eup %10190  ;;  %4705 = vadd.xlane.f32.xlu0 %v4704_v11 }
0x2d8b   :  { %v4707_v4 = vsel %vm301_vm2, %v10191_v21, 0.0 }
0x2d8e   :  { %4708 = vadd.xlane.f32.xlu0 %v4707_v4 }
0x2da4   :  { %4766 = vrot.lane.b32.xlu0 %v11443_v6, %s10334_s0 }
0x2da8   :  { %4864 = vrot.lane.b32.xlu0 %v11431_v39, %s10335_s23 }
0x2e17   :  { %v4706_v20 = vpop.xlane.xlu0 %4705 }
0x2e18   :  { %10192 = vrcp.f32 %v4706_v20 }
0x2e1b   :  { %v4709_v12 = vpop.xlane.xlu0 %4708 }
0x2e1c   :  { %10194 = vrcp.f32 %v4709_v12 }
0x2e1f   :  { %v4767_v29 = vpop.permute.xlu0 %4766 }
0x2e20   :  { %v4772_v23 = vsel %vm421_vm3, %v4767_v29, 0 }
0x2e21   :  { %9521 = vmatpush3.bf16.msra.mxu0 %v4772_v23 }
0x2e22   :  { %v10193_v53 = vpop.eup %10192  ;;  %9532 = vmatprep.subr.bf16.mxu0 %v10332_v1 }
0x2e23   :  { %v4712_v28 = vmul.f32 %v10193_v53, %v10189_v8  ;;  %v4865_v18 = vpop.permute.xlu0 %4864 }
0x2e25   :  { %v4714_v43 = vpack.c.bf16 %v4712_v28, %v4712_v28 }
0x2e26   :  { %v10195_v30 = vpop.eup %10194 }
0x2e27   :  { %9517 = vmatmul.mubr.msk.bf16.vlgmr.msra.gmra.mrb[144].mxu1 %vm301_vm2, %v4714_v43  ;;  %v4713_v34 = vmul.f32 %v10195_v30, %v10191_v21 }
0x2e28   :  { %9527 = vmatpush3.bf16.xpose.msra.mxu1 %v4822_v0  ;;  %9528 = vmatprep.mubr.msk.bf16.mxu1 %vm10333_vm0, %v10332_v1 }
0x2e29   :  { %v4715_v9 = vpack.c.bf16 %v4713_v34, %v4713_v34  ;;  %9538 = vmatprep.subr.bf16.mxu1 %v10332_v1 }
0x2e2b   :  { %9523 = vmatmul.mubr.msk.bf16.vlgmr.msra.gmra.mrb[148].mxu0 %vm301_vm2, %v4715_v9 }
0x2e2c   :  { %9533 = vmatpush3.bf16.xpose.msra.mxu0 %v4872_v13  ;;  %9534 = vmatprep.mubr.msk.bf16.mxu0 %vm10333_vm0, %v10332_v1 }
0x2e2d   :  { %9544 = vmatprep.subr.bf16.mxu0 %v10332_v1 }
0x2e2f   :  { %9529 = vmatmul.mubr.msk.bf16.vlgmr.msra.gmra.mrb[148].mxu1 %vm301_vm2, %v4815_v14 }
0x2e30   :  { %9540 = vmatprep.mubr.msk.bf16.mxu1 %vm10333_vm0, %v10332_v1 }
0x2e33   :  { %9535 = vmatmul.mubr.msk.bf16.vlgmr.msra.gmra.mrb[152].mxu0 %vm301_vm2, %v4865_v18 }
0x2e34   :  { %9546 = vmatprep.mubr.msk.bf16.mxu0 %vm10333_vm0, %v10332_v1 }
0x2efa   :  { %v11533_v47 = vpop.f32.mrb[144].mxu1 }
0x2efb   :  { %v9518_v17 = vpop.f32.mrb[145].mxu1 }
0x2efc   :  { %v4762_v22 = vpop.f32.mrb[146].mxu1 }
0x2efd   :  { %v9519_v32 = vpop.f32.mrb[147].mxu1 }
0x2efe   :  { %v11535_v50 = vpop.f32.mrb[148].mxu0 }
0x2eff   :  { %v9941_v51 = vpack.i.bf16 %v11535_v50, %v11533_v47  ;;  %v9524_v54 = vpop.f32.mrb[149].mxu0 }
0x2f00   :  { %v4811_v57 = vpop.f32.mrb[150].mxu0 }
0x2f01   :  { %v9525_v55 = vpop.f32.mrb[151].mxu0 }
0x2f02   :  { %v4858_v56 = vpop.f32.mrb[148].mxu1 }
0x2f03   :  { %v4859_v61 = vadd.f32 %v11454_v63, %v4858_v56  ;;  %v9530_v58 = vpop.f32.mrb[149].mxu1 }
0x2f04   :  { %v4861_v60 = vpop.f32.mrb[150].mxu1 }
0x2f05   :  { %v9531_v62 = vpop.f32.mrb[151].mxu1  ;;  %v4914_v31 = vsel %vm301_vm2, %v4859_v61, -inf }
0x2f06   :  { %v4908_v2 = vpop.f32.mrb[152].mxu0  ;;  %4915 = vmax.xlane.f32.xlu1 %v4914_v31 }
0x2f07   :  { %v4909_v10 = vadd.f32 %v11460_v3, %v4908_v2  ;;  %v9536_v36 = vpop.f32.mrb[153].mxu0 }
0x2f08   :  { %v4911_v19 = vpop.f32.mrb[154].mxu0 }
0x2f09   :  { %v9537_v33 = vpop.f32.mrb[155].mxu0  ;;  %v4917_v48 = vsel %vm301_vm2, %v4909_v10, -inf }
0x2f0a   :  { %4918 = vmax.xlane.f32.xlu0 %v4917_v48 }
0x2f17   :  { %4938 = vrot.lane.b32.xlu1 %v11437_v27, %s10335_s23 }
0x2f1b   :  { %5036 = vrot.lane.b32.xlu1 %v11413_v15, %s10336_s24 }
0x2f1f   :  { %5086 = vrot.lane.b32.xlu1 %v11418_v46, %s10336_s24 }
0x2f23   :  { %5034 = vrot.lane.b32.xlu1 %v11429_v52, %s10336_s24 }
0x2f93   :  { %v4916_v38 = vpop.xlane.xlu1 %4915 }
0x2f94   :  { %v4920_v16 = vsub.f32 %v4859_v61, %v4916_v38 }
0x2f96   :  { %v4922_v35 = vmul.f32 1.442695, %v4920_v16 }
0x2f97   :  { %v4919_v41 = vpop.xlane.xlu0 %4918  ;;  %v4939_v26 = vpop.permute.xlu1 %4938 }
0x2f98   :  { %10196 = vpow2.f32 %v4922_v35  ;;  %v4921_v5 = vsub.f32 %v4909_v10, %v4919_v41  ;;  %v4944_v7 = vsel %vm421_vm3, %v4939_v26, 0 }
0x2f99   :  { %9539 = vmatpush3.bf16.msra.mxu1 %v4944_v7 }
0x2f9a   :  { %v4924_v8 = vmul.f32 1.442695, %v4921_v5  ;;  %9550 = vmatprep.subr.bf16.mxu1 %v10332_v1 }
0x2f9b   :  { %v5037_v23 = vpop.permute.xlu1 %5036 }
0x2f9c   :  { %10198 = vpow2.f32 %v4924_v8  ;;  %v5042_v43 = vsel %vm301_vm2, %v5037_v23, 0 }
0x2f9f   :  { %v5087_v30 = vpop.permute.xlu1 %5086 }
0x2fa0   :  { %v5092_v34 = vsel %vm301_vm2, %v5087_v30, 0 }
0x2fa2   :  { %v10197_v15 = vpop.eup %10196 }
0x2fa3   :  { %v4926_v46 = vsel %vm301_vm2, %v10197_v15, 0.0  ;;  %v5035_v40 = vpop.permute.xlu1 %5034 }
0x2fa4   :  { %4927 = vadd.xlane.f32.xlu0 %v4926_v46 }
0x2fa6   :  { %v10199_v11 = vpop.eup %10198 }
0x2fa7   :  { %v4929_v52 = vsel %vm301_vm2, %v10199_v11, 0.0 }
0x2fa8   :  { %4930 = vadd.xlane.f32.xlu0 %v4929_v52 }
0x2fbe   :  { %4986 = vrot.lane.b32.xlu0 %v11443_v6, %s10335_s23 }
0x2fc2   :  { %5084 = vrot.lane.b32.xlu0 %v11431_v39, %s10336_s24 }
0x3031   :  { %v4928_v21 = vpop.xlane.xlu0 %4927 }
0x3032   :  { %10200 = vrcp.f32 %v4928_v21 }
0x3035   :  { %v4931_v4 = vpop.xlane.xlu0 %4930 }
0x3036   :  { %10202 = vrcp.f32 %v4931_v4 }
0x3039   :  { %v4987_v20 = vpop.permute.xlu0 %4986 }
0x303a   :  { %v4992_v12 = vsel %vm421_vm3, %v4987_v20, 0 }
0x303b   :  { %9545 = vmatpush3.bf16.msra.mxu0 %v4992_v12  ;;  %v10028_v12 = vld [vmem:[%s12293_s9 + $0x70] sm:$0xff]  }
0x303c   :  { %v10201_v29 = vpop.eup %10200  ;;  %9556 = vmatprep.subr.bf16.mxu0 %v10332_v1 }
0x303d   :  { %v4934_v53 = vmul.f32 %v10201_v29, %v10197_v15  ;;  %v5085_v9 = vpop.permute.xlu0 %5084  ;;  %v10029_v29 = vld [vmem:[%s12293_s9 + $0x78] sm:$0xff]  }
0x303f   :  { %v4936_v59 = vpack.c.bf16 %v4934_v53, %v4934_v53 }
0x3040   :  { %v10203_v28 = vpop.eup %10202 }
0x3041   :  { %9541 = vmatmul.mubr.msk.bf16.vlgmr.msra.gmra.mrb[152].mxu1 %vm301_vm2, %v4936_v59  ;;  %v4935_v39 = vmul.f32 %v10203_v28, %v10199_v11 }
0x3042   :  { %9551 = vmatpush3.bf16.xpose.msra.mxu1 %v5042_v43  ;;  %9552 = vmatprep.mubr.msk.bf16.mxu1 %vm10333_vm0, %v10332_v1 }
0x3043   :  { %v4937_v0 = vpack.c.bf16 %v4935_v39, %v4935_v39  ;;  %9562 = vmatprep.subr.bf16.mxu1 %v10332_v1 }
0x3045   :  { %9547 = vmatmul.mubr.msk.bf16.vlgmr.msra.gmra.mrb[156].mxu0 %vm301_vm2, %v4937_v0 }
0x3046   :  { %9557 = vmatpush3.bf16.xpose.msra.mxu0 %v5092_v34  ;;  %9558 = vmatprep.mubr.msk.bf16.mxu0 %vm10333_vm0, %v10332_v1 }
0x3047   :  { %9568 = vmatprep.subr.bf16.mxu0 %v10332_v1 }
0x3049   :  { %9553 = vmatmul.mubr.msk.bf16.vlgmr.msra.gmra.mrb[156].mxu1 %vm301_vm2, %v5035_v40 }
0x304a   :  { %9564 = vmatprep.mubr.msk.bf16.mxu1 %vm10333_vm0, %v10332_v1 }
0x304d   :  { %9559 = vmatmul.mubr.msk.bf16.vlgmr.msra.gmra.mrb[160].mxu0 %vm301_vm2, %v5085_v9 }
0x304e   :  { %9570 = vmatprep.mubr.msk.bf16.mxu0 %vm10333_vm0, %v10332_v1 }
0x3114   :  { %v4980_v13 = vpop.f32.mrb[152].mxu1 }
0x3115   :  { %v9542_v14 = vpop.f32.mrb[153].mxu1 }
0x3116   :  { %v4983_v18 = vpop.f32.mrb[154].mxu1 }
0x3117   :  { %v9543_v17 = vpop.f32.mrb[155].mxu1 }
0x3118   :  { %v5028_v22 = vpop.f32.mrb[156].mxu0 }
0x3119   :  { %v9946_v32 = vpack.i.bf16 %v5028_v22, %v4980_v13  ;;  %v9548_v54 = vpop.f32.mrb[157].mxu0 }
0x311a   :  { %v5031_v57 = vpop.f32.mrb[158].mxu0 }
0x311b   :  { %v9549_v55 = vpop.f32.mrb[159].mxu0 }
0x311c   :  { %v5078_v56 = vpop.f32.mrb[156].mxu1 }
0x311d   :  { %v5079_v61 = vadd.f32 %v11454_v63, %v5078_v56  ;;  %v9554_v58 = vpop.f32.mrb[157].mxu1 }
0x311e   :  { %v5081_v60 = vpop.f32.mrb[158].mxu1 }
0x311f   :  { %v9555_v62 = vpop.f32.mrb[159].mxu1  ;;  %v5134_v31 = vsel %vm301_vm2, %v5079_v61, -inf }
0x3120   :  { %v5128_v2 = vpop.f32.mrb[160].mxu0  ;;  %5135 = vmax.xlane.f32.xlu1 %v5134_v31 }
0x3121   :  { %v5129_v10 = vadd.f32 %v11460_v3, %v5128_v2  ;;  %v9560_v36 = vpop.f32.mrb[161].mxu0 }
0x3122   :  { %v5131_v19 = vpop.f32.mrb[162].mxu0 }
0x3123   :  { %v9561_v33 = vpop.f32.mrb[163].mxu0  ;;  %v5137_v48 = vsel %vm301_vm2, %v5129_v10, -inf }
0x3124   :  { %5138 = vmax.xlane.f32.xlu0 %v5137_v48 }
0x3131   :  { %5158 = vrot.lane.b32.xlu1 %v11437_v27, %s10336_s24 }
0x3135   :  { %9942 = vrot.lane.b32.xlu1 %v9941_v51, %s10337_s25 }
0x3139   :  { %9947 = vrot.lane.b32.xlu1 %v9946_v32, %s10338_s26 }
0x31ad   :  { %v5136_v63 = vpop.xlane.xlu1 %5135 }
0x31ae   :  { %v5140_v38 = vsub.f32 %v5079_v61, %v5136_v63 }
0x31b0   :  { %v5142_v16 = vmul.f32 1.442695, %v5140_v38 }
0x31b1   :  { %v5139_v3 = vpop.xlane.xlu0 %5138  ;;  %v5159_v35 = vpop.permute.xlu1 %5158 }
0x31b2   :  { %10204 = vpow2.f32 %v5142_v16  ;;  %v5141_v41 = vsub.f32 %v5129_v10, %v5139_v3  ;;  %v5164_v26 = vsel %vm421_vm3, %v5159_v35, 0 }
0x31b3   :  { %9563 = vmatpush3.bf16.msra.mxu1 %v5164_v26 }
0x31b4   :  { %v5144_v5 = vmul.f32 1.442695, %v5141_v41  ;;  %9574 = vmatprep.subr.bf16.mxu1 %v10332_v1 }
0x31b5   :  { %v9943_v40 = vpop.permute.xlu1 %9942 }
0x31b6   :  { %10206 = vpow2.f32 %v5144_v5  ;;  %v9945_v13 = vunpack.i.h.bf16 %v9943_v40  ;;  %v9944_v14 = vunpack.i.l.bf16 %v9943_v40  ;;  %v8573_v40 = vld [vmem:[%s12297_s13] ss:$0 sm:$0xff] }
0x31b8   :  { %v5279_v32 = vsel %vm301_vm2, %v11493_v49, %v9945_v13  ;;  %v5278_v54 = vsel %vm301_vm2, %v11491_v42, %v9944_v14  ;;  %v8567_v42 = vld [vmem:[%s12296_s12 + $0x9] ss:$0 sm:$0xff] }
0x31b9   :  { %v9948_v9 = vpop.permute.xlu1 %9947 }
0x31ba   :  { %v9950_v18 = vunpack.i.h.bf16 %v9948_v9  ;;  %v9949_v17 = vunpack.i.l.bf16 %v9948_v9 }
0x31bc   :  { %v10205_v27 = vpop.eup %10204  ;;  %v5280_v56 = vsel %vm1203_vm4, %v5278_v54, %v9949_v17  ;;  %v5281_v61 = vsel %vm1203_vm4, %v5279_v32, %v9950_v18 }
0x31bd   :  { %v5146_v47 = vsel %vm301_vm2, %v10205_v27, 0.0 }
0x31be   :  { %5147 = vadd.xlane.f32.xlu0 %v5146_v47 }
0x31c0   :  { %v10207_v50 = vpop.eup %10206 }
0x31c1   :  { %v5149_v51 = vsel %vm301_vm2, %v10207_v50, 0.0 }
0x31c2   :  { %5150 = vadd.xlane.f32.xlu0 %v5149_v51  ;;  %v10031_v51 = vld [vmem:[%s12294_s10 + $0x8] sm:$0xff]  }
0x31d8   :  { %5206 = vrot.lane.b32.xlu0 %v11443_v6, %s10336_s24 }
0x324b   :  { %v5148_v7 = vpop.xlane.xlu0 %5147 }
0x324c   :  { %10208 = vrcp.f32 %v5148_v7  ;;  %v10032_v7 = vld [vmem:[%s12295_s11] sm:$0xff]  }
0x324f   :  { %v5151_v8 = vpop.xlane.xlu0 %5150 }
0x3250   :  { %10210 = vrcp.f32 %v5151_v8  ;;  %v10033_v8 = vld [vmem:[%s12295_s11 + $0x8] sm:$0xff]  }
0x3253   :  { %v5207_v15 = vpop.permute.xlu0 %5206 }
0x3254   :  { %v5212_v46 = vsel %vm421_vm3, %v5207_v15, 0 }
0x3255   :  { %9569 = vmatpush3.bf16.msra.mxu0 %v5212_v46 }
0x3256   :  { %v10209_v11 = vpop.eup %10208  ;;  %9582 = vmatprep.subr.bf16.mxu0 %v10332_v1 }
0x3257   :  { %v5154_v52 = vmul.f32 %v10209_v11, %v10205_v27 }
0x3259   :  { %v5156_v21 = vpack.c.bf16 %v5154_v52, %v5154_v52 }
0x325a   :  { %v10211_v4 = vpop.eup %10210 }
0x325b   :  { %9565 = vmatmul.mubr.msk.bf16.vlgmr.msra.gmra.mrb[160].mxu1 %vm301_vm2, %v5156_v21  ;;  %v5155_v20 = vmul.f32 %v10211_v4, %v10207_v50 }
0x325c   :  { %9578 = vmatprep.mubr.msk.bf16.mxu1 %vm10333_vm0, %v10332_v1  ;;  %9575 = vmatpush3.bf16.msra.mxu1 %v10028_v12  ;;  %v8571_v12 = vld [vmem:[%s12296_s12 + $0xa] ss:$0 sm:$0xff] }
0x325d   :  { %v5157_v6 = vpack.c.bf16 %v5155_v20, %v5155_v20  ;;  %9576 = vmatprep.subr.bf16.mxu1 %v10332_v1 }
0x325f   :  { %9571 = vmatmul.mubr.msk.bf16.vlgmr.msra.gmra.mrb[164].mxu0 %vm301_vm2, %v5157_v6 }
0x3260   :  { %9586 = vmatprep.mubr.msk.bf16.mxu0 %vm10333_vm0, %v10332_v1  ;;  %9577 = vmatpush3.bf16.msra.mxu1 %v10029_v29 }
0x3261   :  { %9590 = vmatprep.subr.bf16.mxu1 %v10332_v1 }
0x332e   :  { %v5200_v23 = vpop.f32.mrb[160].mxu1 }
0x332f   :  { %v9566_v53 = vpop.f32.mrb[161].mxu1 }
0x3330   :  { %v5203_v59 = vpop.f32.mrb[162].mxu1 }
0x3331   :  { %v9567_v28 = vpop.f32.mrb[163].mxu1  ;;  %v8572_v59 = vld [vmem:[%s12296_s12 + $0xb] ss:$0 sm:$0xff] }
0x3332   :  { %v5248_v43 = vpop.f32.mrb[164].mxu0 }
0x3333   :  { %v9951_v39 = vpack.i.bf16 %v5248_v43, %v5200_v23  ;;  %v9572_v30 = vpop.f32.mrb[165].mxu0 }
0x3334   :  { %v5251_v0 = vpop.f32.mrb[166].mxu0 }
0x3335   :  { %v9573_v34 = vpop.f32.mrb[167].mxu0  ;;  %9952 = vrot.lane.b32.xlu1 %v9951_v39, %s10339_s19  ;;  %v10034_v0 = vld [vmem:[%s12295_s11 + $0x10] sm:$0xff]  }
0x3336   :  { %v10035_v34 = vld [vmem:[%s12295_s11 + $0x18] sm:$0xff]  }
0x33a7   :  { %v9953_v22 = vpop.permute.xlu1 %9952 }
0x33a8   :  { %v9955_v57 = vunpack.i.h.bf16 %v9953_v22  ;;  %v9954_v55 = vunpack.i.l.bf16 %v9953_v22 }
0x33aa   :  { %v5283_v58 = vsel %vm1206_vm5, %v5281_v61, %v9955_v57  ;;  %v5282_v60 = vsel %vm1206_vm5, %v5280_v56, %v9954_v55  ;;  %v8577_v55 = vld [vmem:[%s12296_s12 + $0xc] ss:$0 sm:$0xff] }
0x33ab   :  { %v5284_v62 = vpack.c.bf16 %v5283_v58, %v5282_v60 }
0x33ad   :  { %9579 = vmatmul.mubr.msk.bf16.vlgmr.msra.gmra.mrb[164].mxu1 %vm136_vm1, %v5284_v62 }
0x33ae   :  { %9598 = vmatprep.mubr.msk.bf16.mxu1 %vm10333_vm0, %v10332_v1  ;;  %9591 = vmatpush3.bf16.msra.mxu1 %v10032_v7 }
0x33af   :  { %9592 = vmatprep.subr.bf16.mxu1 %v10332_v1 }
0x33b2   :  { %9593 = vmatpush3.bf16.msra.mxu1 %v10033_v8 }
0x33b3   :  { %9594 = vmatprep.subr.bf16.mxu1 %v10332_v1 }
0x33b6   :  { %9595 = vmatpush3.bf16.msra.mxu1 %v10034_v0 }
0x33b7   :  { %9596 = vmatprep.subr.bf16.mxu1 %v10332_v1 }
0x33ba   :  { %9597 = vmatpush3.bf16.msra.mxu1 %v10035_v34 }
0x33bb   :  { %9618 = vmatprep.subr.bf16.mxu1 %v10332_v1 }
0x3480   :  { %v5338_v49 = vpop.f32.mrb[164].mxu1 }
0x3481   :  { %v5339_v31 = vadd.f32 %v8567_v42, %v5338_v49  ;;  %v9580_v2 = vpop.f32.mrb[165].mxu1 }
0x3482   :  { %v5341_v10 = vpop.f32.mrb[166].mxu1 }
0x3483   :  { %v5345_v36 = vadd.f32 %v5339_v31, %v11387_v37  ;;  %v5342_v19 = vadd.f32 %v8567_v42, %v5341_v10  ;;  %v9581_v33 = vpop.f32.mrb[167].mxu1 }
0x3485   :  { %v5346_v48 = vadd.f32 %v5342_v19, %v11389_v25  ;;  %v5349_v63 = vsel %vm136_vm1, %v5345_v36, 0.0  ;;  %v10030_v25 = vld [vmem:[%s12294_s10] sm:$0xff]  }
0x3486   :  { %5350 = vadd.xlane.f32.xlu0 %v5349_v63  ;;  %9583 = vmatpush3.bf16.msra.mxu0 %v10030_v25 }
0x3487   :  { %v5352_v38 = vsel %vm136_vm1, %v5346_v48, 0.0  ;;  %9584 = vmatprep.subr.bf16.mxu0 %v10332_v1 }
0x3488   :  { %5353 = vadd.xlane.f32.xlu1 %v5352_v38 }
0x348a   :  { %9585 = vmatpush3.bf16.msra.mxu0 %v10031_v51 }
0x348b   :  { %9602 = vmatprep.subr.bf16.mxu0 %v10332_v1 }
0x3513   :  { %v5351_v16 = vpop.xlane.xlu0 %5350 }
0x3514   :  { %v5355_v3 = vmul.f32 0.03125, %v5351_v16 }
0x3515   :  { %v5354_v35 = vpop.xlane.xlu1 %5353 }
0x3516   :  { %v5357_v41 = vsub.f32 %v5345_v36, %v5355_v3  ;;  %v5356_v26 = vmul.f32 0.03125, %v5354_v35 }
0x3518   :  { %v5358_v5 = vsub.f32 %v5346_v48, %v5356_v26  ;;  %v5359_v27 = vmul.f32 %v5357_v41, %v5357_v41  ;;  %v10036_v26 = vld [vmem:[%s12293_s9 + $0x80] sm:$0xff]  }
0x351a   :  { %v5361_v47 = vsel %vm136_vm1, %v5359_v27, 0.0  ;;  %v5360_v37 = vmul.f32 %v5358_v5, %v5358_v5  ;;  %v10038_v27 = vld [vmem:[%s12293_s9 + $0x88] sm:$0xff]  }
0x351b   :  { %5362 = vadd.xlane.f32.xlu0 %v5361_v47  ;;  %v10039_v47 = vld [vmem:[%s12293_s9 + $0xa8] sm:$0xff]  }
0x351c   :  { %v5364_v50 = vsel %vm136_vm1, %v5360_v37, 0.0 }
0x351f   :  { %5365 = vadd.xlane.f32.xlu0 %v5364_v50 }
0x35a8   :  { %v5363_v15 = vpop.xlane.xlu0 %5362 }
0x35a9   :  { %v5367_v46 = vmul.f32 0.03125, %v5363_v15 }
0x35ab   :  { %v5369_v11 = vadd.f32 1e-05, %v5367_v46  ;;  %v8583_v46 = vld [vmem:[%s12296_s12 + $0xd] ss:$0 sm:$0xff] }
0x35ac   :  { %v5366_v52 = vpop.xlane.xlu0 %5365 }
0x35ad   :  { %10212 = vrsqrt.f32 %v5369_v11  ;;  %v5368_v21 = vmul.f32 0.03125, %v5366_v52 }
0x35af   :  { %v5370_v4 = vadd.f32 1e-05, %v5368_v21 }
0x35b1   :  { %10214 = vrsqrt.f32 %v5370_v4 }
0x35b7   :  { %v10213_v20 = vpop.eup %10212 }
0x35b8   :  { %v5373_v6 = vmul.f32 %v10213_v20, %v5357_v41  ;;  %v8584_v20 = vld [vmem:[%s12296_s12 + $0xe] ss:$0 sm:$0xff] }
0x35ba   :  { %v5379_v23 = vmul.f32 %v8571_v12, %v5373_v6 }
0x35bb   :  { %v10215_v29 = vpop.eup %10214 }
0x35bc   :  { %v5374_v53 = vmul.f32 %v10215_v29, %v5358_v5  ;;  %v5385_v43 = vadd.f32 %v8572_v59, %v5379_v23  ;;  %v10037_v5 = vld [vmem:[%s12293_s9 + $0xa0] sm:$0xff]   ;;  %v10040_v23 = vld [vmem:[%s12293_s9 + $0x90] sm:$0xff]  }
0x35be   :  { %v5380_v28 = vmul.f32 %v8571_v12, %v5374_v53 }
0x35c0   :  { %v5386_v39 = vadd.f32 %v8572_v59, %v5380_v28  ;;  %v10041_v59 = vld [vmem:[%s12293_s9 + $0x98] sm:$0xff]  }
0x35c2   :  { %v5387_v30 = vpack.c.bf16 %v5386_v39, %v5385_v43 }
0x35c4   :  { %9587 = vmatmul.mubr.msk.bf16.vlgmr.msra.gmra.mrb[168].mxu0 %vm136_vm1, %v5387_v30 }
0x35c5   :  { %9606 = vmatprep.mubr.msk.bf16.mxu0 %vm10333_vm0, %v10332_v1  ;;  %9603 = vmatpush3.bf16.msra.mxu0 %v10036_v26 }
0x35c6   :  { %9604 = vmatprep.subr.bf16.mxu0 %v10332_v1 }
0x35c9   :  { %9605 = vmatpush3.bf16.msra.mxu0 %v10038_v27 }
0x35ca   :  { %9610 = vmatprep.subr.bf16.mxu0 %v10332_v1 }
0x3697   :  { %v5448_v9 = vpop.f32.mrb[168].mxu0 }
0x3698   :  { %v5449_v13 = vadd.f32 %v8573_v40, %v5448_v9  ;;  %v9588_v14 = vpop.f32.mrb[169].mxu0 }
0x3699   :  { %v5451_v18 = vpop.f32.mrb[170].mxu0 }
0x369a   :  { %v5452_v17 = vadd.f32 %v8573_v40, %v5451_v18  ;;  %v9589_v22 = vpop.f32.mrb[171].mxu0  ;;  %v5455_v32 = vmax.f32 %v5449_v13, 0.0  ;;  %v8609_v13 = vld [vmem:[%s12296_s12 + $0x11] ss:$0 sm:$0xff] }
0x369b   :  { %v8613_v22 = vld [vmem:[%s12296_s12 + $0x12] ss:$0 sm:$0xff] }
0x369c   :  { %v5456_v54 = vmax.f32 %v5452_v17, 0.0 }
0x369e   :  { %v5457_v57 = vpack.c.bf16 %v5456_v54, %v5455_v32 }
0x36a0   :  { %9599 = vmatmul.mubr.msk.bf16.vlgmr.msra.gmra.mrb[168].mxu1 %vm1421_vm6, %v5457_v57 }
0x36a1   :  { %9622 = vmatprep.mubr.msk.bf16.mxu1 %vm10333_vm0, %v10332_v1  ;;  %9619 = vmatpush3.bf16.msra.mxu1 %v10037_v5 }
0x36a2   :  { %9620 = vmatprep.subr.bf16.mxu1 %v10332_v1 }
0x36a5   :  { %9621 = vmatpush3.bf16.msra.mxu1 %v10039_v47 }
0x36a6   :  { %9632 = vmatprep.subr.bf16.mxu1 %v10332_v1 }
0x3773   :  { %v5532_v56 = vpop.f32.mrb[168].mxu1 }
0x3774   :  { %v5533_v61 = vadd.f32 %v8577_v55, %v5532_v56  ;;  %v9600_v58 = vpop.f32.mrb[169].mxu1  ;;  %v8605_v56 = vld [vmem:[%s12296_s12 + $0x10] ss:$0 sm:$0xff] }
0x3775   :  { %v5535_v60 = vpop.f32.mrb[170].mxu1 }
0x3776   :  { %v5539_v62 = vadd.f32 %v5533_v61, %v5385_v43  ;;  %v5536_v42 = vadd.f32 %v8577_v55, %v5535_v60  ;;  %v9601_v49 = vpop.f32.mrb[171].mxu1 }
0x3778   :  { %v5540_v31 = vadd.f32 %v5536_v42, %v5386_v39  ;;  %v5543_v2 = vsel %vm136_vm1, %v5539_v62, 0.0 }
0x3779   :  { %5544 = vadd.xlane.f32.xlu0 %v5543_v2 }
0x377a   :  { %v5546_v10 = vsel %vm136_vm1, %v5540_v31, 0.0 }
0x377b   :  { %5547 = vadd.xlane.f32.xlu1 %v5546_v10 }
0x3806   :  { %v5545_v36 = vpop.xlane.xlu0 %5544 }
0x3807   :  { %v5549_v19 = vmul.f32 0.03125, %v5545_v36 }
0x3808   :  { %v5548_v33 = vpop.xlane.xlu1 %5547 }
0x3809   :  { %v5551_v48 = vsub.f32 %v5539_v62, %v5549_v19  ;;  %v5550_v63 = vmul.f32 0.03125, %v5548_v33 }
0x380b   :  { %v5552_v38 = vsub.f32 %v5540_v31, %v5550_v63  ;;  %v5553_v16 = vmul.f32 %v5551_v48, %v5551_v48 }
0x380d   :  { %v5555_v3 = vsel %vm136_vm1, %v5553_v16, 0.0  ;;  %v5554_v35 = vmul.f32 %v5552_v38, %v5552_v38 }
0x380e   :  { %5556 = vadd.xlane.f32.xlu0 %v5555_v3 }
0x380f   :  { %v5558_v41 = vsel %vm136_vm1, %v5554_v35, 0.0 }
0x3810   :  { %5559 = vadd.xlane.f32.xlu1 %v5558_v41 }
0x389b   :  { %v5557_v37 = vpop.xlane.xlu0 %5556 }
0x389c   :  { %v5561_v50 = vmul.f32 0.03125, %v5557_v37 }
0x389d   :  { %v5560_v25 = vpop.xlane.xlu1 %5559 }
0x389e   :  { %v5563_v51 = vadd.f32 1e-05, %v5561_v50  ;;  %v5562_v7 = vmul.f32 0.03125, %v5560_v25 }
0x38a0   :  { %10216 = vrsqrt.f32 %v5563_v51  ;;  %v5564_v8 = vadd.f32 1e-05, %v5562_v7 }
0x38a2   :  { %10218 = vrsqrt.f32 %v5564_v8 }
0x38aa   :  { %v10217_v15 = vpop.eup %10216 }
0x38ab   :  { %v5567_v11 = vmul.f32 %v10217_v15, %v5551_v48 }
0x38ac   :  { %v10219_v52 = vpop.eup %10218 }
0x38ad   :  { %v5573_v21 = vmul.f32 %v8583_v46, %v5567_v11  ;;  %v5568_v4 = vmul.f32 %v10219_v52, %v5552_v38 }
0x38af   :  { %v5574_v6 = vmul.f32 %v8583_v46, %v5568_v4  ;;  %v11699_v12 = vadd.f32 %v8584_v20, %v5573_v21 }
0x38b1   :  { %v11701_v29 = vadd.f32 %v8584_v20, %v5574_v6 }
0x38b3   :  { %v5606_v53 = vpack.c.bf16 %v11701_v29, %v11699_v12 }
0x38b5   :  { %9607 = vmatmul.mubr.msk.bf16.vlgmr.msra.gmra.mrb[172].mxu0 %vm136_vm1, %v5606_v53  ;;  %9623 = vmatmul.mubr.msk.bf16.vlgmr.msra.gmra.mrb[172].mxu1 %vm136_vm1, %v5606_v53 }
0x38b6   :  { %9611 = vmatpush3.bf16.msra.mxu0 %v10040_v23  ;;  %9614 = vmatprep.mubr.msk.bf16.mxu0 %vm10333_vm0, %v10332_v1 }
0x38b7   :  { %9612 = vmatprep.subr.bf16.mxu0 %v10332_v1  ;;  %9634 = vmatprep.mubr.msk.bf16.mxu1 %vm10333_vm0, %v10332_v1 }
0x38ba   :  { %9613 = vmatpush3.bf16.msra.mxu0 %v10041_v59 }
0x38bb   :  { %9626 = vmatprep.subr.bf16.mxu0 %v10332_v1 }
0x38bd   :  { %9615 = vmatmul.mubr.msk.bf16.vlgmr.msra.gmra.mrb[176].mxu0 %vm136_vm1, %v5606_v53 }
0x38be   :  { %9628 = vmatprep.mubr.msk.bf16.mxu0 %vm10333_vm0, %v10332_v1 }
0x3988   :  { %v5660_v28 = vpop.f32.mrb[172].mxu0  ;;  %v5778_v43 = vpop.f32.mrb[172].mxu1 }
0x3989   :  { %v9608_v39 = vpop.f32.mrb[173].mxu0  ;;  %v9624_v30 = vpop.f32.mrb[173].mxu1  ;;  %v5779_v61 = vadd.f32 %v8613_v22, %v5778_v43  ;;  %v5661_v62 = vadd.f32 %v8605_v56, %v5660_v28 }
0x398a   :  { %v5663_v0 = vpop.f32.mrb[174].mxu0  ;;  %v5781_v34 = vpop.f32.mrb[174].mxu1 }
0x398b   :  { %v9609_v40 = vpop.f32.mrb[175].mxu0  ;;  %v9625_v9 = vpop.f32.mrb[175].mxu1  ;;  %v5782_v42 = vadd.f32 %v8613_v22, %v5781_v34  ;;  %v11740_v31 = vpack.c.bf16 %v5779_v61, %v5779_v61  ;;  %v5664_v2 = vadd.f32 %v8605_v56, %v5663_v0  ;;  %v11743_v10 = vpack.c.bf16 %v5661_v62, %v5661_v62 }
0x398d   :  { %v11745_v36 = vpack.c.bf16 %v5782_v42, %v5782_v42  ;;  %v11747_v19 = vpack.c.bf16 %v5664_v2, %v5664_v2  ;;  %v5907_v33 = vsel %vm421_vm3, %v11740_v31, 0 }
0x398f   :  { %v5953_v48 = vsel %vm421_vm3, %v11745_v36, 0 }
0x3990   :  { %v5719_v14 = vpop.f32.mrb[176].mxu0 }
0x3991   :  { %v5720_v18 = vadd.f32 %v8609_v13, %v5719_v14  ;;  %v9616_v17 = vpop.f32.mrb[177].mxu0 }
0x3992   :  { %v5722_v32 = vpop.f32.mrb[178].mxu0 }
0x3993   :  { %v11728_v54 = vpack.c.bf16 %v5720_v18, %v5720_v18  ;;  %v5723_v57 = vadd.f32 %v8609_v13, %v5722_v32  ;;  %v9617_v55 = vpop.f32.mrb[179].mxu0 }
0x3995   :  { %v11733_v58 = vpack.c.bf16 %v5723_v57, %v5723_v57  ;;  %v5791_v60 = vsel %vm301_vm2, %v11728_v54, 0 }
0x3996   :  { %9627 = vmatpush3.bf16.xpose.msra.mxu0 %v5791_v60 }
0x3997   :  { %v5837_v49 = vsel %vm301_vm2, %v11733_v58, 0  ;;  %9638 = vmatprep.subr.bf16.mxu0 %v10332_v1 }
0x3998   :  { %9633 = vmatpush3.bf16.xpose.msra.mxu1 %v5837_v49 }
0x3999   :  { %9644 = vmatprep.subr.bf16.mxu1 %v10332_v1 }
0x399d   :  { %9629 = vmatmul.mubr.msk.bf16.vlgmr.msra.gmra.mrb[180].mxu0 %vm301_vm2, %v11743_v10 }
0x399e   :  { %9639 = vmatpush3.bf16.msra.mxu0 %v5907_v33  ;;  %9640 = vmatprep.mubr.msk.bf16.mxu0 %vm10333_vm0, %v10332_v1 }
0x399f   :  { %9635 = vmatmul.mubr.msk.bf16.vlgmr.msra.gmra.mrb[176].mxu1 %vm301_vm2, %v11747_v19  ;;  %9650 = vmatprep.subr.bf16.mxu0 %v10332_v1 }
0x39a0   :  { %9645 = vmatpush3.bf16.msra.mxu1 %v5953_v48  ;;  %9646 = vmatprep.mubr.msk.bf16.mxu1 %vm10333_vm0, %v10332_v1 }
0x39a1   :  { %9656 = vmatprep.subr.bf16.mxu1 %v10332_v1 }
0x3a70   :  { %v5827_v63 = vpop.f32.mrb[180].mxu0 }
0x3a71   :  { %v5828_v38 = vadd.f32 %v5827_v63, %v11161_v44  ;;  %v9630_v16 = vpop.f32.mrb[181].mxu0 }
0x3a72   :  { %v5830_v3 = vpop.f32.mrb[182].mxu0  ;;  %v5873_v35 = vpop.f32.mrb[176].mxu1 }
0x3a73   :  { %v5874_v41 = vadd.f32 %v5873_v35, %v11164_v45  ;;  %v9631_v26 = vpop.f32.mrb[183].mxu0  ;;  %v9636_v5 = vpop.f32.mrb[177].mxu1  ;;  %v5879_v27 = vsel %vm301_vm2, %v5828_v38, -inf }
0x3a74   :  { %5880 = vmax.xlane.f32.xlu0 %v5879_v27  ;;  %v5876_v47 = vpop.f32.mrb[178].mxu1 }
0x3a75   :  { %v9637_v37 = vpop.f32.mrb[179].mxu1  ;;  %v5882_v50 = vsel %vm301_vm2, %v5874_v41, -inf }
0x3a76   :  { %5883 = vmax.xlane.f32.xlu1 %v5882_v50 }
0x3a87   :  { %6051 = vrot.lane.b32.xlu1 %v11733_v58, %s10334_s0 }
0x3b01   :  { %v5881_v25 = vpop.xlane.xlu0 %5880 }
0x3b02   :  { %v5885_v51 = vsub.f32 %v5828_v38, %v5881_v25 }
0x3b03   :  { %v5884_v7 = vpop.xlane.xlu1 %5883 }
0x3b04   :  { %v5887_v8 = vmul.f32 1.442695, %v5885_v51  ;;  %v5886_v15 = vsub.f32 %v5874_v41, %v5884_v7 }
0x3b06   :  { %10220 = vpow2.f32 %v5887_v8  ;;  %v5889_v46 = vmul.f32 1.442695, %v5886_v15 }
0x3b07   :  { %v6052_v20 = vpop.permute.xlu1 %6051 }
0x3b08   :  { %10222 = vpow2.f32 %v5889_v46  ;;  %v6057_v40 = vsel %vm301_vm2, %v6052_v20, 0 }
0x3b10   :  { %v10221_v11 = vpop.eup %10220 }
0x3b11   :  { %v5891_v52 = vsel %vm301_vm2, %v10221_v11, 0.0 }
0x3b12   :  { %v10223_v21 = vpop.eup %10222  ;;  %5892 = vadd.xlane.f32.xlu0 %v5891_v52 }
0x3b13   :  { %v5894_v4 = vsel %vm301_vm2, %v10223_v21, 0.0 }
0x3b14   :  { %5895 = vadd.xlane.f32.xlu1 %v5894_v4 }
0x3b25   :  { %5996 = vrot.lane.b32.xlu1 %v11743_v10, %s10334_s0 }
0x3b28   :  { %5999 = vrot.lane.b32.xlu0 %v11728_v54, %s10334_s0 }
0x3b29   :  { %6048 = vrot.lane.b32.xlu1 %v11747_v19, %s10334_s0 }
0x3b9f   :  { %v5893_v6 = vpop.xlane.xlu0 %5892 }
0x3ba0   :  { %10224 = vrcp.f32 %v5893_v6 }
0x3ba1   :  { %v5896_v23 = vpop.xlane.xlu1 %5895 }
0x3ba2   :  { %10226 = vrcp.f32 %v5896_v23 }
0x3ba3   :  { %v6000_v43 = vpop.permute.xlu0 %5999 }
0x3ba4   :  { %v6005_v0 = vsel %vm301_vm2, %v6000_v43, 0 }
0x3ba5   :  { %v5997_v9 = vpop.permute.xlu1 %5996 }
0x3ba9   :  { %v6049_v13 = vpop.permute.xlu1 %6048 }
0x3baa   :  { %v10225_v53 = vpop.eup %10224 }
0x3bab   :  { %v5899_v59 = vmul.f32 %v10225_v53, %v10221_v11 }
0x3bac   :  { %v10227_v28 = vpop.eup %10226 }
0x3bad   :  { %v5900_v39 = vmul.f32 %v10227_v28, %v10223_v21  ;;  %v5901_v30 = vpack.c.bf16 %v5899_v59, %v5899_v59 }
0x3baf   :  { %9641 = vmatmul.mubr.msk.bf16.vlgmr.msra.gmra.mrb[184].mxu0 %vm301_vm2, %v5901_v30  ;;  %v5902_v34 = vpack.c.bf16 %v5900_v39, %v5900_v39 }
0x3bb0   :  { %9651 = vmatpush3.bf16.xpose.msra.mxu0 %v6005_v0  ;;  %9652 = vmatprep.mubr.msk.bf16.mxu0 %vm10333_vm0, %v10332_v1 }
0x3bb1   :  { %9647 = vmatmul.mubr.msk.bf16.vlgmr.msra.gmra.mrb[180].mxu1 %vm301_vm2, %v5902_v34  ;;  %9662 = vmatprep.subr.bf16.mxu0 %v10332_v1 }
0x3bb2   :  { %9657 = vmatpush3.bf16.xpose.msra.mxu1 %v6057_v40  ;;  %9658 = vmatprep.mubr.msk.bf16.mxu1 %vm10333_vm0, %v10332_v1 }
0x3bb3   :  { %9668 = vmatprep.subr.bf16.mxu1 %v10332_v1 }
0x3bb7   :  { %9653 = vmatmul.mubr.msk.bf16.vlgmr.msra.gmra.mrb[188].mxu0 %vm301_vm2, %v5997_v9 }
0x3bb8   :  { %9664 = vmatprep.mubr.msk.bf16.mxu0 %vm10333_vm0, %v10332_v1 }
0x3bb9   :  { %9659 = vmatmul.mubr.msk.bf16.vlgmr.msra.gmra.mrb[184].mxu1 %vm301_vm2, %v6049_v13 }
0x3bba   :  { %9670 = vmatprep.mubr.msk.bf16.mxu1 %vm10333_vm0, %v10332_v1 }
0x3c82   :  { %v11793_v14 = vpop.f32.mrb[184].mxu0 }
0x3c83   :  { %v9642_v18 = vpop.f32.mrb[185].mxu0 }
0x3c84   :  { %v5946_v17 = vpop.f32.mrb[186].mxu0  ;;  %v11795_v22 = vpop.f32.mrb[180].mxu1 }
0x3c85   :  { %v9643_v32 = vpop.f32.mrb[187].mxu0  ;;  %v9648_v57 = vpop.f32.mrb[181].mxu1 }
0x3c86   :  { %v5992_v55 = vpop.f32.mrb[182].mxu1 }
0x3c87   :  { %v9649_v56 = vpop.f32.mrb[183].mxu1 }
0x3c8a   :  { %v6041_v61 = vpop.f32.mrb[188].mxu0 }
0x3c8b   :  { %v6042_v60 = vadd.f32 %v6041_v61, %v11161_v44  ;;  %v9654_v62 = vpop.f32.mrb[189].mxu0 }
0x3c8c   :  { %v6044_v42 = vpop.f32.mrb[190].mxu0  ;;  %v6093_v49 = vpop.f32.mrb[184].mxu1 }
0x3c8d   :  { %v6094_v2 = vadd.f32 %v6093_v49, %v11164_v45  ;;  %v9655_v33 = vpop.f32.mrb[191].mxu0  ;;  %v9660_v48 = vpop.f32.mrb[185].mxu1  ;;  %v6099_v63 = vsel %vm301_vm2, %v6042_v60, -inf }
0x3c8e   :  { %6100 = vmax.xlane.f32.xlu0 %v6099_v63  ;;  %v6096_v38 = vpop.f32.mrb[186].mxu1 }
0x3c8f   :  { %v9661_v16 = vpop.f32.mrb[187].mxu1  ;;  %v6102_v3 = vsel %vm301_vm2, %v6094_v2, -inf }
0x3c90   :  { %6103 = vmax.xlane.f32.xlu1 %v6102_v3 }
0x3ca1   :  { %6173 = vrot.lane.b32.xlu1 %v11745_v36, %s10334_s0 }
0x3ca5   :  { %6223 = vrot.lane.b32.xlu1 %v11728_v54, %s10335_s23 }
0x3ca9   :  { %6273 = vrot.lane.b32.xlu1 %v11733_v58, %s10335_s23 }
0x3cad   :  { %6271 = vrot.lane.b32.xlu1 %v11747_v19, %s10335_s23 }
0x3d1b   :  { %v6101_v35 = vpop.xlane.xlu0 %6100 }
0x3d1c   :  { %v6105_v41 = vsub.f32 %v6042_v60, %v6101_v35 }
0x3d1d   :  { %v6104_v26 = vpop.xlane.xlu1 %6103 }
0x3d1e   :  { %v6107_v5 = vmul.f32 1.442695, %v6105_v41  ;;  %v6106_v27 = vsub.f32 %v6094_v2, %v6104_v26 }
0x3d20   :  { %10228 = vpow2.f32 %v6107_v5  ;;  %v6109_v47 = vmul.f32 1.442695, %v6106_v27 }
0x3d21   :  { %v6174_v37 = vpop.permute.xlu1 %6173 }
0x3d22   :  { %10230 = vpow2.f32 %v6109_v47  ;;  %v6179_v50 = vsel %vm421_vm3, %v6174_v37, 0 }
0x3d23   :  { %9669 = vmatpush3.bf16.msra.mxu1 %v6179_v50 }
0x3d24   :  { %9680 = vmatprep.subr.bf16.mxu1 %v10332_v1 }
0x3d25   :  { %v6224_v4 = vpop.permute.xlu1 %6223 }
0x3d26   :  { %v6229_v28 = vsel %vm301_vm2, %v6224_v4, 0 }
0x3d29   :  { %v6274_v59 = vpop.permute.xlu1 %6273 }
0x3d2a   :  { %v10229_v25 = vpop.eup %10228  ;;  %v6279_v39 = vsel %vm301_vm2, %v6274_v59, 0 }
0x3d2b   :  { %v6111_v51 = vsel %vm301_vm2, %v10229_v25, 0.0 }
0x3d2c   :  { %v10231_v7 = vpop.eup %10230  ;;  %6112 = vadd.xlane.f32.xlu0 %v6111_v51 }
0x3d2d   :  { %v6114_v8 = vsel %vm301_vm2, %v10231_v7, 0.0  ;;  %v6272_v0 = vpop.permute.xlu1 %6271 }
0x3d30   :  { %6115 = vadd.xlane.f32.xlu0 %v6114_v8 }
0x3d46   :  { %6124 = vrot.lane.b32.xlu0 %v11740_v31, %s10334_s0 }
0x3d4a   :  { %6221 = vrot.lane.b32.xlu0 %v11743_v10, %s10335_s23 }
0x3db9   :  { %v6113_v15 = vpop.xlane.xlu0 %6112 }
0x3dba   :  { %10232 = vrcp.f32 %v6113_v15 }
0x3dbd   :  { %v6116_v46 = vpop.xlane.xlu0 %6115 }
0x3dbe   :  { %10234 = vrcp.f32 %v6116_v46 }
0x3dc1   :  { %v6125_v11 = vpop.permute.xlu0 %6124 }
0x3dc2   :  { %v6130_v52 = vsel %vm421_vm3, %v6125_v11, 0 }
0x3dc3   :  { %9663 = vmatpush3.bf16.msra.mxu0 %v6130_v52 }
0x3dc4   :  { %v10233_v21 = vpop.eup %10232  ;;  %9674 = vmatprep.subr.bf16.mxu0 %v10332_v1 }
0x3dc5   :  { %v6119_v20 = vmul.f32 %v10233_v21, %v10229_v25  ;;  %v6222_v30 = vpop.permute.xlu0 %6221 }
0x3dc7   :  { %v6121_v6 = vpack.c.bf16 %v6119_v20, %v6119_v20 }
0x3dc8   :  { %v10235_v23 = vpop.eup %10234 }
0x3dc9   :  { %v6120_v53 = vmul.f32 %v10235_v23, %v10231_v7  ;;  %9665 = vmatmul.mubr.msk.bf16.vlgmr.msra.gmra.mrb[192].mxu0 %vm301_vm2, %v6121_v6 }
0x3dca   :  { %9676 = vmatprep.mubr.msk.bf16.mxu0 %vm10333_vm0, %v10332_v1 }
0x3dcb   :  { %v6122_v43 = vpack.c.bf16 %v6120_v53, %v6120_v53 }
0x3dcc   :  { %9675 = vmatpush3.bf16.xpose.msra.mxu0 %v6229_v28 }
0x3dcd   :  { %9671 = vmatmul.mubr.msk.bf16.vlgmr.msra.gmra.mrb[188].mxu1 %vm301_vm2, %v6122_v43  ;;  %9686 = vmatprep.subr.bf16.mxu0 %v10332_v1 }
0x3dce   :  { %9681 = vmatpush3.bf16.xpose.msra.mxu1 %v6279_v39  ;;  %9682 = vmatprep.mubr.msk.bf16.mxu1 %vm10333_vm0, %v10332_v1 }
0x3dcf   :  { %9692 = vmatprep.subr.bf16.mxu1 %v10332_v1 }
0x3dd3   :  { %9677 = vmatmul.mubr.msk.bf16.vlgmr.msra.gmra.mrb[196].mxu0 %vm301_vm2, %v6222_v30 }
0x3dd4   :  { %9688 = vmatprep.mubr.msk.bf16.mxu0 %vm10333_vm0, %v10332_v1 }
0x3dd5   :  { %9683 = vmatmul.mubr.msk.bf16.vlgmr.msra.gmra.mrb[192].mxu1 %vm301_vm2, %v6272_v0 }
0x3dd6   :  { %9694 = vmatprep.mubr.msk.bf16.mxu1 %vm10333_vm0, %v10332_v1 }
0x3e9c   :  { %v11835_v34 = vpop.f32.mrb[192].mxu0 }
0x3e9d   :  { %v9666_v40 = vpop.f32.mrb[193].mxu0 }
0x3e9e   :  { %v6169_v9 = vpop.f32.mrb[194].mxu0 }
0x3e9f   :  { %v9667_v13 = vpop.f32.mrb[195].mxu0 }
0x3ea0   :  { %v11837_v18 = vpop.f32.mrb[188].mxu1 }
0x3ea1   :  { %v9956_v17 = vpack.i.bf16 %v11837_v18, %v11835_v34  ;;  %v9672_v32 = vpop.f32.mrb[189].mxu1 }
0x3ea2   :  { %v6218_v57 = vpop.f32.mrb[190].mxu1 }
0x3ea3   :  { %v9673_v55 = vpop.f32.mrb[191].mxu1 }
0x3ea6   :  { %v6265_v56 = vpop.f32.mrb[196].mxu0 }
0x3ea7   :  { %v6266_v61 = vadd.f32 %v6265_v56, %v11161_v44  ;;  %v9678_v60 = vpop.f32.mrb[197].mxu0 }
0x3ea8   :  { %v6268_v62 = vpop.f32.mrb[198].mxu0  ;;  %v6315_v42 = vpop.f32.mrb[192].mxu1 }
0x3ea9   :  { %v6316_v49 = vadd.f32 %v6315_v42, %v11164_v45  ;;  %v9679_v2 = vpop.f32.mrb[199].mxu0  ;;  %v9684_v33 = vpop.f32.mrb[193].mxu1  ;;  %v6321_v48 = vsel %vm301_vm2, %v6266_v61, -inf }
0x3eaa   :  { %6322 = vmax.xlane.f32.xlu0 %v6321_v48  ;;  %v6318_v63 = vpop.f32.mrb[194].mxu1 }
0x3eab   :  { %v9685_v38 = vpop.f32.mrb[195].mxu1  ;;  %v6324_v16 = vsel %vm301_vm2, %v6316_v49, -inf }
0x3eac   :  { %6325 = vmax.xlane.f32.xlu1 %v6324_v16 }
0x3ebd   :  { %6393 = vrot.lane.b32.xlu1 %v11745_v36, %s10335_s23 }
0x3ec1   :  { %6443 = vrot.lane.b32.xlu1 %v11728_v54, %s10336_s24 }
0x3ec5   :  { %6493 = vrot.lane.b32.xlu1 %v11733_v58, %s10336_s24 }
0x3ec9   :  { %6491 = vrot.lane.b32.xlu1 %v11747_v19, %s10336_s24 }
0x3f37   :  { %v6323_v3 = vpop.xlane.xlu0 %6322 }
0x3f38   :  { %v6327_v35 = vsub.f32 %v6266_v61, %v6323_v3 }
0x3f39   :  { %v6326_v41 = vpop.xlane.xlu1 %6325 }
0x3f3a   :  { %v6329_v26 = vmul.f32 1.442695, %v6327_v35  ;;  %v6328_v5 = vsub.f32 %v6316_v49, %v6326_v41 }
0x3f3c   :  { %10236 = vpow2.f32 %v6329_v26  ;;  %v6331_v27 = vmul.f32 1.442695, %v6328_v5 }
0x3f3d   :  { %v6394_v47 = vpop.permute.xlu1 %6393 }
0x3f3e   :  { %10238 = vpow2.f32 %v6331_v27  ;;  %v6399_v37 = vsel %vm421_vm3, %v6394_v47, 0 }
0x3f3f   :  { %9693 = vmatpush3.bf16.msra.mxu1 %v6399_v37 }
0x3f40   :  { %9704 = vmatprep.subr.bf16.mxu1 %v10332_v1 }
0x3f41   :  { %v6444_v46 = vpop.permute.xlu1 %6443 }
0x3f45   :  { %v6494_v20 = vpop.permute.xlu1 %6493 }
0x3f46   :  { %v10237_v54 = vpop.eup %10236  ;;  %v6499_v23 = vsel %vm301_vm2, %v6494_v20, 0 }
0x3f47   :  { %v6333_v58 = vsel %vm301_vm2, %v10237_v54, 0.0 }
0x3f48   :  { %v10239_v50 = vpop.eup %10238  ;;  %6334 = vadd.xlane.f32.xlu0 %v6333_v58 }
0x3f49   :  { %v6336_v19 = vsel %vm301_vm2, %v10239_v50, 0.0  ;;  %v6492_v59 = vpop.permute.xlu1 %6491 }
0x3f4c   :  { %6337 = vadd.xlane.f32.xlu0 %v6336_v19 }
0x3f62   :  { %6345 = vrot.lane.b32.xlu0 %v11740_v31, %s10335_s23 }
0x3f66   :  { %6441 = vrot.lane.b32.xlu0 %v11743_v10, %s10336_s24  ;;  %v6449_v10 = vsel %vm301_vm2, %v6444_v46, 0 }
0x3fd5   :  { %v6335_v25 = vpop.xlane.xlu0 %6334 }
0x3fd6   :  { %10240 = vrcp.f32 %v6335_v25 }
0x3fd9   :  { %v6338_v51 = vpop.xlane.xlu0 %6337 }
0x3fda   :  { %10242 = vrcp.f32 %v6338_v51  ;;  %v10042_v51 = vld [vmem:[%s12293_s9 + $0xb0] sm:$0xff]  }
0x3fdd   :  { %v6346_v7 = vpop.permute.xlu0 %6345 }
0x3fde   :  { %v6351_v8 = vsel %vm421_vm3, %v6346_v7, 0  ;;  %v10043_v7 = vld [vmem:[%s12293_s9 + $0xb8] sm:$0xff]  }
0x3fdf   :  { %9687 = vmatpush3.bf16.msra.mxu0 %v6351_v8 }
0x3fe0   :  { %v10241_v15 = vpop.eup %10240  ;;  %9698 = vmatprep.subr.bf16.mxu0 %v10332_v1 }
0x3fe1   :  { %v6341_v11 = vmul.f32 %v10241_v15, %v10237_v54  ;;  %v6442_v53 = vpop.permute.xlu0 %6441 }
0x3fe3   :  { %v6343_v52 = vpack.c.bf16 %v6341_v11, %v6341_v11 }
0x3fe4   :  { %v10243_v21 = vpop.eup %10242 }
0x3fe5   :  { %v6342_v4 = vmul.f32 %v10243_v21, %v10239_v50  ;;  %9689 = vmatmul.mubr.msk.bf16.vlgmr.msra.gmra.mrb[200].mxu0 %vm301_vm2, %v6343_v52 }
0x3fe6   :  { %9700 = vmatprep.mubr.msk.bf16.mxu0 %vm10333_vm0, %v10332_v1 }
0x3fe7   :  { %v6344_v6 = vpack.c.bf16 %v6342_v4, %v6342_v4 }
0x3fe8   :  { %9699 = vmatpush3.bf16.xpose.msra.mxu0 %v6449_v10 }
0x3fe9   :  { %9695 = vmatmul.mubr.msk.bf16.vlgmr.msra.gmra.mrb[196].mxu1 %vm301_vm2, %v6344_v6  ;;  %9710 = vmatprep.subr.bf16.mxu0 %v10332_v1 }
0x3fea   :  { %9705 = vmatpush3.bf16.xpose.msra.mxu1 %v6499_v23  ;;  %9706 = vmatprep.mubr.msk.bf16.mxu1 %vm10333_vm0, %v10332_v1 }
0x3feb   :  { %9716 = vmatprep.subr.bf16.mxu1 %v10332_v1 }
0x3fef   :  { %9701 = vmatmul.mubr.msk.bf16.vlgmr.msra.gmra.mrb[204].mxu0 %vm301_vm2, %v6442_v53 }
0x3ff0   :  { %9712 = vmatprep.mubr.msk.bf16.mxu0 %vm10333_vm0, %v10332_v1 }
0x3ff1   :  { %9707 = vmatmul.mubr.msk.bf16.vlgmr.msra.gmra.mrb[200].mxu1 %vm301_vm2, %v6492_v59 }
0x3ff2   :  { %9718 = vmatprep.mubr.msk.bf16.mxu1 %vm10333_vm0, %v10332_v1 }
0x40b8   :  { %v6387_v28 = vpop.f32.mrb[200].mxu0 }
0x40b9   :  { %v9690_v43 = vpop.f32.mrb[201].mxu0 }
0x40ba   :  { %v6390_v39 = vpop.f32.mrb[202].mxu0 }
0x40bb   :  { %v9691_v30 = vpop.f32.mrb[203].mxu0 }
0x40bc   :  { %v6435_v0 = vpop.f32.mrb[196].mxu1 }
0x40bd   :  { %v9961_v40 = vpack.i.bf16 %v6435_v0, %v6387_v28  ;;  %v9696_v9 = vpop.f32.mrb[197].mxu1 }
0x40be   :  { %v6438_v13 = vpop.f32.mrb[198].mxu1 }
0x40bf   :  { %v9697_v32 = vpop.f32.mrb[199].mxu1 }
0x40c2   :  { %v6485_v57 = vpop.f32.mrb[204].mxu0 }
0x40c3   :  { %v6486_v55 = vadd.f32 %v6485_v57, %v11161_v44  ;;  %v9702_v56 = vpop.f32.mrb[205].mxu0 }
0x40c4   :  { %v6488_v61 = vpop.f32.mrb[206].mxu0  ;;  %v6535_v60 = vpop.f32.mrb[200].mxu1  ;;  %v10044_v56 = vld [vmem:[%s12293_s9 + $0xd0] sm:$0xff]  }
0x40c5   :  { %v6536_v62 = vadd.f32 %v6535_v60, %v11164_v45  ;;  %v9703_v42 = vpop.f32.mrb[207].mxu0  ;;  %v9708_v49 = vpop.f32.mrb[201].mxu1  ;;  %v6541_v2 = vsel %vm301_vm2, %v6486_v55, -inf }
0x40c6   :  { %6542 = vmax.xlane.f32.xlu0 %v6541_v2  ;;  %v6538_v33 = vpop.f32.mrb[202].mxu1 }
0x40c7   :  { %v9709_v48 = vpop.f32.mrb[203].mxu1  ;;  %v6544_v63 = vsel %vm301_vm2, %v6536_v62, -inf }
0x40c8   :  { %6545 = vmax.xlane.f32.xlu1 %v6544_v63 }
0x40d9   :  { %6613 = vrot.lane.b32.xlu1 %v11745_v36, %s10336_s24 }
0x40dd   :  { %9957 = vrot.lane.b32.xlu1 %v9956_v17, %s10337_s25 }
0x40e1   :  { %9962 = vrot.lane.b32.xlu1 %v9961_v40, %s10338_s26 }
0x4153   :  { %v6543_v44 = vpop.xlane.xlu0 %6542 }
0x4154   :  { %v6547_v45 = vsub.f32 %v6486_v55, %v6543_v44 }
0x4155   :  { %v6546_v38 = vpop.xlane.xlu1 %6545 }
0x4156   :  { %v6549_v16 = vmul.f32 1.442695, %v6547_v45  ;;  %v6548_v3 = vsub.f32 %v6536_v62, %v6546_v38  ;;  %v8665_v45 = vld [vmem:[%s12296_s12 + $0x17] ss:$0 sm:$0xff] }
0x4158   :  { %10244 = vpow2.f32 %v6549_v16  ;;  %v6551_v35 = vmul.f32 1.442695, %v6548_v3 }
0x4159   :  { %v6614_v41 = vpop.permute.xlu1 %6613 }
0x415a   :  { %10246 = vpow2.f32 %v6551_v35  ;;  %v6619_v26 = vsel %vm421_vm3, %v6614_v41, 0 }
0x415b   :  { %9717 = vmatpush3.bf16.msra.mxu1 %v6619_v26 }
0x415c   :  { %9730 = vmatprep.subr.bf16.mxu1 %v10332_v1 }
0x415d   :  { %v9958_v6 = vpop.permute.xlu1 %9957 }
0x415e   :  { %v9960_v53 = vunpack.i.h.bf16 %v9958_v6  ;;  %v9959_v59 = vunpack.i.l.bf16 %v9958_v6  ;;  %v8640_v6 = vld [vmem:[%s12296_s12 + $0x15] ss:$0 sm:$0xff] }
0x4160   :  { %v6686_v30 = vsel %vm301_vm2, %v11795_v22, %v9960_v53  ;;  %v6685_v0 = vsel %vm301_vm2, %v11793_v14, %v9959_v59  ;;  %v10045_v14 = vld [vmem:[%s12293_s9 + $0xd8] sm:$0xff]   ;;  %v8633_v22 = vld [vmem:[%s12296_s12 + $0x13] ss:$0 sm:$0xff] }
0x4161   :  { %v9963_v23 = vpop.permute.xlu1 %9962 }
0x4162   :  { %v10245_v36 = vpop.eup %10244  ;;  %v9965_v28 = vunpack.i.h.bf16 %v9963_v23  ;;  %v9964_v43 = vunpack.i.l.bf16 %v9963_v23 }
0x4163   :  { %v6553_v34 = vsel %vm301_vm2, %v10245_v36, 0.0 }
0x4164   :  { %v10247_v18 = vpop.eup %10246  ;;  %6554 = vadd.xlane.f32.xlu0 %v6553_v34  ;;  %v6687_v13 = vsel %vm1203_vm4, %v6685_v0, %v9964_v43  ;;  %v6688_v32 = vsel %vm1203_vm4, %v6686_v30, %v9965_v28  ;;  %v10048_v28 = vld [vmem:[%s12293_s9 + $0xe0] sm:$0xff]  }
0x4165   :  { %v6556_v17 = vsel %vm301_vm2, %v10247_v18, 0.0 }
0x4168   :  { %6557 = vadd.xlane.f32.xlu0 %v6556_v17 }
0x417e   :  { %6565 = vrot.lane.b32.xlu0 %v11740_v31, %s10336_s24 }
0x41f1   :  { %v6555_v5 = vpop.xlane.xlu0 %6554 }
0x41f2   :  { %10248 = vrcp.f32 %v6555_v5 }
0x41f5   :  { %v6558_v27 = vpop.xlane.xlu0 %6557 }
0x41f6   :  { %10250 = vrcp.f32 %v6558_v27 }
0x41f9   :  { %v6566_v47 = vpop.permute.xlu0 %6565 }
0x41fa   :  { %v6571_v37 = vsel %vm421_vm3, %v6566_v47, 0 }
0x41fb   :  { %9711 = vmatpush3.bf16.msra.mxu0 %v6571_v37 }
0x41fc   :  { %v10249_v54 = vpop.eup %10248  ;;  %9722 = vmatprep.subr.bf16.mxu0 %v10332_v1 }
0x41fd   :  { %v6561_v58 = vmul.f32 %v10249_v54, %v10245_v36 }
0x41ff   :  { %v6563_v50 = vpack.c.bf16 %v6561_v58, %v6561_v58 }
0x4200   :  { %v10251_v19 = vpop.eup %10250 }
0x4201   :  { %v6562_v25 = vmul.f32 %v10251_v19, %v10247_v18  ;;  %9713 = vmatmul.mubr.msk.bf16.vlgmr.msra.gmra.mrb[208].mxu0 %vm301_vm2, %v6563_v50  ;;  %v10046_v19 = vld [vmem:[%s12293_s9 + $0xc0] sm:$0xff]  }
0x4202   :  { %9726 = vmatprep.mubr.msk.bf16.mxu0 %vm10333_vm0, %v10332_v1  ;;  %9723 = vmatpush3.bf16.msra.mxu0 %v10042_v51 }
0x4203   :  { %v6564_v31 = vpack.c.bf16 %v6562_v25, %v6562_v25  ;;  %9724 = vmatprep.subr.bf16.mxu0 %v10332_v1  ;;  %v10047_v25 = vld [vmem:[%s12293_s9 + $0xc8] sm:$0xff]  }
0x4205   :  { %9719 = vmatmul.mubr.msk.bf16.vlgmr.msra.gmra.mrb[204].mxu1 %vm301_vm2, %v6564_v31 }
0x4206   :  { %9734 = vmatprep.mubr.msk.bf16.mxu1 %vm10333_vm0, %v10332_v1  ;;  %9725 = vmatpush3.bf16.msra.mxu0 %v10043_v7 }
0x4207   :  { %9738 = vmatprep.subr.bf16.mxu0 %v10332_v1  ;;  %9731 = vmatpush3.bf16.msra.mxu1 %v10046_v19 }
0x4208   :  { %9732 = vmatprep.subr.bf16.mxu1 %v10332_v1 }
0x420b   :  { %9733 = vmatpush3.bf16.msra.mxu1 %v10047_v25 }
0x420c   :  { %9746 = vmatprep.subr.bf16.mxu1 %v10332_v1 }
0x42d4   :  { %v6607_v8 = vpop.f32.mrb[208].mxu0 }
0x42d5   :  { %v9714_v15 = vpop.f32.mrb[209].mxu0 }
0x42d6   :  { %v6610_v46 = vpop.f32.mrb[210].mxu0 }
0x42d7   :  { %v9715_v11 = vpop.f32.mrb[211].mxu0 }
0x42d8   :  { %v6655_v52 = vpop.f32.mrb[204].mxu1 }
0x42d9   :  { %v9966_v21 = vpack.i.bf16 %v6655_v52, %v6607_v8  ;;  %v9720_v4 = vpop.f32.mrb[205].mxu1 }
0x42da   :  { %v6658_v20 = vpop.f32.mrb[206].mxu1 }
0x42db   :  { %9967 = vrot.lane.b32.xlu0 %v9966_v21, %s10339_s19  ;;  %v9721_v10 = vpop.f32.mrb[207].mxu1  ;;  %v8639_v21 = vld [vmem:[%s12296_s12 + $0x14] ss:$0 sm:$0xff] }
0x434d   :  { %v9968_v39 = vpop.permute.xlu0 %9967 }
0x434e   :  { %v9970_v40 = vunpack.i.h.bf16 %v9968_v39  ;;  %v9969_v9 = vunpack.i.l.bf16 %v9968_v39  ;;  %v10049_v39 = vld [vmem:[%s12293_s9 + $0xe8] sm:$0xff]  }
0x4350   :  { %v6690_v57 = vsel %vm1206_vm5, %v6688_v32, %v9970_v40  ;;  %v6689_v55 = vsel %vm1206_vm5, %v6687_v13, %v9969_v9  ;;  %v8661_v40 = vld [vmem:[%s12296_s12 + $0x16] ss:$0 sm:$0xff] }
0x4351   :  { %v6691_v61 = vpack.c.bf16 %v6690_v57, %v6689_v55 }
0x4353   :  { %9727 = vmatmul.mubr.msk.bf16.vlgmr.msra.gmra.mrb[212].mxu0 %vm136_vm1, %v6691_v61 }
0x4354   :  { %9739 = vmatpush3.bf16.msra.mxu0 %v10044_v56  ;;  %9742 = vmatprep.mubr.msk.bf16.mxu0 %vm10333_vm0, %v10332_v1 }
0x4355   :  { %9740 = vmatprep.subr.bf16.mxu0 %v10332_v1 }
0x4358   :  { %9741 = vmatpush3.bf16.msra.mxu0 %v10045_v14  ;;  %v8669_v14 = vld [vmem:[%s12296_s12 + $0x18] ss:$0 sm:$0xff] }
0x4359   :  { %9754 = vmatprep.subr.bf16.mxu0 %v10332_v1 }
0x435b   :  { %9743 = vmatmul.mubr.msk.bf16.vlgmr.msra.gmra.mrb[216].mxu0 %vm136_vm1, %v11383_v24 }
0x435c   :  { %9756 = vmatprep.mubr.msk.bf16.mxu0 %vm10333_vm0, %v10332_v1 }
0x4426   :  { %v6745_v60 = vpop.f32.mrb[212].mxu0 }
0x4427   :  { %v6746_v62 = vadd.f32 %v8633_v22, %v6745_v60  ;;  %v9728_v42 = vpop.f32.mrb[213].mxu0 }
0x4428   :  { %v6748_v49 = vpop.f32.mrb[214].mxu0 }
0x4429   :  { %v6752_v2 = vadd.f32 %v6746_v62, %v11699_v12  ;;  %v6749_v33 = vadd.f32 %v8633_v22, %v6748_v49  ;;  %v9729_v48 = vpop.f32.mrb[215].mxu0 }
0x442b   :  { %v6753_v63 = vadd.f32 %v6749_v33, %v11701_v29  ;;  %v6756_v44 = vsel %vm136_vm1, %v6752_v2, 0.0 }
0x442c   :  { %6757 = vadd.xlane.f32.xlu1 %v6756_v44 }
0x442d   :  { %v6759_v38 = vsel %vm136_vm1, %v6753_v63, 0.0 }
0x442e   :  { %6760 = vadd.xlane.f32.xlu0 %v6759_v38  ;;  %v6931_v16 = vpop.f32.mrb[216].mxu0  ;;  %v12024_v38 = vld [vmem:[%s12286_s2] ss:$0 sm:$0xff] }
0x442f   :  { %v6932_v3 = vadd.f32 %v8665_v45, %v6931_v16  ;;  %v9744_v35 = vpop.f32.mrb[217].mxu0 }
0x4430   :  { %v6934_v41 = vpop.f32.mrb[218].mxu0 }
0x4431   :  { %v11946_v26 = vpack.c.bf16 %v6932_v3, %v6932_v3  ;;  %v6935_v12 = vadd.f32 %v8665_v45, %v6934_v41  ;;  %v9745_v36 = vpop.f32.mrb[219].mxu0 }
0x4433   :  { %v7003_v29 = vsel %vm301_vm2, %v11946_v26, 0  ;;  %v11986_v30 = vpack.c.bf16 %v6935_v12, %v6935_v12  ;;  %v12030_v12 = vld [vmem:[%s12286_s2 + $0x1] ss:$0 sm:$0xff] }
0x4434   :  { %9755 = vmatpush3.bf16.xpose.msra.mxu0 %v7003_v29 }
0x4435   :  { %9766 = vmatprep.subr.bf16.mxu0 %v10332_v1  ;;  %v7049_v0 = vsel %vm301_vm2, %v11986_v30, 0 }
0x44b9   :  { %v6758_v34 = vpop.xlane.xlu1 %6757 }
0x44ba   :  { %v6762_v18 = vmul.f32 0.03125, %v6758_v34 }
0x44bb   :  { %v6761_v17 = vpop.xlane.xlu0 %6760 }
0x44bc   :  { %v6764_v5 = vsub.f32 %v6752_v2, %v6762_v18  ;;  %v6763_v27 = vmul.f32 0.03125, %v6761_v17 }
0x44be   :  { %v6765_v47 = vsub.f32 %v6753_v63, %v6763_v27  ;;  %v6766_v37 = vmul.f32 %v6764_v5, %v6764_v5 }
0x44c0   :  { %v6768_v54 = vsel %vm136_vm1, %v6766_v37, 0.0  ;;  %v6767_v58 = vmul.f32 %v6765_v47, %v6765_v47 }
0x44c1   :  { %6769 = vadd.xlane.f32.xlu0 %v6768_v54 }
0x44c2   :  { %v6771_v50 = vsel %vm136_vm1, %v6767_v58, 0.0 }
0x44c5   :  { %6772 = vadd.xlane.f32.xlu0 %v6771_v50 }
0x454e   :  { %v6770_v31 = vpop.xlane.xlu0 %6769 }
0x454f   :  { %v6774_v51 = vmul.f32 0.03125, %v6770_v31 }
0x4551   :  { %v6776_v7 = vadd.f32 1e-05, %v6774_v51 }
0x4552   :  { %v6773_v8 = vpop.xlane.xlu0 %6772 }
0x4553   :  { %10252 = vrsqrt.f32 %v6776_v7  ;;  %v6775_v15 = vmul.f32 0.03125, %v6773_v8 }
0x4555   :  { %v6777_v46 = vadd.f32 1e-05, %v6775_v15 }
0x4557   :  { %10254 = vrsqrt.f32 %v6777_v46 }
0x455d   :  { %v10253_v11 = vpop.eup %10252 }
0x455e   :  { %v6780_v52 = vmul.f32 %v10253_v11, %v6764_v5 }
0x4560   :  { %v6786_v20 = vmul.f32 %v8639_v21, %v6780_v52 }
0x4561   :  { %v10255_v4 = vpop.eup %10254 }
0x4562   :  { %v6781_v10 = vmul.f32 %v10255_v4, %v6765_v47  ;;  %v11967_v53 = vadd.f32 %v8640_v6, %v6786_v20 }
0x4564   :  { %v6787_v23 = vmul.f32 %v8639_v21, %v6781_v10 }
0x4566   :  { %v11969_v59 = vadd.f32 %v8640_v6, %v6787_v23 }
0x4568   :  { %v6818_v43 = vpack.c.bf16 %v11969_v59, %v11967_v53 }
0x456a   :  { %9735 = vmatmul.mubr.msk.bf16.vlgmr.msra.gmra.mrb[208].mxu1 %vm136_vm1, %v6818_v43 }
0x456b   :  { %9747 = vmatpush3.bf16.msra.mxu1 %v10048_v28  ;;  %9750 = vmatprep.mubr.msk.bf16.mxu1 %vm10333_vm0, %v10332_v1 }
0x456c   :  { %9748 = vmatprep.subr.bf16.mxu1 %v10332_v1 }
0x456f   :  { %9749 = vmatpush3.bf16.msra.mxu1 %v10049_v39 }
0x4570   :  { %9760 = vmatprep.subr.bf16.mxu1 %v10332_v1 }
0x4572   :  { %9751 = vmatmul.mubr.msk.bf16.vlgmr.msra.gmra.mrb[212].mxu1 %vm136_vm1, %v11383_v24 }
0x4573   :  { %9762 = vmatprep.mubr.msk.bf16.mxu1 %vm10333_vm0, %v10332_v1 }
0x4578   :  { %9761 = vmatpush3.bf16.xpose.msra.mxu1 %v7049_v0 }
0x4579   :  { %9772 = vmatprep.subr.bf16.mxu1 %v10332_v1 }
0x463d   :  { %v6872_v9 = vpop.f32.mrb[208].mxu1 }
0x463e   :  { %v6873_v13 = vadd.f32 %v8661_v40, %v6872_v9  ;;  %v9736_v32 = vpop.f32.mrb[209].mxu1 }
0x463f   :  { %v6875_v57 = vpop.f32.mrb[210].mxu1 }
0x4640   :  { %v11996_v24 = vpack.c.bf16 %v6873_v13, %v6873_v13  ;;  %v6876_v55 = vadd.f32 %v8661_v40, %v6875_v57  ;;  %v9737_v56 = vpop.f32.mrb[211].mxu1 }
0x4642   :  { %v11998_v61 = vpack.c.bf16 %v6876_v55, %v6876_v55  ;;  %9757 = vmatmul.mubr.msk.bf16.vlgmr.msra.gmra.mrb[220].mxu0 %vm301_vm2, %v11996_v24 }
0x4643   :  { %9768 = vmatprep.mubr.msk.bf16.mxu0 %vm10333_vm0, %v10332_v1 }
0x4644   :  { %9763 = vmatmul.mubr.msk.bf16.vlgmr.msra.gmra.mrb[216].mxu1 %vm301_vm2, %v11998_v61 }
0x4645   :  { %v6990_v22 = vpop.f32.mrb[212].mxu1  ;;  %9774 = vmatprep.mubr.msk.bf16.mxu1 %vm10333_vm0, %v10332_v1 }
0x4646   :  { %v6991_v60 = vadd.f32 %v8669_v14, %v6990_v22  ;;  %v9752_v62 = vpop.f32.mrb[213].mxu1 }
0x4647   :  { %v6993_v42 = vpop.f32.mrb[214].mxu1 }
0x4648   :  { %v12011_v49 = vpack.c.bf16 %v6991_v60, %v6991_v60  ;;  %v6994_v2 = vadd.f32 %v8669_v14, %v6993_v42  ;;  %v9753_v33 = vpop.f32.mrb[215].mxu1 }
0x464a   :  { %v12013_v48 = vpack.c.bf16 %v6994_v2, %v6994_v2  ;;  %v7119_v63 = vsel %vm421_vm3, %v12011_v49, 0 }
0x464b   :  { %9767 = vmatpush3.bf16.msra.mxu0 %v7119_v63 }
0x464c   :  { %v7165_v44 = vsel %vm421_vm3, %v12013_v48, 0  ;;  %9778 = vmatprep.subr.bf16.mxu0 %v10332_v1 }
0x464d   :  { %9773 = vmatpush3.bf16.msra.mxu1 %v7165_v44 }
0x464e   :  { %9784 = vmatprep.subr.bf16.mxu1 %v10332_v1 }
0x4715   :  { %v7039_v45 = vpop.f32.mrb[220].mxu0 }
0x4716   :  { %v7040_v16 = vadd.f32 %v12024_v38, %v7039_v45  ;;  %v9758_v3 = vpop.f32.mrb[221].mxu0 }
0x4717   :  { %v7042_v35 = vpop.f32.mrb[222].mxu0  ;;  %v7085_v41 = vpop.f32.mrb[216].mxu1 }
0x4718   :  { %v7086_v36 = vadd.f32 %v12030_v12, %v7085_v41  ;;  %v9759_v29 = vpop.f32.mrb[223].mxu0  ;;  %v9764_v34 = vpop.f32.mrb[217].mxu1  ;;  %v7091_v18 = vsel %vm301_vm2, %v7040_v16, -inf }
0x4719   :  { %7092 = vmax.xlane.f32.xlu1 %v7091_v18  ;;  %v7088_v17 = vpop.f32.mrb[218].mxu1 }
0x471a   :  { %v9765_v5 = vpop.f32.mrb[219].mxu1  ;;  %v7094_v27 = vsel %vm301_vm2, %v7086_v36, -inf }
0x471b   :  { %7095 = vmax.xlane.f32.xlu0 %v7094_v27 }
0x472a   :  { %7211 = vrot.lane.b32.xlu1 %v11946_v26, %s10334_s0 }
0x47a6   :  { %v7093_v47 = vpop.xlane.xlu1 %7092 }
0x47a7   :  { %v7097_v37 = vsub.f32 %v7040_v16, %v7093_v47 }
0x47a8   :  { %v7096_v54 = vpop.xlane.xlu0 %7095 }
0x47a9   :  { %v7099_v58 = vmul.f32 1.442695, %v7097_v37  ;;  %v7098_v50 = vsub.f32 %v7086_v36, %v7096_v54 }
0x47aa   :  { %v7212_v8 = vpop.permute.xlu1 %7211 }
0x47ab   :  { %10256 = vpow2.f32 %v7099_v58  ;;  %v7101_v19 = vmul.f32 1.442695, %v7098_v50  ;;  %v7217_v6 = vsel %vm301_vm2, %v7212_v8, 0 }
0x47ad   :  { %10258 = vpow2.f32 %v7101_v19 }
0x47b5   :  { %v10257_v25 = vpop.eup %10256 }
0x47b6   :  { %v7103_v31 = vsel %vm301_vm2, %v10257_v25, 0.0 }
0x47b7   :  { %v10259_v51 = vpop.eup %10258  ;;  %7104 = vadd.xlane.f32.xlu1 %v7103_v31 }
0x47b8   :  { %v7106_v7 = vsel %vm301_vm2, %v10259_v51, 0.0 }
0x47b9   :  { %7107 = vadd.xlane.f32.xlu0 %v7106_v7 }
0x47c8   :  { %7208 = vrot.lane.b32.xlu1 %v11996_v24, %s10334_s0 }
0x47cc   :  { %7260 = vrot.lane.b32.xlu1 %v11998_v61, %s10334_s0 }
0x47cf   :  { %7263 = vrot.lane.b32.xlu0 %v11986_v30, %s10334_s0 }
0x4844   :  { %v7105_v15 = vpop.xlane.xlu1 %7104 }
0x4845   :  { %10260 = vrcp.f32 %v7105_v15 }
0x4846   :  { %v7108_v46 = vpop.xlane.xlu0 %7107 }
0x4847   :  { %10262 = vrcp.f32 %v7108_v46 }
0x4848   :  { %v7209_v43 = vpop.permute.xlu1 %7208 }
0x484a   :  { %v7264_v10 = vpop.permute.xlu0 %7263 }
0x484b   :  { %v7269_v28 = vsel %vm301_vm2, %v7264_v10, 0 }
0x484c   :  { %v7261_v39 = vpop.permute.xlu1 %7260 }
0x484f   :  { %v10261_v11 = vpop.eup %10260 }
0x4850   :  { %v7111_v52 = vmul.f32 %v10261_v11, %v10257_v25 }
0x4851   :  { %v10263_v21 = vpop.eup %10262 }
0x4852   :  { %v7112_v4 = vmul.f32 %v10263_v21, %v10259_v51  ;;  %v7113_v20 = vpack.c.bf16 %v7111_v52, %v7111_v52 }
0x4854   :  { %9769 = vmatmul.mubr.msk.bf16.vlgmr.msra.gmra.mrb[224].mxu0 %vm301_vm2, %v7113_v20  ;;  %v7114_v23 = vpack.c.bf16 %v7112_v4, %v7112_v4 }
0x4855   :  { %9779 = vmatpush3.bf16.xpose.msra.mxu0 %v7217_v6  ;;  %9780 = vmatprep.mubr.msk.bf16.mxu0 %vm10333_vm0, %v10332_v1 }
0x4856   :  { %9775 = vmatmul.mubr.msk.bf16.vlgmr.msra.gmra.mrb[220].mxu1 %vm301_vm2, %v7114_v23  ;;  %9790 = vmatprep.subr.bf16.mxu0 %v10332_v1 }
0x4857   :  { %9785 = vmatpush3.bf16.xpose.msra.mxu1 %v7269_v28  ;;  %9786 = vmatprep.mubr.msk.bf16.mxu1 %vm10333_vm0, %v10332_v1 }
0x4858   :  { %9796 = vmatprep.subr.bf16.mxu1 %v10332_v1 }
0x485c   :  { %9781 = vmatmul.mubr.msk.bf16.vlgmr.msra.gmra.mrb[228].mxu0 %vm301_vm2, %v7209_v43 }
0x485d   :  { %9792 = vmatprep.mubr.msk.bf16.mxu0 %vm10333_vm0, %v10332_v1 }
0x485e   :  { %9787 = vmatmul.mubr.msk.bf16.vlgmr.msra.gmra.mrb[224].mxu1 %vm301_vm2, %v7261_v39 }
0x485f   :  { %9798 = vmatprep.mubr.msk.bf16.mxu1 %vm10333_vm0, %v10332_v1 }
0x4927   :  { %v12061_v0 = vpop.f32.mrb[224].mxu0 }
0x4928   :  { %v9770_v40 = vpop.f32.mrb[225].mxu0 }
0x4929   :  { %v7158_v9 = vpop.f32.mrb[226].mxu0  ;;  %v12063_v13 = vpop.f32.mrb[220].mxu1 }
0x492a   :  { %v9771_v32 = vpop.f32.mrb[227].mxu0  ;;  %v9776_v57 = vpop.f32.mrb[221].mxu1 }
0x492b   :  { %v7204_v55 = vpop.f32.mrb[222].mxu1 }
0x492c   :  { %v9777_v56 = vpop.f32.mrb[223].mxu1 }
0x492f   :  { %v7253_v14 = vpop.f32.mrb[228].mxu0 }
0x4930   :  { %v7254_v22 = vadd.f32 %v12024_v38, %v7253_v14  ;;  %v9782_v60 = vpop.f32.mrb[229].mxu0 }
0x4931   :  { %v7256_v62 = vpop.f32.mrb[230].mxu0  ;;  %v7305_v42 = vpop.f32.mrb[224].mxu1 }
0x4932   :  { %v7306_v2 = vadd.f32 %v12030_v12, %v7305_v42  ;;  %v9783_v33 = vpop.f32.mrb[231].mxu0  ;;  %v9788_v63 = vpop.f32.mrb[225].mxu1  ;;  %v7311_v44 = vsel %vm301_vm2, %v7254_v22, -inf }
0x4933   :  { %7312 = vmax.xlane.f32.xlu1 %v7311_v44  ;;  %v7308_v45 = vpop.f32.mrb[226].mxu1 }
0x4934   :  { %v9789_v16 = vpop.f32.mrb[227].mxu1  ;;  %v7314_v3 = vsel %vm301_vm2, %v7306_v2, -inf }
0x4935   :  { %7315 = vmax.xlane.f32.xlu0 %v7314_v3 }
0x4944   :  { %7336 = vrot.lane.b32.xlu1 %v12011_v49, %s10334_s0 }
0x4948   :  { %7435 = vrot.lane.b32.xlu1 %v11946_v26, %s10335_s23 }
0x494c   :  { %7485 = vrot.lane.b32.xlu1 %v11986_v30, %s10335_s23 }
0x4950   :  { %7433 = vrot.lane.b32.xlu1 %v11996_v24, %s10335_s23 }
0x49c0   :  { %v7313_v35 = vpop.xlane.xlu1 %7312 }
0x49c1   :  { %v7317_v41 = vsub.f32 %v7254_v22, %v7313_v35 }
0x49c2   :  { %v7316_v36 = vpop.xlane.xlu0 %7315 }
0x49c3   :  { %v7319_v29 = vmul.f32 1.442695, %v7317_v41  ;;  %v7318_v34 = vsub.f32 %v7306_v2, %v7316_v36 }
0x49c4   :  { %v7337_v18 = vpop.permute.xlu1 %7336 }
0x49c5   :  { %10264 = vpow2.f32 %v7319_v29  ;;  %v7321_v17 = vmul.f32 1.442695, %v7318_v34  ;;  %v7342_v5 = vsel %vm421_vm3, %v7337_v18, 0 }
0x49c6   :  { %9791 = vmatpush3.bf16.msra.mxu0 %v7342_v5 }
0x49c7   :  { %10266 = vpow2.f32 %v7321_v17  ;;  %9802 = vmatprep.subr.bf16.mxu0 %v10332_v1 }
0x49c8   :  { %v7436_v51 = vpop.permute.xlu1 %7435 }
0x49c9   :  { %v7441_v46 = vsel %vm301_vm2, %v7436_v51, 0 }
0x49cc   :  { %v7486_v52 = vpop.permute.xlu1 %7485 }
0x49cd   :  { %v7491_v4 = vsel %vm301_vm2, %v7486_v52, 0 }
0x49cf   :  { %v10265_v27 = vpop.eup %10264 }
0x49d0   :  { %v7323_v47 = vsel %vm301_vm2, %v10265_v27, 0.0  ;;  %v7434_v20 = vpop.permute.xlu1 %7433 }
0x49d1   :  { %v10267_v37 = vpop.eup %10266  ;;  %7324 = vadd.xlane.f32.xlu0 %v7323_v47 }
0x49d2   :  { %v7326_v54 = vsel %vm301_vm2, %v10267_v37, 0.0 }
0x49d5   :  { %7327 = vadd.xlane.f32.xlu0 %v7326_v54 }
0x49eb   :  { %7385 = vrot.lane.b32.xlu0 %v12013_v48, %s10334_s0 }
0x49ef   :  { %7483 = vrot.lane.b32.xlu0 %v11998_v61, %s10335_s23 }
0x4a5e   :  { %v7325_v58 = vpop.xlane.xlu0 %7324 }
0x4a5f   :  { %10268 = vrcp.f32 %v7325_v58 }
0x4a62   :  { %v7328_v50 = vpop.xlane.xlu0 %7327 }
0x4a63   :  { %10270 = vrcp.f32 %v7328_v50 }
0x4a66   :  { %v7386_v19 = vpop.permute.xlu0 %7385 }
0x4a67   :  { %v7391_v25 = vsel %vm421_vm3, %v7386_v19, 0 }
0x4a68   :  { %9797 = vmatpush3.bf16.msra.mxu1 %v7391_v25 }
0x4a69   :  { %v10269_v31 = vpop.eup %10268  ;;  %9808 = vmatprep.subr.bf16.mxu1 %v10332_v1 }
0x4a6a   :  { %v7331_v7 = vmul.f32 %v10269_v31, %v10265_v27  ;;  %v7484_v10 = vpop.permute.xlu0 %7483 }
0x4a6c   :  { %v7333_v8 = vpack.c.bf16 %v7331_v7, %v7331_v7 }
0x4a6d   :  { %v10271_v15 = vpop.eup %10270 }
0x4a6e   :  { %v7332_v11 = vmul.f32 %v10271_v15, %v10267_v37  ;;  %9793 = vmatmul.mubr.msk.bf16.vlgmr.msra.gmra.mrb[232].mxu0 %vm301_vm2, %v7333_v8 }
0x4a6f   :  { %9803 = vmatpush3.bf16.xpose.msra.mxu0 %v7441_v46  ;;  %9804 = vmatprep.mubr.msk.bf16.mxu0 %vm10333_vm0, %v10332_v1 }
0x4a70   :  { %v7334_v21 = vpack.c.bf16 %v7332_v11, %v7332_v11  ;;  %9814 = vmatprep.subr.bf16.mxu0 %v10332_v1 }
0x4a72   :  { %9799 = vmatmul.mubr.msk.bf16.vlgmr.msra.gmra.mrb[228].mxu1 %vm301_vm2, %v7334_v21 }
0x4a73   :  { %9809 = vmatpush3.bf16.xpose.msra.mxu1 %v7491_v4  ;;  %9810 = vmatprep.mubr.msk.bf16.mxu1 %vm10333_vm0, %v10332_v1 }
0x4a74   :  { %9820 = vmatprep.subr.bf16.mxu1 %v10332_v1 }
0x4a76   :  { %9805 = vmatmul.mubr.msk.bf16.vlgmr.msra.gmra.mrb[236].mxu0 %vm301_vm2, %v7434_v20 }
0x4a77   :  { %9816 = vmatprep.mubr.msk.bf16.mxu0 %vm10333_vm0, %v10332_v1 }
0x4a7a   :  { %9811 = vmatmul.mubr.msk.bf16.vlgmr.msra.gmra.mrb[232].mxu1 %vm301_vm2, %v7484_v10 }
0x4a7b   :  { %9822 = vmatprep.mubr.msk.bf16.mxu1 %vm10333_vm0, %v10332_v1 }
0x4b41   :  { %v12103_v6 = vpop.f32.mrb[232].mxu0 }
0x4b42   :  { %v9794_v23 = vpop.f32.mrb[233].mxu0 }
0x4b43   :  { %v7381_v28 = vpop.f32.mrb[234].mxu0 }
0x4b44   :  { %v9795_v43 = vpop.f32.mrb[235].mxu0 }
0x4b45   :  { %v12105_v39 = vpop.f32.mrb[228].mxu1 }
0x4b46   :  { %v9971_v40 = vpack.i.bf16 %v12105_v39, %v12103_v6  ;;  %v9800_v9 = vpop.f32.mrb[229].mxu1 }
0x4b47   :  { %v7430_v32 = vpop.f32.mrb[230].mxu1 }
0x4b48   :  { %v9801_v57 = vpop.f32.mrb[231].mxu1 }
0x4b49   :  { %v7477_v55 = vpop.f32.mrb[236].mxu0 }
0x4b4a   :  { %v7478_v56 = vadd.f32 %v12024_v38, %v7477_v55  ;;  %v9806_v14 = vpop.f32.mrb[237].mxu0 }
0x4b4b   :  { %v7480_v22 = vpop.f32.mrb[238].mxu0 }
0x4b4c   :  { %v9807_v60 = vpop.f32.mrb[239].mxu0  ;;  %v7533_v62 = vsel %vm301_vm2, %v7478_v56, -inf }
0x4b4d   :  { %7534 = vmax.xlane.f32.xlu1 %v7533_v62  ;;  %v7527_v42 = vpop.f32.mrb[232].mxu1 }
0x4b4e   :  { %v7528_v2 = vadd.f32 %v12030_v12, %v7527_v42  ;;  %v9812_v33 = vpop.f32.mrb[233].mxu1 }
0x4b4f   :  { %v7530_v63 = vpop.f32.mrb[234].mxu1 }
0x4b50   :  { %v9813_v44 = vpop.f32.mrb[235].mxu1  ;;  %v7536_v45 = vsel %vm301_vm2, %v7528_v2, -inf }
0x4b51   :  { %7537 = vmax.xlane.f32.xlu0 %v7536_v45 }
0x4b5e   :  { %7557 = vrot.lane.b32.xlu1 %v12011_v49, %s10335_s23 }
0x4b62   :  { %7655 = vrot.lane.b32.xlu1 %v11946_v26, %s10336_s24 }
0x4b66   :  { %7705 = vrot.lane.b32.xlu1 %v11986_v30, %s10336_s24 }
0x4b6a   :  { %7653 = vrot.lane.b32.xlu1 %v11996_v24, %s10336_s24 }
0x4bda   :  { %v7535_v16 = vpop.xlane.xlu1 %7534 }
0x4bdb   :  { %v7539_v3 = vsub.f32 %v7478_v56, %v7535_v16 }
0x4bdd   :  { %v7541_v35 = vmul.f32 1.442695, %v7539_v3 }
0x4bde   :  { %v7558_v41 = vpop.permute.xlu1 %7557  ;;  %v7538_v36 = vpop.xlane.xlu0 %7537 }
0x4bdf   :  { %10272 = vpow2.f32 %v7541_v35  ;;  %v7563_v29 = vsel %vm421_vm3, %v7558_v41, 0  ;;  %v7540_v34 = vsub.f32 %v7528_v2, %v7538_v36 }
0x4be0   :  { %9815 = vmatpush3.bf16.msra.mxu0 %v7563_v29 }
0x4be1   :  { %v7543_v18 = vmul.f32 1.442695, %v7540_v34  ;;  %9826 = vmatprep.subr.bf16.mxu0 %v10332_v1 }
0x4be2   :  { %v7656_v58 = vpop.permute.xlu1 %7655 }
0x4be3   :  { %10274 = vpow2.f32 %v7543_v18  ;;  %v7661_v31 = vsel %vm301_vm2, %v7656_v58, 0 }
0x4be9   :  { %v10273_v26 = vpop.eup %10272 }
0x4bea   :  { %v7545_v30 = vsel %vm301_vm2, %v10273_v26, 0.0 }
0x4beb   :  { %7546 = vadd.xlane.f32.xlu0 %v7545_v30 }
0x4bed   :  { %v10275_v17 = vpop.eup %10274 }
0x4bee   :  { %v7548_v24 = vsel %vm301_vm2, %v10275_v17, 0.0 }
0x4bef   :  { %7549 = vadd.xlane.f32.xlu0 %v7548_v24 }
0x4c05   :  { %7605 = vrot.lane.b32.xlu0 %v12013_v48, %s10335_s23 }
0x4c09   :  { %7703 = vrot.lane.b32.xlu0 %v11998_v61, %s10336_s24  ;;  %v7706_v61 = vpop.permute.xlu1 %7705 }
0x4c0a   :  { %v7711_v8 = vsel %vm301_vm2, %v7706_v61, 0 }
0x4c0d   :  { %v7654_v15 = vpop.permute.xlu1 %7653 }
0x4c78   :  { %v7547_v5 = vpop.xlane.xlu0 %7546 }
0x4c79   :  { %10276 = vrcp.f32 %v7547_v5  ;;  %v10050_v5 = vld [vmem:[%s12293_s9 + $0xf0] sm:$0xff]  }
0x4c7c   :  { %v7550_v27 = vpop.xlane.xlu0 %7549 }
0x4c7d   :  { %10278 = vrcp.f32 %v7550_v27  ;;  %v10051_v27 = vld [vmem:[%s12293_s9 + $0xf8] sm:$0xff]  }
0x4c80   :  { %v7606_v47 = vpop.permute.xlu0 %7605 }
0x4c81   :  { %v7611_v37 = vsel %vm421_vm3, %v7606_v47, 0 }
0x4c82   :  { %9821 = vmatpush3.bf16.msra.mxu1 %v7611_v37 }
0x4c83   :  { %v10277_v54 = vpop.eup %10276  ;;  %9832 = vmatprep.subr.bf16.mxu1 %v10332_v1 }
0x4c84   :  { %v7553_v50 = vmul.f32 %v10277_v54, %v10273_v26  ;;  %v7704_v46 = vpop.permute.xlu0 %7703 }
0x4c86   :  { %v7555_v19 = vpack.c.bf16 %v7553_v50, %v7553_v50 }
0x4c87   :  { %v10279_v25 = vpop.eup %10278 }
0x4c88   :  { %v7554_v51 = vmul.f32 %v10279_v25, %v10275_v17  ;;  %9817 = vmatmul.mubr.msk.bf16.vlgmr.msra.gmra.mrb[240].mxu0 %vm301_vm2, %v7555_v19 }
0x4c89   :  { %9827 = vmatpush3.bf16.xpose.msra.mxu0 %v7661_v31  ;;  %9828 = vmatprep.mubr.msk.bf16.mxu0 %vm10333_vm0, %v10332_v1 }
0x4c8a   :  { %v7556_v7 = vpack.c.bf16 %v7554_v51, %v7554_v51  ;;  %9838 = vmatprep.subr.bf16.mxu0 %v10332_v1 }
0x4c8c   :  { %9823 = vmatmul.mubr.msk.bf16.vlgmr.msra.gmra.mrb[236].mxu1 %vm301_vm2, %v7556_v7 }
0x4c8d   :  { %9833 = vmatpush3.bf16.xpose.msra.mxu1 %v7711_v8  ;;  %9834 = vmatprep.mubr.msk.bf16.mxu1 %vm10333_vm0, %v10332_v1 }
0x4c8e   :  { %9844 = vmatprep.subr.bf16.mxu1 %v10332_v1 }
0x4c90   :  { %9829 = vmatmul.mubr.msk.bf16.vlgmr.msra.gmra.mrb[244].mxu0 %vm301_vm2, %v7654_v15 }
0x4c91   :  { %9840 = vmatprep.mubr.msk.bf16.mxu0 %vm10333_vm0, %v10332_v1 }
0x4c94   :  { %9835 = vmatmul.mubr.msk.bf16.vlgmr.msra.gmra.mrb[240].mxu1 %vm301_vm2, %v7704_v46 }
0x4c95   :  { %9846 = vmatprep.mubr.msk.bf16.mxu1 %vm10333_vm0, %v10332_v1 }
0x4d5b   :  { %v7599_v11 = vpop.f32.mrb[240].mxu0 }
0x4d5c   :  { %v9818_v52 = vpop.f32.mrb[241].mxu0 }
0x4d5d   :  { %v7602_v21 = vpop.f32.mrb[242].mxu0 }
0x4d5e   :  { %v9819_v4 = vpop.f32.mrb[243].mxu0 }
0x4d5f   :  { %v7647_v20 = vpop.f32.mrb[236].mxu1 }
0x4d60   :  { %v9976_v10 = vpack.i.bf16 %v7647_v20, %v7599_v11  ;;  %v9824_v23 = vpop.f32.mrb[237].mxu1 }
0x4d61   :  { %v7650_v28 = vpop.f32.mrb[238].mxu1 }
0x4d62   :  { %v9825_v43 = vpop.f32.mrb[239].mxu1 }
0x4d63   :  { %v7697_v9 = vpop.f32.mrb[244].mxu0 }
0x4d64   :  { %v7698_v32 = vadd.f32 %v12024_v38, %v7697_v9  ;;  %v9830_v57 = vpop.f32.mrb[245].mxu0 }
0x4d65   :  { %v7700_v55 = vpop.f32.mrb[246].mxu0 }
0x4d66   :  { %v9831_v56 = vpop.f32.mrb[247].mxu0  ;;  %v7753_v14 = vsel %vm301_vm2, %v7698_v32, -inf }
0x4d67   :  { %7754 = vmax.xlane.f32.xlu1 %v7753_v14  ;;  %v7747_v22 = vpop.f32.mrb[240].mxu1 }
0x4d68   :  { %v7748_v60 = vadd.f32 %v12030_v12, %v7747_v22  ;;  %v9836_v62 = vpop.f32.mrb[241].mxu1 }
0x4d69   :  { %v7750_v42 = vpop.f32.mrb[242].mxu1 }
0x4d6a   :  { %v9837_v2 = vpop.f32.mrb[243].mxu1  ;;  %v7756_v33 = vsel %vm301_vm2, %v7748_v60, -inf }
0x4d6b   :  { %7757 = vmax.xlane.f32.xlu0 %v7756_v33 }
0x4d78   :  { %7777 = vrot.lane.b32.xlu1 %v12011_v49, %s10336_s24 }
0x4d7c   :  { %9972 = vrot.lane.b32.xlu1 %v9971_v40, %s10337_s25 }
0x4d80   :  { %9977 = vrot.lane.b32.xlu1 %v9976_v10, %s10338_s26 }
0x4df4   :  { %v7755_v38 = vpop.xlane.xlu1 %7754 }
0x4df5   :  { %v7759_v63 = vsub.f32 %v7698_v32, %v7755_v38 }
0x4df7   :  { %v7761_v44 = vmul.f32 1.442695, %v7759_v63 }
0x4df8   :  { %v7778_v12 = vpop.permute.xlu1 %7777  ;;  %v7758_v45 = vpop.xlane.xlu0 %7757 }
0x4df9   :  { %10280 = vpow2.f32 %v7761_v44  ;;  %v7783_v16 = vsel %vm421_vm3, %v7778_v12, 0  ;;  %v7760_v3 = vsub.f32 %v7748_v60, %v7758_v45 }
0x4dfa   :  { %9839 = vmatpush3.bf16.msra.mxu0 %v7783_v16 }
0x4dfb   :  { %v7763_v35 = vmul.f32 1.442695, %v7760_v3  ;;  %9850 = vmatprep.subr.bf16.mxu0 %v10332_v1 }
0x4dfc   :  { %v9973_v61 = vpop.permute.xlu1 %9972 }
0x4dfd   :  { %10282 = vpow2.f32 %v7763_v35  ;;  %v9975_v8 = vunpack.i.h.bf16 %v9973_v61  ;;  %v9974_v15 = vunpack.i.l.bf16 %v9973_v61 }
0x4dff   :  { %v7898_v21 = vsel %vm301_vm2, %v12063_v13, %v9975_v8  ;;  %v7897_v4 = vsel %vm301_vm2, %v12061_v0, %v9974_v15  ;;  %v8689_v0 = vld [vmem:[%s12296_s12 + $0x19] ss:$0 sm:$0xff] }
0x4e00   :  { %v9978_v7 = vpop.permute.xlu1 %9977 }
0x4e01   :  { %v9980_v46 = vunpack.i.h.bf16 %v9978_v7  ;;  %v9979_v11 = vunpack.i.l.bf16 %v9978_v7 }
0x4e03   :  { %v10281_v49 = vpop.eup %10280  ;;  %v7900_v23 = vsel %vm1203_vm4, %v7898_v21, %v9980_v46  ;;  %v7899_v28 = vsel %vm1203_vm4, %v7897_v4, %v9979_v11  ;;  %v8715_v21 = vld [vmem:[%s12296_s12 + $0x1c] ss:$0 sm:$0xff] }
0x4e04   :  { %v7765_v6 = vsel %vm301_vm2, %v10281_v49, 0.0 }
0x4e05   :  { %7766 = vadd.xlane.f32.xlu0 %v7765_v6  ;;  %v10054_v6 = vld [vmem:[%s12295_s11 + $0x20] sm:$0xff]  }
0x4e07   :  { %v10283_v39 = vpop.eup %10282 }
0x4e08   :  { %v7768_v40 = vsel %vm301_vm2, %v10283_v39, 0.0 }
0x4e09   :  { %7769 = vadd.xlane.f32.xlu0 %v7768_v40 }
0x4e1f   :  { %7825 = vrot.lane.b32.xlu0 %v12013_v48, %s10336_s24 }
0x4e92   :  { %v7767_v41 = vpop.xlane.xlu0 %7766 }
0x4e93   :  { %10284 = vrcp.f32 %v7767_v41 }
0x4e96   :  { %v7770_v36 = vpop.xlane.xlu0 %7769 }
0x4e97   :  { %10286 = vrcp.f32 %v7770_v36 }
0x4e9a   :  { %v7826_v29 = vpop.permute.xlu0 %7825 }
0x4e9b   :  { %v7831_v34 = vsel %vm421_vm3, %v7826_v29, 0 }
0x4e9c   :  { %9845 = vmatpush3.bf16.msra.mxu1 %v7831_v34 }
0x4e9d   :  { %v10285_v18 = vpop.eup %10284  ;;  %9858 = vmatprep.subr.bf16.mxu1 %v10332_v1 }
0x4e9e   :  { %v7773_v26 = vmul.f32 %v10285_v18, %v10281_v49  ;;  %v10053_v49 = vld [vmem:[%s12294_s10 + $0x18] sm:$0xff]  }
0x4ea0   :  { %v7775_v30 = vpack.c.bf16 %v7773_v26, %v7773_v26 }
0x4ea1   :  { %v10287_v17 = vpop.eup %10286 }
0x4ea2   :  { %v7774_v24 = vmul.f32 %v10287_v17, %v10283_v39  ;;  %9841 = vmatmul.mubr.msk.bf16.vlgmr.msra.gmra.mrb[248].mxu0 %vm301_vm2, %v7775_v30  ;;  %v10055_v39 = vld [vmem:[%s12295_s11 + $0x28] sm:$0xff]   ;;  %v8695_v17 = vld [vmem:[%s12296_s12 + $0x1a] ss:$0 sm:$0xff] }
0x4ea3   :  { %9854 = vmatprep.mubr.msk.bf16.mxu0 %vm10333_vm0, %v10332_v1  ;;  %9851 = vmatpush3.bf16.msra.mxu0 %v10050_v5 }
0x4ea4   :  { %v7776_v48 = vpack.c.bf16 %v7774_v24, %v7774_v24  ;;  %9852 = vmatprep.subr.bf16.mxu0 %v10332_v1 }
0x4ea6   :  { %9847 = vmatmul.mubr.msk.bf16.vlgmr.msra.gmra.mrb[244].mxu1 %vm301_vm2, %v7776_v48 }
0x4ea7   :  { %9862 = vmatprep.mubr.msk.bf16.mxu1 %vm10333_vm0, %v10332_v1  ;;  %9853 = vmatpush3.bf16.msra.mxu0 %v10051_v27  ;;  %v8696_v27 = vld [vmem:[%s12296_s12 + $0x1b] ss:$0 sm:$0xff] }
0x4ea8   :  { %9866 = vmatprep.subr.bf16.mxu0 %v10332_v1 }
0x4f75   :  { %v7819_v47 = vpop.f32.mrb[248].mxu0 }
0x4f76   :  { %v9842_v37 = vpop.f32.mrb[249].mxu0 }
0x4f77   :  { %v7822_v54 = vpop.f32.mrb[250].mxu0 }
0x4f78   :  { %v9843_v58 = vpop.f32.mrb[251].mxu0 }
0x4f79   :  { %v7867_v50 = vpop.f32.mrb[244].mxu1 }
0x4f7a   :  { %v9981_v19 = vpack.i.bf16 %v7867_v50, %v7819_v47  ;;  %v9848_v25 = vpop.f32.mrb[245].mxu1  ;;  %v10056_v50 = vld [vmem:[%s12295_s11 + $0x30] sm:$0xff]  }
0x4f7b   :  { %v7870_v31 = vpop.f32.mrb[246].mxu1  ;;  %v8702_v25 = vld [vmem:[%s12297_s13 + $0x1] ss:$0 sm:$0xff] }
0x4f7c   :  { %9982 = vrot.lane.b32.xlu1 %v9981_v19, %s10339_s19  ;;  %v9849_v51 = vpop.f32.mrb[247].mxu1  ;;  %v10057_v19 = vld [vmem:[%s12295_s11 + $0x38] sm:$0xff]  }
0x4fee   :  { %v9983_v52 = vpop.permute.xlu1 %9982 }
0x4fef   :  { %v9985_v20 = vunpack.i.h.bf16 %v9983_v52  ;;  %v9984_v10 = vunpack.i.l.bf16 %v9983_v52 }
0x4ff1   :  { %v7902_v43 = vsel %vm1206_vm5, %v7900_v23, %v9985_v20  ;;  %v7901_v9 = vsel %vm1206_vm5, %v7899_v28, %v9984_v10 }
0x4ff2   :  { %v7903_v32 = vpack.c.bf16 %v7902_v43, %v7901_v9 }
0x4ff4   :  { %9855 = vmatmul.mubr.msk.bf16.vlgmr.msra.gmra.mrb[252].mxu0 %vm136_vm1, %v7903_v32 }
0x4ff5   :  { %9874 = vmatprep.mubr.msk.bf16.mxu0 %vm10333_vm0, %v10332_v1  ;;  %9867 = vmatpush3.bf16.msra.mxu0 %v10054_v6 }
0x4ff6   :  { %9868 = vmatprep.subr.bf16.mxu0 %v10332_v1 }
0x4ff9   :  { %9869 = vmatpush3.bf16.msra.mxu0 %v10055_v39 }
0x4ffa   :  { %9870 = vmatprep.subr.bf16.mxu0 %v10332_v1 }
0x4ffd   :  { %9871 = vmatpush3.bf16.msra.mxu0 %v10056_v50 }
0x4ffe   :  { %9872 = vmatprep.subr.bf16.mxu0 %v10332_v1 }
0x5001   :  { %9873 = vmatpush3.bf16.msra.mxu0 %v10057_v19 }
0x50c7   :  { %v7957_v13 = vpop.f32.mrb[252].mxu0 }
0x50c8   :  { %v7958_v57 = vadd.f32 %v8689_v0, %v7957_v13  ;;  %v9856_v55 = vpop.f32.mrb[253].mxu0 }
0x50c9   :  { %v7960_v56 = vpop.f32.mrb[254].mxu0 }
0x50ca   :  { %v7964_v14 = vadd.f32 %v7958_v57, %v11967_v53  ;;  %v7961_v22 = vadd.f32 %v8689_v0, %v7960_v56  ;;  %v9857_v60 = vpop.f32.mrb[255].mxu0 }
0x50cc   :  { %v7965_v62 = vadd.f32 %v7961_v22, %v11969_v59  ;;  %v7968_v42 = vsel %vm136_vm1, %v7964_v14, 0.0  ;;  %v10052_v59 = vld [vmem:[%s12294_s10 + $0x10] sm:$0xff]   ;;  %s8318_s10 = sshll.u32 %s10340_s29, 4  ;;  %s8319_s10 = int_to_ptr.vmem [resolvable:$true] %s8318_s10 }
0x50cd   :  { %7969 = vadd.xlane.f32.xlu0 %v7968_v42  ;;  %9859 = vmatpush3.bf16.msra.mxu1 %v10052_v59  ;;  %p10313_p1 = scmp.lt.s32.totalorder %s8319_s10, %s8319_s10 }
0x50ce   :  { %v7971_v2 = vsel %vm136_vm1, %v7965_v62, 0.0  ;;  %9860 = vmatprep.subr.bf16.mxu1 %v10332_v1 }
0x50cf   :  { %7972 = vadd.xlane.f32.xlu1 %v7971_v2 }
0x50d1   :  { %9861 = vmatpush3.bf16.msra.mxu1 %v10053_v49  ;;  %v8724_v49 = vld [vmem:[%s12296_s12 + $0x1e] ss:$0 sm:$0xff] }
0x50d2   :  { %9878 = vmatprep.subr.bf16.mxu1 %v10332_v1 }
0x515a   :  { %v7970_v33 = vpop.xlane.xlu0 %7969 }
0x515b   :  { %v7974_v38 = vmul.f32 0.03125, %v7970_v33 }
0x515c   :  { %v7973_v63 = vpop.xlane.xlu1 %7972 }
0x515d   :  { %v7976_v44 = vsub.f32 %v7964_v14, %v7974_v38  ;;  %v7975_v12 = vmul.f32 0.03125, %v7973_v63 }
0x515f   :  { %v7977_v45 = vsub.f32 %v7965_v62, %v7975_v12  ;;  %v7978_v16 = vmul.f32 %v7976_v44, %v7976_v44 }
0x5161   :  { %v7980_v3 = vsel %vm136_vm1, %v7978_v16, 0.0  ;;  %v7979_v53 = vmul.f32 %v7977_v45, %v7977_v45 }
0x5162   :  { %7981 = vadd.xlane.f32.xlu0 %v7980_v3 }
0x5163   :  { %v7983_v35 = vsel %vm136_vm1, %v7979_v53, 0.0  ;;  %v8723_v53 = vld [vmem:[%s12296_s12 + $0x1d] ss:$0 sm:$0xff] }
0x5166   :  { %7984 = vadd.xlane.f32.xlu0 %v7983_v35 }
0x51ef   :  { %v7982_v40 = vpop.xlane.xlu0 %7981 }
0x51f0   :  { %v7986_v41 = vmul.f32 0.03125, %v7982_v40 }
0x51f2   :  { %v7988_v36 = vadd.f32 1e-05, %v7986_v41 }
0x51f3   :  { %v7985_v29 = vpop.xlane.xlu0 %7984 }
0x51f4   :  { %10288 = vrsqrt.f32 %v7988_v36  ;;  %v7987_v34 = vmul.f32 0.03125, %v7985_v29 }
0x51f6   :  { %v7989_v18 = vadd.f32 1e-05, %v7987_v34 }
0x51f8   :  { %10290 = vrsqrt.f32 %v7989_v18 }
0x51fe   :  { %v10289_v26 = vpop.eup %10288 }
0x51ff   :  { %v7992_v30 = vmul.f32 %v10289_v26, %v7976_v44 }
0x5201   :  { %v7998_v48 = vmul.f32 %v8695_v17, %v7992_v30 }
0x5202   :  { %v10291_v24 = vpop.eup %10290 }
0x5203   :  { %v7993_v5 = vmul.f32 %v10291_v24, %v7977_v45  ;;  %v8004_v37 = vadd.f32 %v8696_v27, %v7998_v48 }
0x5205   :  { %v7999_v47 = vmul.f32 %v8695_v17, %v7993_v5 }
0x5207   :  { %v8005_v54 = vadd.f32 %v8696_v27, %v7999_v47 }
0x5209   :  { %v8006_v58 = vpack.c.bf16 %v8005_v54, %v8004_v37 }
0x520b   :  { %9863 = vmatmul.mubr.msk.bf16.vlgmr.msra.gmra.mrb[248].mxu1 %vm136_vm1, %v8006_v58  ;;  %v10059_v58 = vld [vmem:[%s12299_s15 + $0x8] sm:$0xff]  }
0x520c   :  { %9882 = vmatprep.mubr.msk.bf16.mxu1 %vm10333_vm0, %v10332_v1 }
0x52de   :  { %v8069_v31 = vpop.f32.mrb[248].mxu1 }
0x52df   :  { %v8070_v51 = vadd.f32 %v8702_v25, %v8069_v31  ;;  %v9864_v61 = vpop.f32.mrb[249].mxu1 }
0x52e0   :  { %v8072_v7 = vpop.f32.mrb[250].mxu1 }
0x52e1   :  { %v8073_v8 = vadd.f32 %v8702_v25, %v8072_v7  ;;  %v9865_v15 = vpop.f32.mrb[251].mxu1  ;;  %v8076_v46 = vmax.f32 %v8070_v51, 0.0 }
0x52e3   :  { %v8077_v11 = vmax.f32 %v8073_v8, 0.0  ;;  %v8725_v8 = vld [vmem:[%s12298_s14 + $0x2] ss:$0 sm:$0xff] }
0x52e5   :  { %v8078_v52 = vpack.c.bf16 %v8077_v11, %v8076_v46 }
0x52e7   :  { %9875 = vmatmul.mubr.msk.bf16.vlgmr.msra.gmra.mrb[0].mxu0 %vm1421_vm6, %v8078_v52 }
0x53ba   :  { %v8154_v4 = vpop.f32.mrb[0].mxu0 }
0x53bb   :  { %v8155_v20 = vadd.f32 %v8715_v21, %v8154_v4  ;;  %v9876_v10 = vpop.f32.mrb[1].mxu0 }
0x53bc   :  { %v8157_v23 = vpop.f32.mrb[2].mxu0 }
0x53bd   :  { %v8161_v28 = vadd.f32 %v8155_v20, %v8004_v37  ;;  %v8158_v43 = vadd.f32 %v8715_v21, %v8157_v23  ;;  %v9877_v9 = vpop.f32.mrb[3].mxu0  ;;  %v8727_v23 = vld [vmem:[%s12300_s16] ss:$0 sm:$0xff] }
0x53bf   :  { %v8162_v32 = vadd.f32 %v8158_v43, %v8005_v54  ;;  %v8165_v0 = vsel %vm136_vm1, %v8161_v28, 0.0  ;;  %v10058_v54 = vld [vmem:[%s12299_s15] sm:$0xff]  }
0x53c0   :  { %8166 = vadd.xlane.f32.xlu0 %v8165_v0  ;;  %9879 = vmatpush3.bf16.msra.mxu1 %v10058_v54 }
0x53c1   :  { %v8168_v13 = vsel %vm136_vm1, %v8162_v32, 0.0  ;;  %9880 = vmatprep.subr.bf16.mxu1 %v10332_v1  ;;  %v8726_v1 = vld [vmem:[%s12298_s14 + $0x3] ss:$0 sm:$0xff]  ;;  %s10308_s14 = scalar_lea.vmem %s8319_s10, 256 }
0x53c2   :  { %8169 = vadd.xlane.f32.xlu1 %v8168_v13  ;;  %p10309_p0 = scmp.ne.s32.totalorder %s8319_s10, %s10308_s14  ;;  %p10314_p2 = scmp.lt.s32.totalorder %s10308_s14, %s10308_s14 }
0x53c4   :  { %9881 = vmatpush3.bf16.msra.mxu1 %v10059_v58  ;;  %p10315_p3 = por %p10314_p2, %p10313_p1 }
0x53c6   :  { %p10316_p4 = pnand %p10315_p3, %p10309_p0 }
0x544d   :  { %v8167_v57 = vpop.xlane.xlu0 %8166 }
0x544e   :  { %v8171_v55 = vmul.f32 0.03125, %v8167_v57 }
0x544f   :  { %v8170_v56 = vpop.xlane.xlu1 %8169 }
0x5450   :  { %v8173_v14 = vsub.f32 %v8161_v28, %v8171_v55  ;;  %v8172_v22 = vmul.f32 0.03125, %v8170_v56 }
0x5452   :  { %v8174_v60 = vsub.f32 %v8162_v32, %v8172_v22  ;;  %v8175_v62 = vmul.f32 %v8173_v14, %v8173_v14 }
0x5454   :  { %v8177_v42 = vsel %vm136_vm1, %v8175_v62, 0.0  ;;  %v8176_v2 = vmul.f32 %v8174_v60, %v8174_v60 }
0x5455   :  { %8178 = vadd.xlane.f32.xlu0 %v8177_v42 }
0x5456   :  { %v8180_v33 = vsel %vm136_vm1, %v8176_v2, 0.0 }
0x5457   :  { %8181 = vadd.xlane.f32.xlu1 %v8180_v33 }
0x54e2   :  { %v8179_v38 = vpop.xlane.xlu0 %8178 }
0x54e3   :  { %v8183_v63 = vmul.f32 0.03125, %v8179_v38 }
0x54e4   :  { %v8182_v44 = vpop.xlane.xlu1 %8181 }
0x54e5   :  { %v8185_v12 = vadd.f32 1e-05, %v8183_v63  ;;  %v8184_v45 = vmul.f32 0.03125, %v8182_v44 }
0x54e7   :  { %10292 = vrsqrt.f32 %v8185_v12  ;;  %v8186_v16 = vadd.f32 1e-05, %v8184_v45 }
0x54e9   :  { %10294 = vrsqrt.f32 %v8186_v16 }
0x54f1   :  { %v10293_v3 = vpop.eup %10292 }
0x54f2   :  { %v8189_v35 = vmul.f32 %v10293_v3, %v8173_v14 }
0x54f3   :  { %v10295_v59 = vpop.eup %10294 }
0x54f4   :  { %v8195_v6 = vmul.f32 %v8723_v53, %v8189_v35  ;;  %v8190_v39 = vmul.f32 %v10295_v59, %v8174_v60 }
0x54f6   :  { %v8201_v40 = vadd.f32 %v8724_v49, %v8195_v6  ;;  %v8196_v41 = vmul.f32 %v8723_v53, %v8190_v39 }
0x54f8   :  { %v8205_v36 = vsel %vm136_vm1, %v8201_v40, 0.0  ;;  %v8202_v29 = vadd.f32 %v8724_v49, %v8196_v41 }
0x54f9   :  { %8206 = vadd.xlane.f32.xlu0 %v8205_v36 }
0x54fa   :  { %v8208_v34 = vsel %vm136_vm1, %v8202_v29, 0.0 }
0x54fb   :  { %8209 = vadd.xlane.f32.xlu1 %v8208_v34 }
0x5586   :  { %v8207_v18 = vpop.xlane.xlu0 %8206 }
0x5587   :  { %v8211_v26 = vmul.f32 0.03125, %v8207_v18 }
0x5588   :  { %v8210_v30 = vpop.xlane.xlu1 %8209 }
0x5589   :  { %v8213_v17 = vsub.f32 %v8201_v40, %v8211_v26  ;;  %v8212_v24 = vmul.f32 0.03125, %v8210_v30 }
0x558b   :  { %v8214_v48 = vsub.f32 %v8202_v29, %v8212_v24  ;;  %v8215_v5 = vmul.f32 %v8213_v17, %v8213_v17 }
0x558d   :  { %v8217_v27 = vsel %vm136_vm1, %v8215_v5, 0.0  ;;  %v8216_v47 = vmul.f32 %v8214_v48, %v8214_v48 }
0x558e   :  { %8218 = vadd.xlane.f32.xlu0 %v8217_v27 }
0x558f   :  { %v8220_v37 = vsel %vm136_vm1, %v8216_v47, 0.0 }
0x5590   :  { %8221 = vadd.xlane.f32.xlu1 %v8220_v37 }
0x561b   :  { %v8219_v50 = vpop.xlane.xlu0 %8218 }
0x561c   :  { %v8223_v19 = vmul.f32 0.03125, %v8219_v50 }
0x561d   :  { %v8222_v25 = vpop.xlane.xlu1 %8221 }
0x561e   :  { %v8225_v31 = vadd.f32 1e-05, %v8223_v19  ;;  %v8224_v51 = vmul.f32 0.03125, %v8222_v25 }
0x5620   :  { %10296 = vrsqrt.f32 %v8225_v31  ;;  %v8226_v61 = vadd.f32 1e-05, %v8224_v51 }
0x5622   :  { %10298 = vrsqrt.f32 %v8226_v61 }
0x562a   :  { %v10297_v7 = vpop.eup %10296 }
0x562b   :  { %v8229_v15 = vmul.f32 %v10297_v7, %v8213_v17 }
0x562c   :  { %v10299_v46 = vpop.eup %10298 }
0x562d   :  { %v8235_v11 = vmul.f32 %v8725_v8, %v8229_v15  ;;  %v8230_v52 = vmul.f32 %v10299_v46, %v8214_v48 }
0x562f   :  { %v8236_v21 = vmul.f32 %v8725_v8, %v8230_v52  ;;  %v8241_v4 = vadd.f32 %v8726_v1, %v8235_v11 }
0x5631   :  { %v8242_v20 = vadd.f32 %v8726_v1, %v8236_v21 }
0x5633   :  { %v8243_v10 = vpack.c.bf16 %v8242_v20, %v8241_v4 }
0x5635   :  { %9883 = vmatmul.mubr.msk.bf16.vlgmr.msra.gmra.mrb[252].mxu1 %vm136_vm1, %v8243_v10 }
0x5708   :  { %v8304_v28 = vpop.f32.mrb[252].mxu1 }
0x5709   :  { %v8305_v43 = vadd.f32 %v8727_v23, %v8304_v28  ;;  %v9884_v9 = vpop.f32.mrb[253].mxu1 }
0x570a   :  { %v8307_v32 = vpop.f32.mrb[254].mxu1 }
0x570b   :  { %8311 = vst [vmem:[#allocation2] sm:$0xff] %v8305_v43  ;;  %v8308_v0 = vadd.f32 %v8727_v23, %v8307_v32  ;;  %v9885_v13 = vpop.f32.mrb[255].mxu1 }
0x570d   :  { %8312 = vst [vmem:[#allocation2 + $0x8] sm:$0xff] %v8308_v0 }
0x570e   :  { %10319 = shalt.err (!%p10316_p4)
}
0x570f   :  { %s10320_s1 = scalar_lea.hbm %s12301_s17, 256 }
0x5710   :  { %p10321_p5 = scmp.ne.s32.totalorder %s12301_s17, %s10320_s1  ;;  %p10324_p6 = scmp.lt.u32.totalorder %s10320_s1, %s12301_s17 }
0x5712   :  { %p10326_p7 = pnand %p10324_p6, %p10321_p5 }
0x5714   :  { %10329 = shalt.err (!%p10326_p7)
}
0x5715   :  { %s10341_s21 = smov 128  }
0x5716   :  { %8324 = dma.vmem_to_hbm [thread:$0]  %s8319_s10, 256, %s12301_s17, [#allocation3], %s10341_s21, %s10341_s21, %s10337_s25  }
0x5717   :  { %10330 = dma.done.wait [#allocation3], 256  }
0x5718   :  { %10331 = vsyncadd [#allocation3], 4294967040 }
0x5719   :  { %8328 = vsyncpa [#allocation3], 1 }

</bundles_post_ra>
